<compile_context>
chip_gen: v7x
topology: tpu7x:2x2x1
jax: 0.10.0
libtpu: 0.0.40
codegen_flags: <defaults>
</compile_context>

<pallas_src>
import functools

import numpy as np

import jax
import jax.numpy as jnp
from jax.experimental import pallas as pl
from jax.experimental.pallas import tpu as pltpu


# ----------------------------------------------------------------------------
# Geometry helpers (host / trace time)
# ----------------------------------------------------------------------------

def _round8(n):
    return ((n + 7) // 8) * 8


def _rup128(c):
    return ((c + 127) // 128) * 128


def _slab_rows(H, W):
    """Padded-flat slab height: (H+2)*(W+2) + 2 extra rows so every one of the
    nine tap slices of length H*(W+2) stays in bounds, rounded to sublanes."""
    return _round8((H + 2) * (W + 2) + 2)


def _interior_mask(N, H, W):
    """(N*R, 1) f32: 1.0 on real pixel rows of the padded-flat slab, else 0."""
    Wp = W + 2
    R = _slab_rows(H, W)
    m = np.zeros((R, 1), np.float32)
    for h in range(H):
        m[(h + 1) * Wp + 1:(h + 1) * Wp + 1 + W, 0] = 1.0
    return jnp.asarray(np.tile(m, (N, 1)))


def _wide_mask(N, H, W):
    """(N*L, 1) f32: 1.0 on valid rows of the 'wide' conv-output layout."""
    Wp = W + 2
    m = np.zeros((H * Wp, 1), np.float32)
    for h in range(H):
        m[h * Wp:h * Wp + W, 0] = 1.0
    return jnp.asarray(np.tile(m, (N, 1)))


def _pool_matrix(H, W):
    """(R_out, H*(W+2)) bf16: 2x2 avg-pool of the wide layout + placement of the
    pooled pixels directly into the next block's padded-flat slab."""
    Wp = W + 2
    Ho, Wo = H // 2, W // 2
    Wop = Wo + 2
    R_out = _slab_rows(Ho, Wo)
    P = np.zeros((R_out, H * Wp), np.float32)
    for ho in range(Ho):
        for wo in range(Wo):
            r = (ho + 1) * Wop + (wo + 1)
            for dh in (0, 1):
                for dw in (0, 1):
                    P[r, (2 * ho + dh) * Wp + (2 * wo + dw)] = 0.25
    return jnp.asarray(P, dtype=jnp.bfloat16)


# ----------------------------------------------------------------------------
# Fused ResBlockDown Pallas kernel
# ----------------------------------------------------------------------------

def _resblock_kernel(x_ref, g1_ref, bt1_ref, w1_ref, b1_ref, g2_ref, bt2_ref,
                     w2_ref, b2_ref, ws_ref, bs_ref, min_ref, mw_ref, pool_ref,
                     out_ref, *, N, H, W, apply_bn1, eps=1e-5):
    Wp = W + 2
    L = H * Wp                              # wide-layout rows per image
    R = x_ref.shape[0] // N                 # padded slab rows per image
    Cout = out_ref.shape[1]
    inv_cnt = 1.0 / float(N * H * W)

    def vcat(parts, axis=0):
        return parts[0] if len(parts) == 1 else jnp.concatenate(parts, axis=axis)

    def im2col(slabs):
        """per-image padded slabs (>= (H+2)*Wp+2 rows) -> (N*L, 9*C) bf16."""
        rows = []
        for s in slabs:
            taps = []
            for t in range(9):
                off = (t // 3) * Wp + (t % 3)
                taps.append(s[off:off + L, :])
            rows.append(jnp.concatenate(taps, axis=1))
        return vcat(rows)

    x = x_ref[...]                          # (N*R, Cin) f32, zero borders
    m_in = min_ref[...]                     # (N*R, 1)
    m_w = mw_ref[...]                       # (N*L, 1)

    # ---- BN1 (training-mode batch stats, two-pass variance) -> ReLU --------
    if apply_bn1:
        mean1 = jnp.sum(x, axis=0, keepdims=True) * inv_cnt     # borders are 0
        d1 = (x - mean1) * m_in
        var1 = jnp.sum(d1 * d1, axis=0, keepdims=True) * inv_cnt
        sc1 = g1_ref[...] * jax.lax.rsqrt(var1 + eps)
        sh1 = bt1_ref[...] - mean1 * sc1
        a = jnp.maximum(x * sc1 + sh1, 0.0) * m_in              # re-zero borders
    else:
        a = x
    ab = a.astype(jnp.bfloat16)             # single hoisted f32->bf16 cast

    # ---- conv1: one (N*L, 9*Cin) @ (9*Cin, Cout) MXU matmul ----------------
    im1 = im2col([ab[n * R:(n + 1) * R, :] for n in range(N)])
    h1 = jnp.dot(im1, w1_ref[...], preferred_element_type=jnp.float32)
    h1 = (h1 + b1_ref[...]) * m_w           # zero the wrap-around garbage cols

    # ---- BN2 -> ReLU --------------------------------------------------------
    mean2 = jnp.sum(h1, axis=0, keepdims=True) * inv_cnt
    d2 = (h1 - mean2) * m_w
    var2 = jnp.sum(d2 * d2, axis=0, keepdims=True) * inv_cnt
    sc2 = g2_ref[...] * jax.lax.rsqrt(var2 + eps)
    sh2 = bt2_ref[...] - mean2 * sc2
    a2 = (jnp.maximum(h1 * sc2 + sh2, 0.0) * m_w).astype(jnp.bfloat16)

    # ---- conv2: re-pad in registers (zeros ++ wide rows ++ zeros) ----------
    zpad = jnp.zeros((Wp + 1, Cout), jnp.bfloat16)
    exts = [jnp.concatenate([zpad, a2[n * L:(n + 1) * L, :], zpad], axis=0)
            for n in range(N)]
    im2 = im2col(exts)                      # (N*L, 9*Cout)
    h2 = jnp.dot(im2, w2_ref[...], preferred_element_type=jnp.float32) + b2_ref[...]

    # ---- skip: 1x1 conv on the raw block input (center-tap rows) -----------
    xs = vcat([x[n * R + Wp + 1:n * R + Wp + 1 + L, :] for n in range(N)])
    skip = jnp.dot(xs.astype(jnp.bfloat16), ws_ref[...],
                   preferred_element_type=jnp.float32) + bs_ref[...]

    # ---- fused 2x2 avg-pool + placement into next block's padded slab ------
    res = (h2 + skip).astype(jnp.bfloat16)  # (N*L, Cout)
    P = pool_ref[...]                       # (R_out, L) bf16 (0 / 0.25 exact)
    pooled = [jnp.dot(P, res[n * L:(n + 1) * L, :],
                      preferred_element_type=jnp.float32) for n in range(N)]
    out_ref[...] = vcat(pooled)             # single aligned full-tile store


def resblock_down(slab, q, *, N, H, W):
    """One fused ResBlockDown pallas_call.  slab: (N*R, Cin_p) canonical layout."""
    Cout = q["w1k"].shape[1]
    R = _slab_rows(H, W)
    Ho, Wo = H // 2, W // 2
    R_out = _slab_rows(Ho, Wo)

    mask_in = _interior_mask(N, H, W)
    mask_w = _wide_mask(N, H, W)
    pool = _pool_matrix(H, W)

    inputs = (slab, q["bn1_g"], q["bn1_b"], q["w1k"], q["b1"],
              q["bn2_g"], q["bn2_b"], q["w2k"], q["b2"],
              q["wsk"], q["bs"], mask_in, mask_w, pool)
    in_specs = [pl.BlockSpec(a.shape, lambda i: (0, 0)) for a in inputs]

    kern = functools.partial(_resblock_kernel, N=N, H=H, W=W,
                             apply_bn1=not q["is_first"])
    return pl.pallas_call(
        kern,
        out_shape=jax.ShapeDtypeStruct((N * R_out, Cout), jnp.float32),
        grid_spec=pltpu.PrefetchScalarGridSpec(
            num_scalar_prefetch=0,
            grid=(1,),
            in_specs=in_specs,
            out_specs=pl.BlockSpec((N * R_out, Cout), lambda i: (0, 0)),
        ),
        # Whole footprint is a few MiB -> default scoped-VMEM limit is ample on
        # v5e/v6e (128 MiB) and v7x (64 MiB).
        compiler_params=pltpu.CompilerParams(
            dimension_semantics=("arbitrary",)),
    )(*inputs)


# ----------------------------------------------------------------------------
# Parameters (true PyTorch shapes -> padded / bf16 kernel shapes)
# ----------------------------------------------------------------------------

def init_params(key, image_feat_dim=512):
    """Deterministic synthetic parameters at the module's true shapes (HWIO)."""
    blocks = [(3, 64, True), (64, 128, False), (128, image_feat_dim, False)]
    params = []
    for (cin, cout, is_first) in blocks:
        key, *ks = jax.random.split(key, 11)
        p = dict(
            is_first=is_first,
            w1=0.05 * jax.random.normal(ks[0], (3, 3, cin, cout), jnp.float32),
            b1=0.05 * jax.random.normal(ks[1], (cout,), jnp.float32),
            w2=0.05 * jax.random.normal(ks[2], (3, 3, cout, cout), jnp.float32),
            b2=0.05 * jax.random.normal(ks[3], (cout,), jnp.float32),
            ws=0.05 * jax.random.normal(ks[4], (cin, cout), jnp.float32),
            bs=0.05 * jax.random.normal(ks[5], (cout,), jnp.float32),
            bn2_g=1.0 + 0.1 * jax.random.normal(ks[6], (cout,), jnp.float32),
            bn2_b=0.1 * jax.random.normal(ks[7], (cout,), jnp.float32),
        )
        if not is_first:
            p["bn1_g"] = 1.0 + 0.1 * jax.random.normal(ks[8], (cin,), jnp.float32)
            p["bn1_b"] = 0.1 * jax.random.normal(ks[9], (cin,), jnp.float32)
        params.append(p)
    return params


def prepare_params(params):
    """Pad channels to multiples of 128 (lane-dense), pack 3x3 weights tap-major
    as (9*Cin_p, Cout_p) bf16.  Padded channels stay exactly zero end-to-end."""
    prepared = []
    cin_p = 128                              # RGB input padded 3 -> 128 lanes
    for p in params:
        cin_t, cout_t = p["w1"].shape[2], p["w1"].shape[3]
        cout_p = _rup128(cout_t)

        def pack3x3(w, cip, cop):
            ci, co = w.shape[2], w.shape[3]
            w9 = w.reshape(9, ci, co)
            w9 = jnp.pad(w9, ((0, 0), (0, cip - ci), (0, cop - co)))
            return w9.reshape(9 * cip, cop).astype(jnp.bfloat16)

        def padvec(v, cp, fill=0.0):
            return jnp.pad(v, (0, cp - v.shape[0]),
                           constant_values=fill).reshape(1, cp)

        q = dict(
            is_first=p["is_first"],
            w1k=pack3x3(p["w1"], cin_p, cout_p),
            b1=padvec(p["b1"], cout_p),
            w2k=pack3x3(p["w2"], cout_p, cout_p),
            b2=padvec(p["b2"], cout_p),
            wsk=jnp.pad(p["ws"], ((0, cin_p - cin_t),
                                  (0, cout_p - cout_t))).astype(jnp.bfloat16),
            bs=padvec(p["bs"], cout_p),
            bn2_g=padvec(p["bn2_g"], cout_p, 1.0),
            bn2_b=padvec(p["bn2_b"], cout_p, 0.0),
        )
        if p["is_first"]:
            q["bn1_g"] = jnp.ones((1, cin_p), jnp.float32)   # unused (no BN1)
            q["bn1_b"] = jnp.zeros((1, cin_p), jnp.float32)
        else:
            q["bn1_g"] = padvec(p["bn1_g"], cin_p, 1.0)
            q["bn1_b"] = padvec(p["bn1_b"], cin_p, 0.0)
        prepared.append(q)
        cin_p = cout_p
    return prepared


# ----------------------------------------------------------------------------
# Forward pass (wrapper)
# ----------------------------------------------------------------------------

def _to_slab(x_nhwc, c_pad):
    N, H, W, C = x_nhwc.shape
    Hp, Wp = H + 2, W + 2
    R = _slab_rows(H, W)
    xp = jnp.pad(x_nhwc, ((0, 0), (1, 1), (1, 1), (0, c_pad - C)))
    flat = xp.reshape(N, Hp * Wp, c_pad)
    flat = jnp.pad(flat, ((0, 0), (0, R - Hp * Wp), (0, 0)))
    return flat.reshape(N * R, c_pad)


def _from_slab(slab, N, H, W, c_true):
    Hp, Wp = H + 2, W + 2
    R = _slab_rows(H, W)
    y = slab.reshape(N, R, -1)[:, :Hp * Wp, :].reshape(N, Hp, Wp, -1)
    return y[:, 1:1 + H, 1:1 + W, :c_true]


def image_encoder_forward(x_nchw, prepared, image_feat_dim=512):
    """Input NCHW (PyTorch convention); returns NCHW feature map."""
    x = jnp.transpose(x_nchw, (0, 2, 3, 1)).astype(jnp.float32)   # -> NHWC
    N, H, W, _ = x.shape
    slab = _to_slab(x, 128)
    for q in prepared:
        slab = resblock_down(slab, q, N=N, H=H, W=W)
        H, W = H // 2, W // 2
    y = _from_slab(slab, N, H, W, image_feat_dim)
    return jnp.transpose(y, (0, 3, 1, 2))                         # -> NCHW


# ----------------------------------------------------------------------------
# Pure-JAX f32 reference (same assumed ResBlockDown semantics)
# ----------------------------------------------------------------------------

def _conv3x3_ref(x, w):
    return jax.lax.conv_general_dilated(
        x, w, window_strides=(1, 1), padding="SAME",
        dimension_numbers=("NHWC", "HWIO", "NHWC"),
        precision=jax.lax.Precision.HIGHEST)


def _bn_ref(h, gamma, beta, eps=1e-5):
    mean = jnp.mean(h, axis=(0, 1, 2))
    var = jnp.mean(jnp.square(h - mean), axis=(0, 1, 2))
    return (h - mean) * jax.lax.rsqrt(var + eps) * gamma + beta


def _resblock_ref(x, p):
    h = x
    if not p["is_first"]:
        h = jax.nn.relu(_bn_ref(h, p["bn1_g"], p["bn1_b"]))
    h = _conv3x3_ref(h, p["w1"]) + p["b1"]
    h = jax.nn.relu(_bn_ref(h, p["bn2_g"], p["bn2_b"]))
    h = _conv3x3_ref(h, p["w2"]) + p["b2"]
    s = jnp.einsum("nhwc,cd->nhwd", x, p["ws"],
                   precision=jax.lax.Precision.HIGHEST) + p["bs"]
    y = h + s
    n, hh, ww, c = y.shape
    return y.reshape(n, hh // 2, 2, ww // 2, 2, c).mean(axis=(2, 4))


def image_encoder_reference(x_nchw, params, image_feat_dim=512):
    x = jnp.transpose(x_nchw, (0, 2, 3, 1)).astype(jnp.float32)
    for p in params:
        x = _resblock_ref(x, p)
    return jnp.transpose(x, (0, 3, 1, 2))


# ----------------------------------------------------------------------------
# Main
# ----------------------------------------------------------------------------

if __name__ == "__main__":
    key = jax.random.PRNGKey(0)
    k_x, k_p = jax.random.split(key)

    # Small but consistent with the module: batch=2, RGB, 16x16 images.
    x = jax.random.normal(k_x, (2, 3, 16, 16), jnp.float32)
    params = init_params(k_p, image_feat_dim=512)
    prepared = prepare_params(params)

    out = image_encoder_forward(x, prepared, image_feat_dim=512)
    out = jax.block_until_ready(out)

    assert out.shape == (2, 512, 2, 2), out.shape      # 16 -> 8 -> 4 -> 2 spatial
    assert bool(jnp.all(jnp.isfinite(out)))

    # Explicit tolerance vs a full-precision reference (bf16 MXU rounding only).
    ref = jax.block_until_ready(image_encoder_reference(x, params, 512))
    err = float(jnp.linalg.norm(out - ref) / (jnp.linalg.norm(ref) + 1e-12))
    assert err < 8e-2, f"relative Frobenius error too large: {err}"

    print("KERNEL_OK")
</pallas_src>

<mosaic_0001>
module attributes {stable_mosaic.version = 11 : i64} {
  func.func @_resblock_kernel(%arg0: i32, %arg1: memref<656x128xf32, #tpu.memory_space<vmem>>, %arg2: memref<1x128xf32, #tpu.memory_space<vmem>>, %arg3: memref<1x128xf32, #tpu.memory_space<vmem>>, %arg4: memref<1152x128xbf16, #tpu.memory_space<vmem>>, %arg5: memref<1x128xf32, #tpu.memory_space<vmem>>, %arg6: memref<1x128xf32, #tpu.memory_space<vmem>>, %arg7: memref<1x128xf32, #tpu.memory_space<vmem>>, %arg8: memref<1152x128xbf16, #tpu.memory_space<vmem>>, %arg9: memref<1x128xf32, #tpu.memory_space<vmem>>, %arg10: memref<128x128xbf16, #tpu.memory_space<vmem>>, %arg11: memref<1x128xf32, #tpu.memory_space<vmem>>, %arg12: memref<656x1xf32, #tpu.memory_space<vmem>>, %arg13: memref<576x1xf32, #tpu.memory_space<vmem>>, %arg14: memref<104x288xbf16, #tpu.memory_space<vmem>>, %arg15: memref<208x128xf32, #tpu.memory_space<vmem>>) attributes {dimension_semantics = [#tpu.dimension_semantics<arbitrary>], iteration_bounds = array<i64: 1>, scalar_prefetch = 0 : i64, scratch_operands = 0 : i64, tpu.core_type = #tpu.core_type<tc>, window_params = [{pipeline_mode = #tpu.pipeline_mode<synchronous>, transform_indices = @transform_0, window_bounds = array<i64: 656, 128>}, {pipeline_mode = #tpu.pipeline_mode<synchronous>, transform_indices = @transform_1, window_bounds = array<i64: 1, 128>}, {pipeline_mode = #tpu.pipeline_mode<synchronous>, transform_indices = @transform_2, window_bounds = array<i64: 1, 128>}, {pipeline_mode = #tpu.pipeline_mode<synchronous>, transform_indices = @transform_3, window_bounds = array<i64: 1152, 128>}, {pipeline_mode = #tpu.pipeline_mode<synchronous>, transform_indices = @transform_4, window_bounds = array<i64: 1, 128>}, {pipeline_mode = #tpu.pipeline_mode<synchronous>, transform_indices = @transform_5, window_bounds = array<i64: 1, 128>}, {pipeline_mode = #tpu.pipeline_mode<synchronous>, transform_indices = @transform_6, window_bounds = array<i64: 1, 128>}, {pipeline_mode = #tpu.pipeline_mode<synchronous>, transform_indices = @transform_7, window_bounds = array<i64: 1152, 128>}, {pipeline_mode = #tpu.pipeline_mode<synchronous>, transform_indices = @transform_8, window_bounds = array<i64: 1, 128>}, {pipeline_mode = #tpu.pipeline_mode<synchronous>, transform_indices = @transform_9, window_bounds = array<i64: 128, 128>}, {pipeline_mode = #tpu.pipeline_mode<synchronous>, transform_indices = @transform_10, window_bounds = array<i64: 1, 128>}, {pipeline_mode = #tpu.pipeline_mode<synchronous>, transform_indices = @transform_11, window_bounds = array<i64: 656, 1>}, {pipeline_mode = #tpu.pipeline_mode<synchronous>, transform_indices = @transform_12, window_bounds = array<i64: 576, 1>}, {pipeline_mode = #tpu.pipeline_mode<synchronous>, transform_indices = @transform_13, window_bounds = array<i64: 104, 288>}, {pipeline_mode = #tpu.pipeline_mode<synchronous>, transform_indices = @transform_14, window_bounds = array<i64: 208, 128>}]} {
    %c0 = arith.constant 0 : index
    %c0_0 = arith.constant 0 : index
    %0 = vector.load %arg1[%c0, %c0_0] : memref<656x128xf32, #tpu.memory_space<vmem>>, vector<656x128xf32>
    %c0_1 = arith.constant 0 : index
    %c0_2 = arith.constant 0 : index
    %1 = vector.load %arg13[%c0_1, %c0_2] : memref<576x1xf32, #tpu.memory_space<vmem>>, vector<576x1xf32>
    %2 = arith.truncf %0 : vector<656x128xf32> to vector<656x128xbf16>
    %3 = vector.extract_strided_slice %2 {offsets = [0, 0], sizes = [328, 128], strides = [1, 1]} : vector<656x128xbf16> to vector<328x128xbf16>
    %4 = vector.extract_strided_slice %2 {offsets = [328, 0], sizes = [328, 128], strides = [1, 1]} : vector<656x128xbf16> to vector<328x128xbf16>
    %5 = vector.extract_strided_slice %3 {offsets = [0, 0], sizes = [288, 128], strides = [1, 1]} : vector<328x128xbf16> to vector<288x128xbf16>
    %6 = vector.extract_strided_slice %3 {offsets = [1, 0], sizes = [288, 128], strides = [1, 1]} : vector<328x128xbf16> to vector<288x128xbf16>
    %7 = vector.extract_strided_slice %3 {offsets = [2, 0], sizes = [288, 128], strides = [1, 1]} : vector<328x128xbf16> to vector<288x128xbf16>
    %8 = vector.extract_strided_slice %3 {offsets = [18, 0], sizes = [288, 128], strides = [1, 1]} : vector<328x128xbf16> to vector<288x128xbf16>
    %9 = vector.extract_strided_slice %3 {offsets = [19, 0], sizes = [288, 128], strides = [1, 1]} : vector<328x128xbf16> to vector<288x128xbf16>
    %10 = vector.extract_strided_slice %3 {offsets = [20, 0], sizes = [288, 128], strides = [1, 1]} : vector<328x128xbf16> to vector<288x128xbf16>
    %11 = vector.extract_strided_slice %3 {offsets = [36, 0], sizes = [288, 128], strides = [1, 1]} : vector<328x128xbf16> to vector<288x128xbf16>
    %12 = vector.extract_strided_slice %3 {offsets = [37, 0], sizes = [288, 128], strides = [1, 1]} : vector<328x128xbf16> to vector<288x128xbf16>
    %13 = vector.extract_strided_slice %3 {offsets = [38, 0], sizes = [288, 128], strides = [1, 1]} : vector<328x128xbf16> to vector<288x128xbf16>
    %14 = tpu.concatenate %5, %6, %7, %8, %9, %10, %11, %12, %13 in 1 : vector<288x128xbf16>, vector<288x128xbf16>, vector<288x128xbf16>, vector<288x128xbf16>, vector<288x128xbf16>, vector<288x128xbf16>, vector<288x128xbf16>, vector<288x128xbf16>, vector<288x128xbf16> -> vector<288x1152xbf16>
    %15 = vector.extract_strided_slice %4 {offsets = [0, 0], sizes = [288, 128], strides = [1, 1]} : vector<328x128xbf16> to vector<288x128xbf16>
    %16 = vector.extract_strided_slice %4 {offsets = [1, 0], sizes = [288, 128], strides = [1, 1]} : vector<328x128xbf16> to vector<288x128xbf16>
    %17 = vector.extract_strided_slice %4 {offsets = [2, 0], sizes = [288, 128], strides = [1, 1]} : vector<328x128xbf16> to vector<288x128xbf16>
    %18 = vector.extract_strided_slice %4 {offsets = [18, 0], sizes = [288, 128], strides = [1, 1]} : vector<328x128xbf16> to vector<288x128xbf16>
    %19 = vector.extract_strided_slice %4 {offsets = [19, 0], sizes = [288, 128], strides = [1, 1]} : vector<328x128xbf16> to vector<288x128xbf16>
    %20 = vector.extract_strided_slice %4 {offsets = [20, 0], sizes = [288, 128], strides = [1, 1]} : vector<328x128xbf16> to vector<288x128xbf16>
    %21 = vector.extract_strided_slice %4 {offsets = [36, 0], sizes = [288, 128], strides = [1, 1]} : vector<328x128xbf16> to vector<288x128xbf16>
    %22 = vector.extract_strided_slice %4 {offsets = [37, 0], sizes = [288, 128], strides = [1, 1]} : vector<328x128xbf16> to vector<288x128xbf16>
    %23 = vector.extract_strided_slice %4 {offsets = [38, 0], sizes = [288, 128], strides = [1, 1]} : vector<328x128xbf16> to vector<288x128xbf16>
    %24 = tpu.concatenate %15, %16, %17, %18, %19, %20, %21, %22, %23 in 1 : vector<288x128xbf16>, vector<288x128xbf16>, vector<288x128xbf16>, vector<288x128xbf16>, vector<288x128xbf16>, vector<288x128xbf16>, vector<288x128xbf16>, vector<288x128xbf16>, vector<288x128xbf16> -> vector<288x1152xbf16>
    %25 = tpu.concatenate %14, %24 in 0 : vector<288x1152xbf16>, vector<288x1152xbf16> -> vector<576x1152xbf16>
    %c0_3 = arith.constant 0 : index
    %c0_4 = arith.constant 0 : index
    %26 = vector.load %arg4[%c0_3, %c0_4] : memref<1152x128xbf16, #tpu.memory_space<vmem>>, vector<1152x128xbf16>
    %cst = arith.constant dense<0.000000e+00> : vector<576x128xf32>
    %27 = tpu.matmul %25, %26, %cst {dimension_numbers = #tpu.dot_dimension_numbers<[1], [0], [0], [1], [0, 0, 1, 1], [], []>} : vector<576x1152xbf16>, vector<1152x128xbf16>, vector<576x128xf32> -> vector<576x128xf32>
    %c0_5 = arith.constant 0 : index
    %c0_6 = arith.constant 0 : index
    %28 = vector.load %arg5[%c0_5, %c0_6] : memref<1x128xf32, #tpu.memory_space<vmem>>, vector<1x128xf32>
    %29 = vector.broadcast %28 : vector<1x128xf32> to vector<576x128xf32>
    %30 = arith.addf %27, %29 : vector<576x128xf32>
    %31 = vector.broadcast %1 : vector<576x1xf32> to vector<576x128xf32>
    %32 = arith.mulf %30, %31 : vector<576x128xf32>
    %cst_7 = arith.constant dense<0.000000e+00> : vector<128xf32>
    %33 = vector.multi_reduction <add>, %32, %cst_7 [0] : vector<576x128xf32> to vector<128xf32>
    %34 = vector.shape_cast %33 : vector<128xf32> to vector<1x128xf32>
    %cst_8 = arith.constant 0.001953125 : f32
    %35 = vector.broadcast %cst_8 : f32 to vector<1x128xf32>
    %36 = arith.mulf %34, %35 : vector<1x128xf32>
    %37 = vector.broadcast %36 : vector<1x128xf32> to vector<576x128xf32>
    %38 = arith.subf %32, %37 : vector<576x128xf32>
    %39 = vector.broadcast %1 : vector<576x1xf32> to vector<576x128xf32>
    %40 = arith.mulf %38, %39 : vector<576x128xf32>
    %41 = arith.mulf %40, %40 : vector<576x128xf32>
    %cst_9 = arith.constant dense<0.000000e+00> : vector<128xf32>
    %42 = vector.multi_reduction <add>, %41, %cst_9 [0] : vector<576x128xf32> to vector<128xf32>
    %43 = vector.shape_cast %42 : vector<128xf32> to vector<1x128xf32>
    %cst_10 = arith.constant 0.001953125 : f32
    %44 = vector.broadcast %cst_10 : f32 to vector<1x128xf32>
    %45 = arith.mulf %43, %44 : vector<1x128xf32>
    %c0_11 = arith.constant 0 : index
    %c0_12 = arith.constant 0 : index
    %46 = vector.load %arg6[%c0_11, %c0_12] : memref<1x128xf32, #tpu.memory_space<vmem>>, vector<1x128xf32>
    %cst_13 = arith.constant 9.99999974E-6 : f32
    %47 = vector.broadcast %cst_13 : f32 to vector<1x128xf32>
    %48 = arith.addf %45, %47 : vector<1x128xf32>
    %49 = math.rsqrt %48 : vector<1x128xf32>
    %50 = arith.mulf %46, %49 : vector<1x128xf32>
    %c0_14 = arith.constant 0 : index
    %c0_15 = arith.constant 0 : index
    %51 = vector.load %arg7[%c0_14, %c0_15] : memref<1x128xf32, #tpu.memory_space<vmem>>, vector<1x128xf32>
    %52 = arith.mulf %36, %50 : vector<1x128xf32>
    %53 = arith.subf %51, %52 : vector<1x128xf32>
    %54 = vector.broadcast %50 : vector<1x128xf32> to vector<576x128xf32>
    %55 = arith.mulf %32, %54 : vector<576x128xf32>
    %56 = vector.broadcast %53 : vector<1x128xf32> to vector<576x128xf32>
    %57 = arith.addf %55, %56 : vector<576x128xf32>
    %cst_16 = arith.constant 0.000000e+00 : f32
    %58 = vector.broadcast %cst_16 : f32 to vector<576x128xf32>
    %59 = arith.maximumf %57, %58 : vector<576x128xf32>
    %60 = vector.broadcast %1 : vector<576x1xf32> to vector<576x128xf32>
    %61 = arith.mulf %59, %60 : vector<576x128xf32>
    %62 = arith.truncf %61 : vector<576x128xf32> to vector<576x128xbf16>
    %cst_17 = arith.constant 0.000000e+00 : bf16
    %63 = vector.broadcast %cst_17 : bf16 to vector<19x128xbf16>
    %64 = vector.extract_strided_slice %62 {offsets = [0, 0], sizes = [288, 128], strides = [1, 1]} : vector<576x128xbf16> to vector<288x128xbf16>
    %65 = tpu.concatenate %63, %64, %63 in 0 : vector<19x128xbf16>, vector<288x128xbf16>, vector<19x128xbf16> -> vector<326x128xbf16>
    %66 = vector.extract_strided_slice %62 {offsets = [288, 0], sizes = [288, 128], strides = [1, 1]} : vector<576x128xbf16> to vector<288x128xbf16>
    %67 = tpu.concatenate %63, %66, %63 in 0 : vector<19x128xbf16>, vector<288x128xbf16>, vector<19x128xbf16> -> vector<326x128xbf16>
    %68 = vector.extract_strided_slice %65 {offsets = [0, 0], sizes = [288, 128], strides = [1, 1]} : vector<326x128xbf16> to vector<288x128xbf16>
    %69 = vector.extract_strided_slice %65 {offsets = [1, 0], sizes = [288, 128], strides = [1, 1]} : vector<326x128xbf16> to vector<288x128xbf16>
    %70 = vector.extract_strided_slice %65 {offsets = [2, 0], sizes = [288, 128], strides = [1, 1]} : vector<326x128xbf16> to vector<288x128xbf16>
    %71 = vector.extract_strided_slice %65 {offsets = [18, 0], sizes = [288, 128], strides = [1, 1]} : vector<326x128xbf16> to vector<288x128xbf16>
    %72 = vector.extract_strided_slice %65 {offsets = [19, 0], sizes = [288, 128], strides = [1, 1]} : vector<326x128xbf16> to vector<288x128xbf16>
    %73 = vector.extract_strided_slice %65 {offsets = [20, 0], sizes = [288, 128], strides = [1, 1]} : vector<326x128xbf16> to vector<288x128xbf16>
    %74 = vector.extract_strided_slice %65 {offsets = [36, 0], sizes = [288, 128], strides = [1, 1]} : vector<326x128xbf16> to vector<288x128xbf16>
    %75 = vector.extract_strided_slice %65 {offsets = [37, 0], sizes = [288, 128], strides = [1, 1]} : vector<326x128xbf16> to vector<288x128xbf16>
    %76 = vector.extract_strided_slice %65 {offsets = [38, 0], sizes = [288, 128], strides = [1, 1]} : vector<326x128xbf16> to vector<288x128xbf16>
    %77 = tpu.concatenate %68, %69, %70, %71, %72, %73, %74, %75, %76 in 1 : vector<288x128xbf16>, vector<288x128xbf16>, vector<288x128xbf16>, vector<288x128xbf16>, vector<288x128xbf16>, vector<288x128xbf16>, vector<288x128xbf16>, vector<288x128xbf16>, vector<288x128xbf16> -> vector<288x1152xbf16>
    %78 = vector.extract_strided_slice %67 {offsets = [0, 0], sizes = [288, 128], strides = [1, 1]} : vector<326x128xbf16> to vector<288x128xbf16>
    %79 = vector.extract_strided_slice %67 {offsets = [1, 0], sizes = [288, 128], strides = [1, 1]} : vector<326x128xbf16> to vector<288x128xbf16>
    %80 = vector.extract_strided_slice %67 {offsets = [2, 0], sizes = [288, 128], strides = [1, 1]} : vector<326x128xbf16> to vector<288x128xbf16>
    %81 = vector.extract_strided_slice %67 {offsets = [18, 0], sizes = [288, 128], strides = [1, 1]} : vector<326x128xbf16> to vector<288x128xbf16>
    %82 = vector.extract_strided_slice %67 {offsets = [19, 0], sizes = [288, 128], strides = [1, 1]} : vector<326x128xbf16> to vector<288x128xbf16>
    %83 = vector.extract_strided_slice %67 {offsets = [20, 0], sizes = [288, 128], strides = [1, 1]} : vector<326x128xbf16> to vector<288x128xbf16>
    %84 = vector.extract_strided_slice %67 {offsets = [36, 0], sizes = [288, 128], strides = [1, 1]} : vector<326x128xbf16> to vector<288x128xbf16>
    %85 = vector.extract_strided_slice %67 {offsets = [37, 0], sizes = [288, 128], strides = [1, 1]} : vector<326x128xbf16> to vector<288x128xbf16>
    %86 = vector.extract_strided_slice %67 {offsets = [38, 0], sizes = [288, 128], strides = [1, 1]} : vector<326x128xbf16> to vector<288x128xbf16>
    %87 = tpu.concatenate %78, %79, %80, %81, %82, %83, %84, %85, %86 in 1 : vector<288x128xbf16>, vector<288x128xbf16>, vector<288x128xbf16>, vector<288x128xbf16>, vector<288x128xbf16>, vector<288x128xbf16>, vector<288x128xbf16>, vector<288x128xbf16>, vector<288x128xbf16> -> vector<288x1152xbf16>
    %88 = tpu.concatenate %77, %87 in 0 : vector<288x1152xbf16>, vector<288x1152xbf16> -> vector<576x1152xbf16>
    %c0_18 = arith.constant 0 : index
    %c0_19 = arith.constant 0 : index
    %89 = vector.load %arg8[%c0_18, %c0_19] : memref<1152x128xbf16, #tpu.memory_space<vmem>>, vector<1152x128xbf16>
    %cst_20 = arith.constant dense<0.000000e+00> : vector<576x128xf32>
    %90 = tpu.matmul %88, %89, %cst_20 {dimension_numbers = #tpu.dot_dimension_numbers<[1], [0], [0], [1], [0, 0, 1, 1], [], []>} : vector<576x1152xbf16>, vector<1152x128xbf16>, vector<576x128xf32> -> vector<576x128xf32>
    %c0_21 = arith.constant 0 : index
    %c0_22 = arith.constant 0 : index
    %91 = vector.load %arg9[%c0_21, %c0_22] : memref<1x128xf32, #tpu.memory_space<vmem>>, vector<1x128xf32>
    %92 = vector.broadcast %91 : vector<1x128xf32> to vector<576x128xf32>
    %93 = arith.addf %90, %92 : vector<576x128xf32>
    %94 = vector.extract_strided_slice %0 {offsets = [19, 0], sizes = [288, 128], strides = [1, 1]} : vector<656x128xf32> to vector<288x128xf32>
    %95 = vector.extract_strided_slice %0 {offsets = [347, 0], sizes = [288, 128], strides = [1, 1]} : vector<656x128xf32> to vector<288x128xf32>
    %96 = tpu.concatenate %94, %95 in 0 : vector<288x128xf32>, vector<288x128xf32> -> vector<576x128xf32>
    %97 = arith.truncf %96 : vector<576x128xf32> to vector<576x128xbf16>
    %c0_23 = arith.constant 0 : index
    %c0_24 = arith.constant 0 : index
    %98 = vector.load %arg10[%c0_23, %c0_24] : memref<128x128xbf16, #tpu.memory_space<vmem>>, vector<128x128xbf16>
    %cst_25 = arith.constant dense<0.000000e+00> : vector<576x128xf32>
    %99 = tpu.matmul %97, %98, %cst_25 {dimension_numbers = #tpu.dot_dimension_numbers<[1], [0], [0], [1], [0, 0, 1, 1], [], []>} : vector<576x128xbf16>, vector<128x128xbf16>, vector<576x128xf32> -> vector<576x128xf32>
    %c0_26 = arith.constant 0 : index
    %c0_27 = arith.constant 0 : index
    %100 = vector.load %arg11[%c0_26, %c0_27] : memref<1x128xf32, #tpu.memory_space<vmem>>, vector<1x128xf32>
    %101 = vector.broadcast %100 : vector<1x128xf32> to vector<576x128xf32>
    %102 = arith.addf %99, %101 : vector<576x128xf32>
    %103 = arith.addf %93, %102 : vector<576x128xf32>
    %104 = arith.truncf %103 : vector<576x128xf32> to vector<576x128xbf16>
    %c0_28 = arith.constant 0 : index
    %c0_29 = arith.constant 0 : index
    %105 = vector.load %arg14[%c0_28, %c0_29] : memref<104x288xbf16, #tpu.memory_space<vmem>>, vector<104x288xbf16>
    %106 = vector.extract_strided_slice %104 {offsets = [0, 0], sizes = [288, 128], strides = [1, 1]} : vector<576x128xbf16> to vector<288x128xbf16>
    %cst_30 = arith.constant dense<0.000000e+00> : vector<104x128xf32>
    %107 = tpu.matmul %105, %106, %cst_30 {dimension_numbers = #tpu.dot_dimension_numbers<[1], [0], [0], [1], [0, 0, 1, 1], [], []>} : vector<104x288xbf16>, vector<288x128xbf16>, vector<104x128xf32> -> vector<104x128xf32>
    %108 = vector.extract_strided_slice %104 {offsets = [288, 0], sizes = [288, 128], strides = [1, 1]} : vector<576x128xbf16> to vector<288x128xbf16>
    %cst_31 = arith.constant dense<0.000000e+00> : vector<104x128xf32>
    %109 = tpu.matmul %105, %108, %cst_31 {dimension_numbers = #tpu.dot_dimension_numbers<[1], [0], [0], [1], [0, 0, 1, 1], [], []>} : vector<104x288xbf16>, vector<288x128xbf16>, vector<104x128xf32> -> vector<104x128xf32>
    %110 = tpu.concatenate %107, %109 in 0 : vector<104x128xf32>, vector<104x128xf32> -> vector<208x128xf32>
    %c0_32 = arith.constant 0 : index
    %c0_33 = arith.constant 0 : index
    %111 = vector.load %arg15[%c0_32, %c0_33] : memref<208x128xf32, #tpu.memory_space<vmem>>, vector<208x128xf32>
    tpu.vector_store %arg15[%c0_32, %c0_33], %110 {strides = array<i32>} : memref<208x128xf32, #tpu.memory_space<vmem>>, vector<208x128xf32>,
    return
  }
  func.func @transform_0(%arg0: i32) -> (i32, i32) {
    %c0_i32 = arith.constant 0 : i32
    %c0_i32_0 = arith.constant 0 : i32
    %c0_i32_1 = arith.constant 0 : i32
    return %c0_i32, %c0_i32_0 : i32, i32
  }
  func.func @transform_1(%arg0: i32) -> (i32, i32) {
    %c0_i32 = arith.constant 0 : i32
    %c0_i32_0 = arith.constant 0 : i32
    %c0_i32_1 = arith.constant 0 : i32
    return %c0_i32, %c0_i32_0 : i32, i32
  }
  func.func @transform_2(%arg0: i32) -> (i32, i32) {
    %c0_i32 = arith.constant 0 : i32
    %c0_i32_0 = arith.constant 0 : i32
    %c0_i32_1 = arith.constant 0 : i32
    return %c0_i32, %c0_i32_0 : i32, i32
  }
  func.func @transform_3(%arg0: i32) -> (i32, i32) {
    %c0_i32 = arith.constant 0 : i32
    %c0_i32_0 = arith.constant 0 : i32
    %c0_i32_1 = arith.constant 0 : i32
    return %c0_i32, %c0_i32_0 : i32, i32
  }
  func.func @transform_4(%arg0: i32) -> (i32, i32) {
    %c0_i32 = arith.constant 0 : i32
    %c0_i32_0 = arith.constant 0 : i32
    %c0_i32_1 = arith.constant 0 : i32
    return %c0_i32, %c0_i32_0 : i32, i32
  }
  func.func @transform_5(%arg0: i32) -> (i32, i32) {
    %c0_i32 = arith.constant 0 : i32
    %c0_i32_0 = arith.constant 0 : i32
    %c0_i32_1 = arith.constant 0 : i32
    return %c0_i32, %c0_i32_0 : i32, i32
  }
  func.func @transform_6(%arg0: i32) -> (i32, i32) {
    %c0_i32 = arith.constant 0 : i32
    %c0_i32_0 = arith.constant 0 : i32
    %c0_i32_1 = arith.constant 0 : i32
    return %c0_i32, %c0_i32_0 : i32, i32
  }
  func.func @transform_7(%arg0: i32) -> (i32, i32) {
    %c0_i32 = arith.constant 0 : i32
    %c0_i32_0 = arith.constant 0 : i32
    %c0_i32_1 = arith.constant 0 : i32
    return %c0_i32, %c0_i32_0 : i32, i32
  }
  func.func @transform_8(%arg0: i32) -> (i32, i32) {
    %c0_i32 = arith.constant 0 : i32
    %c0_i32_0 = arith.constant 0 : i32
    %c0_i32_1 = arith.constant 0 : i32
    return %c0_i32, %c0_i32_0 : i32, i32
  }
  func.func @transform_9(%arg0: i32) -> (i32, i32) {
    %c0_i32 = arith.constant 0 : i32
    %c0_i32_0 = arith.constant 0 : i32
    %c0_i32_1 = arith.constant 0 : i32
    return %c0_i32, %c0_i32_0 : i32, i32
  }
  func.func @transform_10(%arg0: i32) -> (i32, i32) {
    %c0_i32 = arith.constant 0 : i32
    %c0_i32_0 = arith.constant 0 : i32
    %c0_i32_1 = arith.constant 0 : i32
    return %c0_i32, %c0_i32_0 : i32, i32
  }
  func.func @transform_11(%arg0: i32) -> (i32, i32) {
    %c0_i32 = arith.constant 0 : i32
    %c0_i32_0 = arith.constant 0 : i32
    %c0_i32_1 = arith.constant 0 : i32
    return %c0_i32, %c0_i32_0 : i32, i32
  }
  func.func @transform_12(%arg0: i32) -> (i32, i32) {
    %c0_i32 = arith.constant 0 : i32
    %c0_i32_0 = arith.constant 0 : i32
    %c0_i32_1 = arith.constant 0 : i32
    return %c0_i32, %c0_i32_0 : i32, i32
  }
  func.func @transform_13(%arg0: i32) -> (i32, i32) {
    %c0_i32 = arith.constant 0 : i32
    %c0_i32_0 = arith.constant 0 : i32
    %c0_i32_1 = arith.constant 0 : i32
    return %c0_i32, %c0_i32_0 : i32, i32
  }
  func.func @transform_14(%arg0: i32) -> (i32, i32) {
    %c0_i32 = arith.constant 0 : i32
    %c0_i32_0 = arith.constant 0 : i32
    %c0_i32_1 = arith.constant 0 : i32
    return %c0_i32, %c0_i32_0 : i32, i32
  }
}

</mosaic_0001>

<bundles_post_ra>
// kernel: tpu_custom_call.1
= control target key start
LH: loop header
LB: loop body
LE: loop exit
PB: predicated region body
PF: predicated region fallthrough
CT: control target
= control target key end

     0   :  { %19 = vsyncpa [#allocation3], 0  ;;  %s18494_s0 = inlined_call_operand.vmem [shape: f32[656,128], index: 0, kind: input, shape index: {}]   ;;  %s18495_s1 = inlined_call_operand.vmem [shape: f32[1,128], index: 1, kind: input, shape index: {}]   ;;  %s18496_s2 = inlined_call_operand.vmem [shape: f32[1,128], index: 2, kind: input, shape index: {}]   ;;  %s18497_s3 = inlined_call_operand.vmem [shape: bf16[1152,128], index: 3, kind: input, shape index: {}]   ;;  %s18498_s4 = inlined_call_operand.vmem [shape: f32[1,128], index: 4, kind: input, shape index: {}]   ;;  %s18499_s5 = inlined_call_operand.vmem [shape: f32[1,128], index: 5, kind: input, shape index: {}]   ;;  %s18500_s6 = inlined_call_operand.vmem [shape: f32[1,128], index: 6, kind: input, shape index: {}]   ;;  %s18501_s7 = inlined_call_operand.hbm [shape: bf16[1152,128], index: 7, kind: input, shape index: {}]   ;;  %s18502_s8 = inlined_call_operand.vmem [shape: f32[1,128], index: 8, kind: input, shape index: {}]   ;;  %s18503_s9 = inlined_call_operand.vmem [shape: bf16[128,128], index: 9, kind: input, shape index: {}]   ;;  %s18504_s10 = inlined_call_operand.vmem [shape: f32[1,128], index: 10, kind: input, shape index: {}]   ;;  %s18505_s11 = inlined_call_operand.vmem [shape: f32[656,1], index: 11, kind: input, shape index: {}]   ;;  %s18506_s12 = inlined_call_operand.vmem [shape: f32[576,1], index: 12, kind: input, shape index: {}]   ;;  %s18507_s13 = inlined_call_operand.vmem [shape: bf16[104,288], index: 13, kind: input, shape index: {}]   ;;  %s18508_s14 = inlined_call_operand.hbm [shape: f32[208,128], index: 14, kind: output, shape index: {}]  }
   0x1   :  { %20 = vsyncpa [#allocation4], 0  ;;  %s12079_s27 = smov [#allocation2]   ;;  %s12031_s15 = scalar_lea.hbm %s18501_s7, 9216 }
   0x2   :  { %s40_s28 = sshll.u32 %s12079_s27, 4  ;;  %p12032_p0 = scmp.ne.s32.totalorder %s18501_s7, %s12031_s15  ;;  %s41_s28 = int_to_ptr.vmem [resolvable:$true] %s40_s28 }
   0x3   :  { %p12035_p1 = scmp.lt.u32.totalorder %s12031_s15, %s18501_s7 }
   0x5   :  { %p12037_p2 = pnand %p12035_p1, %p12032_p0 }
   0x7   :  { %12040 = shalt.err (!%p12037_p2)
}
   0x8   :  { %s12041_s17 = scalar_lea.vmem %s41_s28, 9216  ;;  %p12046_p4 = scmp.lt.s32.totalorder %s41_s28, %s41_s28 }
   0x9   :  { %p12042_p3 = scmp.ne.s32.totalorder %s41_s28, %s12041_s17  ;;  %p12047_p5 = scmp.lt.s32.totalorder %s12041_s17, %s12041_s17 }
   0xb   :  { %p12048_p6 = por %p12047_p5, %p12046_p4 }
   0xd   :  { %p12049_p7 = pnand %p12048_p6, %p12042_p3 }
   0xf   :  { %12052 = shalt.err (!%p12049_p7)
}
  0x10   :  { %s12080_s18 = smov 64   ;;  %s12081_s19 = smov 4  }
  0x11   :  { %46 = dma.hbm_to_vmem [thread:$0]  %s18501_s7, 9216, %s41_s28, [#allocation3], %s12080_s18, %s12080_s18, %s12081_s19  }
  0x12   :  { %12075 = dma.done.wait [#allocation3], 9216  }
  0x13   :  { %12076 = vsyncadd [#allocation3], 4294958080  ;;  %v18511_v0 = vmov 0   ;;  %v11774_v1 = vld [vmem:[%s18497_s3] sm:$0xff]   ;;  %v11775_v2 = vld [vmem:[%s18497_s3 + $0x8] sm:$0xff]   ;;  %vm1261_vm1 = vcmask 1043456  }
  0x14   :  { %2242 = vmatprep.subr.bf16.mxu0 %v18511_v0  ;;  %11772 = vset.pattern.permute.xlu0 %v18511_v0  ;;  %v11776_v3 = vld [vmem:[%s18497_s3 + $0x10] sm:$0xff]   ;;  %v11777_v4 = vld [vmem:[%s18497_s3 + $0x18] sm:$0xff]   ;;  %v11778_v5 = vld [vmem:[%s18497_s3 + $0x20] sm:$0xff]   ;;  %vm258_vm0 = vsmask.f32 7424  ;;  %vm444_vm2 = vcmask 1046528  }
  0x15   :  { %11773 = vset.pattern.permute.xlu1 %v18511_v0  ;;  %2243 = vmatpush1.bf16.msra.mxu0 %v11774_v1  ;;  %v63_v6 = vld [vmem:[%s18494_s0] sm:$0xff]  ;;  %v64_v7 = vld [vmem:[%s18494_s0 + $0x8] sm:$0xff]  ;;  %v65_v8 = vld [vmem:[%s18494_s0 + $0x10] sm:$0xff]  ;;  %vm605_vm3 = vcmask 1045504   ;;  %vm504_vm4 = vsmask.f32 6400 }
  0x16   :  { %2244 = vmatprep.subr.bf16.mxu0 %v18511_v0  ;;  %v66_v9 = vld [vmem:[%s18494_s0 + $0x18] sm:$0xff]  ;;  %v12209_v10 = vpack.c.bf16 %v64_v7, %v63_v6  ;;  %v11779_v11 = vld [vmem:[%s18497_s3 + $0x28] sm:$0xff]   ;;  %v11780_v17 = vld [vmem:[%s18497_s3 + $0x30] sm:$0xff]   ;;  %vm764_vm5 = vcmask 1044480   ;;  %vm665_vm6 = vsmask.f32 5376 }
  0x17   :  { %v12214_v12 = vpack.c.bf16 %v66_v9, %v65_v8  ;;  %v11781_v21 = vld [vmem:[%s18497_s3 + $0x38] sm:$0xff]   ;;  %v11782_v22 = vld [vmem:[%s18497_s3 + $0x40] sm:$0xff]   ;;  %v11783_v23 = vld [vmem:[%s18497_s3 + $0x48] sm:$0xff]   ;;  %vm4994_vm7 = vsmask.f32 1280  ;;  %vm5174_vm8 = vcmask 1041408  }
  0x18   :  { %v260_v13 = vshrl.u32 %v12209_v10, 16  ;;  %v262_v14 = vshll.u32 %v12209_v10, 16  ;;  %v11784_v24 = vld [vmem:[%s18497_s3 + $0x50] sm:$0xff]   ;;  %v11785_v25 = vld [vmem:[%s18497_s3 + $0x58] sm:$0xff]   ;;  %v11786_v26 = vld [vmem:[%s18497_s3 + $0x60] sm:$0xff]   ;;  %vm12084_vm10 = vmmov 0  }
  0x19   :  { %2245 = vmatpush1.bf16.msra.mxu0 %v11775_v2  ;;  %v18510_v15 = vshll.u32 %v12214_v12, 16  ;;  %v67_v27 = vld [vmem:[%s18494_s0 + $0x20] sm:$0xff]  ;;  %v68_v28 = vld [vmem:[%s18494_s0 + $0x28] sm:$0xff]  ;;  %v18509_v31 = vshrl.u32 %v12214_v12, 16  ;;  %v11788_v32 = vld [vmem:[%s18497_s3 + $0x70] sm:$0xff]   ;;  %vm9554_vm11 = vcmask 261120  }
  0x1a   :  { %2246 = vmatprep.subr.bf16.mxu0 %v18511_v0  ;;  %v264_v16 = vrot.slane %v262_v14, 1  ;;  %v11787_v29 = vld [vmem:[%s18497_s3 + $0x68] sm:$0xff]   ;;  %v12260_v30 = vpack.c.bf16 %v68_v28, %v67_v27  ;;  %v69_v33 = vld [vmem:[%s18494_s0 + $0x30] sm:$0xff]  ;;  %v70_v34 = vld [vmem:[%s18494_s0 + $0x38] sm:$0xff] }
  0x1b   :  { %v269_v18 = vrot.slane %v18510_v15, 1  ;;  %v11789_v36 = vld [vmem:[%s18497_s3 + $0x78] sm:$0xff]   ;;  %v12280_v37 = vpack.c.bf16 %v70_v34, %v69_v33  ;;  %v11790_v41 = vld [vmem:[%s18497_s3 + $0x80] sm:$0xff]   ;;  %v72_v44 = vld [vmem:[%s18494_s0 + $0x48] sm:$0xff] }
  0x1c   :  { %v265_v19 = vor.u32 %v264_v16, %v260_v13  ;;  %v12274_v35 = vshll.u32 %v12260_v30, 16  ;;  %v12283_v38 = vshrl.u32 %v12260_v30, 16  ;;  %v71_v43 = vld [vmem:[%s18494_s0 + $0x40] sm:$0xff]  ;;  %v11791_v46 = vld [vmem:[%s18497_s3 + $0x88] sm:$0xff]   ;;  %v73_v50 = vld [vmem:[%s18494_s0 + $0x50] sm:$0xff] }
  0x1d   :  { %2247 = vmatpush1.bf16.msra.mxu0 %v11776_v3  ;;  %v273_v39 = vor.u32 %v18509_v31, %v269_v18  ;;  %v12293_v42 = vshll.u32 %v12280_v37, 16  ;;  %v12307_v47 = vpack.c.bf16 %v72_v44, %v71_v43  ;;  %v12320_v53 = vshrl.u32 %v12280_v37, 16  ;;  %v74_v54 = vld [vmem:[%s18494_s0 + $0x58] sm:$0xff]  ;;  %v75_v58 = vld [vmem:[%s18494_s0 + $0x60] sm:$0xff]  ;;  %v76_v59 = vld [vmem:[%s18494_s0 + $0x68] sm:$0xff] }
  0x1e   :  { %2248 = vmatprep.subr.bf16.mxu0 %v18511_v0  ;;  %v270_v20 = vsel %vm258_vm0, %v265_v19, %v269_v18  ;;  %v277_v40 = vrot.slane %v12274_v35, 1  ;;  %v12328_v56 = vpack.c.bf16 %v74_v54, %v73_v50  ;;  %v12345_v63 = vpack.c.bf16 %v76_v59, %v75_v58  ;;  %v11792_v1 = vld [vmem:[%s18497_s3 + $0x90] sm:$0xff]   ;;  %v78_v7 = vld [vmem:[%s18494_s0 + $0x78] sm:$0xff]  ;;  %v80_v18 = vld [vmem:[%s18494_s0 + $0x88] sm:$0xff] }
  0x1f   :  { %2274 = vmatprep.mubr.bf16.mxu0 %v270_v20  ;;  %v285_v49 = vrot.slane %v12293_v42, 1  ;;  %v12316_v51 = vshll.u32 %v12307_v47, 16  ;;  %v12338_v60 = vshrl.u32 %v12307_v47, 16  ;;  %v77_v6 = vld [vmem:[%s18494_s0 + $0x70] sm:$0xff]  ;;  %v82_v27 = vld [vmem:[%s18494_s0 + $0x98] sm:$0xff]  ;;  %vm15892_vm9 = vmand %vm5174_vm8, %vm4994_vm7 }
  0x20   :  { %v278_v45 = vsel %vm258_vm0, %v273_v39, %v277_v40  ;;  %v281_v48 = vor.u32 %v12283_v38, %v277_v40  ;;  %v12341_v61 = vshll.u32 %v12328_v56, 16  ;;  %v12367_v9 = vpack.c.bf16 %v78_v7, %v77_v6  ;;  %v83_v39 = vld [vmem:[%s18494_s0 + $0xa0] sm:$0xff]  ;;  %v84_v40 = vld [vmem:[%s18494_s0 + $0xa8] sm:$0xff]  ;;  %v86_v50 = vld [vmem:[%s18494_s0 + $0xb8] sm:$0xff] }
  0x21   :  { %2249 = vmatpush1.bf16.msra.mxu0 %v11777_v4  ;;  %v293_v55 = vrot.slane %v12316_v51, 1  ;;  %v289_v57 = vor.u32 %v12320_v53, %v285_v49  ;;  %v12354_v4 = vshrl.u32 %v12328_v56, 16  ;;  %v12372_v14 = vshrl.u32 %v12345_v63, 16 }
  0x22   :  { %2250 = vmatprep.subr.bf16.mxu0 %v18511_v0  ;;  %v286_v52 = vsel %vm258_vm0, %v281_v48, %v285_v49  ;;  %19106 = vst [vmem:[#allocation8_spill] sm:$0xff] %v12341_v61  ;;  %v301_v2 = vrot.slane %v12341_v61, 1  ;;  %v12375_v16 = vshll.u32 %v12367_v9, 16  ;;  %v12425_v43 = vpack.c.bf16 %v84_v40, %v83_v39  ;;  %v85_v49 = vld [vmem:[%s18494_s0 + $0xb0] sm:$0xff]  ;;  %v92_v39 = vld [vmem:[%s18494_s0 + $0xe8] sm:$0xff] }
  0x23   :  { %v294_v62 = vsel %vm258_vm0, %v289_v57, %v293_v55  ;;  %v297_v3 = vor.u32 %v12338_v60, %v293_v55  ;;  %19107 = vst [vmem:[#allocation9_spill] sm:$0xff] %v12354_v4  ;;  %19109 = vst [vmem:[#allocation11_spill] sm:$0xff] %v12372_v14  ;;  %v12443_v54 = vpack.c.bf16 %v86_v50, %v85_v49  ;;  %v11794_v55 = vld [vmem:[%s18497_s3 + $0xa0] sm:$0xff]  }
  0x24   :  { %v305_v13 = vor.u32 %v12354_v4, %v301_v2  ;;  %19110 = vst [vmem:[#allocation12_spill] sm:$0xff] %v12375_v16  ;;  %v12433_v48 = vshll.u32 %v12425_v43, 16  ;;  %v12452_v59 = vshrl.u32 %v12425_v43, 16 }
  0x25   :  { %2251 = vmatpush1.bf16.msra.mxu0 %v11778_v5  ;;  %v12357_v5 = vshll.u32 %v12345_v63, 16  ;;  %v302_v8 = vsel %vm258_vm0, %v297_v3, %v301_v2  ;;  %v88_v2 = vld [vmem:[%s18494_s0 + $0xc8] sm:$0xff] }
  0x26   :  { %2252 = vmatprep.subr.bf16.mxu0 %v18511_v0  ;;  %19116 = vst [vmem:[#allocation18_spill] sm:$0xff] %v12433_v48  ;;  %v341_v57 = vrot.slane %v12433_v48, 1  ;;  %19117 = vst [vmem:[#allocation19_spill] sm:$0xff] %v12452_v59 }
  0x27   :  { %19108 = vst [vmem:[#allocation10_spill] sm:$0xff] %v12357_v5 }
  0x29   :  { %2253 = vmatpush1.bf16.msra.mxu0 %v11779_v11  ;;  %v309_v11 = vrot.slane %v12357_v5, 1 }
  0x2a   :  { %2254 = vmatprep.subr.bf16.mxu0 %v18511_v0 }
  0x2b   :  { %v310_v19 = vsel %vm258_vm0, %v305_v13, %v309_v11 }
  0x2d   :  { %2255 = vmatpush1.bf16.msra.mxu0 %v11780_v17  ;;  %v79_v17 = vld [vmem:[%s18494_s0 + $0x80] sm:$0xff] }
  0x2e   :  { %2256 = vmatprep.subr.bf16.mxu0 %v18511_v0  ;;  %v12385_v20 = vpack.c.bf16 %v80_v18, %v79_v17  ;;  %v89_v17 = vld [vmem:[%s18494_s0 + $0xd0] sm:$0xff]  ;;  %v90_v18 = vld [vmem:[%s18494_s0 + $0xd8] sm:$0xff] }
  0x30   :  { %v12412_v34 = vshrl.u32 %v12385_v20, 16 }
  0x31   :  { %2257 = vmatpush1.bf16.msra.mxu0 %v11781_v21  ;;  %v317_v21 = vrot.slane %v12375_v16, 1 }
  0x32   :  { %2258 = vmatprep.subr.bf16.mxu0 %v18511_v0  ;;  %19113 = vst [vmem:[#allocation15_spill] sm:$0xff] %v12412_v34 }
  0x35   :  { %2259 = vmatpush1.bf16.msra.mxu0 %v11782_v22  ;;  %v11793_v22 = vld [vmem:[%s18497_s3 + $0x98] sm:$0xff]  }
  0x36   :  { %2260 = vmatprep.subr.bf16.mxu0 %v18511_v0 }
  0x39   :  { %2261 = vmatpush1.bf16.msra.mxu0 %v11783_v23  ;;  %v313_v23 = vor.u32 %v12372_v14, %v309_v11  ;;  %v12470_v11 = vshrl.u32 %v12443_v54, 16 }
  0x3a   :  { %2262 = vmatprep.subr.bf16.mxu0 %v18511_v0 }
  0x3b   :  { %v318_v28 = vsel %vm258_vm0, %v313_v23, %v317_v21  ;;  %19119 = vst [vmem:[#allocation21_spill] sm:$0xff] %v12470_v11 }
  0x3d   :  { %2263 = vmatpush1.bf16.msra.mxu0 %v11784_v24  ;;  %v12393_v24 = vshrl.u32 %v12367_v9, 16 }
  0x3e   :  { %2264 = vmatprep.subr.bf16.mxu0 %v18511_v0 }
  0x3f   :  { %19111 = vst [vmem:[#allocation13_spill] sm:$0xff] %v12393_v24  ;;  %v321_v33 = vor.u32 %v12393_v24, %v317_v21  ;;  %v12483_v21 = vpack.c.bf16 %v90_v18, %v89_v17  ;;  %v95_v17 = vld [vmem:[%s18494_s0 + $0x100] sm:$0xff]  ;;  %v96_v18 = vld [vmem:[%s18494_s0 + $0x108] sm:$0xff] }
  0x41   :  { %2265 = vmatpush1.bf16.msra.mxu0 %v11785_v25  ;;  %v12396_v25 = vshll.u32 %v12385_v20, 16  ;;  %v12511_v49 = vshrl.u32 %v12483_v21, 16 }
  0x42   :  { %2266 = vmatprep.subr.bf16.mxu0 %v18511_v0 }
  0x43   :  { %19112 = vst [vmem:[#allocation14_spill] sm:$0xff] %v12396_v25  ;;  %19123 = vst [vmem:[#allocation25_spill] sm:$0xff] %v12511_v49 }
  0x45   :  { %2267 = vmatpush1.bf16.msra.mxu0 %v11786_v26  ;;  %v81_v26 = vld [vmem:[%s18494_s0 + $0x90] sm:$0xff] }
  0x46   :  { %2268 = vmatprep.subr.bf16.mxu0 %v18511_v0 }
  0x49   :  { %2269 = vmatpush1.bf16.msra.mxu0 %v11787_v29  ;;  %v12407_v29 = vpack.c.bf16 %v82_v27, %v81_v26 }
  0x4a   :  { %2270 = vmatprep.subr.bf16.mxu0 %v18511_v0 }
  0x4d   :  { %2271 = vmatpush1.bf16.msra.mxu0 %v11788_v32  ;;  %v325_v32 = vrot.slane %v12396_v25, 1 }
  0x4e   :  { %2272 = vmatprep.subr.bf16.mxu0 %v18511_v0 }
  0x51   :  { %2273 = vmatpush1.bf16.msra.mxu0 %v11789_v36  ;;  %v12415_v36 = vshll.u32 %v12407_v29, 16 }
  0x52   :  { %2563 = vmatprep.subr.bf16.mxu0 %v18511_v0 }
  0x53   :  { %19114 = vst [vmem:[#allocation16_spill] sm:$0xff] %v12415_v36  ;;  %v333_v44 = vrot.slane %v12415_v36, 1 }
  0x54   :  { %2275 = vmatmul.mubr.bf16.vlgmr.msra.gmra.mrb[0].mxu0 %v12209_v10 }
  0x55   :  { %2282 = vmatprep.mubr.bf16.mxu0 %v278_v45  ;;  %2564 = vmatpush1.bf16.msra.mxu0 %v11790_v41  ;;  %v326_v41 = vsel %vm258_vm0, %v321_v33, %v325_v32  ;;  %v329_v45 = vor.u32 %v12412_v34, %v325_v32  ;;  %v91_v32 = vld [vmem:[%s18494_s0 + $0xe0] sm:$0xff] }
  0x56   :  { %2565 = vmatprep.subr.bf16.mxu0 %v18511_v0 }
  0x59   :  { %2566 = vmatpush1.bf16.msra.mxu0 %v11791_v46  ;;  %v12430_v46 = vshrl.u32 %v12407_v29, 16 }
  0x5a   :  { %2567 = vmatprep.subr.bf16.mxu0 %v18511_v0 }
  0x5b   :  { %19115 = vst [vmem:[#allocation17_spill] sm:$0xff] %v12430_v46  ;;  %v337_v58 = vor.u32 %v12430_v46, %v333_v44 }
  0x5c   :  { %2283 = vmatmul.mubr.bf16.gmra.mrb[4].mxu0 %v12214_v12 }
  0x5d   :  { %2290 = vmatprep.mubr.bf16.mxu0 %v286_v52  ;;  %2568 = vmatpush1.bf16.msra.mxu0 %v11792_v1  ;;  %v334_v52 = vsel %vm258_vm0, %v329_v45, %v333_v44  ;;  %v87_v1 = vld [vmem:[%s18494_s0 + $0xc0] sm:$0xff]  ;;  %v342_v3 = vsel %vm258_vm0, %v337_v58, %v341_v57  ;;  %v12507_v44 = vpack.c.bf16 %v92_v39, %v91_v32  ;;  %v97_v39 = vld [vmem:[%s18494_s0 + $0x110] sm:$0xff] }
  0x5e   :  { %2569 = vmatprep.subr.bf16.mxu0 %v18511_v0  ;;  %v12465_v6 = vpack.c.bf16 %v88_v2, %v87_v1 }
  0x5f   :  { %v12514_v50 = vshll.u32 %v12507_v44, 16 }
  0x60   :  { %v12473_v13 = vshll.u32 %v12465_v6, 16  ;;  %v12492_v27 = vshrl.u32 %v12465_v6, 16 }
  0x61   :  { %2570 = vmatpush1.bf16.msra.mxu0 %v11793_v22  ;;  %v11795_v22 = vld [vmem:[%s18497_s3 + $0xa8] sm:$0xff]   ;;  %19124 = vst [vmem:[#allocation26_spill] sm:$0xff] %v12514_v50  ;;  %v373_v1 = vrot.slane %v12514_v50, 1 }
  0x62   :  { %2571 = vmatprep.subr.bf16.mxu0 %v18511_v0  ;;  %19120 = vst [vmem:[#allocation22_spill] sm:$0xff] %v12473_v13  ;;  %v357_v23 = vrot.slane %v12473_v13, 1  ;;  %19121 = vst [vmem:[#allocation23_spill] sm:$0xff] %v12492_v27 }
  0x64   :  { %2291 = vmatmul.mubr.bf16.gmra.mrb[8].mxu0 %v12260_v30 }
  0x65   :  { %2298 = vmatprep.mubr.bf16.mxu0 %v294_v62  ;;  %2572 = vmatpush1.bf16.msra.mxu0 %v11794_v55  ;;  %v12455_v62 = vshll.u32 %v12443_v54, 16  ;;  %v94_v55 = vld [vmem:[%s18494_s0 + $0xf8] sm:$0xff] }
  0x66   :  { %2573 = vmatprep.subr.bf16.mxu0 %v18511_v0 }
  0x67   :  { %19118 = vst [vmem:[#allocation20_spill] sm:$0xff] %v12455_v62  ;;  %v349_v7 = vrot.slane %v12455_v62, 1 }
  0x69   :  { %v353_v26 = vor.u32 %v12470_v11, %v349_v7  ;;  %2574 = vmatpush1.bf16.msra.mxu0 %v11795_v22 }
  0x6a   :  { %2575 = vmatprep.subr.bf16.mxu0 %v18511_v0 }
  0x6b   :  { %v358_v33 = vsel %vm258_vm0, %v353_v26, %v357_v23 }
  0x6c   :  { %2299 = vmatmul.mubr.bf16.gmra.mrb[12].mxu0 %v12280_v37 }
  0x6d   :  { %2306 = vmatprep.mubr.bf16.mxu0 %v302_v8  ;;  %v345_v8 = vor.u32 %v12452_v59, %v341_v57  ;;  %v11796_v57 = vld [vmem:[%s18497_s3 + $0xb0] sm:$0xff]  }
  0x6e   :  { %2576 = vmatpush1.bf16.msra.mxu0 %v11796_v57  ;;  %v103_v57 = vld [vmem:[%s18494_s0 + $0x140] sm:$0xff] }
  0x6f   :  { %2577 = vmatprep.subr.bf16.mxu0 %v18511_v0 }
  0x74   :  { %2307 = vmatmul.mubr.bf16.gmra.mrb[16].mxu0 %v12307_v47 }
  0x75   :  { %2314 = vmatprep.mubr.bf16.mxu0 %v310_v19  ;;  %v350_v19 = vsel %vm258_vm0, %v345_v8, %v349_v7  ;;  %v12533_v7 = vshrl.u32 %v12507_v44, 16 }
  0x77   :  { %19125 = vst [vmem:[#allocation27_spill] sm:$0xff] %v12533_v7 }
  0x7c   :  { %2315 = vmatmul.mubr.bf16.gmra.mrb[20].mxu0 %v12328_v56 }
  0x7d   :  { %2322 = vmatprep.mubr.bf16.mxu0 %v318_v28  ;;  %v12495_v28 = vshll.u32 %v12483_v21, 16 }
  0x7f   :  { %19122 = vst [vmem:[#allocation24_spill] sm:$0xff] %v12495_v28  ;;  %v365_v40 = vrot.slane %v12495_v28, 1 }
  0x81   :  { %v369_v58 = vor.u32 %v12511_v49, %v365_v40 }
  0x84   :  { %2323 = vmatmul.mubr.bf16.gmra.mrb[24].mxu0 %v12345_v63 }
  0x85   :  { %2330 = vmatprep.mubr.bf16.mxu0 %v326_v41  ;;  %v361_v41 = vor.u32 %v12492_v27, %v357_v23  ;;  %v12547_v23 = vpack.c.bf16 %v96_v18, %v95_v17 }
  0x87   :  { %v366_v45 = vsel %vm258_vm0, %v361_v41, %v365_v40  ;;  %v98_v40 = vld [vmem:[%s18494_s0 + $0x118] sm:$0xff]  ;;  %v12585_v18 = vshrl.u32 %v12547_v23, 16 }
  0x88   :  { %v11797_v41 = vld [vmem:[%s18497_s3 + $0xb8] sm:$0xff]  }
  0x89   :  { %2578 = vmatpush1.bf16.msra.mxu0 %v11797_v41  ;;  %19129 = vst [vmem:[#allocation31_spill] sm:$0xff] %v12585_v18  ;;  %v107_v41 = vld [vmem:[%s18494_s0 + $0x160] sm:$0xff] }
  0x8a   :  { %2579 = vmatprep.subr.bf16.mxu0 %v18511_v0 }
  0x8c   :  { %2331 = vmatmul.mubr.bf16.gmra.mrb[28].mxu0 %v12367_v9 }
  0x8d   :  { %2338 = vmatprep.mubr.bf16.mxu0 %v334_v52  ;;  %v93_v52 = vld [vmem:[%s18494_s0 + $0xf0] sm:$0xff] }
  0x8e   :  { %v12528_v2 = vpack.c.bf16 %v94_v55, %v93_v52  ;;  %v12568_v55 = vpack.c.bf16 %v98_v40, %v97_v39 }
  0x90   :  { %v12536_v8 = vshll.u32 %v12528_v2, 16  ;;  %v12551_v32 = vshrl.u32 %v12528_v2, 16 }
  0x92   :  { %19126 = vst [vmem:[#allocation28_spill] sm:$0xff] %v12536_v8  ;;  %v381_v22 = vrot.slane %v12536_v8, 1  ;;  %19127 = vst [vmem:[#allocation29_spill] sm:$0xff] %v12551_v32 }
  0x94   :  { %2339 = vmatmul.mubr.bf16.gmra.mrb[32].mxu0 %v12385_v20 }
  0x95   :  { %2346 = vmatprep.mubr.bf16.mxu0 %v342_v3  ;;  %v374_v3 = vsel %vm258_vm0, %v369_v58, %v373_v1  ;;  %v104_v58 = vld [vmem:[%s18494_s0 + $0x148] sm:$0xff] }
  0x96   :  { %v12596_v39 = vpack.c.bf16 %v104_v58, %v103_v57 }
  0x98   :  { %19131 = vst [vmem:[#allocation33_spill] sm:$0xff] %v12596_v39  ;;  %v18517_v58 = vshll.u32 %v12596_v39, 16 }
  0x9c   :  { %2347 = vmatmul.mubr.bf16.gmra.mrb[36].mxu0 %v12407_v29 }
  0x9d   :  { %2354 = vmatprep.mubr.bf16.mxu0 %v350_v19  ;;  %v377_v19 = vor.u32 %v12533_v7, %v373_v1  ;;  %v105_v1 = vld [vmem:[%s18494_s0 + $0x150] sm:$0xff] }
  0x9f   :  { %v382_v26 = vsel %vm258_vm0, %v377_v19, %v381_v22  ;;  %v12588_v19 = vshll.u32 %v12568_v55, 16 }
  0xa1   :  { %19130 = vst [vmem:[#allocation32_spill] sm:$0xff] %v12588_v19  ;;  %v397_v15 = vrot.slane %v12588_v19, 1 }
  0xa4   :  { %2355 = vmatmul.mubr.bf16.gmra.mrb[40].mxu0 %v12425_v43 }
  0xa5   :  { %2362 = vmatprep.mubr.bf16.mxu0 %v358_v33  ;;  %v12554_v33 = vshll.u32 %v12547_v23, 16 }
  0xa7   :  { %19128 = vst [vmem:[#allocation30_spill] sm:$0xff] %v12554_v33  ;;  %v389_v52 = vrot.slane %v12554_v33, 1  ;;  %v12617_v33 = vshrl.u32 %v12568_v55, 16 }
  0xa9   :  { %v393_v31 = vor.u32 %v12585_v18, %v389_v52  ;;  %19133 = vst [vmem:[#allocation35_spill] sm:$0xff] %v12617_v33 }
  0xac   :  { %2363 = vmatmul.mubr.bf16.gmra.mrb[44].mxu0 %v12443_v54 }
  0xad   :  { %2370 = vmatprep.mubr.bf16.mxu0 %v366_v45  ;;  %v385_v45 = vor.u32 %v12551_v32, %v381_v22  ;;  %v99_v22 = vld [vmem:[%s18494_s0 + $0x120] sm:$0xff] }
  0xaf   :  { %v390_v17 = vsel %vm258_vm0, %v385_v45, %v389_v52  ;;  %v108_v45 = vld [vmem:[%s18494_s0 + $0x168] sm:$0xff]  ;;  %v18533_v52 = vshrl.u32 %v12596_v39, 16 }
  0xb0   :  { %v12611_v57 = vpack.c.bf16 %v108_v45, %v107_v41  ;;  %v110_v45 = vld [vmem:[%s18494_s0 + $0x178] sm:$0xff] }
  0xb2   :  { %19132 = vst [vmem:[#allocation34_spill] sm:$0xff] %v12611_v57  ;;  %v12629_v41 = vshll.u32 %v12611_v57, 16 }
  0xb4   :  { %2371 = vmatmul.mubr.bf16.gmra.mrb[48].mxu0 %v12465_v6  ;;  %19135 = vst [vmem:[#allocation37_spill] sm:$0xff] %v12629_v41  ;;  %v833_v32 = vrot.slane %v12629_v41, 1 }
  0xb5   :  { %2378 = vmatprep.mubr.bf16.mxu0 %v374_v3  ;;  %v106_v3 = vld [vmem:[%s18494_s0 + $0x158] sm:$0xff] }
  0xb6   :  { %v12598_v40 = vpack.c.bf16 %v106_v3, %v105_v1  ;;  %v398_v3 = vsel %vm258_vm0, %v393_v31, %v397_v15  ;;  %v109_v31 = vld [vmem:[%s18494_s0 + $0x170] sm:$0xff] }
  0xb7   :  { %v12645_v50 = vpack.c.bf16 %v110_v45, %v109_v31 }
  0xb8   :  { %v18518_v1 = vshll.u32 %v12598_v40, 16  ;;  %v19136_v19 = vshrl.u32 %v12598_v40, 16 }
  0xb9   :  { %19137 = vst [vmem:[#allocation38_spill] sm:$0xff] %v12645_v50 }
  0xbc   :  { %2379 = vmatmul.mubr.bf16.gmra.mrb[52].mxu0 %v12483_v21 }
  0xbd   :  { %2386 = vmatprep.mubr.bf16.mxu0 %v382_v26  ;;  %v100_v26 = vld [vmem:[%s18494_s0 + $0x128] sm:$0xff] }
  0xbe   :  { %v12609_v0 = vpack.c.bf16 %v100_v26, %v99_v22  ;;  %v825_v22 = vrot.slane %v18518_v1, 1 }
  0xc0   :  { %v12620_v8 = vshll.u32 %v12609_v0, 16  ;;  %v829_v18 = vor.u32 %v19136_v19, %v825_v22  ;;  %v11798_v19 = vld [vmem:[%s18497_s3 + $0xc0] sm:$0xff]  }
  0xc1   :  { %2580 = vmatpush1.bf16.msra.mxu0 %v11798_v19  ;;  %v12678_v19 = vshrl.u32 %v12645_v50, 16 }
  0xc2   :  { %19134 = vst [vmem:[#allocation36_spill] sm:$0xff] %v12620_v8  ;;  %v405_v1 = vrot.slane %v12620_v8, 1  ;;  %v12654_v8 = vshll.u32 %v12645_v50, 16 }
  0xc3   :  { %19141 = vst [vmem:[#allocation41_spill] sm:$0xff] %v12678_v19 }
  0xc4   :  { %2387 = vmatmul.mubr.bf16.gmra.mrb[56].mxu0 %v12507_v44  ;;  %19139 = vst [vmem:[#allocation40_spill] sm:$0xff] %v12654_v8  ;;  %v841_v45 = vrot.slane %v12654_v8, 1 }
  0xc5   :  { %2394 = vmatprep.mubr.bf16.mxu0 %v390_v17  ;;  %v820_v17 = vrot.slane %v18517_v58, 1  ;;  %v401_v58 = vor.u32 %v12617_v33, %v397_v15  ;;  %v12651_v15 = vshrl.u32 %v12611_v57, 16 }
  0xc6   :  { %v845_v8 = vor.u32 %v12678_v19, %v841_v45 }
  0xc7   :  { %v821_v26 = vor.u32 %v820_v17, %v18533_v52  ;;  %v406_v7 = vsel %vm258_vm0, %v401_v58, %v405_v1  ;;  %19138 = vst [vmem:[#allocation39_spill] sm:$0xff] %v12651_v15  ;;  %v111_v58 = vld [vmem:[%s18494_s0 + $0x180] sm:$0xff]  ;;  %v11799_v1 = vld [vmem:[%s18497_s3 + $0xc8] sm:$0xff]   ;;  %v837_v31 = vor.u32 %v12651_v15, %v833_v32 }
  0xc9   :  { %v826_v28 = vsel %vm258_vm0, %v821_v26, %v825_v22  ;;  %v19140_v26 = vmov 0  }
  0xca   :  { %v1265_v17 = vrot.slane %v826_v28, 4  ;;  %2581 = vmatprep.subr.bf16.mxu0 %v19140_v26 }
  0xcb   :  { %2582 = vmatpush1.bf16.msra.mxu0 %v11799_v1  ;;  %v1263_v1 = vrot.slane %v12598_v40, 4 }
  0xcc   :  { %2395 = vmatmul.mubr.bf16.gmra.mrb[60].mxu0 %v12528_v2  ;;  %2583 = vmatprep.subr.bf16.mxu0 %v19140_v26 }
  0xcd   :  { %2402 = vmatprep.mubr.bf16.mxu0 %v398_v3  ;;  %v834_v3 = vsel %vm258_vm0, %v829_v18, %v833_v32  ;;  %v112_v18 = vld [vmem:[%s18494_s0 + $0x188] sm:$0xff]  ;;  %v11800_v32 = vld [vmem:[%s18497_s3 + $0xd0] sm:$0xff]  }
  0xce   :  { %v1266_v22 = vrot.slane %v834_v3, 4  ;;  %v12672_v52 = vpack.c.bf16 %v112_v18, %v111_v58  ;;  %v113_v3 = vld [vmem:[%s18494_s0 + $0x190] sm:$0xff]  ;;  %v114_v58 = vld [vmem:[%s18494_s0 + $0x198] sm:$0xff]  ;;  %v1262_v18 = vrot.slane %v12596_v39, 4 }
  0xcf   :  { %2584 = vmatpush1.bf16.msra.mxu0 %v11800_v32  ;;  %v12701_v33 = vpack.c.bf16 %v114_v58, %v113_v3  ;;  %v115_v3 = vld [vmem:[%s18494_s0 + $0x1a0] sm:$0xff]  ;;  %v11803_v58 = vld [vmem:[%s18497_s3 + $0xe8] sm:$0xff]  }
  0xd0   :  { %v1267_v41 = vsel %vm1261_vm1, %v1265_v17, %v1266_v22  ;;  %v12681_v28 = vshll.u32 %v12672_v52, 16  ;;  %v11801_v17 = vld [vmem:[%s18497_s3 + $0xd8] sm:$0xff]   ;;  %2585 = vmatprep.subr.bf16.mxu0 %v19140_v26  ;;  %v12708_v13 = vshrl.u32 %v12672_v52, 16 }
  0xd1   :  { %v12736_v27 = vshrl.u32 %v12701_v33, 16 }
  0xd2   :  { %19142 = vst [vmem:[#allocation42_spill] sm:$0xff] %v12681_v28  ;;  %v849_v15 = vrot.slane %v12681_v28, 1  ;;  %19143 = vst [vmem:[#allocation43_spill] sm:$0xff] %v12708_v13 }
  0xd3   :  { %2586 = vmatpush1.bf16.msra.mxu0 %v11801_v17  ;;  %19145 = vst [vmem:[#allocation45_spill] sm:$0xff] %v12736_v27 }
  0xd4   :  { %2403 = vmatmul.mubr.bf16.gmra.mrb[64].mxu0 %v12547_v23  ;;  %2587 = vmatprep.subr.bf16.mxu0 %v19140_v26  ;;  %v850_v32 = vsel %vm258_vm0, %v845_v8, %v849_v15  ;;  %v1287_v8 = vrot.slane %v12611_v57, 4  ;;  %v853_v17 = vor.u32 %v12708_v13, %v849_v15  ;;  %v11804_v15 = vld [vmem:[%s18497_s3 + $0xf0] sm:$0xff]  }
  0xd5   :  { %2410 = vmatprep.mubr.bf16.mxu0 %v406_v7  ;;  %v842_v7 = vsel %vm258_vm0, %v837_v31, %v841_v45  ;;  %v11802_v45 = vld [vmem:[%s18497_s3 + $0xe0] sm:$0xff]  }
  0xd6   :  { %v1289_v31 = vrot.slane %v842_v7, 4  ;;  %v12711_v7 = vshll.u32 %v12701_v33, 16  ;;  %v1288_v19 = vsel %vm1261_vm1, %v1263_v1, %v1287_v8 }
  0xd7   :  { %2588 = vmatpush1.bf16.msra.mxu0 %v11802_v45 }
  0xd8   :  { %v1290_v49 = vsel %vm1261_vm1, %v1266_v22, %v1289_v31  ;;  %19144 = vst [vmem:[#allocation44_spill] sm:$0xff] %v12711_v7  ;;  %v116_v22 = vld [vmem:[%s18494_s0 + $0x1a8] sm:$0xff]  ;;  %2589 = vmatprep.subr.bf16.mxu0 %v19140_v26 }
  0xd9   :  { %v12729_v28 = vpack.c.bf16 %v116_v22, %v115_v3  ;;  %v1301_v3 = vrot.slane %v12645_v50, 4  ;;  %v11805_v22 = vld [vmem:[%s18497_s3 + $0xf8] sm:$0xff]  }
  0xdb   :  { %2590 = vmatpush1.bf16.msra.mxu0 %v11803_v58  ;;  %v1302_v13 = vsel %vm1261_vm1, %v1287_v8, %v1301_v3  ;;  %v12764_v62 = vshrl.u32 %v12729_v28, 16  ;;  %v120_v8 = vld [vmem:[%s18494_s0 + $0x1c8] sm:$0xff] }
  0xdc   :  { %2411 = vmatmul.mubr.bf16.gmra.mrb[68].mxu0 %v12568_v55  ;;  %2591 = vmatprep.subr.bf16.mxu0 %v19140_v26 }
  0xdd   :  { %2418 = vmatprep.mubr.bf16.mxu0 %v1267_v41  ;;  %v1264_v41 = vsel %vm1261_vm1, %v1262_v18, %v1263_v1  ;;  %v1303_v18 = vrot.slane %v850_v32, 4  ;;  %v12739_v32 = vshll.u32 %v12729_v28, 16  ;;  %v117_v1 = vld [vmem:[%s18494_s0 + $0x1b0] sm:$0xff]  ;;  %19147 = vst [vmem:[#allocation47_spill] sm:$0xff] %v12764_v62 }
  0xdf   :  { %19146 = vst [vmem:[#allocation46_spill] sm:$0xff] %v12739_v32  ;;  %2592 = vmatpush1.bf16.msra.mxu0 %v11804_v15 }
  0xe0   :  { %2593 = vmatprep.subr.bf16.mxu0 %v19140_v26 }
  0xe3   :  { %2594 = vmatpush1.bf16.msra.mxu0 %v11805_v22 }
  0xe4   :  { %2419 = vmatmul.mubr.bf16.gmra.mrb[72].mxu0 %v1264_v41  ;;  %v857_v41 = vrot.slane %v12711_v7, 1  ;;  %2884 = vmatprep.subr.bf16.mxu0 %v19140_v26 }
  0xe5   :  { %2426 = vmatprep.mubr.bf16.mxu0 %v1290_v49  ;;  %v1304_v49 = vsel %vm1261_vm1, %v1289_v31, %v1303_v18  ;;  %v118_v31 = vld [vmem:[%s18494_s0 + $0x1b8] sm:$0xff] }
  0xe6   :  { %v858_v45 = vsel %vm258_vm0, %v853_v17, %v857_v41  ;;  %v865_v17 = vrot.slane %v12739_v32, 1  ;;  %v12757_v7 = vpack.c.bf16 %v118_v31, %v117_v1 }
  0xe7   :  { %v1317_v58 = vrot.slane %v858_v45, 4 }
  0xe8   :  { %v12767_v45 = vshll.u32 %v12757_v7, 16  ;;  %v869_v31 = vor.u32 %v12764_v62, %v865_v17  ;;  %v12784_v11 = vshrl.u32 %v12757_v7, 16 }
  0xea   :  { %19148 = vst [vmem:[#allocation48_spill] sm:$0xff] %v12767_v45  ;;  %v873_v22 = vrot.slane %v12767_v45, 1  ;;  %19149 = vst [vmem:[#allocation49_spill] sm:$0xff] %v12784_v11 }
  0xec   :  { %2427 = vmatmul.mubr.bf16.gmra.mrb[76].mxu0 %v1288_v19  ;;  %v861_v19 = vor.u32 %v12736_v27, %v857_v41  ;;  %v119_v41 = vld [vmem:[%s18494_s0 + $0x1c0] sm:$0xff]  ;;  %v874_v27 = vsel %vm258_vm0, %v869_v31, %v873_v22 }
  0xed   :  { %2434 = vmatprep.mubr.bf16.mxu0 %v1304_v49  ;;  %v1318_v49 = vsel %vm1261_vm1, %v1303_v18, %v1317_v58  ;;  %v1315_v18 = vrot.slane %v12672_v52, 4 }
  0xee   :  { %v866_v15 = vsel %vm258_vm0, %v861_v19, %v865_v17  ;;  %v12778_v19 = vpack.c.bf16 %v120_v8, %v119_v41  ;;  %v121_v17 = vld [vmem:[%s18494_s0 + $0x1d0] sm:$0xff]  ;;  %v877_v41 = vor.u32 %v12784_v11, %v873_v22  ;;  %v124_v22 = vld [vmem:[%s18494_s0 + $0x1e8] sm:$0xff] }
  0xef   :  { %v1331_v1 = vrot.slane %v866_v15, 4  ;;  %v122_v15 = vld [vmem:[%s18494_s0 + $0x1d8] sm:$0xff] }
  0xf0   :  { %v12798_v31 = vpack.c.bf16 %v122_v15, %v121_v17  ;;  %v12804_v48 = vshrl.u32 %v12778_v19, 16 }
  0xf1   :  { %v1332_v32 = vsel %vm1261_vm1, %v1317_v58, %v1331_v1  ;;  %v1345_v58 = vrot.slane %v874_v27, 4  ;;  %v123_v27 = vld [vmem:[%s18494_s0 + $0x1e0] sm:$0xff] }
  0xf2   :  { %19151 = vst [vmem:[#allocation51_spill] sm:$0xff] %v12804_v48  ;;  %v12824_v59 = vshrl.u32 %v12798_v31, 16 }
  0xf3   :  { %v1346_v45 = vsel %vm1261_vm1, %v1331_v1, %v1345_v58 }
  0xf4   :  { %2435 = vmatmul.mubr.bf16.gmra.mrb[80].mxu0 %v1302_v13  ;;  %v1316_v13 = vsel %vm1261_vm1, %v1301_v3, %v1315_v18  ;;  %v1329_v3 = vrot.slane %v12701_v33, 4  ;;  %19153 = vst [vmem:[#allocation53_spill] sm:$0xff] %v12824_v59 }
  0xf5   :  { %2442 = vmatprep.mubr.bf16.mxu0 %v1318_v49  ;;  %v12787_v49 = vshll.u32 %v12778_v19, 16 }
  0xf7   :  { %19150 = vst [vmem:[#allocation50_spill] sm:$0xff] %v12787_v49  ;;  %v881_v8 = vrot.slane %v12787_v49, 1 }
  0xf9   :  { %v882_v62 = vsel %vm258_vm0, %v877_v41, %v881_v8  ;;  %v885_v17 = vor.u32 %v12804_v48, %v881_v8  ;;  %v12818_v41 = vpack.c.bf16 %v124_v22, %v123_v27  ;;  %v126_v8 = vld [vmem:[%s18494_s0 + $0x1f8] sm:$0xff] }
  0xfa   :  { %v1359_v1 = vrot.slane %v882_v62, 4  ;;  %v125_v62 = vld [vmem:[%s18494_s0 + $0x1f0] sm:$0xff] }
  0xfb   :  { %v12844_v36 = vshrl.u32 %v12818_v41, 16 }
  0xfc   :  { %2443 = vmatmul.mubr.bf16.gmra.mrb[84].mxu0 %v1316_v13  ;;  %v1330_v13 = vsel %vm1261_vm1, %v1315_v18, %v1329_v3  ;;  %v1343_v18 = vrot.slane %v12729_v28, 4  ;;  %v1360_v49 = vsel %vm1261_vm1, %v1345_v58, %v1359_v1 }
  0xfd   :  { %2450 = vmatprep.mubr.bf16.mxu0 %v1332_v32  ;;  %v12807_v32 = vshll.u32 %v12798_v31, 16  ;;  %19155 = vst [vmem:[#allocation55_spill] sm:$0xff] %v12844_v36 }
  0xff   :  { %19152 = vst [vmem:[#allocation52_spill] sm:$0xff] %v12807_v32  ;;  %v889_v15 = vrot.slane %v12807_v32, 1 }
 0x101   :  { %v890_v11 = vsel %vm258_vm0, %v885_v17, %v889_v15  ;;  %v893_v27 = vor.u32 %v12824_v59, %v889_v15  ;;  %v12838_v17 = vpack.c.bf16 %v126_v8, %v125_v62  ;;  %v128_v15 = vld [vmem:[%s18494_s0 + $0x208] sm:$0xff] }
 0x102   :  { %v1373_v58 = vrot.slane %v890_v11, 4  ;;  %v127_v11 = vld [vmem:[%s18494_s0 + $0x200] sm:$0xff] }
 0x103   :  { %v12864_v46 = vshrl.u32 %v12838_v17, 16 }
 0x104   :  { %2451 = vmatmul.mubr.bf16.gmra.mrb[88].mxu0 %v1330_v13  ;;  %v1344_v13 = vsel %vm1261_vm1, %v1329_v3, %v1343_v18  ;;  %v1357_v3 = vrot.slane %v12757_v7, 4  ;;  %v1374_v32 = vsel %vm1261_vm1, %v1359_v1, %v1373_v58 }
 0x105   :  { %2458 = vmatprep.mubr.bf16.mxu0 %v1346_v45  ;;  %v12827_v45 = vshll.u32 %v12818_v41, 16  ;;  %19157 = vst [vmem:[#allocation57_spill] sm:$0xff] %v12864_v46 }
 0x107   :  { %19154 = vst [vmem:[#allocation54_spill] sm:$0xff] %v12827_v45  ;;  %v897_v22 = vrot.slane %v12827_v45, 1 }
 0x109   :  { %v898_v48 = vsel %vm258_vm0, %v893_v27, %v897_v22  ;;  %v901_v62 = vor.u32 %v12844_v36, %v897_v22  ;;  %v12858_v27 = vpack.c.bf16 %v128_v15, %v127_v11  ;;  %v130_v22 = vld [vmem:[%s18494_s0 + $0x218] sm:$0xff] }
 0x10a   :  { %v1387_v1 = vrot.slane %v898_v48, 4  ;;  %v129_v48 = vld [vmem:[%s18494_s0 + $0x210] sm:$0xff] }
 0x10b   :  { %v12884_v25 = vshrl.u32 %v12858_v27, 16 }
 0x10c   :  { %2459 = vmatmul.mubr.bf16.gmra.mrb[92].mxu0 %v1344_v13  ;;  %v1358_v13 = vsel %vm1261_vm1, %v1343_v18, %v1357_v3  ;;  %v1371_v18 = vrot.slane %v12778_v19, 4  ;;  %v1388_v45 = vsel %vm1261_vm1, %v1373_v58, %v1387_v1 }
 0x10d   :  { %2466 = vmatprep.mubr.bf16.mxu0 %v1360_v49  ;;  %v12847_v49 = vshll.u32 %v12838_v17, 16  ;;  %19159 = vst [vmem:[#allocation59_spill] sm:$0xff] %v12884_v25 }
 0x10f   :  { %19156 = vst [vmem:[#allocation56_spill] sm:$0xff] %v12847_v49  ;;  %v905_v8 = vrot.slane %v12847_v49, 1 }
 0x111   :  { %v906_v59 = vsel %vm258_vm0, %v901_v62, %v905_v8  ;;  %v909_v11 = vor.u32 %v12864_v46, %v905_v8  ;;  %v12878_v62 = vpack.c.bf16 %v130_v22, %v129_v48  ;;  %v132_v8 = vld [vmem:[%s18494_s0 + $0x228] sm:$0xff] }
 0x112   :  { %v1401_v58 = vrot.slane %v906_v59, 4  ;;  %v131_v59 = vld [vmem:[%s18494_s0 + $0x220] sm:$0xff] }
 0x113   :  { %v12904_v34 = vshrl.u32 %v12878_v62, 16 }
 0x114   :  { %2467 = vmatmul.mubr.bf16.gmra.mrb[96].mxu0 %v1358_v13  ;;  %v1372_v13 = vsel %vm1261_vm1, %v1357_v3, %v1371_v18  ;;  %v1385_v3 = vrot.slane %v12798_v31, 4  ;;  %v1402_v49 = vsel %vm1261_vm1, %v1387_v1, %v1401_v58 }
 0x115   :  { %2474 = vmatprep.mubr.bf16.mxu0 %v1374_v32  ;;  %v12867_v32 = vshll.u32 %v12858_v27, 16  ;;  %19161 = vst [vmem:[#allocation61_spill] sm:$0xff] %v12904_v34 }
 0x117   :  { %19158 = vst [vmem:[#allocation58_spill] sm:$0xff] %v12867_v32  ;;  %v913_v15 = vrot.slane %v12867_v32, 1 }
 0x119   :  { %v914_v36 = vsel %vm258_vm0, %v909_v11, %v913_v15  ;;  %v917_v48 = vor.u32 %v12884_v25, %v913_v15  ;;  %v12898_v11 = vpack.c.bf16 %v132_v8, %v131_v59  ;;  %v134_v15 = vld [vmem:[%s18494_s0 + $0x238] sm:$0xff] }
 0x11a   :  { %v1415_v1 = vrot.slane %v914_v36, 4  ;;  %v133_v36 = vld [vmem:[%s18494_s0 + $0x230] sm:$0xff] }
 0x11b   :  { %v12924_v16 = vshrl.u32 %v12898_v11, 16 }
 0x11c   :  { %2475 = vmatmul.mubr.bf16.gmra.mrb[100].mxu0 %v1372_v13  ;;  %v1386_v13 = vsel %vm1261_vm1, %v1371_v18, %v1385_v3  ;;  %v1399_v18 = vrot.slane %v12818_v41, 4  ;;  %v1416_v32 = vsel %vm1261_vm1, %v1401_v58, %v1415_v1 }
 0x11d   :  { %2482 = vmatprep.mubr.bf16.mxu0 %v1388_v45  ;;  %v12887_v45 = vshll.u32 %v12878_v62, 16  ;;  %19163 = vst [vmem:[#allocation63_spill] sm:$0xff] %v12924_v16 }
 0x11f   :  { %19160 = vst [vmem:[#allocation60_spill] sm:$0xff] %v12887_v45  ;;  %v921_v22 = vrot.slane %v12887_v45, 1 }
 0x121   :  { %v922_v46 = vsel %vm258_vm0, %v917_v48, %v921_v22  ;;  %v925_v59 = vor.u32 %v12904_v34, %v921_v22  ;;  %v12918_v48 = vpack.c.bf16 %v134_v15, %v133_v36  ;;  %v136_v22 = vld [vmem:[%s18494_s0 + $0x248] sm:$0xff] }
 0x122   :  { %v1429_v58 = vrot.slane %v922_v46, 4  ;;  %v135_v46 = vld [vmem:[%s18494_s0 + $0x240] sm:$0xff] }
 0x123   :  { %v12944_v24 = vshrl.u32 %v12918_v48, 16 }
 0x124   :  { %2483 = vmatmul.mubr.bf16.gmra.mrb[104].mxu0 %v1386_v13  ;;  %v1400_v13 = vsel %vm1261_vm1, %v1385_v3, %v1399_v18  ;;  %v1413_v3 = vrot.slane %v12838_v17, 4  ;;  %v1430_v45 = vsel %vm1261_vm1, %v1415_v1, %v1429_v58 }
 0x125   :  { %2490 = vmatprep.mubr.bf16.mxu0 %v1402_v49  ;;  %v12907_v49 = vshll.u32 %v12898_v11, 16  ;;  %19165 = vst [vmem:[#allocation65_spill] sm:$0xff] %v12944_v24 }
 0x127   :  { %19162 = vst [vmem:[#allocation62_spill] sm:$0xff] %v12907_v49  ;;  %v929_v8 = vrot.slane %v12907_v49, 1 }
 0x129   :  { %v930_v25 = vsel %vm258_vm0, %v925_v59, %v929_v8  ;;  %v933_v36 = vor.u32 %v12924_v16, %v929_v8  ;;  %v12938_v59 = vpack.c.bf16 %v136_v22, %v135_v46  ;;  %v138_v8 = vld [vmem:[%s18494_s0 + $0x258] sm:$0xff] }
 0x12a   :  { %v1443_v1 = vrot.slane %v930_v25, 4  ;;  %v137_v25 = vld [vmem:[%s18494_s0 + $0x250] sm:$0xff] }
 0x12b   :  { %v12964_v5 = vshrl.u32 %v12938_v59, 16 }
 0x12c   :  { %2491 = vmatmul.mubr.bf16.gmra.mrb[108].mxu0 %v1400_v13  ;;  %v1414_v13 = vsel %vm1261_vm1, %v1399_v18, %v1413_v3  ;;  %v1427_v18 = vrot.slane %v12858_v27, 4  ;;  %v1444_v49 = vsel %vm1261_vm1, %v1429_v58, %v1443_v1 }
 0x12d   :  { %2498 = vmatprep.mubr.bf16.mxu0 %v1416_v32  ;;  %v12927_v32 = vshll.u32 %v12918_v48, 16  ;;  %19167 = vst [vmem:[#allocation67_spill] sm:$0xff] %v12964_v5 }
 0x12f   :  { %19164 = vst [vmem:[#allocation64_spill] sm:$0xff] %v12927_v32  ;;  %v937_v15 = vrot.slane %v12927_v32, 1 }
 0x131   :  { %v938_v34 = vsel %vm258_vm0, %v933_v36, %v937_v15  ;;  %v941_v46 = vor.u32 %v12944_v24, %v937_v15  ;;  %v12958_v36 = vpack.c.bf16 %v138_v8, %v137_v25  ;;  %v140_v15 = vld [vmem:[%s18494_s0 + $0x268] sm:$0xff] }
 0x132   :  { %v1457_v58 = vrot.slane %v938_v34, 4  ;;  %v139_v34 = vld [vmem:[%s18494_s0 + $0x260] sm:$0xff] }
 0x133   :  { %v12984_v14 = vshrl.u32 %v12958_v36, 16 }
 0x134   :  { %2499 = vmatmul.mubr.bf16.gmra.mrb[112].mxu0 %v1414_v13  ;;  %v1428_v13 = vsel %vm1261_vm1, %v1413_v3, %v1427_v18  ;;  %v1441_v3 = vrot.slane %v12878_v62, 4  ;;  %v1458_v32 = vsel %vm1261_vm1, %v1443_v1, %v1457_v58 }
 0x135   :  { %2506 = vmatprep.mubr.bf16.mxu0 %v1430_v45  ;;  %v12947_v45 = vshll.u32 %v12938_v59, 16  ;;  %19170 = vst [vmem:[#allocation70_spill] sm:$0xff] %v12984_v14 }
 0x137   :  { %19166 = vst [vmem:[#allocation66_spill] sm:$0xff] %v12947_v45  ;;  %v945_v22 = vrot.slane %v12947_v45, 1 }
 0x139   :  { %v946_v16 = vsel %vm258_vm0, %v941_v46, %v945_v22  ;;  %v949_v25 = vor.u32 %v12964_v5, %v945_v22  ;;  %v12978_v46 = vpack.c.bf16 %v140_v15, %v139_v34 }
 0x13a   :  { %v1471_v1 = vrot.slane %v946_v16, 4  ;;  %v1469_v16 = vrot.slane %v12918_v48, 4 }
 0x13b   :  { %19169 = vst [vmem:[#allocation69_spill] sm:$0xff] %v12978_v46 }
 0x13c   :  { %2507 = vmatmul.mubr.bf16.gmra.mrb[116].mxu0 %v1428_v13  ;;  %v1442_v13 = vsel %vm1261_vm1, %v1427_v18, %v1441_v3  ;;  %v1455_v18 = vrot.slane %v12898_v11, 4  ;;  %v1472_v45 = vsel %vm1261_vm1, %v1457_v58, %v1471_v1 }
 0x13d   :  { %2514 = vmatprep.mubr.bf16.mxu0 %v1444_v49  ;;  %v12967_v49 = vshll.u32 %v12958_v36, 16 }
 0x13f   :  { %19168 = vst [vmem:[#allocation68_spill] sm:$0xff] %v12967_v49  ;;  %v953_v8 = vrot.slane %v12967_v49, 1  ;;  %v1483_v49 = vrot.slane %v12938_v59, 4 }
 0x141   :  { %v954_v24 = vsel %vm258_vm0, %v949_v25, %v953_v8  ;;  %v957_v34 = vor.u32 %v12984_v14, %v953_v8 }
 0x142   :  { %v1485_v22 = vrot.slane %v954_v24, 4  ;;  %v1484_v24 = vsel %vm1261_vm1, %v1469_v16, %v1483_v49 }
 0x144   :  { %2515 = vmatmul.mubr.bf16.gmra.mrb[120].mxu0 %v1442_v13  ;;  %v1456_v13 = vsel %vm1261_vm1, %v1441_v3, %v1455_v18  ;;  %v1470_v3 = vsel %vm1261_vm1, %v1455_v18, %v1469_v16  ;;  %v1486_v58 = vsel %vm1261_vm1, %v1471_v1, %v1485_v22  ;;  %v1497_v18 = vrot.slane %v12958_v36, 4 }
 0x145   :  { %2522 = vmatprep.mubr.bf16.mxu0 %v1458_v32  ;;  %v12987_v32 = vshll.u32 %v12978_v46, 16  ;;  %v448_v16 = vrot.slane %v12260_v30, 1 }
 0x147   :  { %19171 = vst [vmem:[#allocation71_spill] sm:$0xff] %v12987_v32  ;;  %v961_v15 = vrot.slane %v12987_v32, 1  ;;  %v984_v32 = vrot.slane %v12596_v39, 1 }
 0x149   :  { %v962_v25 = vsel %vm258_vm0, %v957_v34, %v961_v15  ;;  %v1498_v34 = vsel %vm1261_vm1, %v1483_v49, %v1497_v18  ;;  %v450_v49 = vrot.slane %v12280_v37, 1 }
 0x14a   :  { %v1499_v5 = vrot.slane %v962_v25, 4  ;;  %v446_v25 = vrot.slane %v12214_v12, 1 }
 0x14c   :  { %2523 = vmatmul.mubr.bf16.gmra.mrb[124].mxu0 %v1456_v13  ;;  %v1500_v8 = vsel %vm1261_vm1, %v1485_v22, %v1499_v5 }
 0x14d   :  { %2530 = vmatprep.mubr.bf16.mxu0 %v1472_v45  ;;  %v12997_v45 = vshrl.u32 %v12978_v46, 16 }
 0x14f   :  { %19172 = vst [vmem:[#allocation72_spill] sm:$0xff] %v12997_v45  ;;  %v965_v13 = vor.u32 %v12997_v45, %v961_v15  ;;  %v449_v15 = vsel %vm444_vm2, %v446_v25, %v448_v16 }
 0x151   :  { %v1513_v1 = vrot.slane %v965_v13, 4  ;;  %v451_v13 = vsel %vm444_vm2, %v448_v16, %v450_v49 }
 0x154   :  { %2531 = vmatmul.mubr.bf16.gmra.mrb[128].mxu0 %v1470_v3  ;;  %v1514_v3 = vsel %vm1261_vm1, %v1499_v5, %v1513_v1  ;;  %v452_v1 = vrot.slane %v12307_v47, 1 }
 0x155   :  { %2538 = vmatprep.mubr.bf16.mxu0 %v1486_v58  ;;  %v1511_v58 = vrot.slane %v12978_v46, 4 }
 0x157   :  { %v1512_v22 = vsel %vm1261_vm1, %v1497_v18, %v1511_v58  ;;  %v11807_v18 = vld [vmem:[%s18497_s3 + $0x108] sm:$0xff]   ;;  %v11808_v58 = vld [vmem:[%s18497_s3 + $0x110] sm:$0xff]  }
 0x15c   :  { %2539 = vmatmul.mubr.bf16.gmra.mrb[132].mxu0 %v1484_v24  ;;  %v445_v24 = vrot.slane %v12209_v10, 1  ;;  %v453_v10 = vsel %vm444_vm2, %v450_v49, %v452_v1  ;;  %v460_v49 = vrot.slane %v12385_v20, 1 }
 0x15d   :  { %2546 = vmatprep.mubr.bf16.mxu0 %v1500_v8  ;;  %v11806_v8 = vld [vmem:[%s18497_s3 + $0x100] sm:$0xff]  }
 0x15e   :  { %v447_v5 = vsel %vm444_vm2, %v445_v24, %v446_v25  ;;  %v456_v25 = vrot.slane %v12345_v63, 1  ;;  %v11809_v24 = vld [vmem:[%s18497_s3 + $0x118] sm:$0xff]  }
 0x164   :  { %2547 = vmatmul.mubr.bf16.gmra.mrb[136].mxu0 %v1498_v34  ;;  %v454_v34 = vrot.slane %v12328_v56, 1 }
 0x165   :  { %2554 = vmatprep.mubr.bf16.mxu0 %v1514_v3 }
 0x166   :  { %v455_v3 = vsel %vm444_vm2, %v452_v1, %v454_v34  ;;  %v457_v16 = vsel %vm444_vm2, %v454_v34, %v456_v25  ;;  %v466_v34 = vrot.slane %v12443_v54, 1 }
 0x16c   :  { %2555 = vmatmul.mubr.bf16.gmra.mrb[140].mxu0 %v1512_v22  ;;  %v458_v22 = vrot.slane %v12367_v9, 1 }
 0x16d   :  { %2595 = vmatprep.mubr.bf16.mxu0 %v449_v15 }
 0x174   :  { %2596 = vmatmul.mubr.bf16.vlgmr.msra.gmra.mrb[0].mxu0 %v447_v5  ;;  %v461_v5 = vsel %vm444_vm2, %v458_v22, %v460_v49 }
 0x175   :  { %2603 = vmatprep.mubr.bf16.mxu0 %v451_v13  ;;  %2885 = vmatpush1.bf16.msra.mxu0 %v11806_v8  ;;  %v462_v8 = vrot.slane %v12407_v29, 1 }
 0x176   :  { %2886 = vmatprep.subr.bf16.mxu0 %v19140_v26 }
 0x179   :  { %2887 = vmatpush1.bf16.msra.mxu0 %v11807_v18  ;;  %v464_v18 = vrot.slane %v12425_v43, 1 }
 0x17a   :  { %2888 = vmatprep.subr.bf16.mxu0 %v19140_v26 }
 0x17b   :  { %v465_v1 = vsel %vm444_vm2, %v462_v8, %v464_v18 }
 0x17c   :  { %2604 = vmatmul.mubr.bf16.gmra.mrb[4].mxu0 %v449_v15  ;;  %v459_v15 = vsel %vm444_vm2, %v456_v25, %v458_v22  ;;  %v470_v22 = vrot.slane %v12483_v21, 1 }
 0x17d   :  { %2611 = vmatprep.mubr.bf16.mxu0 %v453_v10  ;;  %2889 = vmatpush1.bf16.msra.mxu0 %v11808_v58  ;;  %v468_v58 = vrot.slane %v12465_v6, 1 }
 0x17e   :  { %2890 = vmatprep.subr.bf16.mxu0 %v19140_v26 }
 0x17f   :  { %v469_v25 = vsel %vm444_vm2, %v466_v34, %v468_v58 }
 0x181   :  { %2891 = vmatpush1.bf16.msra.mxu0 %v11809_v24  ;;  %v472_v24 = vrot.slane %v12507_v44, 1 }
 0x182   :  { %2892 = vmatprep.subr.bf16.mxu0 %v19140_v26 }
 0x184   :  { %2612 = vmatmul.mubr.bf16.gmra.mrb[8].mxu0 %v451_v13  ;;  %v463_v13 = vsel %vm444_vm2, %v460_v49, %v462_v8  ;;  %v473_v49 = vsel %vm444_vm2, %v470_v22, %v472_v24  ;;  %v474_v8 = vrot.slane %v12528_v2, 1 }
 0x185   :  { %2619 = vmatprep.mubr.bf16.mxu0 %v455_v3 }
 0x18c   :  { %2620 = vmatmul.mubr.bf16.gmra.mrb[12].mxu0 %v453_v10  ;;  %v11810_v10 = vld [vmem:[%s18497_s3 + $0x120] sm:$0xff]  }
 0x18d   :  { %2627 = vmatprep.mubr.bf16.mxu0 %v457_v16  ;;  %2893 = vmatpush1.bf16.msra.mxu0 %v11810_v10  ;;  %v11813_v10 = vld [vmem:[%s18497_s3 + $0x138] sm:$0xff]  }
 0x18e   :  { %2894 = vmatprep.subr.bf16.mxu0 %v19140_v26 }
 0x194   :  { %2628 = vmatmul.mubr.bf16.gmra.mrb[16].mxu0 %v455_v3  ;;  %v467_v3 = vsel %vm444_vm2, %v464_v18, %v466_v34  ;;  %v476_v18 = vrot.slane %v12547_v23, 1  ;;  %v478_v34 = vrot.slane %v12568_v55, 1 }
 0x195   :  { %2635 = vmatprep.mubr.bf16.mxu0 %v459_v15 }
 0x19c   :  { %2636 = vmatmul.mubr.bf16.gmra.mrb[20].mxu0 %v457_v16  ;;  %v11811_v16 = vld [vmem:[%s18497_s3 + $0x128] sm:$0xff]  }
 0x19d   :  { %2643 = vmatprep.mubr.bf16.mxu0 %v461_v5  ;;  %2895 = vmatpush1.bf16.msra.mxu0 %v11811_v16  ;;  %v102_v16 = vld [vmem:[%s18494_s0 + $0x138] sm:$0xff] }
 0x19e   :  { %2896 = vmatprep.subr.bf16.mxu0 %v19140_v26 }
 0x1a4   :  { %2644 = vmatmul.mubr.bf16.gmra.mrb[24].mxu0 %v459_v15  ;;  %v471_v15 = vsel %vm444_vm2, %v468_v58, %v470_v22  ;;  %v480_v58 = vrot.slane %v12609_v0, 1 }
 0x1a5   :  { %2651 = vmatprep.mubr.bf16.mxu0 %v463_v13 }
 0x1a6   :  { %v481_v22 = vsel %vm444_vm2, %v478_v34, %v480_v58 }
 0x1ac   :  { %2652 = vmatmul.mubr.bf16.gmra.mrb[28].mxu0 %v461_v5  ;;  %v11812_v5 = vld [vmem:[%s18497_s3 + $0x130] sm:$0xff]  }
 0x1ad   :  { %2659 = vmatprep.mubr.bf16.mxu0 %v465_v1  ;;  %2897 = vmatpush1.bf16.msra.mxu0 %v11812_v5  ;;  %v987_v5 = vrot.slane %v12611_v57, 1 }
 0x1ae   :  { %2898 = vmatprep.subr.bf16.mxu0 %v19140_v26 }
 0x1b1   :  { %2899 = vmatpush1.bf16.msra.mxu0 %v11813_v10 }
 0x1b2   :  { %2900 = vmatprep.subr.bf16.mxu0 %v19140_v26 }
 0x1b4   :  { %2660 = vmatmul.mubr.bf16.gmra.mrb[32].mxu0 %v463_v13  ;;  %v475_v13 = vsel %vm444_vm2, %v472_v24, %v474_v8 }
 0x1b5   :  { %2667 = vmatprep.mubr.bf16.mxu0 %v467_v3 }
 0x1bc   :  { %2668 = vmatmul.mubr.bf16.gmra.mrb[36].mxu0 %v465_v1  ;;  %v477_v1 = vsel %vm444_vm2, %v474_v8, %v476_v18  ;;  %v989_v8 = vrot.slane %v12645_v50, 1 }
 0x1bd   :  { %2675 = vmatprep.mubr.bf16.mxu0 %v469_v25 }
 0x1be   :  { %v990_v10 = vsel %vm444_vm2, %v987_v5, %v989_v8 }
 0x1c4   :  { %2676 = vmatmul.mubr.bf16.gmra.mrb[40].mxu0 %v467_v3  ;;  %v479_v3 = vsel %vm444_vm2, %v476_v18, %v478_v34  ;;  %v11814_v34 = vld [vmem:[%s18497_s3 + $0x140] sm:$0xff]  }
 0x1c5   :  { %2683 = vmatprep.mubr.bf16.mxu0 %v471_v15  ;;  %2901 = vmatpush1.bf16.msra.mxu0 %v11814_v34 }
 0x1c6   :  { %2902 = vmatprep.subr.bf16.mxu0 %v19140_v26 }
 0x1cc   :  { %2684 = vmatmul.mubr.bf16.gmra.mrb[44].mxu0 %v469_v25  ;;  %v101_v25 = vld [vmem:[%s18494_s0 + $0x130] sm:$0xff] }
 0x1cd   :  { %2691 = vmatprep.mubr.bf16.mxu0 %v473_v49 }
 0x1d4   :  { %2692 = vmatmul.mubr.bf16.gmra.mrb[48].mxu0 %v471_v15  ;;  %v13082_v15 = vpack.c.bf16 %v102_v16, %v101_v25  ;;  %v1271_v16 = vrot.slane %v990_v10, 4  ;;  %v11817_v10 = vld [vmem:[%s18497_s3 + $0x158] sm:$0xff]  }
 0x1d5   :  { %2699 = vmatprep.mubr.bf16.mxu0 %v475_v13 }
 0x1d6   :  { %v501_v24 = vrot.slane %v13082_v15, 1 }
 0x1dc   :  { %2700 = vmatmul.mubr.bf16.gmra.mrb[52].mxu0 %v473_v49  ;;  %v985_v49 = vrot.slane %v12598_v40, 1 }
 0x1dd   :  { %2707 = vmatprep.mubr.bf16.mxu0 %v477_v1 }
 0x1de   :  { %v988_v18 = vsel %vm444_vm2, %v985_v49, %v987_v5  ;;  %v986_v5 = vsel %vm444_vm2, %v984_v32, %v985_v49  ;;  %v993_v32 = vrot.slane %v12701_v33, 1 }
 0x1df   :  { %v1269_v25 = vrot.slane %v988_v18, 4  ;;  %v1268_v18 = vrot.slane %v986_v5, 4  ;;  %v11819_v5 = vld [vmem:[%s18497_s3 + $0x168] sm:$0xff]  }
 0x1e1   :  { %v1270_v49 = vsel %vm1261_vm1, %v1268_v18, %v1269_v25 }
 0x1e4   :  { %2708 = vmatmul.mubr.bf16.gmra.mrb[56].mxu0 %v475_v13  ;;  %v502_v13 = vsel %vm444_vm2, %v480_v58, %v501_v24  ;;  %v991_v58 = vrot.slane %v12672_v52, 1  ;;  %v1272_v24 = vsel %vm1261_vm1, %v1269_v25, %v1271_v16  ;;  %v995_v25 = vrot.slane %v12729_v28, 1 }
 0x1e5   :  { %2715 = vmatprep.mubr.bf16.mxu0 %v479_v3 }
 0x1ec   :  { %2716 = vmatmul.mubr.bf16.gmra.mrb[60].mxu0 %v477_v1  ;;  %v11815_v1 = vld [vmem:[%s18497_s3 + $0x148] sm:$0xff]  }
 0x1ed   :  { %2723 = vmatprep.mubr.bf16.mxu0 %v481_v22  ;;  %2903 = vmatpush1.bf16.msra.mxu0 %v11815_v1  ;;  %v11818_v1 = vld [vmem:[%s18497_s3 + $0x160] sm:$0xff]  }
 0x1ee   :  { %2904 = vmatprep.subr.bf16.mxu0 %v19140_v26 }
 0x1f4   :  { %2724 = vmatmul.mubr.bf16.gmra.mrb[64].mxu0 %v479_v3  ;;  %v992_v3 = vsel %vm444_vm2, %v989_v8, %v991_v58 }
 0x1f5   :  { %2731 = vmatprep.mubr.bf16.mxu0 %v502_v13  ;;  %v11816_v13 = vld [vmem:[%s18497_s3 + $0x150] sm:$0xff]   ;;  %v1291_v34 = vrot.slane %v992_v3, 4 }
 0x1f6   :  { %2905 = vmatpush1.bf16.msra.mxu0 %v11816_v13 }
 0x1f7   :  { %2906 = vmatprep.subr.bf16.mxu0 %v19140_v26  ;;  %v1292_v8 = vsel %vm1261_vm1, %v1271_v16, %v1291_v34  ;;  %v19173_v16 = vshll.u32 %v12214_v12, 16 }
 0x1f9   :  { %v13126_v13 = vrot.slane %v19173_v16, 2 }
 0x1fa   :  { %2907 = vmatpush1.bf16.msra.mxu0 %v11817_v10 }
 0x1fb   :  { %2908 = vmatprep.subr.bf16.mxu0 %v19140_v26 }
 0x1fc   :  { %2732 = vmatmul.mubr.bf16.gmra.mrb[68].mxu0 %v481_v22  ;;  %v994_v22 = vsel %vm444_vm2, %v991_v58, %v993_v32  ;;  %v19174_v58 = vshrl.u32 %v12214_v12, 16 }
 0x1fd   :  { %2739 = vmatprep.mubr.bf16.mxu0 %v1272_v24  ;;  %v1305_v3 = vrot.slane %v994_v22, 4  ;;  %v11820_v22 = vld [vmem:[%s18497_s3 + $0x170] sm:$0xff]  }
 0x1fe   :  { %2909 = vmatpush1.bf16.msra.mxu0 %v11818_v1  ;;  %v13130_v18 = vrot.slane %v19174_v58, 1  ;;  %v11821_v1 = vld [vmem:[%s18497_s3 + $0x178] sm:$0xff]  }
 0x1ff   :  { %2910 = vmatprep.subr.bf16.mxu0 %v19140_v26  ;;  %v1306_v10 = vsel %vm1261_vm1, %v1291_v34, %v1305_v3  ;;  %v997_v34 = vrot.slane %v12757_v7, 1 }
 0x202   :  { %2911 = vmatpush1.bf16.msra.mxu0 %v11819_v5 }
 0x203   :  { %2912 = vmatprep.subr.bf16.mxu0 %v19140_v26 }
 0x204   :  { %2740 = vmatmul.mubr.bf16.gmra.mrb[72].mxu0 %v1270_v49  ;;  %v996_v49 = vsel %vm444_vm2, %v993_v32, %v995_v25 }
 0x205   :  { %2747 = vmatprep.mubr.bf16.mxu0 %v1292_v8  ;;  %v1319_v16 = vrot.slane %v996_v49, 4 }
 0x206   :  { %2913 = vmatpush1.bf16.msra.mxu0 %v11820_v22  ;;  %v999_v22 = vrot.slane %v12778_v19, 1 }
 0x207   :  { %2914 = vmatprep.subr.bf16.mxu0 %v19140_v26  ;;  %v1320_v32 = vsel %vm1261_vm1, %v1305_v3, %v1319_v16 }
 0x208   :  { %v1000_v49 = vsel %vm444_vm2, %v997_v34, %v999_v22 }
 0x209   :  { %v1347_v5 = vrot.slane %v1000_v49, 4 }
 0x20a   :  { %2915 = vmatpush1.bf16.msra.mxu0 %v11821_v1  ;;  %v1001_v1 = vrot.slane %v12798_v31, 1 }
 0x20b   :  { %3205 = vmatprep.subr.bf16.mxu0 %v19140_v26 }
 0x20c   :  { %2748 = vmatmul.mubr.bf16.gmra.mrb[76].mxu0 %v1272_v24  ;;  %v998_v24 = vsel %vm444_vm2, %v995_v25, %v997_v34  ;;  %v1002_v45 = vsel %vm444_vm2, %v999_v22, %v1001_v1  ;;  %v1003_v25 = vrot.slane %v12818_v41, 1  ;;  %v1005_v34 = vrot.slane %v12838_v17, 1 }
 0x20d   :  { %2755 = vmatprep.mubr.bf16.mxu0 %v1306_v10  ;;  %v1333_v58 = vrot.slane %v998_v24, 4 }
 0x20f   :  { %v1334_v39 = vsel %vm1261_vm1, %v1319_v16, %v1333_v58  ;;  %v1348_v3 = vsel %vm1261_vm1, %v1333_v58, %v1347_v5  ;;  %v1004_v16 = vsel %vm444_vm2, %v1001_v1, %v1003_v25  ;;  %v1006_v58 = vsel %vm444_vm2, %v1003_v25, %v1005_v34 }
 0x210   :  { %v1009_v1 = vrot.slane %v12878_v62, 1  ;;  %v1011_v25 = vrot.slane %v12898_v11, 1 }
 0x214   :  { %2756 = vmatmul.mubr.bf16.gmra.mrb[80].mxu0 %v1292_v8  ;;  %v1361_v8 = vrot.slane %v1002_v45, 4  ;;  %v1007_v45 = vrot.slane %v12858_v27, 1 }
 0x215   :  { %2763 = vmatprep.mubr.bf16.mxu0 %v1320_v32 }
 0x216   :  { %v1362_v24 = vsel %vm1261_vm1, %v1347_v5, %v1361_v8  ;;  %v1008_v5 = vsel %vm444_vm2, %v1005_v34, %v1007_v45  ;;  %v1013_v34 = vrot.slane %v12918_v48, 1 }
 0x21c   :  { %2764 = vmatmul.mubr.bf16.gmra.mrb[84].mxu0 %v1306_v10  ;;  %v1375_v10 = vrot.slane %v1004_v16, 4 }
 0x21d   :  { %2771 = vmatprep.mubr.bf16.mxu0 %v1334_v39 }
 0x21e   :  { %v1376_v49 = vsel %vm1261_vm1, %v1361_v8, %v1375_v10  ;;  %v1010_v8 = vsel %vm444_vm2, %v1007_v45, %v1009_v1  ;;  %v1015_v45 = vrot.slane %v12938_v59, 1 }
 0x224   :  { %2772 = vmatmul.mubr.bf16.gmra.mrb[88].mxu0 %v1320_v32  ;;  %v1389_v32 = vrot.slane %v1006_v58, 4 }
 0x225   :  { %2779 = vmatprep.mubr.bf16.mxu0 %v1348_v3 }
 0x226   :  { %v1390_v22 = vsel %vm1261_vm1, %v1375_v10, %v1389_v32  ;;  %v1012_v10 = vsel %vm444_vm2, %v1009_v1, %v1011_v25  ;;  %v1017_v1 = vrot.slane %v12958_v36, 1 }
 0x22c   :  { %2780 = vmatmul.mubr.bf16.gmra.mrb[92].mxu0 %v1334_v39  ;;  %v1403_v39 = vrot.slane %v1008_v5, 4 }
 0x22d   :  { %2787 = vmatprep.mubr.bf16.mxu0 %v1362_v24 }
 0x22e   :  { %v1404_v16 = vsel %vm1261_vm1, %v1389_v32, %v1403_v39  ;;  %v1014_v32 = vsel %vm444_vm2, %v1011_v25, %v1013_v34  ;;  %v1019_v25 = vrot.slane %v12978_v46, 1 }
 0x234   :  { %2788 = vmatmul.mubr.bf16.gmra.mrb[96].mxu0 %v1348_v3  ;;  %v1417_v3 = vrot.slane %v1010_v8, 4 }
 0x235   :  { %2795 = vmatprep.mubr.bf16.mxu0 %v1376_v49 }
 0x236   :  { %v1418_v58 = vsel %vm1261_vm1, %v1403_v39, %v1417_v3  ;;  %v1016_v39 = vsel %vm444_vm2, %v1013_v34, %v1015_v45 }
 0x23c   :  { %2796 = vmatmul.mubr.bf16.gmra.mrb[100].mxu0 %v1362_v24  ;;  %v1431_v24 = vrot.slane %v1012_v10, 4 }
 0x23d   :  { %2803 = vmatprep.mubr.bf16.mxu0 %v1390_v22 }
 0x23e   :  { %v1432_v5 = vsel %vm1261_vm1, %v1417_v3, %v1431_v24  ;;  %v1018_v3 = vsel %vm444_vm2, %v1015_v45, %v1017_v1 }
 0x244   :  { %2804 = vmatmul.mubr.bf16.gmra.mrb[104].mxu0 %v1376_v49  ;;  %v1445_v49 = vrot.slane %v1014_v32, 4  ;;  %v1020_v32 = vsel %vm444_vm2, %v1017_v1, %v1019_v25 }
 0x245   :  { %2811 = vmatprep.mubr.bf16.mxu0 %v1404_v16 }
 0x246   :  { %v1446_v8 = vsel %vm1261_vm1, %v1431_v24, %v1445_v49  ;;  %v141_v24 = vld [vmem:[%s18494_s0 + $0x270] sm:$0xff] }
 0x24c   :  { %2812 = vmatmul.mubr.bf16.gmra.mrb[108].mxu0 %v1390_v22  ;;  %v1459_v22 = vrot.slane %v1016_v39, 4 }
 0x24d   :  { %2819 = vmatprep.mubr.bf16.mxu0 %v1418_v58 }
 0x24e   :  { %v1460_v10 = vsel %vm1261_vm1, %v1445_v49, %v1459_v22 }
 0x254   :  { %2820 = vmatmul.mubr.bf16.gmra.mrb[112].mxu0 %v1404_v16  ;;  %v1473_v16 = vrot.slane %v1018_v3, 4 }
 0x255   :  { %2827 = vmatprep.mubr.bf16.mxu0 %v1432_v5 }
 0x256   :  { %v1474_v34 = vsel %vm1261_vm1, %v1459_v22, %v1473_v16 }
 0x25c   :  { %2828 = vmatmul.mubr.bf16.gmra.mrb[116].mxu0 %v1418_v58  ;;  %v142_v58 = vld [vmem:[%s18494_s0 + $0x278] sm:$0xff] }
 0x25d   :  { %2835 = vmatprep.mubr.bf16.mxu0 %v1446_v8  ;;  %v13187_v49 = vpack.c.bf16 %v142_v58, %v141_v24  ;;  %v606_v24 = vrot.slane %v12214_v12, 2  ;;  %v607_v58 = vrot.slane %v12260_v30, 2  ;;  %v19175_v12 = vor.u32 %v13126_v13, %v13130_v18  ;;  %v11823_v13 = vld [vmem:[%s18497_s3 + $0x188] sm:$0xff]  }
 0x25e   :  { %v611_v18 = vrot.slane %v12307_v47, 2 }
 0x25f   :  { %v1022_v45 = vrot.slane %v13187_v49, 1 }
 0x261   :  { %v1023_v3 = vsel %vm444_vm2, %v1019_v25, %v1022_v45  ;;  %v1517_v22 = vrot.slane %v1022_v45, 4  ;;  %v512_v45 = vrot.slane %v12320_v53, 1 }
 0x262   :  { %v1501_v46 = vrot.slane %v1023_v3, 4 }
 0x264   :  { %2836 = vmatmul.mubr.bf16.gmra.mrb[120].mxu0 %v1432_v5  ;;  %v1487_v5 = vrot.slane %v1020_v32, 4  ;;  %v1518_v1 = vsel %vm1261_vm1, %v1501_v46, %v1517_v22  ;;  %v509_v32 = vrot.slane %v12274_v35, 2 }
 0x265   :  { %2843 = vmatprep.mubr.bf16.mxu0 %v1460_v10 }
 0x266   :  { %v1488_v39 = vsel %vm1261_vm1, %v1473_v16, %v1487_v5  ;;  %v1502_v14 = vsel %vm1261_vm1, %v1487_v5, %v1501_v46  ;;  %v609_v46 = vrot.slane %v12280_v37, 2 }
 0x268   :  { %v13211_v3 = vsel %vm605_vm3, %v607_v58, %v609_v46 }
 0x269   :  { %19176 = vst [vmem:[#allocation73_spill] sm:$0xff] %v13211_v3 }
 0x26c   :  { %2844 = vmatmul.mubr.bf16.gmra.mrb[124].mxu0 %v1446_v8  ;;  %v1515_v8 = vrot.slane %v1019_v25, 4 }
 0x26d   :  { %2851 = vmatprep.mubr.bf16.mxu0 %v1474_v34 }
 0x26e   :  { %v1516_v16 = vsel %vm1261_vm1, %v1487_v5, %v1515_v8  ;;  %v513_v5 = vrot.slane %v12293_v42, 2  ;;  %v516_v8 = vrot.slane %v12338_v60, 1 }
 0x270   :  { %v514_v22 = vor.u32 %v513_v5, %v512_v45  ;;  %v615_v45 = vrot.slane %v12345_v63, 2 }
 0x274   :  { %2852 = vmatmul.mubr.bf16.gmra.mrb[128].mxu0 %v1460_v10  ;;  %v508_v10 = vrot.slane %v12283_v38, 1 }
 0x275   :  { %2859 = vmatprep.mubr.bf16.mxu0 %v1488_v39 }
 0x27c   :  { %2860 = vmatmul.mubr.bf16.gmra.mrb[132].mxu0 %v1474_v34  ;;  %v608_v34 = vsel %vm605_vm3, %v606_v24, %v607_v58  ;;  %v517_v24 = vrot.slane %v12316_v51, 2  ;;  %v13223_v58 = vsel %vm605_vm3, %v609_v46, %v611_v18  ;;  %v11824_v46 = vld [vmem:[%s18497_s3 + $0x190] sm:$0xff]  }
 0x27d   :  { %2867 = vmatprep.mubr.bf16.mxu0 %v1502_v14  ;;  %v510_v14 = vor.u32 %v509_v32, %v508_v10  ;;  %19177 = vst [vmem:[#allocation74_spill] sm:$0xff] %v13223_v58  ;;  %v613_v10 = vrot.slane %v12328_v56, 2 }
 0x27f   :  { %v511_v25 = vsel %vm504_vm4, %v19175_v12, %v510_v14  ;;  %v13232_v12 = vsel %vm605_vm3, %v611_v18, %v613_v10 }
 0x280   :  { %19178 = vst [vmem:[#allocation75_spill] sm:$0xff] %v13232_v12 }
 0x284   :  { %2868 = vmatmul.mubr.bf16.gmra.mrb[136].mxu0 %v1488_v39  ;;  %v11822_v39 = vld [vmem:[%s18497_s3 + $0x180] sm:$0xff]  }
 0x285   :  { %2875 = vmatprep.mubr.bf16.mxu0 %v1518_v1  ;;  %v515_v1 = vsel %vm504_vm4, %v510_v14, %v514_v22  ;;  %v521_v14 = vrot.slane %v12341_v61, 2 }
 0x28c   :  { %2876 = vmatmul.mubr.bf16.gmra.mrb[140].mxu0 %v1516_v16  ;;  %v518_v16 = vor.u32 %v517_v24, %v516_v8  ;;  %v617_v24 = vrot.slane %v12367_v9, 2 }
 0x28d   :  { %2916 = vmatprep.mubr.bf16.mxu0 %v608_v34  ;;  %v520_v34 = vrot.slane %v12354_v4, 1 }
 0x28e   :  { %v519_v32 = vsel %vm504_vm4, %v514_v22, %v518_v16 }
 0x294   :  { %2917 = vmatmul.mubr.bf16.vlgmr.msra.gmra.mrb[0].mxu0 %v511_v25  ;;  %v522_v25 = vor.u32 %v521_v14, %v520_v34  ;;  %v19182_v34 = vld [vmem:[#allocation13_spill] sm:$0xff] }
 0x295   :  { %2924 = vmatprep.mubr.bf16.mxu0 %v13211_v3  ;;  %3206 = vmatpush1.bf16.msra.mxu0 %v11822_v39  ;;  %v19179_v39 = vld [vmem:[#allocation11_spill] sm:$0xff]  ;;  %v528_v14 = vrot.slane %v19182_v34, 1 }
 0x296   :  { %3207 = vmatprep.subr.bf16.mxu0 %v19140_v26  ;;  %v523_v5 = vsel %vm504_vm4, %v518_v16, %v522_v25  ;;  %v524_v22 = vrot.slane %v19179_v39, 1  ;;  %v13252_v16 = vsel %vm605_vm3, %v615_v45, %v617_v24 }
 0x297   :  { %19184 = vst [vmem:[#allocation77_spill] sm:$0xff] %v13252_v16 }
 0x299   :  { %3208 = vmatpush1.bf16.msra.mxu0 %v11823_v13  ;;  %v19180_v13 = vld [vmem:[#allocation10_spill] sm:$0xff] }
 0x29a   :  { %3209 = vmatprep.subr.bf16.mxu0 %v19140_v26  ;;  %v525_v18 = vrot.slane %v19180_v13, 2 }
 0x29c   :  { %2925 = vmatmul.mubr.bf16.gmra.mrb[4].mxu0 %v515_v1  ;;  %v13244_v1 = vsel %vm605_vm3, %v613_v10, %v615_v45  ;;  %v526_v8 = vor.u32 %v525_v18, %v524_v22  ;;  %v619_v22 = vrot.slane %v12385_v20, 2  ;;  %v19185_v18 = vld [vmem:[#allocation15_spill] sm:$0xff] }
 0x29d   :  { %2932 = vmatprep.mubr.bf16.mxu0 %v13223_v58  ;;  %3210 = vmatpush1.bf16.msra.mxu0 %v11824_v46  ;;  %19181 = vst [vmem:[#allocation76_spill] sm:$0xff] %v13244_v1  ;;  %v19183_v46 = vld [vmem:[#allocation12_spill] sm:$0xff] }
 0x29e   :  { %3211 = vmatprep.subr.bf16.mxu0 %v19140_v26  ;;  %v19189_v58 = vld [vmem:[#allocation16_spill] sm:$0xff] }
 0x29f   :  { %v537_v13 = vrot.slane %v19189_v58, 2  ;;  %v19198_v58 = vld [vmem:[#allocation22_spill] sm:$0xff] }
 0x2a4   :  { %2933 = vmatmul.mubr.bf16.gmra.mrb[8].mxu0 %v519_v32  ;;  %v527_v32 = vsel %vm504_vm4, %v522_v25, %v526_v8 }
 0x2a5   :  { %2940 = vmatprep.mubr.bf16.mxu0 %v13232_v12  ;;  %v529_v12 = vrot.slane %v19183_v46, 2  ;;  %v19186_v46 = vld [vmem:[#allocation14_spill] sm:$0xff] }
 0x2a6   :  { %v533_v45 = vrot.slane %v19186_v46, 2  ;;  %v19192_v46 = vld [vmem:[#allocation18_spill] sm:$0xff] }
 0x2a7   :  { %v530_v10 = vor.u32 %v529_v12, %v528_v14  ;;  %v621_v14 = vrot.slane %v12407_v29, 2 }
 0x2a9   :  { %v531_v25 = vsel %vm504_vm4, %v526_v8, %v530_v10  ;;  %v13272_v8 = vsel %vm605_vm3, %v619_v22, %v621_v14 }
 0x2aa   :  { %19190 = vst [vmem:[#allocation79_spill] sm:$0xff] %v13272_v8 }
 0x2ac   :  { %2941 = vmatmul.mubr.bf16.gmra.mrb[12].mxu0 %v523_v5  ;;  %v11825_v5 = vld [vmem:[%s18497_s3 + $0x198] sm:$0xff]  }
 0x2ad   :  { %2948 = vmatprep.mubr.bf16.mxu0 %v13244_v1  ;;  %3212 = vmatpush1.bf16.msra.mxu0 %v11825_v5  ;;  %v532_v1 = vrot.slane %v19185_v18, 1  ;;  %v19188_v5 = vld [vmem:[#allocation17_spill] sm:$0xff]  ;;  %v541_v18 = vrot.slane %v19192_v46, 2  ;;  %v19195_v46 = vld [vmem:[#allocation20_spill] sm:$0xff] }
 0x2ae   :  { %3213 = vmatprep.subr.bf16.mxu0 %v19140_v26  ;;  %v536_v34 = vrot.slane %v19188_v5, 1  ;;  %v549_v5 = vrot.slane %v19198_v58, 2  ;;  %v19201_v58 = vld [vmem:[#allocation24_spill] sm:$0xff] }
 0x2af   :  { %v534_v12 = vor.u32 %v533_v45, %v532_v1  ;;  %v19191_v1 = vld [vmem:[#allocation19_spill] sm:$0xff] }
 0x2b0   :  { %v540_v45 = vrot.slane %v19191_v1, 1 }
 0x2b4   :  { %2949 = vmatmul.mubr.bf16.gmra.mrb[16].mxu0 %v527_v32  ;;  %v13264_v32 = vsel %vm605_vm3, %v617_v24, %v619_v22  ;;  %v538_v24 = vor.u32 %v537_v13, %v536_v34  ;;  %v11826_v22 = vld [vmem:[%s18497_s3 + $0x1a0] sm:$0xff]   ;;  %v625_v13 = vrot.slane %v12443_v54, 2 }
 0x2b5   :  { %2956 = vmatprep.mubr.bf16.mxu0 %v13252_v16  ;;  %19187 = vst [vmem:[#allocation78_spill] sm:$0xff] %v13264_v32  ;;  %v535_v16 = vsel %vm504_vm4, %v530_v10, %v534_v12  ;;  %3214 = vmatpush1.bf16.msra.mxu0 %v11826_v22  ;;  %v19197_v22 = vld [vmem:[#allocation23_spill] sm:$0xff] }
 0x2b6   :  { %3215 = vmatprep.subr.bf16.mxu0 %v19140_v26 }
 0x2bc   :  { %2957 = vmatmul.mubr.bf16.gmra.mrb[20].mxu0 %v531_v25  ;;  %v623_v25 = vrot.slane %v12425_v43, 2 }
 0x2bd   :  { %2964 = vmatprep.mubr.bf16.mxu0 %v13264_v32  ;;  %v539_v32 = vsel %vm504_vm4, %v534_v12, %v538_v24  ;;  %v19194_v12 = vld [vmem:[#allocation21_spill] sm:$0xff] }
 0x2be   :  { %v13280_v10 = vsel %vm605_vm3, %v621_v14, %v623_v25  ;;  %v545_v14 = vrot.slane %v19195_v46, 2  ;;  %v19204_v46 = vld [vmem:[#allocation26_spill] sm:$0xff] }
 0x2bf   :  { %19193 = vst [vmem:[#allocation80_spill] sm:$0xff] %v13280_v10 }
 0x2c4   :  { %2965 = vmatmul.mubr.bf16.gmra.mrb[24].mxu0 %v535_v16  ;;  %v542_v16 = vor.u32 %v541_v18, %v540_v45  ;;  %v627_v18 = vrot.slane %v12465_v6, 2 }
 0x2c5   :  { %2972 = vmatprep.mubr.bf16.mxu0 %v13272_v8  ;;  %v544_v8 = vrot.slane %v19194_v12, 1  ;;  %v557_v12 = vrot.slane %v19204_v46, 2  ;;  %v19207_v46 = vld [vmem:[#allocation28_spill] sm:$0xff] }
 0x2c6   :  { %v543_v34 = vsel %vm504_vm4, %v538_v24, %v542_v16  ;;  %v13300_v24 = vsel %vm605_vm3, %v625_v13, %v627_v18 }
 0x2c7   :  { %v546_v1 = vor.u32 %v545_v14, %v544_v8  ;;  %19199 = vst [vmem:[#allocation82_spill] sm:$0xff] %v13300_v24  ;;  %v629_v8 = vrot.slane %v12483_v21, 2  ;;  %v19200_v14 = vld [vmem:[#allocation25_spill] sm:$0xff] }
 0x2c9   :  { %v547_v45 = vsel %vm504_vm4, %v542_v16, %v546_v1 }
 0x2cc   :  { %2973 = vmatmul.mubr.bf16.gmra.mrb[28].mxu0 %v539_v32  ;;  %v13292_v32 = vsel %vm605_vm3, %v623_v25, %v625_v13  ;;  %v11827_v25 = vld [vmem:[%s18497_s3 + $0x1a8] sm:$0xff]   ;;  %v553_v13 = vrot.slane %v19201_v58, 2  ;;  %v19210_v58 = vld [vmem:[#allocation30_spill] sm:$0xff] }
 0x2cd   :  { %2980 = vmatprep.mubr.bf16.mxu0 %v13280_v10  ;;  %19196 = vst [vmem:[#allocation81_spill] sm:$0xff] %v13292_v32  ;;  %v548_v10 = vrot.slane %v19197_v22, 1  ;;  %3216 = vmatpush1.bf16.msra.mxu0 %v11827_v25  ;;  %v19203_v25 = vld [vmem:[#allocation27_spill] sm:$0xff] }
 0x2ce   :  { %3217 = vmatprep.subr.bf16.mxu0 %v19140_v26 }
 0x2d4   :  { %2981 = vmatmul.mubr.bf16.gmra.mrb[32].mxu0 %v543_v34  ;;  %v550_v34 = vor.u32 %v549_v5, %v548_v10  ;;  %v631_v5 = vrot.slane %v12507_v44, 2 }
 0x2d5   :  { %2988 = vmatprep.mubr.bf16.mxu0 %v13292_v32  ;;  %v552_v32 = vrot.slane %v19200_v14, 1  ;;  %v565_v14 = vrot.slane %v19210_v58, 2  ;;  %v19213_v58 = vld [vmem:[#allocation32_spill] sm:$0xff] }
 0x2d6   :  { %v551_v16 = vsel %vm504_vm4, %v546_v1, %v550_v34  ;;  %v13320_v1 = vsel %vm605_vm3, %v629_v8, %v631_v5 }
 0x2d7   :  { %v554_v22 = vor.u32 %v553_v13, %v552_v32  ;;  %19205 = vst [vmem:[#allocation84_spill] sm:$0xff] %v13320_v1  ;;  %v633_v32 = vrot.slane %v12528_v2, 2  ;;  %v19206_v13 = vld [vmem:[#allocation29_spill] sm:$0xff] }
 0x2d9   :  { %v555_v10 = vsel %vm504_vm4, %v550_v34, %v554_v22 }
 0x2dc   :  { %2989 = vmatmul.mubr.bf16.gmra.mrb[36].mxu0 %v547_v45  ;;  %v13312_v45 = vsel %vm605_vm3, %v627_v18, %v629_v8  ;;  %v11828_v18 = vld [vmem:[%s18497_s3 + $0x1b0] sm:$0xff]   ;;  %v561_v8 = vrot.slane %v19207_v46, 2  ;;  %v18659_v46 = vshrl.u32 %v13082_v15, 16 }
 0x2dd   :  { %2996 = vmatprep.mubr.bf16.mxu0 %v13300_v24  ;;  %19202 = vst [vmem:[#allocation83_spill] sm:$0xff] %v13312_v45  ;;  %v556_v24 = vrot.slane %v19203_v25, 1  ;;  %3218 = vmatpush1.bf16.msra.mxu0 %v11828_v18  ;;  %v19209_v18 = vld [vmem:[#allocation31_spill] sm:$0xff] }
 0x2de   :  { %3219 = vmatprep.subr.bf16.mxu0 %v19140_v26 }
 0x2e4   :  { %2997 = vmatmul.mubr.bf16.gmra.mrb[40].mxu0 %v551_v16  ;;  %v558_v16 = vor.u32 %v557_v12, %v556_v24  ;;  %v635_v12 = vrot.slane %v12547_v23, 2 }
 0x2e5   :  { %3004 = vmatprep.mubr.bf16.mxu0 %v13312_v45  ;;  %v560_v45 = vrot.slane %v19206_v13, 1 }
 0x2e6   :  { %v559_v34 = vsel %vm504_vm4, %v554_v22, %v558_v16  ;;  %v13340_v22 = vsel %vm605_vm3, %v633_v32, %v635_v12 }
 0x2e7   :  { %v562_v25 = vor.u32 %v561_v8, %v560_v45  ;;  %19211 = vst [vmem:[#allocation86_spill] sm:$0xff] %v13340_v22  ;;  %v637_v45 = vrot.slane %v12568_v55, 2  ;;  %v19212_v8 = vld [vmem:[#allocation35_spill] sm:$0xff] }
 0x2e9   :  { %v563_v24 = vsel %vm504_vm4, %v558_v16, %v562_v25 }
 0x2ec   :  { %3005 = vmatmul.mubr.bf16.gmra.mrb[44].mxu0 %v555_v10  ;;  %v13332_v10 = vsel %vm605_vm3, %v631_v5, %v633_v32  ;;  %v569_v32 = vrot.slane %v19213_v58, 2 }
 0x2ed   :  { %3012 = vmatprep.mubr.bf16.mxu0 %v13320_v1  ;;  %19208 = vst [vmem:[#allocation85_spill] sm:$0xff] %v13332_v10  ;;  %v564_v1 = vrot.slane %v19209_v18, 1  ;;  %v19215_v18 = vld [vmem:[#allocation36_spill] sm:$0xff] }
 0x2ef   :  { %v566_v5 = vor.u32 %v565_v14, %v564_v1  ;;  %v18651_v14 = vshrl.u32 %v12609_v0, 16 }
 0x2f1   :  { %v567_v16 = vsel %vm504_vm4, %v562_v25, %v566_v5  ;;  %v575_v25 = vrot.slane %v19215_v18, 2  ;;  %v19219_v18 = vshll.u32 %v12598_v40, 16 }
 0x2f3   :  { %v1025_v13 = vrot.slane %v19219_v18, 2  ;;  %v11833_v18 = vld [vmem:[%s18497_s3 + $0x208] sm:$0xff]  }
 0x2f4   :  { %3013 = vmatmul.mubr.bf16.gmra.mrb[48].mxu0 %v559_v34  ;;  %v11829_v34 = vld [vmem:[%s18497_s3 + $0x1b8] sm:$0xff]  }
 0x2f5   :  { %3020 = vmatprep.mubr.bf16.mxu0 %v13332_v10  ;;  %3220 = vmatpush1.bf16.msra.mxu0 %v11829_v34  ;;  %v568_v10 = vrot.slane %v19212_v8, 1  ;;  %v574_v34 = vrot.slane %v18651_v14, 1  ;;  %v1105_v14 = vrot.slane %v12611_v57, 2 }
 0x2f6   :  { %3221 = vmatprep.subr.bf16.mxu0 %v19140_v26 }
 0x2f7   :  { %v570_v1 = vor.u32 %v569_v32, %v568_v10  ;;  %v18661_v10 = vshll.u32 %v13082_v15, 16  ;;  %v1104_v32 = vrot.slane %v12598_v40, 2 }
 0x2f9   :  { %v571_v8 = vsel %vm504_vm4, %v566_v5, %v570_v1  ;;  %v1106_v3 = vsel %vm605_vm3, %v1104_v32, %v1105_v14 }
 0x2fa   :  { %v1276_v32 = vrot.slane %v1106_v3, 4 }
 0x2fc   :  { %3021 = vmatmul.mubr.bf16.gmra.mrb[52].mxu0 %v563_v24  ;;  %v13352_v24 = vsel %vm605_vm3, %v635_v12, %v637_v45  ;;  %v576_v12 = vor.u32 %v575_v25, %v574_v34  ;;  %v584_v34 = vrot.slane %v18661_v10, 2  ;;  %v19218_v25 = vshrl.u32 %v12598_v40, 16  ;;  %v11830_v10 = vld [vmem:[%s18497_s3 + $0x1c0] sm:$0xff]  }
 0x2fd   :  { %3028 = vmatprep.mubr.bf16.mxu0 %v13340_v22  ;;  %19214 = vst [vmem:[#allocation87_spill] sm:$0xff] %v13352_v24  ;;  %v639_v22 = vrot.slane %v12609_v0, 2  ;;  %v11831_v40 = vld [vmem:[%s18497_s3 + $0x200] sm:$0xff]   ;;  %3222 = vmatpush1.bf16.msra.mxu0 %v11830_v10 }
 0x2fe   :  { %v577_v5 = vsel %vm504_vm4, %v570_v1, %v576_v12  ;;  %v19221_v1 = vld [vmem:[#allocation37_spill] sm:$0xff]  ;;  %10427 = vmatprep.subr.bf16.mxu1 %v11831_v40  ;;  %3223 = vmatprep.subr.bf16.mxu0 %v19140_v26 }
 0x2ff   :  { %v13362_v58 = vsel %vm605_vm3, %v637_v45, %v639_v22  ;;  %v1028_v39 = vrot.slane %v19221_v1, 2  ;;  %10428 = vmatpush3.bf16.msra.mxu1 %v11831_v40  ;;  %v1111_v40 = vrot.slane %v12701_v33, 2 }
 0x300   :  { %19216 = vst [vmem:[#allocation88_spill] sm:$0xff] %v13362_v58  ;;  %10429 = vmatprep.subr.bf16.mxu1 %v11833_v18 }
 0x303   :  { %10430 = vmatpush3.bf16.msra.mxu1 %v11833_v18  ;;  %v19226_v18 = vld [vmem:[#allocation45_spill] sm:$0xff] }
 0x304   :  { %3029 = vmatmul.mubr.bf16.gmra.mrb[56].mxu0 %v567_v16  ;;  %v18657_v16 = vrot.slane %v13082_v15, 2 }
 0x305   :  { %3036 = vmatprep.mubr.bf16.mxu0 %v13352_v24  ;;  %v1107_v24 = vrot.slane %v12645_v50, 2  ;;  %v19220_v50 = vld [vmem:[#allocation39_spill] sm:$0xff] }
 0x306   :  { %v13375_v45 = vsel %vm605_vm3, %v639_v22, %v18657_v16  ;;  %v1027_v57 = vrot.slane %v19220_v50, 1  ;;  %v19222_v16 = vld [vmem:[#allocation41_spill] sm:$0xff] }
 0x307   :  { %19217 = vst [vmem:[#allocation89_spill] sm:$0xff] %v13375_v45  ;;  %v1108_v22 = vsel %vm605_vm3, %v1105_v14, %v1107_v24  ;;  %v1031_v61 = vrot.slane %v19222_v16, 1 }
 0x308   :  { %v1029_v1 = vor.u32 %v1028_v39, %v1027_v57  ;;  %v19225_v57 = vld [vmem:[#allocation42_spill] sm:$0xff]  ;;  %v11834_v39 = vld [vmem:[%s18497_s3 + $0x1d0] sm:$0xff]  }
 0x30c   :  { %3037 = vmatmul.mubr.bf16.gmra.mrb[60].mxu0 %v571_v8  ;;  %v581_v8 = vrot.slane %v18659_v46, 1  ;;  %v19223_v46 = vld [vmem:[#allocation40_spill] sm:$0xff] }
 0x30d   :  { %3044 = vmatprep.mubr.bf16.mxu0 %v13362_v58  ;;  %v1024_v58 = vrot.slane %v19218_v25, 1  ;;  %v1032_v4 = vrot.slane %v19223_v46, 2  ;;  %v1277_v25 = vrot.slane %v1108_v22, 4  ;;  %v11832_v46 = vld [vmem:[%s18497_s3 + $0x1c8] sm:$0xff]  }
 0x30e   :  { %v585_v14 = vor.u32 %v584_v34, %v581_v8  ;;  %3224 = vmatpush1.bf16.msra.mxu0 %v11832_v46  ;;  %v19224_v34 = vld [vmem:[#allocation43_spill] sm:$0xff]  ;;  %v11835_v46 = vld [vmem:[%s18497_s3 + $0x210] sm:$0xff]  }
 0x30f   :  { %v1026_v16 = vor.u32 %v1025_v13, %v1024_v58  ;;  %v1033_v50 = vor.u32 %v1032_v4, %v1031_v61  ;;  %v1278_v3 = vsel %vm1261_vm1, %v1276_v32, %v1277_v25  ;;  %v1035_v58 = vrot.slane %v19224_v34, 1  ;;  %3225 = vmatprep.subr.bf16.mxu0 %v19140_v26  ;;  %v11837_v13 = vld [vmem:[%s18497_s3 + $0x218] sm:$0xff]   ;;  %10431 = vmatprep.subr.bf16.mxu1 %v11835_v46  ;;  %v19227_v32 = vld [vmem:[#allocation44_spill] sm:$0xff] }
 0x310   :  { %v1036_v61 = vrot.slane %v19225_v57, 2  ;;  %10432 = vmatpush3.bf16.msra.mxu1 %v11835_v46 }
 0x311   :  { %v1030_v10 = vsel %vm504_vm4, %v1026_v16, %v1029_v1  ;;  %v1034_v8 = vsel %vm504_vm4, %v1029_v1, %v1033_v50  ;;  %10433 = vmatprep.subr.bf16.mxu1 %v11837_v13 }
 0x312   :  { %v1274_v16 = vrot.slane %v1034_v8, 4  ;;  %3226 = vmatpush1.bf16.msra.mxu0 %v11834_v39  ;;  %v1037_v22 = vor.u32 %v1036_v61, %v1035_v58  ;;  %v11838_v61 = vld [vmem:[%s18497_s3 + $0x1e0] sm:$0xff]  }
 0x313   :  { %3227 = vmatprep.subr.bf16.mxu0 %v19140_v26 }
 0x314   :  { %3045 = vmatmul.mubr.bf16.gmra.mrb[64].mxu0 %v577_v5  ;;  %v1109_v5 = vrot.slane %v12672_v52, 2  ;;  %v1038_v8 = vsel %vm504_vm4, %v1033_v50, %v1037_v22  ;;  %10434 = vmatpush3.bf16.msra.mxu1 %v11837_v13  ;;  %v1113_v13 = vrot.slane %v12729_v28, 2 }
 0x315   :  { %3052 = vmatprep.mubr.bf16.mxu0 %v13375_v45  ;;  %v586_v45 = vsel %vm504_vm4, %v576_v12, %v585_v14  ;;  %v1273_v12 = vrot.slane %v1030_v10, 4  ;;  %v1039_v14 = vrot.slane %v19226_v18, 1  ;;  %v1293_v50 = vrot.slane %v1038_v8, 4 }
 0x316   :  { %v1110_v4 = vsel %vm605_vm3, %v1107_v24, %v1109_v5  ;;  %v11836_v24 = vld [vmem:[%s18497_s3 + $0x1d8] sm:$0xff]   ;;  %v1112_v58 = vsel %vm605_vm3, %v1109_v5, %v1111_v40  ;;  %v11840_v5 = vld [vmem:[%s18497_s3 + $0x1e8] sm:$0xff]  }
 0x317   :  { %v1279_v1 = vrot.slane %v1110_v4, 4  ;;  %3228 = vmatpush1.bf16.msra.mxu0 %v11836_v24  ;;  %v11839_v4 = vld [vmem:[%s18497_s3 + $0x220] sm:$0xff]   ;;  %v1295_v46 = vrot.slane %v1112_v58, 4  ;;  %v1114_v58 = vsel %vm605_vm3, %v1111_v40, %v1113_v13 }
 0x318   :  { %3229 = vmatprep.subr.bf16.mxu0 %v19140_v26  ;;  %10435 = vmatprep.subr.bf16.mxu1 %v11839_v4  ;;  %v1309_v40 = vrot.slane %v1114_v58, 4 }
 0x319   :  { %v13432_v10 = vsel %vm1261_vm1, %v1277_v25, %v1279_v1  ;;  %v11841_v25 = vld [vmem:[%s18497_s3 + $0x228] sm:$0xff]   ;;  %10436 = vmatpush3.bf16.msra.mxu1 %v11839_v4  ;;  %v11842_v4 = vld [vmem:[%s18497_s3 + $0x1f0] sm:$0xff]  }
 0x31a   :  { %19228 = vst [vmem:[#allocation43_spill] sm:$0xff] %v13432_v10  ;;  %10437 = vmatprep.subr.bf16.mxu1 %v11841_v25 }
 0x31b   :  { %3230 = vmatpush1.bf16.msra.mxu0 %v11838_v61  ;;  %v13457_v61 = vsel %vm1261_vm1, %v1279_v1, %v1295_v46  ;;  %v11845_v1 = vld [vmem:[%s18497_s3 + $0x238] sm:$0xff]  }
 0x31c   :  { %3053 = vmatmul.mubr.bf16.gmra.mrb[68].mxu0 %v586_v45  ;;  %v1275_v45 = vsel %vm1261_vm1, %v1273_v12, %v1274_v16  ;;  %3231 = vmatprep.subr.bf16.mxu0 %v19140_v26  ;;  %v1294_v12 = vsel %vm1261_vm1, %v1274_v16, %v1293_v50  ;;  %19231 = vst [vmem:[#allocation42_spill] sm:$0xff] %v13457_v61  ;;  %v11843_v16 = vld [vmem:[%s18497_s3 + $0x230] sm:$0xff]  }
 0x31d   :  { %3060 = vmatprep.mubr.bf16.mxu0 %v1278_v3  ;;  %v1040_v3 = vrot.slane %v19227_v32, 2  ;;  %10438 = vmatpush3.bf16.msra.mxu1 %v11841_v25  ;;  %v11844_v25 = vld [vmem:[%s18497_s3 + $0x1f8] sm:$0xff]  }
 0x31e   :  { %10439 = vmatprep.subr.bf16.mxu1 %v11843_v16 }
 0x31f   :  { %v1041_v39 = vor.u32 %v1040_v3, %v1039_v14  ;;  %v19230_v14 = vld [vmem:[#allocation46_spill] sm:$0xff]  ;;  %3232 = vmatpush1.bf16.msra.mxu0 %v11840_v5 }
 0x320   :  { %v1044_v3 = vrot.slane %v19230_v14, 2  ;;  %3233 = vmatprep.subr.bf16.mxu0 %v19140_v26  ;;  %v19234_v14 = vld [vmem:[#allocation48_spill] sm:$0xff] }
 0x321   :  { %v1042_v24 = vsel %vm504_vm4, %v1037_v22, %v1041_v39  ;;  %10440 = vmatpush3.bf16.msra.mxu1 %v11843_v16  ;;  %v768_v16 = vrot.slane %v12307_v47, 3 }
 0x322   :  { %v1307_v22 = vrot.slane %v1042_v24, 4  ;;  %10441 = vmatprep.subr.bf16.mxu1 %v11845_v1  ;;  %v13478_v24 = vsel %vm1261_vm1, %v1295_v46, %v1309_v40 }
 0x323   :  { %3234 = vmatpush1.bf16.msra.mxu0 %v11842_v4  ;;  %19232 = vst [vmem:[#allocation45_spill] sm:$0xff] %v13478_v24  ;;  %v19233_v4 = vld [vmem:[#allocation49_spill] sm:$0xff] }
 0x324   :  { %3061 = vmatmul.mubr.bf16.gmra.mrb[72].mxu0 %v1275_v45  ;;  %v19229_v45 = vld [vmem:[#allocation47_spill] sm:$0xff]  ;;  %3235 = vmatprep.subr.bf16.mxu0 %v19140_v26 }
 0x325   :  { %3068 = vmatprep.mubr.bf16.mxu0 %v13432_v10  ;;  %v1043_v8 = vrot.slane %v19229_v45, 1  ;;  %v1115_v10 = vrot.slane %v12757_v7, 2  ;;  %v1048_v45 = vrot.slane %v19234_v14, 2  ;;  %10442 = vmatpush3.bf16.msra.mxu1 %v11845_v1  ;;  %v1117_v14 = vrot.slane %v12778_v19, 2 }
 0x326   :  { %6994 = vmatprep.subr.bf16.mxu1 %v19140_v26  ;;  %v770_v26 = vrot.slane %v12328_v56, 3 }
 0x327   :  { %v1045_v5 = vor.u32 %v1044_v3, %v1043_v8  ;;  %3236 = vmatpush1.bf16.msra.mxu0 %v11844_v25  ;;  %v765_v8 = vrot.slane %v12260_v30, 3  ;;  %v766_v3 = vrot.slane %v12280_v37, 3 }
 0x329   :  { %v1046_v58 = vsel %vm504_vm4, %v1041_v39, %v1045_v5  ;;  %v767_v46 = vsel %vm764_vm5, %v765_v8, %v766_v3  ;;  %v769_v39 = vsel %vm764_vm5, %v766_v3, %v768_v16 }
 0x32a   :  { %10443 = vmatprep.mubr.bf16.mxu1 %v767_v46  ;;  %v1321_v30 = vrot.slane %v1046_v58, 4  ;;  %v1118_v58 = vsel %vm605_vm3, %v1115_v10, %v1117_v14  ;;  %v1119_v46 = vrot.slane %v12798_v31, 2 }
 0x32b   :  { %10444 = vmatmul.mubr.bf16.vlgmr.msra.gmra.mrb[0].mxu1 %v769_v39 }
 0x32c   :  { %3069 = vmatmul.mubr.bf16.gmra.mrb[76].mxu0 %v1294_v12  ;;  %v1308_v12 = vsel %vm1261_vm1, %v1293_v50, %v1307_v22  ;;  %v1116_v50 = vsel %vm605_vm3, %v1113_v13, %v1115_v10  ;;  %v1322_v47 = vsel %vm1261_vm1, %v1307_v22, %v1321_v30  ;;  %v19235_v13 = vld [vmem:[#allocation51_spill] sm:$0xff]  ;;  %v19240_v10 = vld [vmem:[#allocation52_spill] sm:$0xff] }
 0x32d   :  { %3076 = vmatprep.mubr.bf16.mxu0 %v13457_v61  ;;  %v1047_v61 = vrot.slane %v19233_v4, 1  ;;  %v1323_v37 = vrot.slane %v1116_v50, 4  ;;  %v1051_v1 = vrot.slane %v19235_v13, 1  ;;  %v19236_v4 = vld [vmem:[#allocation50_spill] sm:$0xff]  ;;  %v1337_v50 = vrot.slane %v1118_v58, 4 }
 0x32e   :  { %v1052_v8 = vrot.slane %v19236_v4, 2 }
 0x32f   :  { %v1049_v25 = vor.u32 %v1048_v45, %v1047_v61 }
 0x330   :  { %v1053_v61 = vor.u32 %v1052_v8, %v1051_v1  ;;  %v1120_v1 = vsel %vm605_vm3, %v1117_v14, %v1119_v46  ;;  %v771_v8 = vsel %vm764_vm5, %v768_v16, %v770_v26 }
 0x331   :  { %v1050_v3 = vsel %vm504_vm4, %v1045_v5, %v1049_v25  ;;  %v19239_v5 = vld [vmem:[#allocation53_spill] sm:$0xff]  ;;  %10447 = vmatprep.mubr.bf16.mxu1 %v771_v8 }
 0x332   :  { %v1335_v45 = vrot.slane %v1050_v3, 4  ;;  %v1054_v39 = vsel %vm504_vm4, %v1049_v25, %v1053_v61  ;;  %v1121_v3 = vrot.slane %v12818_v41, 2 }
 0x333   :  { %v1349_v56 = vrot.slane %v1054_v39, 4 }
 0x334   :  { %3077 = vmatmul.mubr.bf16.gmra.mrb[80].mxu0 %v1308_v12  ;;  %v13496_v12 = vsel %vm1261_vm1, %v1309_v40, %v1323_v37  ;;  %v1336_v22 = vsel %vm1261_vm1, %v1321_v30, %v1335_v45  ;;  %v13506_v40 = vsel %vm1261_vm1, %v1323_v37, %v1337_v50  ;;  %v1351_v37 = vrot.slane %v1120_v1, 4 }
 0x335   :  { %3084 = vmatprep.mubr.bf16.mxu0 %v13478_v24  ;;  %19237 = vst [vmem:[#allocation44_spill] sm:$0xff] %v13496_v12  ;;  %19238 = vst [vmem:[#allocation51_spill] sm:$0xff] %v13506_v40  ;;  %v1055_v24 = vrot.slane %v19239_v5, 1  ;;  %v1350_v58 = vsel %vm1261_vm1, %v1335_v45, %v1349_v56  ;;  %v19242_v5 = vld [vmem:[#allocation54_spill] sm:$0xff]  ;;  %v1123_v1 = vrot.slane %v12838_v17, 2 }
 0x336   :  { %v1060_v14 = vrot.slane %v19242_v5, 2  ;;  %v13520_v16 = vsel %vm1261_vm1, %v1337_v50, %v1351_v37 }
 0x337   :  { %19243 = vst [vmem:[#allocation50_spill] sm:$0xff] %v13520_v16 }
 0x33c   :  { %3085 = vmatmul.mubr.bf16.gmra.mrb[84].mxu0 %v1322_v47  ;;  %v1056_v47 = vrot.slane %v19240_v10, 2  ;;  %v19241_v10 = vld [vmem:[#allocation55_spill] sm:$0xff] }
 0x33d   :  { %3092 = vmatprep.mubr.bf16.mxu0 %v13496_v12  ;;  %v772_v12 = vrot.slane %v12345_v63, 3  ;;  %v1059_v63 = vrot.slane %v19241_v10, 1 }
 0x33e   :  { %v1057_v25 = vor.u32 %v1056_v47, %v1055_v24 }
 0x33f   :  { %v773_v30 = vsel %vm764_vm5, %v770_v26, %v772_v12  ;;  %v1122_v26 = vsel %vm605_vm3, %v1119_v46, %v1121_v3  ;;  %v1061_v24 = vor.u32 %v1060_v14, %v1059_v63  ;;  %v19246_v46 = vld [vmem:[#allocation56_spill] sm:$0xff]  ;;  %v1124_v63 = vsel %vm605_vm3, %v1121_v3, %v1123_v1 }
 0x340   :  { %10448 = vmatmul.mubr.bf16.gmra.mrb[4].mxu1 %v773_v30  ;;  %v1365_v47 = vrot.slane %v1122_v26, 4  ;;  %v774_v30 = vrot.slane %v12367_v9, 3 }
 0x341   :  { %v1062_v8 = vsel %vm504_vm4, %v1057_v25, %v1061_v24 }
 0x342   :  { %v13530_v50 = vsel %vm1261_vm1, %v1351_v37, %v1365_v47  ;;  %v775_v14 = vsel %vm764_vm5, %v772_v12, %v774_v30  ;;  %v1377_v9 = vrot.slane %v1062_v8, 4  ;;  %v1379_v37 = vrot.slane %v1124_v63, 4 }
 0x343   :  { %19244 = vst [vmem:[#allocation55_spill] sm:$0xff] %v13530_v50  ;;  %10451 = vmatprep.mubr.bf16.mxu1 %v775_v14  ;;  %v1127_v63 = vrot.slane %v12878_v62, 2 }
 0x344   :  { %3093 = vmatmul.mubr.bf16.gmra.mrb[88].mxu0 %v1336_v22  ;;  %v1058_v22 = vsel %vm504_vm4, %v1053_v61, %v1057_v25  ;;  %v19245_v61 = vld [vmem:[#allocation57_spill] sm:$0xff]  ;;  %v13544_v12 = vsel %vm1261_vm1, %v1365_v47, %v1379_v37 }
 0x345   :  { %3100 = vmatprep.mubr.bf16.mxu0 %v13506_v40  ;;  %v1363_v39 = vrot.slane %v1058_v22, 4  ;;  %v1063_v40 = vrot.slane %v19245_v61, 1  ;;  %v1125_v22 = vrot.slane %v12858_v27, 2  ;;  %v19248_v61 = vld [vmem:[#allocation58_spill] sm:$0xff]  ;;  %19249 = vst [vmem:[#allocation54_spill] sm:$0xff] %v13544_v12 }
 0x346   :  { %v1068_v3 = vrot.slane %v19248_v61, 2 }
 0x347   :  { %v1364_v45 = vsel %vm1261_vm1, %v1349_v56, %v1363_v39  ;;  %v1378_v26 = vsel %vm1261_vm1, %v1363_v39, %v1377_v9 }
 0x34c   :  { %3101 = vmatmul.mubr.bf16.gmra.mrb[92].mxu0 %v1350_v58  ;;  %v1064_v58 = vrot.slane %v19246_v46, 2  ;;  %v19247_v46 = vld [vmem:[#allocation59_spill] sm:$0xff] }
 0x34d   :  { %3108 = vmatprep.mubr.bf16.mxu0 %v13520_v16  ;;  %v776_v16 = vrot.slane %v12385_v20, 3  ;;  %v1067_v20 = vrot.slane %v19247_v46, 1 }
 0x34e   :  { %v1065_v25 = vor.u32 %v1064_v58, %v1063_v40 }
 0x34f   :  { %v777_v56 = vsel %vm764_vm5, %v774_v30, %v776_v16  ;;  %v1126_v30 = vsel %vm605_vm3, %v1123_v1, %v1125_v22  ;;  %v1069_v40 = vor.u32 %v1068_v3, %v1067_v20  ;;  %v19252_v1 = vld [vmem:[#allocation60_spill] sm:$0xff]  ;;  %v1128_v20 = vsel %vm605_vm3, %v1125_v22, %v1127_v63 }
 0x350   :  { %10452 = vmatmul.mubr.bf16.gmra.mrb[8].mxu1 %v777_v56  ;;  %v1393_v58 = vrot.slane %v1126_v30, 4  ;;  %v778_v56 = vrot.slane %v12407_v29, 3 }
 0x351   :  { %v1070_v14 = vsel %vm504_vm4, %v1065_v25, %v1069_v40 }
 0x352   :  { %v13554_v47 = vsel %vm1261_vm1, %v1379_v37, %v1393_v58  ;;  %v779_v3 = vsel %vm764_vm5, %v776_v16, %v778_v56  ;;  %v1405_v29 = vrot.slane %v1070_v14, 4  ;;  %v1407_v37 = vrot.slane %v1128_v20, 4 }
 0x353   :  { %19250 = vst [vmem:[#allocation59_spill] sm:$0xff] %v13554_v47  ;;  %10455 = vmatprep.mubr.bf16.mxu1 %v779_v3  ;;  %v1131_v20 = vrot.slane %v12918_v48, 2 }
 0x354   :  { %3109 = vmatmul.mubr.bf16.gmra.mrb[96].mxu0 %v1364_v45  ;;  %v1066_v45 = vsel %vm504_vm4, %v1061_v24, %v1065_v25  ;;  %v19251_v24 = vld [vmem:[#allocation61_spill] sm:$0xff]  ;;  %v13568_v16 = vsel %vm1261_vm1, %v1393_v58, %v1407_v37 }
 0x355   :  { %3116 = vmatprep.mubr.bf16.mxu0 %v13530_v50  ;;  %v1391_v8 = vrot.slane %v1066_v45, 4  ;;  %v1071_v50 = vrot.slane %v19251_v24, 1  ;;  %v1129_v45 = vrot.slane %v12898_v11, 2  ;;  %v19254_v24 = vld [vmem:[#allocation62_spill] sm:$0xff]  ;;  %19255 = vst [vmem:[#allocation58_spill] sm:$0xff] %v13568_v16 }
 0x356   :  { %v1076_v22 = vrot.slane %v19254_v24, 2 }
 0x357   :  { %v1392_v39 = vsel %vm1261_vm1, %v1377_v9, %v1391_v8  ;;  %v1406_v30 = vsel %vm1261_vm1, %v1391_v8, %v1405_v29 }
 0x35c   :  { %3117 = vmatmul.mubr.bf16.gmra.mrb[100].mxu0 %v1378_v26  ;;  %v1072_v26 = vrot.slane %v19252_v1, 2  ;;  %v19253_v1 = vld [vmem:[#allocation63_spill] sm:$0xff] }
 0x35d   :  { %3124 = vmatprep.mubr.bf16.mxu0 %v13544_v12  ;;  %v780_v12 = vrot.slane %v12425_v43, 3  ;;  %v1075_v43 = vrot.slane %v19253_v1, 1 }
 0x35e   :  { %v1073_v25 = vor.u32 %v1072_v26, %v1071_v50 }
 0x35f   :  { %v781_v9 = vsel %vm764_vm5, %v778_v56, %v780_v12  ;;  %v1130_v56 = vsel %vm605_vm3, %v1127_v63, %v1129_v45  ;;  %v1077_v50 = vor.u32 %v1076_v22, %v1075_v43  ;;  %v19258_v63 = vld [vmem:[#allocation64_spill] sm:$0xff]  ;;  %v1132_v43 = vsel %vm605_vm3, %v1129_v45, %v1131_v20 }
 0x360   :  { %10456 = vmatmul.mubr.bf16.gmra.mrb[12].mxu1 %v781_v9  ;;  %v1421_v26 = vrot.slane %v1130_v56, 4  ;;  %v782_v9 = vrot.slane %v12443_v54, 3 }
 0x361   :  { %v1078_v3 = vsel %vm504_vm4, %v1073_v25, %v1077_v50 }
 0x362   :  { %v13578_v58 = vsel %vm1261_vm1, %v1407_v37, %v1421_v26  ;;  %v783_v22 = vsel %vm764_vm5, %v780_v12, %v782_v9  ;;  %v1433_v54 = vrot.slane %v1078_v3, 4  ;;  %v1435_v37 = vrot.slane %v1132_v43, 4 }
 0x363   :  { %19256 = vst [vmem:[#allocation63_spill] sm:$0xff] %v13578_v58  ;;  %10459 = vmatprep.mubr.bf16.mxu1 %v783_v22  ;;  %v1135_v43 = vrot.slane %v12958_v36, 2 }
 0x364   :  { %3125 = vmatmul.mubr.bf16.gmra.mrb[104].mxu0 %v1392_v39  ;;  %v1074_v39 = vsel %vm504_vm4, %v1069_v40, %v1073_v25  ;;  %v19257_v40 = vld [vmem:[#allocation65_spill] sm:$0xff]  ;;  %v13592_v12 = vsel %vm1261_vm1, %v1421_v26, %v1435_v37 }
 0x365   :  { %3132 = vmatprep.mubr.bf16.mxu0 %v13554_v47  ;;  %v1419_v14 = vrot.slane %v1074_v39, 4  ;;  %v1079_v47 = vrot.slane %v19257_v40, 1  ;;  %v1133_v39 = vrot.slane %v12938_v59, 2  ;;  %v19260_v40 = vld [vmem:[#allocation66_spill] sm:$0xff]  ;;  %19261 = vst [vmem:[#allocation62_spill] sm:$0xff] %v13592_v12 }
 0x366   :  { %v1084_v45 = vrot.slane %v19260_v40, 2 }
 0x367   :  { %v1420_v8 = vsel %vm1261_vm1, %v1405_v29, %v1419_v14  ;;  %v1434_v56 = vsel %vm1261_vm1, %v1419_v14, %v1433_v54 }
 0x36c   :  { %3133 = vmatmul.mubr.bf16.gmra.mrb[108].mxu0 %v1406_v30  ;;  %v1080_v30 = vrot.slane %v19258_v63, 2  ;;  %v19259_v63 = vld [vmem:[#allocation67_spill] sm:$0xff] }
 0x36d   :  { %3140 = vmatprep.mubr.bf16.mxu0 %v13568_v16  ;;  %v784_v16 = vrot.slane %v12465_v6, 3  ;;  %v1083_v6 = vrot.slane %v19259_v63, 1 }
 0x36e   :  { %v1081_v25 = vor.u32 %v1080_v30, %v1079_v47 }
 0x36f   :  { %v785_v29 = vsel %vm764_vm5, %v782_v9, %v784_v16  ;;  %v1134_v9 = vsel %vm605_vm3, %v1131_v20, %v1133_v39  ;;  %v1085_v47 = vor.u32 %v1084_v45, %v1083_v6  ;;  %v19264_v20 = vld [vmem:[#allocation68_spill] sm:$0xff]  ;;  %v1136_v6 = vsel %vm605_vm3, %v1133_v39, %v1135_v43 }
 0x370   :  { %10460 = vmatmul.mubr.bf16.gmra.mrb[16].mxu1 %v785_v29  ;;  %v1449_v30 = vrot.slane %v1134_v9, 4  ;;  %v786_v29 = vrot.slane %v12483_v21, 3  ;;  %v145_v21 = vld [vmem:[%s18506_s12] sm:$0xff] }
 0x371   :  { %v1086_v22 = vsel %vm504_vm4, %v1081_v25, %v1085_v47  ;;  %3849 = vperm.xlu0 %11772, %v145_v21   ;;  %v149_v21 = vld [vmem:[%s18506_s12 + $0x20] sm:$0xff] }
 0x372   :  { %v13602_v26 = vsel %vm1261_vm1, %v1435_v37, %v1449_v30  ;;  %v787_v45 = vsel %vm764_vm5, %v784_v16, %v786_v29  ;;  %v1461_v37 = vrot.slane %v1086_v22, 4  ;;  %v19266_v16 = vld [vmem:[#allocation72_spill] sm:$0xff] }
 0x373   :  { %19262 = vst [vmem:[#allocation67_spill] sm:$0xff] %v13602_v26  ;;  %10463 = vmatprep.mubr.bf16.mxu1 %v787_v45  ;;  %v19267_v45 = vld [vmem:[#allocation71_spill] sm:$0xff] }
 0x374   :  { %3141 = vmatmul.mubr.bf16.gmra.mrb[112].mxu0 %v1420_v8  ;;  %v1082_v8 = vsel %vm504_vm4, %v1077_v50, %v1081_v25  ;;  %v19263_v50 = vld [vmem:[#allocation70_spill] sm:$0xff]  ;;  %v1463_v25 = vrot.slane %v1136_v6, 4  ;;  %v18678_v6 = vshrl.u32 %v13187_v49, 16 }
 0x375   :  { %3148 = vmatprep.mubr.bf16.mxu0 %v13578_v58  ;;  %v1447_v3 = vrot.slane %v1082_v8, 4  ;;  %v1087_v58 = vrot.slane %v19263_v50, 1 }
 0x377   :  { %v1448_v14 = vsel %vm1261_vm1, %v1433_v54, %v1447_v3  ;;  %v1462_v39 = vsel %vm1261_vm1, %v1447_v3, %v1461_v37  ;;  %v146_v3 = vld [vmem:[%s18506_s12 + $0x8] sm:$0xff] }
 0x378   :  { %3854 = vperm.xlu0 %11772, %v146_v3   ;;  %v792_v3 = vrot.slane %v12547_v23, 3 }
 0x37c   :  { %3149 = vmatmul.mubr.bf16.gmra.mrb[116].mxu0 %v1434_v56  ;;  %v1088_v56 = vrot.slane %v19264_v20, 2  ;;  %v1092_v20 = vrot.slane %v19267_v45, 2  ;;  %3869 = vperm.xlu0 %11772, %v149_v21  }
 0x37d   :  { %3156 = vmatprep.mubr.bf16.mxu0 %v13592_v12  ;;  %v788_v12 = vrot.slane %v12507_v44, 3  ;;  %v19265_v44 = vld [vmem:[#allocation69_spill] sm:$0xff] }
 0x37e   :  { %v1089_v8 = vor.u32 %v1088_v56, %v1087_v58  ;;  %v1137_v9 = vrot.slane %v19265_v44, 2  ;;  %v147_v58 = vld [vmem:[%s18506_s12 + $0x10] sm:$0xff] }
 0x37f   :  { %v789_v54 = vsel %vm764_vm5, %v786_v29, %v788_v12  ;;  %v13619_v29 = vsel %vm1261_vm1, %v1449_v30, %v1463_v25  ;;  %3859 = vperm.xlu1 %11773, %v147_v58  }
 0x380   :  { %10464 = vmatmul.mubr.bf16.gmra.mrb[20].mxu1 %v789_v54  ;;  %v1090_v50 = vsel %vm504_vm4, %v1085_v47, %v1089_v8  ;;  %v18677_v47 = vshll.u32 %v13187_v49, 16  ;;  %v13636_v54 = vrot.slane %v13187_v49, 2 }
 0x381   :  { %v1475_v22 = vrot.slane %v1090_v50, 4 }
 0x382   :  { %v1101_v58 = vrot.slane %v18677_v47, 2 }
 0x383   :  { %v1476_v50 = vsel %vm1261_vm1, %v1461_v37, %v1475_v22  ;;  %v1140_v37 = vsel %vm605_vm3, %v1137_v9, %v13636_v54 }
 0x384   :  { %3157 = vmatmul.mubr.bf16.gmra.mrb[120].mxu0 %v1448_v14  ;;  %v1091_v14 = vrot.slane %v19266_v16, 1  ;;  %v13663_v21 = vrot.slane %v1140_v37, 4  ;;  %v1521_v37 = vrot.slane %v13636_v54, 4 }
 0x385   :  { %3164 = vmatprep.mubr.bf16.mxu0 %v13602_v26  ;;  %v1138_v26 = vsel %vm605_vm3, %v1135_v43, %v1137_v9  ;;  %v148_v43 = vld [vmem:[%s18506_s12 + $0x18] sm:$0xff] }
 0x386   :  { %v1093_v56 = vor.u32 %v1092_v20, %v1091_v14  ;;  %v1477_v30 = vrot.slane %v1138_v26, 4  ;;  %3864 = vperm.xlu1 %11773, %v148_v43   ;;  %v790_v20 = vrot.slane %v12528_v2, 3  ;;  %v1098_v14 = vrot.slane %v18678_v6, 1  ;;  %v151_v43 = vld [vmem:[%s18506_s12 + $0x30] sm:$0xff] }
 0x387   :  { %3879 = vperm.xlu0 %11772, %v151_v43   ;;  %v666_v43 = vrot.slane %v12283_v38, 2  ;;  %v158_v38 = vld [vmem:[%s18506_s12 + $0x68] sm:$0xff] }
 0x388   :  { %v1094_v26 = vsel %vm504_vm4, %v1089_v8, %v1093_v56  ;;  %v791_v8 = vsel %vm764_vm5, %v788_v12, %v790_v20  ;;  %v793_v2 = vsel %vm764_vm5, %v790_v20, %v792_v3  ;;  %v1102_v9 = vor.u32 %v1101_v58, %v1098_v14  ;;  %v152_v12 = vld [vmem:[%s18506_s12 + $0x38] sm:$0xff]  ;;  %v154_v14 = vld [vmem:[%s18506_s12 + $0x48] sm:$0xff]  ;;  %v155_v58 = vld [vmem:[%s18506_s12 + $0x50] sm:$0xff] }
 0x389   :  { %10467 = vmatprep.mubr.bf16.mxu1 %v791_v8  ;;  %v1489_v23 = vrot.slane %v1094_v26, 4  ;;  %v13674_v8 = vsel %vm1261_vm1, %v1477_v30, %v13663_v21 }
 0x38a   :  { %10468 = vmatmul.mubr.bf16.gmra.mrb[24].mxu1 %v793_v2  ;;  %v1103_v26 = vsel %vm504_vm4, %v1093_v56, %v1102_v9  ;;  %v156_v56 = vld [vmem:[%s18506_s12 + $0x58] sm:$0xff] }
 0x38b   :  { %v1490_v20 = vsel %vm1261_vm1, %v1475_v22, %v1489_v23  ;;  %v1503_v22 = vrot.slane %v1103_v26, 4  ;;  %v670_v26 = vrot.slane %v12293_v42, 3  ;;  %v1519_v42 = vrot.slane %v1102_v9, 4 }
 0x38c   :  { %3165 = vmatmul.mubr.bf16.gmra.mrb[124].mxu0 %v1462_v39  ;;  %v13645_v39 = vsel %vm1261_vm1, %v1463_v25, %v1477_v30  ;;  %v150_v25 = vld [vmem:[%s18506_s12 + $0x28] sm:$0xff]  ;;  %v157_v30 = vld [vmem:[%s18506_s12 + $0x60] sm:$0xff]  ;;  %v673_v9 = vrot.slane %v12338_v60, 2  ;;  %v164_v60 = vld [vmem:[%s18506_s12 + $0x98] sm:$0xff] }
 0x38d   :  { %3172 = vmatprep.mubr.bf16.mxu0 %v13619_v29  ;;  %3874 = vperm.xlu1 %11773, %v150_v25   ;;  %v1504_v2 = vsel %vm1261_vm1, %v1489_v23, %v1503_v22  ;;  %v1522_v25 = vsel %vm1261_vm1, %v13663_v21, %v1521_v37  ;;  %v161_v37 = vld [vmem:[%s18506_s12 + $0x80] sm:$0xff] }
 0x391   :  { %3884 = vperm.xlu1 %11773, %v152_v12   ;;  %v794_v12 = vrot.slane %v12568_v55, 3 }
 0x394   :  { %3173 = vmatmul.mubr.bf16.gmra.mrb[128].mxu0 %v1476_v50  ;;  %v153_v50 = vld [vmem:[%s18506_s12 + $0x40] sm:$0xff] }
 0x395   :  { %3180 = vmatprep.mubr.bf16.mxu0 %v13645_v39  ;;  %3889 = vperm.xlu0 %11772, %v153_v50   ;;  %v667_v50 = vrot.slane %v12274_v35, 3  ;;  %v159_v35 = vld [vmem:[%s18506_s12 + $0x70] sm:$0xff] }
 0x396   :  { %3894 = vperm.xlu1 %11773, %v154_v14   ;;  %v796_v14 = vrot.slane %v12609_v0, 3 }
 0x398   :  { %v797_v23 = vsel %vm764_vm5, %v794_v12, %v796_v14 }
 0x399   :  { %3899 = vperm.xlu0 %11772, %v155_v58   ;;  %v795_v58 = vsel %vm764_vm5, %v792_v3, %v794_v12  ;;  %v160_v3 = vld [vmem:[%s18506_s12 + $0x78] sm:$0xff] }
 0x39a   :  { %3904 = vperm.xlu1 %11773, %v156_v56   ;;  %10471 = vmatprep.mubr.bf16.mxu1 %v795_v58  ;;  %v1520_v56 = vsel %vm1261_vm1, %v1503_v22, %v1519_v42  ;;  %v798_v22 = vrot.slane %v13082_v15, 3  ;;  %v19269_v58 = vld [vmem:[#allocation8_spill] sm:$0xff] }
 0x39b   :  { %10472 = vmatmul.mubr.bf16.gmra.mrb[28].mxu1 %v797_v23  ;;  %v678_v23 = vrot.slane %v19269_v58, 3  ;;  %v19276_v58 = vld [vmem:[#allocation38_spill] sm:$0xff] }
 0x39c   :  { %3181 = vmatmul.mubr.bf16.gmra.mrb[132].mxu0 %v1490_v20  ;;  %v669_v20 = vrot.slane %v12320_v53, 2  ;;  %v668_v53 = vor.u32 %v667_v50, %v666_v43  ;;  %v163_v43 = vld [vmem:[%s18506_s12 + $0x90] sm:$0xff]  ;;  %v799_v42 = vsel %vm764_vm5, %v796_v14, %v798_v22  ;;  %v168_v14 = vld [vmem:[%s18506_s12 + $0xb8] sm:$0xff] }
 0x39d   :  { %3188 = vmatprep.mubr.bf16.mxu0 %v13674_v8  ;;  %3909 = vperm.xlu0 %11772, %v157_v30  }
 0x39e   :  { %v671_v55 = vor.u32 %v670_v26, %v669_v20  ;;  %3914 = vperm.xlu1 %11773, %v158_v38   ;;  %v19268_v20 = vld [vmem:[#allocation9_spill] sm:$0xff]  ;;  %10475 = vmatprep.mubr.bf16.mxu1 %v799_v42 }
 0x39f   :  { %v677_v26 = vrot.slane %v19268_v20, 2  ;;  %v19270_v38 = vld [vmem:[#allocation33_spill] sm:$0xff] }
 0x3a0   :  { %v672_v30 = vsel %vm665_vm6, %v668_v53, %v671_v55  ;;  %v19271_v53 = vld [vmem:[#allocation73_spill] sm:$0xff] }
 0x3a1   :  { %3919 = vperm.xlu0 %11772, %v159_v35   ;;  %v800_v35 = vrot.slane %v19270_v38, 3  ;;  %v172_v42 = vld [vmem:[%s18506_s12 + $0xd8] sm:$0xff] }
 0x3a2   :  { %3924 = vperm.xlu1 %11773, %v160_v3  }
 0x3a3   :  { %v801_v3 = vsel %vm764_vm5, %v798_v22, %v800_v35  ;;  %v170_v22 = vld [vmem:[%s18506_s12 + $0xc8] sm:$0xff]  ;;  %v1227_v35 = vrot.slane %v12672_v52, 3 }
 0x3a4   :  { %3189 = vmatmul.mubr.bf16.gmra.mrb[136].mxu0 %v1504_v2  ;;  %v674_v2 = vrot.slane %v12316_v51, 3  ;;  %v165_v51 = vld [vmem:[%s18506_s12 + $0xa0] sm:$0xff]  ;;  %10476 = vmatmul.mubr.bf16.gmra.mrb[32].mxu1 %v801_v3  ;;  %v1229_v3 = vrot.slane %v12701_v33, 3  ;;  %v19279_v33 = vld [vmem:[#allocation75_spill] sm:$0xff] }
 0x3a5   :  { %3196 = vmatprep.mubr.bf16.mxu0 %v1522_v25  ;;  %3929 = vperm.xlu0 %11772, %v161_v37   ;;  %v162_v25 = vld [vmem:[%s18506_s12 + $0x88] sm:$0xff] }
 0x3a6   :  { %v675_v12 = vor.u32 %v674_v2, %v673_v9  ;;  %3934 = vperm.xlu1 %11773, %v162_v25   ;;  %v166_v37 = vld [vmem:[%s18506_s12 + $0xa8] sm:$0xff] }
 0x3a7   :  { %v19272_v2 = vld [vmem:[#allocation11_spill] sm:$0xff] }
 0x3a8   :  { %v676_v50 = vsel %vm665_vm6, %v671_v55, %v675_v12  ;;  %v167_v55 = vld [vmem:[%s18506_s12 + $0xb0] sm:$0xff]  ;;  %v681_v25 = vrot.slane %v19272_v2, 2  ;;  %v19277_v2 = vld [vmem:[#allocation13_spill] sm:$0xff] }
 0x3a9   :  { %3939 = vperm.xlu0 %11772, %v163_v43   ;;  %v19273_v43 = vld [vmem:[#allocation10_spill] sm:$0xff] }
 0x3aa   :  { %3944 = vperm.xlu1 %11773, %v164_v60   ;;  %v682_v60 = vrot.slane %v19273_v43, 3  ;;  %v19278_v43 = vld [vmem:[#allocation12_spill] sm:$0xff] }
 0x3ac   :  { %3197 = vmatmul.mubr.bf16.gmra.mrb[140].mxu0 %v1520_v56  ;;  %v679_v56 = vor.u32 %v678_v23, %v677_v26  ;;  %v683_v20 = vor.u32 %v682_v60, %v681_v25  ;;  %v1225_v23 = vrot.slane %v19276_v58, 3  ;;  %v685_v25 = vrot.slane %v19277_v2, 2  ;;  %v176_v58 = vld [vmem:[%s18506_s12 + $0xf8] sm:$0xff] }
 0x3ad   :  { %3237 = vmatprep.mubr.bf16.mxu0 %v672_v30  ;;  %3949 = vperm.xlu0 %11772, %v165_v51   ;;  %v169_v30 = vld [vmem:[%s18506_s12 + $0xc0] sm:$0xff]  ;;  %v686_v60 = vrot.slane %v19278_v43, 3  ;;  %v180_v2 = vld [vmem:[%s18506_s12 + $0x118] sm:$0xff]  ;;  %v1233_v43 = vrot.slane %v12757_v7, 3 }
 0x3ae   :  { %3954 = vperm.xlu1 %11773, %v166_v37   ;;  %v680_v9 = vsel %vm665_vm6, %v675_v12, %v679_v56  ;;  %v19274_v51 = vld [vmem:[#allocation74_spill] sm:$0xff]  ;;  %v684_v52 = vsel %vm665_vm6, %v679_v56, %v683_v20  ;;  %v175_v56 = vld [vmem:[%s18506_s12 + $0xf0] sm:$0xff] }
 0x3af   :  { %v19275_v12 = vld [vmem:[#allocation34_spill] sm:$0xff] }
 0x3b0   :  { %v1224_v26 = vrot.slane %v19275_v12, 3  ;;  %v174_v12 = vld [vmem:[%s18506_s12 + $0xe8] sm:$0xff] }
 0x3b1   :  { %3959 = vperm.xlu0 %11772, %v167_v55   ;;  %v1228_v55 = vsel %vm764_vm5, %v1225_v23, %v1227_v35 }
 0x3b2   :  { %3964 = vperm.xlu1 %11773, %v168_v14   ;;  %v1226_v37 = vsel %vm764_vm5, %v1224_v26, %v1225_v23  ;;  %v687_v26 = vor.u32 %v686_v60, %v685_v25  ;;  %v177_v23 = vld [vmem:[%s18506_s12 + $0x100] sm:$0xff] }
 0x3b3   :  { %v1284_v14 = vrot.slane %v1226_v37, 4  ;;  %v19281_v37 = vld [vmem:[#allocation14_spill] sm:$0xff] }
 0x3b4   :  { %3238 = vmatmul.mubr.bf16.vlgmr.msra.gmra.mrb[0].mxu0 %v19271_v53  ;;  %v173_v53 = vld [vmem:[%s18506_s12 + $0xe0] sm:$0xff] }
 0x3b5   :  { %3245 = vmatprep.mubr.bf16.mxu0 %v676_v50  ;;  %3969 = vperm.xlu0 %11772, %v169_v30   ;;  %v171_v50 = vld [vmem:[%s18506_s12 + $0xd0] sm:$0xff]  ;;  %v1285_v30 = vrot.slane %v1228_v55, 4  ;;  %v690_v55 = vrot.slane %v19281_v37, 3  ;;  %v181_v25 = vld [vmem:[%s18506_s12 + $0x120] sm:$0xff] }
 0x3b6   :  { %3974 = vperm.xlu1 %11773, %v170_v22   ;;  %v185_v37 = vld [vmem:[%s18506_s12 + $0x140] sm:$0xff] }
 0x3b7   :  { %v1286_v22 = vsel %vm1261_vm1, %v1284_v14, %v1285_v30  ;;  %v19282_v14 = vld [vmem:[#allocation76_spill] sm:$0xff] }
 0x3b8   :  { %10479 = vmatprep.mubr.bf16.mxu1 %v1286_v22 }
 0x3b9   :  { %3979 = vperm.xlu0 %11772, %v171_v50  }
 0x3ba   :  { %3984 = vperm.xlu1 %11773, %v172_v42   ;;  %v19280_v42 = vld [vmem:[#allocation15_spill] sm:$0xff] }
 0x3bc   :  { %3246 = vmatmul.mubr.bf16.gmra.mrb[4].mxu0 %v19274_v51 }
 0x3bd   :  { %3253 = vmatprep.mubr.bf16.mxu0 %v680_v9  ;;  %v1230_v9 = vsel %vm764_vm5, %v1227_v35, %v1229_v3  ;;  %3989 = vperm.xlu0 %11772, %v173_v53   ;;  %v688_v35 = vsel %vm665_vm6, %v683_v20, %v687_v26  ;;  %v689_v53 = vrot.slane %v19280_v42, 2  ;;  %v1231_v20 = vrot.slane %v12729_v28, 3  ;;  %v19284_v28 = vld [vmem:[#allocation16_spill] sm:$0xff]  ;;  %v19285_v42 = vld [vmem:[#allocation77_spill] sm:$0xff] }
 0x3be   :  { %v1299_v51 = vrot.slane %v1230_v9, 4  ;;  %3994 = vperm.xlu1 %11773, %v174_v12   ;;  %v179_v9 = vld [vmem:[%s18506_s12 + $0x110] sm:$0xff]  ;;  %v19283_v12 = vld [vmem:[#allocation17_spill] sm:$0xff] }
 0x3bf   :  { %v1232_v60 = vsel %vm764_vm5, %v1229_v3, %v1231_v20  ;;  %v182_v3 = vld [vmem:[%s18506_s12 + $0x128] sm:$0xff] }
 0x3c0   :  { %v1300_v50 = vsel %vm1261_vm1, %v1285_v30, %v1299_v51  ;;  %v178_v30 = vld [vmem:[%s18506_s12 + $0x108] sm:$0xff]  ;;  %v1313_v22 = vrot.slane %v1232_v60, 4  ;;  %v187_v60 = vld [vmem:[%s18506_s12 + $0x150] sm:$0xff] }
 0x3c1   :  { %10480 = vmatmul.mubr.bf16.gmra.mrb[36].mxu1 %v1300_v50  ;;  %3999 = vperm.xlu0 %11772, %v175_v56   ;;  %v693_v56 = vrot.slane %v19283_v12, 2  ;;  %v1237_v12 = vrot.slane %v12798_v31, 3 }
 0x3c2   :  { %4004 = vperm.xlu1 %11773, %v176_v58   ;;  %v694_v58 = vrot.slane %v19284_v28, 3 }
 0x3c4   :  { %3254 = vmatmul.mubr.bf16.gmra.mrb[8].mxu0 %v19279_v33  ;;  %v1234_v33 = vsel %vm764_vm5, %v1231_v20, %v1233_v43 }
 0x3c5   :  { %3261 = vmatprep.mubr.bf16.mxu0 %v684_v52  ;;  %4009 = vperm.xlu0 %11772, %v177_v23   ;;  %v691_v52 = vor.u32 %v690_v55, %v689_v53  ;;  %v1327_v23 = vrot.slane %v1234_v33, 4  ;;  %v695_v53 = vor.u32 %v694_v58, %v693_v56  ;;  %v188_v33 = vld [vmem:[%s18506_s12 + $0x158] sm:$0xff] }
 0x3c6   :  { %4014 = vperm.xlu1 %11773, %v178_v30  }
 0x3c7   :  { %v692_v50 = vsel %vm665_vm6, %v687_v26, %v691_v52  ;;  %v1328_v7 = vsel %vm1261_vm1, %v1313_v22, %v1327_v23  ;;  %v183_v26 = vld [vmem:[%s18506_s12 + $0x130] sm:$0xff]  ;;  %v696_v55 = vsel %vm665_vm6, %v691_v52, %v695_v53  ;;  %v1235_v52 = vrot.slane %v12778_v19, 3 }
 0x3c8   :  { %v19290_v19 = vld [vmem:[#allocation20_spill] sm:$0xff] }
 0x3c9   :  { %4019 = vperm.xlu0 %11772, %v179_v9   ;;  %v19287_v9 = vld [vmem:[#allocation18_spill] sm:$0xff]  ;;  %v1236_v56 = vsel %vm764_vm5, %v1233_v43, %v1235_v52  ;;  %v1238_v58 = vsel %vm764_vm5, %v1235_v52, %v1237_v12  ;;  %v190_v43 = vld [vmem:[%s18506_s12 + $0x168] sm:$0xff] }
 0x3ca   :  { %4024 = vperm.xlu1 %11773, %v180_v2   ;;  %v698_v20 = vrot.slane %v19287_v9, 3  ;;  %v19288_v2 = vld [vmem:[#allocation78_spill] sm:$0xff]  ;;  %v1341_v28 = vrot.slane %v1236_v56, 4  ;;  %v19292_v9 = vld [vmem:[#allocation23_spill] sm:$0xff]  ;;  %v196_v56 = vld [vmem:[%s18506_s12 + $0x198] sm:$0xff] }
 0x3cb   :  { %v194_v52 = vld [vmem:[%s18506_s12 + $0x188] sm:$0xff] }
 0x3cc   :  { %3262 = vmatmul.mubr.bf16.gmra.mrb[12].mxu0 %v19282_v14  ;;  %v19286_v14 = vld [vmem:[#allocation19_spill] sm:$0xff] }
 0x3cd   :  { %3269 = vmatprep.mubr.bf16.mxu0 %v688_v35  ;;  %4029 = vperm.xlu0 %11772, %v181_v25   ;;  %v1314_v35 = vsel %vm1261_vm1, %v1299_v51, %v1313_v22  ;;  %v184_v51 = vld [vmem:[%s18506_s12 + $0x138] sm:$0xff]  ;;  %v697_v30 = vrot.slane %v19286_v14, 2  ;;  %v186_v25 = vld [vmem:[%s18506_s12 + $0x148] sm:$0xff]  ;;  %v193_v14 = vld [vmem:[%s18506_s12 + $0x180] sm:$0xff] }
 0x3ce   :  { %10483 = vmatprep.mubr.bf16.mxu1 %v1314_v35  ;;  %4034 = vperm.xlu1 %11773, %v182_v3   ;;  %v702_v3 = vrot.slane %v19290_v19, 3 }
 0x3cf   :  { %10484 = vmatmul.mubr.bf16.gmra.mrb[40].mxu1 %v1328_v7  ;;  %v699_v22 = vor.u32 %v698_v20, %v697_v30  ;;  %v705_v20 = vrot.slane %v19292_v9, 2  ;;  %v19298_v9 = vld [vmem:[#allocation27_spill] sm:$0xff] }
 0x3d1   :  { %4039 = vperm.xlu0 %11772, %v183_v26   ;;  %v700_v35 = vsel %vm665_vm6, %v695_v53, %v699_v22  ;;  %v1355_v26 = vrot.slane %v1238_v58, 4  ;;  %v191_v53 = vld [vmem:[%s18506_s12 + $0x170] sm:$0xff]  ;;  %v1241_v58 = vrot.slane %v12838_v17, 3 }
 0x3d2   :  { %4044 = vperm.xlu1 %11773, %v184_v51   ;;  %v1342_v51 = vsel %vm1261_vm1, %v1327_v23, %v1341_v28  ;;  %v192_v23 = vld [vmem:[%s18506_s12 + $0x178] sm:$0xff] }
 0x3d3   :  { %10487 = vmatprep.mubr.bf16.mxu1 %v1342_v51  ;;  %v1356_v31 = vsel %vm1261_vm1, %v1341_v28, %v1355_v26  ;;  %v197_v28 = vld [vmem:[%s18506_s12 + $0x1a0] sm:$0xff] }
 0x3d4   :  { %3270 = vmatmul.mubr.bf16.gmra.mrb[16].mxu0 %v19285_v42  ;;  %v19289_v42 = vld [vmem:[#allocation21_spill] sm:$0xff] }
 0x3d5   :  { %3277 = vmatprep.mubr.bf16.mxu0 %v692_v50  ;;  %4049 = vperm.xlu0 %11772, %v185_v37   ;;  %v189_v50 = vld [vmem:[%s18506_s12 + $0x160] sm:$0xff]  ;;  %v701_v7 = vrot.slane %v19289_v42, 2  ;;  %v19291_v37 = vld [vmem:[#allocation79_spill] sm:$0xff] }
 0x3d6   :  { %4054 = vperm.xlu1 %11773, %v186_v25  }
 0x3d7   :  { %10488 = vmatmul.mubr.bf16.gmra.mrb[44].mxu1 %v1356_v31 }
 0x3d9   :  { %4059 = vperm.xlu0 %11772, %v187_v60   ;;  %v19294_v60 = vld [vmem:[#allocation80_spill] sm:$0xff] }
 0x3da   :  { %4064 = vperm.xlu1 %11773, %v188_v33   ;;  %v195_v33 = vld [vmem:[%s18506_s12 + $0x190] sm:$0xff] }
 0x3dc   :  { %3278 = vmatmul.mubr.bf16.gmra.mrb[20].mxu0 %v19288_v2  ;;  %v19293_v2 = vld [vmem:[#allocation22_spill] sm:$0xff] }
 0x3dd   :  { %3285 = vmatprep.mubr.bf16.mxu0 %v696_v55  ;;  %4069 = vperm.xlu0 %11772, %v189_v50   ;;  %v703_v55 = vor.u32 %v702_v3, %v701_v7  ;;  %v706_v25 = vrot.slane %v19293_v2, 3  ;;  %v19295_v3 = vld [vmem:[#allocation25_spill] sm:$0xff]  ;;  %v19299_v2 = vld [vmem:[#allocation26_spill] sm:$0xff] }
 0x3de   :  { %4074 = vperm.xlu1 %11773, %v190_v43   ;;  %v709_v51 = vrot.slane %v19295_v3, 2 }
 0x3df   :  { %v704_v30 = vsel %vm665_vm6, %v699_v22, %v703_v55  ;;  %v707_v50 = vor.u32 %v706_v25, %v705_v20  ;;  %v1239_v22 = vrot.slane %v12818_v41, 3  ;;  %v19296_v41 = vld [vmem:[#allocation24_spill] sm:$0xff]  ;;  %v713_v20 = vrot.slane %v19298_v9, 2 }
 0x3e0   :  { %v714_v25 = vrot.slane %v19299_v2, 3 }
 0x3e1   :  { %4079 = vperm.xlu0 %11772, %v191_v53   ;;  %v1242_v7 = vsel %vm764_vm5, %v1239_v22, %v1241_v58  ;;  %v708_v19 = vsel %vm665_vm6, %v703_v55, %v707_v50  ;;  %v19297_v53 = vld [vmem:[#allocation81_spill] sm:$0xff]  ;;  %v199_v55 = vld [vmem:[%s18506_s12 + $0x1b0] sm:$0xff] }
 0x3e2   :  { %4084 = vperm.xlu1 %11773, %v192_v23   ;;  %v1383_v31 = vrot.slane %v1242_v7, 4 }
 0x3e4   :  { %3286 = vmatmul.mubr.bf16.gmra.mrb[24].mxu0 %v19291_v37  ;;  %v710_v37 = vrot.slane %v19296_v41, 3 }
 0x3e5   :  { %3293 = vmatprep.mubr.bf16.mxu0 %v700_v35  ;;  %4089 = vperm.xlu0 %11772, %v193_v14   ;;  %v1240_v35 = vsel %vm764_vm5, %v1237_v12, %v1239_v22  ;;  %v198_v12 = vld [vmem:[%s18506_s12 + $0x1a8] sm:$0xff]  ;;  %v201_v14 = vld [vmem:[%s18506_s12 + $0x1c0] sm:$0xff]  ;;  %v715_v22 = vor.u32 %v714_v25, %v713_v20 }
 0x3e6   :  { %4094 = vperm.xlu1 %11773, %v194_v52   ;;  %v1369_v42 = vrot.slane %v1240_v35, 4  ;;  %v711_v23 = vor.u32 %v710_v37, %v709_v51  ;;  %v202_v52 = vld [vmem:[%s18506_s12 + $0x1c8] sm:$0xff]  ;;  %v1245_v35 = vrot.slane %v12878_v62, 3  ;;  %v19301_v51 = vld [vmem:[#allocation29_spill] sm:$0xff]  ;;  %v19305_v20 = vld [vmem:[#allocation30_spill] sm:$0xff] }
 0x3e7   :  { %v717_v41 = vrot.slane %v19301_v51, 2  ;;  %v722_v2 = vrot.slane %v19305_v20, 3  ;;  %v19311_v20 = vld [vmem:[#allocation36_spill] sm:$0xff] }
 0x3e8   :  { %v1370_v43 = vsel %vm1261_vm1, %v1355_v26, %v1369_v42  ;;  %v1384_v17 = vsel %vm1261_vm1, %v1369_v42, %v1383_v31  ;;  %v200_v26 = vld [vmem:[%s18506_s12 + $0x1b8] sm:$0xff]  ;;  %v716_v3 = vsel %vm665_vm6, %v711_v23, %v715_v22 }
 0x3e9   :  { %4099 = vperm.xlu0 %11772, %v195_v33   ;;  %10491 = vmatprep.mubr.bf16.mxu1 %v1370_v43  ;;  %v203_v33 = vld [vmem:[%s18506_s12 + $0x1d0] sm:$0xff] }
 0x3ea   :  { %4104 = vperm.xlu1 %11773, %v196_v56   ;;  %10492 = vmatmul.mubr.bf16.gmra.mrb[48].mxu1 %v1384_v17  ;;  %v204_v56 = vld [vmem:[%s18506_s12 + $0x1d8] sm:$0xff]  ;;  %v19303_v17 = vld [vmem:[#allocation83_spill] sm:$0xff] }
 0x3ec   :  { %3294 = vmatmul.mubr.bf16.gmra.mrb[28].mxu0 %v19294_v60  ;;  %v19300_v60 = vld [vmem:[#allocation82_spill] sm:$0xff] }
 0x3ed   :  { %3301 = vmatprep.mubr.bf16.mxu0 %v704_v30  ;;  %4109 = vperm.xlu0 %11772, %v197_v28   ;;  %v712_v30 = vsel %vm665_vm6, %v707_v50, %v711_v23  ;;  %v1243_v50 = vrot.slane %v12858_v27, 3  ;;  %v205_v28 = vld [vmem:[%s18506_s12 + $0x1e0] sm:$0xff]  ;;  %v19302_v27 = vld [vmem:[#allocation28_spill] sm:$0xff] }
 0x3ee   :  { %4114 = vperm.xlu1 %11773, %v198_v12   ;;  %v718_v37 = vrot.slane %v19302_v27, 3  ;;  %v207_v12 = vld [vmem:[%s18506_s12 + $0x1f0] sm:$0xff] }
 0x3ef   :  { %v1244_v42 = vsel %vm764_vm5, %v1241_v58, %v1243_v50  ;;  %v206_v58 = vld [vmem:[%s18506_s12 + $0x1e8] sm:$0xff] }
 0x3f0   :  { %v1397_v7 = vrot.slane %v1244_v42, 4  ;;  %v1249_v42 = vrot.slane %v12918_v48, 3 }
 0x3f1   :  { %4119 = vperm.xlu0 %11772, %v199_v55   ;;  %v719_v55 = vor.u32 %v718_v37, %v717_v41  ;;  %v19307_v37 = vld [vmem:[#allocation35_spill] sm:$0xff] }
 0x3f2   :  { %4124 = vperm.xlu1 %11773, %v200_v26   ;;  %v209_v26 = vld [vmem:[%s18506_s12 + $0x200] sm:$0xff] }
 0x3f4   :  { %3302 = vmatmul.mubr.bf16.gmra.mrb[32].mxu0 %v19297_v53  ;;  %v1398_v53 = vsel %vm1261_vm1, %v1383_v31, %v1397_v7  ;;  %v208_v31 = vld [vmem:[%s18506_s12 + $0x1f8] sm:$0xff] }
 0x3f5   :  { %3309 = vmatprep.mubr.bf16.mxu0 %v708_v19  ;;  %4129 = vperm.xlu0 %11772, %v201_v14   ;;  %v1246_v19 = vsel %vm764_vm5, %v1243_v50, %v1245_v35  ;;  %v720_v14 = vsel %vm665_vm6, %v715_v22, %v719_v55  ;;  %v210_v50 = vld [vmem:[%s18506_s12 + $0x208] sm:$0xff]  ;;  %v211_v22 = vld [vmem:[%s18506_s12 + $0x210] sm:$0xff] }
 0x3f6   :  { %4134 = vperm.xlu1 %11773, %v202_v52   ;;  %v1411_v43 = vrot.slane %v1246_v19, 4  ;;  %10495 = vmatprep.mubr.bf16.mxu1 %v1398_v53  ;;  %v19306_v52 = vld [vmem:[#allocation84_spill] sm:$0xff]  ;;  %v212_v19 = vld [vmem:[%s18506_s12 + $0x218] sm:$0xff]  ;;  %v725_v53 = vrot.slane %v19307_v37, 2 }
 0x3f8   :  { %v1412_v62 = vsel %vm1261_vm1, %v1397_v7, %v1411_v43 }
 0x3f9   :  { %4139 = vperm.xlu0 %11772, %v203_v33   ;;  %10496 = vmatmul.mubr.bf16.gmra.mrb[52].mxu1 %v1412_v62  ;;  %v19309_v62 = vld [vmem:[#allocation85_spill] sm:$0xff] }
 0x3fa   :  { %4144 = vperm.xlu1 %11773, %v204_v56  }
 0x3fc   :  { %3310 = vmatmul.mubr.bf16.gmra.mrb[36].mxu0 %v19300_v60 }
 0x3fd   :  { %3317 = vmatprep.mubr.bf16.mxu0 %v712_v30  ;;  %4149 = vperm.xlu0 %11772, %v205_v28   ;;  %v19304_v30 = vld [vmem:[#allocation31_spill] sm:$0xff]  ;;  %v1247_v28 = vrot.slane %v12898_v11, 3  ;;  %v19308_v11 = vld [vmem:[#allocation32_spill] sm:$0xff] }
 0x3fe   :  { %4154 = vperm.xlu1 %11773, %v206_v58   ;;  %v13937_v23 = vpop.f32.mrb[0].mxu1  ;;  %v721_v9 = vrot.slane %v19304_v30, 2  ;;  %v19310_v30 = vshrl.u32 %v12609_v0, 16 }
 0x3ff   :  { %v13948_v25 = vpop.f32.mrb[1].mxu1  ;;  %v1248_v7 = vsel %vm764_vm5, %v1245_v35, %v1247_v28  ;;  %v1250_v41 = vsel %vm764_vm5, %v1247_v28, %v1249_v42 }
 0x400   :  { %v13950_v60 = vpop.f32.mrb[2].mxu1  ;;  %v723_v56 = vor.u32 %v722_v2, %v721_v9  ;;  %v1425_v51 = vrot.slane %v1248_v7, 4  ;;  %v1439_v48 = vrot.slane %v1250_v41, 4  ;;  %v729_v9 = vrot.slane %v19310_v30, 2  ;;  %v19319_v30 = vld [vmem:[#allocation37_spill] sm:$0xff] }
 0x401   :  { %4159 = vperm.xlu0 %11772, %v207_v12   ;;  %v13953_v33 = vpop.f32.mrb[3].mxu1  ;;  %v214_v12 = vld [vmem:[%s18506_s12 + $0x228] sm:$0xff]  ;;  %v730_v2 = vrot.slane %v19311_v20, 3  ;;  %v19314_v41 = vshll.u32 %v13082_v15, 16  ;;  %v19320_v20 = vld [vmem:[#allocation41_spill] sm:$0xff] }
 0x402   :  { %4164 = vperm.xlu1 %11773, %v208_v31   ;;  %v724_v27 = vsel %vm665_vm6, %v719_v55, %v723_v56  ;;  %v1426_v35 = vsel %vm1261_vm1, %v1411_v43, %v1425_v51  ;;  %v1440_v58 = vsel %vm1261_vm1, %v1425_v51, %v1439_v48  ;;  %v215_v55 = vld [vmem:[%s18506_s12 + $0x230] sm:$0xff]  ;;  %v216_v43 = vld [vmem:[%s18506_s12 + $0x238] sm:$0xff] }
 0x403   :  { %10499 = vmatprep.mubr.bf16.mxu1 %v1426_v35  ;;  %v731_v7 = vor.u32 %v730_v2, %v729_v9  ;;  %v1145_v9 = vrot.slane %v19319_v30, 3  ;;  %v1147_v2 = vrot.slane %v19320_v20, 2 }
 0x404   :  { %3318 = vmatmul.mubr.bf16.gmra.mrb[40].mxu0 %v19303_v17  ;;  %v726_v17 = vrot.slane %v19308_v11, 3  ;;  %10500 = vmatmul.mubr.bf16.gmra.mrb[56].mxu1 %v1440_v58 }
 0x405   :  { %3325 = vmatprep.mubr.bf16.mxu0 %v716_v3  ;;  %4169 = vperm.xlu0 %11772, %v209_v26   ;;  %v213_v3 = vld [vmem:[%s18506_s12 + $0x220] sm:$0xff] }
 0x406   :  { %4174 = vperm.xlu1 %11773, %v210_v50   ;;  %v727_v31 = vor.u32 %v726_v17, %v725_v53 }
 0x408   :  { %v732_v11 = vsel %vm665_vm6, %v727_v31, %v731_v7 }
 0x409   :  { %4179 = vperm.xlu0 %11772, %v211_v22   ;;  %v19312_v22 = vld [vmem:[#allocation86_spill] sm:$0xff] }
 0x40a   :  { %4184 = vperm.xlu1 %11773, %v212_v19   ;;  %v1251_v19 = vrot.slane %v12938_v59, 3 }
 0x40c   :  { %3326 = vmatmul.mubr.bf16.gmra.mrb[44].mxu0 %v19306_v52  ;;  %v1252_v0 = vsel %vm764_vm5, %v1249_v42, %v1251_v19 }
 0x40d   :  { %3333 = vmatprep.mubr.bf16.mxu0 %v720_v14  ;;  %4189 = vperm.xlu0 %11772, %v213_v3   ;;  %v728_v14 = vsel %vm665_vm6, %v723_v56, %v727_v31  ;;  %v1253_v56 = vrot.slane %v12958_v36, 3  ;;  %v19313_v3 = vshrl.u32 %v13082_v15, 16  ;;  %v1453_v37 = vrot.slane %v1252_v0, 4 }
 0x40e   :  { %4194 = vperm.xlu1 %11773, %v214_v12   ;;  %v19316_v12 = vshrl.u32 %v19270_v38, 16  ;;  %v19317_v31 = vshll.u32 %v19270_v38, 16 }
 0x40f   :  { %v733_v51 = vrot.slane %v19313_v3, 2  ;;  %v1254_v53 = vsel %vm764_vm5, %v1251_v19, %v1253_v56  ;;  %v1454_v35 = vsel %vm1261_vm1, %v1439_v48, %v1453_v37  ;;  %v1151_v3 = vrot.slane %v19224_v34, 2 }
 0x410   :  { %v1467_v17 = vrot.slane %v1254_v53, 4  ;;  %10503 = vmatprep.mubr.bf16.mxu1 %v1454_v35  ;;  %v1255_v35 = vrot.slane %v19265_v44, 3 }
 0x411   :  { %4199 = vperm.xlu0 %11772, %v215_v55   ;;  %v740_v55 = vrot.slane %v19316_v12, 2 }
 0x412   :  { %4204 = vperm.xlu1 %11773, %v216_v43   ;;  %v1468_v59 = vsel %vm1261_vm1, %v1453_v37, %v1467_v17  ;;  %v743_v43 = vrot.slane %v19317_v31, 3  ;;  %v1256_v12 = vsel %vm764_vm5, %v1253_v56, %v1255_v35 }
 0x413   :  { %v13983_v26 = vpop.f32.mrb[4].mxu1  ;;  %10504 = vmatmul.mubr.bf16.gmra.mrb[60].mxu1 %v1468_v59  ;;  %v1257_v59 = vrot.slane %v13187_v49, 3  ;;  %v1481_v34 = vrot.slane %v1256_v12, 4 }
 0x414   :  { %3334 = vmatmul.mubr.bf16.gmra.mrb[48].mxu0 %v19309_v62  ;;  %v13992_v52 = vpop.f32.mrb[5].mxu1  ;;  %v19315_v62 = vld [vmem:[#allocation87_spill] sm:$0xff]  ;;  %v744_v37 = vor.u32 %v743_v43, %v740_v55  ;;  %v1155_v55 = vrot.slane %v19226_v18, 2  ;;  %v1156_v43 = vrot.slane %v19227_v32, 3  ;;  %v19324_v18 = vrot.slane %v13082_v15, 2 }
 0x415   :  { %3341 = vmatprep.mubr.bf16.mxu0 %v724_v27  ;;  %v13994_v50 = vpop.f32.mrb[6].mxu1  ;;  %v734_v27 = vrot.slane %v19314_v41, 3  ;;  %v19322_v41 = vld [vmem:[#allocation88_spill] sm:$0xff]  ;;  %v1482_v44 = vsel %vm1261_vm1, %v1467_v17, %v1481_v34  ;;  %v143_v17 = vld [vmem:[%s18494_s0 + $0x280] sm:$0xff] }
 0x416   :  { %v13997_v28 = vpop.f32.mrb[7].mxu1  ;;  %10507 = vmatprep.mubr.bf16.mxu1 %v1482_v44  ;;  %v19327_v44 = vld [vmem:[#allocation49_spill] sm:$0xff] }
 0x417   :  { %v735_v36 = vor.u32 %v734_v27, %v733_v51 }
 0x419   :  { %v736_v58 = vsel %vm665_vm6, %v731_v7, %v735_v36  ;;  %v1152_v7 = vrot.slane %v19225_v57, 3  ;;  %v1258_v57 = vsel %vm764_vm5, %v1255_v35, %v1257_v59  ;;  %v745_v31 = vsel %vm665_vm6, %v735_v36, %v744_v37 }
 0x41a   :  { %v1495_v30 = vrot.slane %v1258_v57, 4 }
 0x41c   :  { %3342 = vmatmul.mubr.bf16.gmra.mrb[52].mxu0 %v19312_v22  ;;  %v19321_v22 = vld [vmem:[#allocation40_spill] sm:$0xff]  ;;  %v1496_v56 = vsel %vm1261_vm1, %v1481_v34, %v1495_v30 }
 0x41d   :  { %3349 = vmatprep.mubr.bf16.mxu0 %v728_v14  ;;  %v19318_v14 = vld [vmem:[#allocation39_spill] sm:$0xff]  ;;  %v1148_v19 = vrot.slane %v19321_v22, 3  ;;  %10508 = vmatmul.mubr.bf16.gmra.mrb[64].mxu1 %v1496_v56  ;;  %v19328_v56 = vld [vmem:[#allocation48_spill] sm:$0xff] }
 0x41e   :  { %v1144_v48 = vrot.slane %v19318_v14, 2 }
 0x420   :  { %v1146_v53 = vor.u32 %v1145_v9, %v1144_v48  ;;  %v19323_v48 = vld [vmem:[#allocation89_spill] sm:$0xff]  ;;  %v662_v9 = vrot.slane %v19270_v38, 2 }
 0x422   :  { %v663_v32 = vsel %vm605_vm3, %v19324_v18, %v662_v9  ;;  %v1164_v9 = vrot.slane %v19328_v56, 3  ;;  %v19329_v18 = vld [vmem:[#allocation43_spill] sm:$0xff] }
 0x423   :  { %v14011_v42 = vpop.f32.mrb[8].mxu1 }
 0x424   :  { %3350 = vmatmul.mubr.bf16.gmra.mrb[56].mxu0 %v19315_v62  ;;  %v14022_v0 = vpop.f32.mrb[9].mxu1  ;;  %v1153_v62 = vor.u32 %v1152_v7, %v1151_v3 }
 0x425   :  { %3357 = vmatprep.mubr.bf16.mxu0 %v732_v11  ;;  %v14026_v51 = vpop.f32.mrb[10].mxu1  ;;  %v1149_v11 = vor.u32 %v1148_v19, %v1147_v2  ;;  %v1157_v2 = vor.u32 %v1156_v43, %v1155_v55  ;;  %v144_v19 = vld [vmem:[%s18494_s0 + $0x288] sm:$0xff] }
 0x426   :  { %v14029_v27 = vpop.f32.mrb[11].mxu1  ;;  %v14065_v12 = vpack.c.bf16 %v144_v19, %v143_v17 }
 0x427   :  { %v1150_v14 = vsel %vm665_vm6, %v1146_v53, %v1149_v11  ;;  %v1158_v7 = vsel %vm665_vm6, %v1153_v62, %v1157_v2  ;;  %v19326_v53 = vld [vmem:[#allocation46_spill] sm:$0xff] }
 0x428   :  { %v1281_v36 = vrot.slane %v1150_v14, 4  ;;  %v1160_v15 = vrot.slane %v19326_v53, 3  ;;  %v1297_v34 = vrot.slane %v1158_v7, 4  ;;  %v1259_v57 = vrot.slane %v14065_v12, 3 }
 0x429   :  { %v1167_v7 = vrot.slane %v19235_v13, 2  ;;  %v19333_v13 = vld [vmem:[#allocation45_spill] sm:$0xff] }
 0x42a   :  { %v1260_v14 = vsel %vm764_vm5, %v1257_v59, %v1259_v57  ;;  %v1527_v55 = vrot.slane %v1259_v57, 4 }
 0x42c   :  { %3358 = vmatmul.mubr.bf16.gmra.mrb[60].mxu0 %v19322_v41  ;;  %v19325_v41 = vld [vmem:[#allocation47_spill] sm:$0xff] }
 0x42d   :  { %3365 = vmatprep.mubr.bf16.mxu0 %v736_v58  ;;  %v1154_v58 = vsel %vm665_vm6, %v1149_v11, %v1153_v62  ;;  %v1159_v37 = vrot.slane %v19325_v41, 2 }
 0x42e   :  { %v1282_v20 = vrot.slane %v1154_v58, 4  ;;  %v1509_v58 = vrot.slane %v1260_v14, 4 }
 0x430   :  { %v1283_v38 = vsel %vm1261_vm1, %v1281_v36, %v1282_v20  ;;  %v1298_v62 = vsel %vm1261_vm1, %v1282_v20, %v1297_v34  ;;  %v1510_v36 = vsel %vm1261_vm1, %v1495_v30, %v1509_v58  ;;  %v1168_v30 = vrot.slane %v19236_v4, 3 }
 0x431   :  { %10511 = vmatprep.mubr.bf16.mxu1 %v1510_v36  ;;  %v1175_v36 = vrot.slane %v19241_v10, 2  ;;  %v19337_v10 = vld [vmem:[#allocation51_spill] sm:$0xff] }
 0x432   :  { %v1169_v57 = vor.u32 %v1168_v30, %v1167_v7 }
 0x433   :  { %v14044_v22 = vpop.f32.mrb[12].mxu1 }
 0x434   :  { %3366 = vmatmul.mubr.bf16.gmra.mrb[64].mxu0 %v19323_v48  ;;  %v14056_v3 = vpop.f32.mrb[13].mxu1  ;;  %v1163_v48 = vrot.slane %v19327_v44, 2 }
 0x435   :  { %3373 = vmatprep.mubr.bf16.mxu0 %v745_v31  ;;  %v14061_v11 = vpop.f32.mrb[14].mxu1  ;;  %v1161_v31 = vor.u32 %v1160_v15, %v1159_v37  ;;  %v19330_v37 = vld [vmem:[#allocation42_spill] sm:$0xff] }
 0x436   :  { %v14063_v35 = vpop.f32.mrb[15].mxu1  ;;  %v1165_v17 = vor.u32 %v1164_v9, %v1163_v48 }
 0x437   :  { %v1162_v43 = vsel %vm665_vm6, %v1157_v2, %v1161_v31 }
 0x438   :  { %v1311_v59 = vrot.slane %v1162_v43, 4 }
 0x43a   :  { %v1312_v20 = vsel %vm1261_vm1, %v1297_v34, %v1311_v59  ;;  %v1170_v34 = vsel %vm665_vm6, %v1165_v17, %v1169_v57 }
 0x43b   :  { %v1339_v4 = vrot.slane %v1170_v34, 4 }
 0x43c   :  { %3374 = vmatmul.mubr.bf16.gmra.mrb[68].mxu0 %v663_v32  ;;  %v1528_v32 = vsel %vm1261_vm1, %v1509_v58, %v1527_v55  ;;  %v19331_v58 = vld [vmem:[#allocation53_spill] sm:$0xff] }
 0x43d   :  { %3381 = vmatprep.mubr.bf16.mxu0 %v1283_v38  ;;  %10512 = vmatmul.mubr.bf16.gmra.mrb[68].mxu1 %v1528_v32  ;;  %v1166_v38 = vsel %vm665_vm6, %v1161_v31, %v1165_v17  ;;  %v19332_v31 = vld [vmem:[#allocation52_spill] sm:$0xff] }
 0x43e   :  { %v1325_v15 = vrot.slane %v1166_v38, 4  ;;  %v1172_v55 = vrot.slane %v19332_v31, 3 }
 0x440   :  { %v1326_v14 = vsel %vm1261_vm1, %v1311_v59, %v1325_v15  ;;  %v1340_v48 = vsel %vm1261_vm1, %v1325_v15, %v1339_v4  ;;  %v19334_v59 = vld [vmem:[#allocation44_spill] sm:$0xff] }
 0x443   :  { %v14076_v19 = vpop.f32.mrb[16].mxu1 }
 0x444   :  { %3382 = vmatmul.mubr.bf16.gmra.mrb[72].mxu0 %v19329_v18  ;;  %v14079_v2 = vpop.f32.mrb[17].mxu1  ;;  %v1176_v18 = vrot.slane %v19242_v5, 3 }
 0x445   :  { %3389 = vmatprep.mubr.bf16.mxu0 %v1298_v62  ;;  %v14084_v41 = vpop.f32.mrb[18].mxu1  ;;  %v1171_v62 = vrot.slane %v19331_v58, 2 }
 0x446   :  { %v14087_v53 = vpop.f32.mrb[19].mxu1  ;;  %v1177_v38 = vor.u32 %v1176_v18, %v1175_v36 }
 0x447   :  { %v1173_v43 = vor.u32 %v1172_v55, %v1171_v62 }
 0x449   :  { %v1174_v9 = vsel %vm665_vm6, %v1169_v57, %v1173_v43  ;;  %v1178_v30 = vsel %vm665_vm6, %v1173_v43, %v1177_v38  ;;  %v19336_v57 = vld [vmem:[#allocation56_spill] sm:$0xff] }
 0x44a   :  { %v1367_v5 = vrot.slane %v1178_v30, 4 }
 0x44c   :  { %3390 = vmatmul.mubr.bf16.gmra.mrb[76].mxu0 %v19330_v37  ;;  %v19335_v37 = vld [vmem:[#allocation57_spill] sm:$0xff] }
 0x44d   :  { %3397 = vmatprep.mubr.bf16.mxu0 %v1312_v20  ;;  %v1353_v20 = vrot.slane %v1174_v9, 4  ;;  %v1179_v15 = vrot.slane %v19335_v37, 2 }
 0x44f   :  { %v1354_v7 = vsel %vm1261_vm1, %v1339_v4, %v1353_v20  ;;  %v1368_v62 = vsel %vm1261_vm1, %v1353_v20, %v1367_v5  ;;  %v1184_v4 = vrot.slane %v19248_v61, 3 }
 0x453   :  { %v14094_v44 = vpop.f32.mrb[20].mxu1 }
 0x454   :  { %3398 = vmatmul.mubr.bf16.gmra.mrb[80].mxu0 %v19333_v13  ;;  %v14097_v56 = vpop.f32.mrb[21].mxu1  ;;  %v1183_v13 = vrot.slane %v19247_v46, 2  ;;  %v19341_v46 = vld [vmem:[#allocation55_spill] sm:$0xff] }
 0x455   :  { %3405 = vmatprep.mubr.bf16.mxu0 %v1326_v14  ;;  %v14102_v32 = vpop.f32.mrb[22].mxu1  ;;  %v1180_v14 = vrot.slane %v19336_v57, 3 }
 0x456   :  { %v14105_v17 = vpop.f32.mrb[23].mxu1  ;;  %v1185_v18 = vor.u32 %v1184_v4, %v1183_v13  ;;  %v19342_v13 = vld [vmem:[#allocation54_spill] sm:$0xff] }
 0x457   :  { %v1181_v34 = vor.u32 %v1180_v14, %v1179_v15 }
 0x459   :  { %v1182_v55 = vsel %vm665_vm6, %v1177_v38, %v1181_v34  ;;  %v1186_v20 = vsel %vm665_vm6, %v1181_v34, %v1185_v18  ;;  %v19340_v38 = vld [vmem:[#allocation60_spill] sm:$0xff]  ;;  %v1192_v34 = vrot.slane %v19254_v24, 3  ;;  %v14151_v24 = vld [vmem:[%s18498_s4] ss:$0 sm:$0xff] }
 0x45a   :  { %v1381_v36 = vrot.slane %v1182_v55, 4  ;;  %v1188_v37 = vrot.slane %v19340_v38, 3  ;;  %v1395_v61 = vrot.slane %v1186_v20, 4 }
 0x45c   :  { %3406 = vmatmul.mubr.bf16.gmra.mrb[84].mxu0 %v19334_v59  ;;  %v1382_v59 = vsel %vm1261_vm1, %v1367_v5, %v1381_v36  ;;  %v1396_v14 = vsel %vm1261_vm1, %v1381_v36, %v1395_v61  ;;  %v1191_v5 = vrot.slane %v19253_v1, 2  ;;  %v19345_v1 = vld [vmem:[#allocation59_spill] sm:$0xff] }
 0x45d   :  { %3413 = vmatprep.mubr.bf16.mxu0 %v1340_v48  ;;  %v14112_v58 = vpop.f32.mrb[24].mxu1  ;;  %v19338_v48 = vld [vmem:[#allocation50_spill] sm:$0xff] }
 0x45e   :  { %v14115_v31 = vpop.f32.mrb[25].mxu1 }
 0x45f   :  { %v14120_v43 = vpop.f32.mrb[26].mxu1 }
 0x460   :  { %v14123_v9 = vpop.f32.mrb[27].mxu1 }
 0x464   :  { %3414 = vmatmul.mubr.bf16.gmra.mrb[88].mxu0 %v19337_v10 }
 0x465   :  { %3421 = vmatprep.mubr.bf16.mxu0 %v1354_v7  ;;  %v19339_v7 = vld [vmem:[#allocation61_spill] sm:$0xff] }
 0x466   :  { %v1187_v30 = vrot.slane %v19339_v7, 2  ;;  %v19343_v7 = vld [vmem:[#allocation65_spill] sm:$0xff] }
 0x468   :  { %v1189_v15 = vor.u32 %v1188_v37, %v1187_v30  ;;  %v1195_v30 = vrot.slane %v19343_v7, 2 }
 0x46c   :  { %3422 = vmatmul.mubr.bf16.gmra.mrb[92].mxu0 %v19338_v48 }
 0x46d   :  { %3429 = vmatprep.mubr.bf16.mxu0 %v1368_v62  ;;  %v1190_v62 = vsel %vm665_vm6, %v1185_v18, %v1189_v15  ;;  %v19344_v18 = vld [vmem:[#allocation64_spill] sm:$0xff] }
 0x46e   :  { %v14130_v57 = vpop.f32.mrb[28].mxu1  ;;  %v1409_v48 = vrot.slane %v1190_v62, 4  ;;  %v1196_v38 = vrot.slane %v19344_v18, 3 }
 0x46f   :  { %v14133_v10 = vpop.f32.mrb[29].mxu1 }
 0x470   :  { %v14138_v55 = vpop.f32.mrb[30].mxu1  ;;  %v1410_v20 = vsel %vm1261_vm1, %v1395_v61, %v1409_v48 }
 0x471   :  { %v14141_v4 = vpop.f32.mrb[31].mxu1 }
 0x474   :  { %3430 = vmatmul.mubr.bf16.gmra.mrb[96].mxu0 %v19341_v46 }
 0x475   :  { %3437 = vmatprep.mubr.bf16.mxu0 %v1382_v59  ;;  %v1193_v59 = vor.u32 %v1192_v34, %v1191_v5 }
 0x477   :  { %v1194_v36 = vsel %vm665_vm6, %v1189_v15, %v1193_v59  ;;  %v14154_v5 = vpop.f32.mrb[32].mxu1 }
 0x478   :  { %v1423_v37 = vrot.slane %v1194_v36, 4  ;;  %v1200_v36 = vrot.slane %v19260_v40, 3 }
 0x47a   :  { %v1424_v18 = vsel %vm1261_vm1, %v1409_v48, %v1423_v37 }
 0x47c   :  { %3438 = vmatmul.mubr.bf16.gmra.mrb[100].mxu0 %v19342_v13 }
 0x47d   :  { %3445 = vmatprep.mubr.bf16.mxu0 %v1396_v14  ;;  %v1197_v14 = vor.u32 %v1196_v38, %v1195_v30  ;;  %v14164_v30 = vpop.f32.mrb[33].mxu1 }
 0x484   :  { %3446 = vmatmul.mubr.bf16.gmra.mrb[104].mxu0 %v19345_v1  ;;  %v1198_v1 = vsel %vm665_vm6, %v1193_v59, %v1197_v14 }
 0x485   :  { %3453 = vmatprep.mubr.bf16.mxu0 %v1410_v20  ;;  %v1199_v20 = vrot.slane %v19259_v63, 2 }
 0x487   :  { %v3239_v46 = vpop.f32.mrb[0].mxu0 }
 0x488   :  { %v10755_v62 = vadd.f32 %v14151_v24, %v3239_v46  ;;  %v3241_v61 = vpop.f32.mrb[1].mxu0  ;;  %v19346_v46 = vld [vmem:[#allocation58_spill] sm:$0xff] }
 0x489   :  { %v3242_v15 = vpop.f32.mrb[2].mxu0  ;;  %v14170_v61 = vpop.f32.mrb[34].mxu1 }
 0x48a   :  { %v10756_v34 = vadd.f32 %v14151_v24, %v3242_v15  ;;  %v14158_v13 = vadd.f32 %v10755_v62, %v13948_v25  ;;  %v3244_v7 = vpop.f32.mrb[3].mxu0  ;;  %19347 = vst [vmem:[#allocation66_spill] sm:$0xff] %v14170_v61  ;;  %v14172_v25 = vpop.f32.mrb[35].mxu1  ;;  %v1437_v62 = vrot.slane %v1198_v1, 4  ;;  %v1201_v15 = vor.u32 %v1200_v36, %v1199_v20  ;;  %v19349_v61 = vld [vmem:[#allocation68_spill] sm:$0xff]  ;;  %v19350_v36 = vld [vmem:[#allocation63_spill] sm:$0xff] }
 0x48b   :  { %v1204_v1 = vrot.slane %v19349_v61, 3 }
 0x48c   :  { %v14167_v38 = vadd.f32 %v10756_v34, %v13953_v33  ;;  %3454 = vmatmul.mubr.bf16.gmra.mrb[108].mxu0 %v19346_v46  ;;  %v1438_v46 = vsel %vm1261_vm1, %v1423_v37, %v1437_v62  ;;  %v1202_v47 = vsel %vm665_vm6, %v1197_v14, %v1201_v15 }
 0x48d   :  { %3461 = vmatprep.mubr.bf16.mxu0 %v1424_v18  ;;  %v19348_v18 = vld [vmem:[#allocation70_spill] sm:$0xff] }
 0x48e   :  { %v1203_v6 = vrot.slane %v19348_v18, 2 }
 0x48f   :  { %v3247_v48 = vpop.f32.mrb[4].mxu0 }
 0x490   :  { %v10757_v59 = vadd.f32 %v14151_v24, %v3247_v48  ;;  %v3249_v63 = vpop.f32.mrb[5].mxu0  ;;  %v1451_v48 = vrot.slane %v1202_v47, 4 }
 0x491   :  { %v3250_v7 = vpop.f32.mrb[6].mxu0 }
 0x492   :  { %v14176_v40 = vadd.f32 %v10757_v59, %v13937_v23  ;;  %v10758_v33 = vadd.f32 %v14151_v24, %v3250_v7  ;;  %v3252_v34 = vpop.f32.mrb[7].mxu0  ;;  %v1205_v59 = vor.u32 %v1204_v1, %v1203_v6  ;;  %v1207_v6 = vrot.slane %v19266_v16, 2 }
 0x494   :  { %v14184_v20 = vadd.f32 %v10758_v33, %v13950_v60  ;;  %3462 = vmatmul.mubr.bf16.gmra.mrb[112].mxu0 %v19350_v36  ;;  %v14188_v34 = vpop.f32.mrb[36].mxu1  ;;  %v1452_v60 = vsel %vm1261_vm1, %v1437_v62, %v1451_v48  ;;  %v1206_v47 = vsel %vm665_vm6, %v1201_v15, %v1205_v59 }
 0x495   :  { %3469 = vmatprep.mubr.bf16.mxu0 %v1438_v46  ;;  %v14195_v33 = vpop.f32.mrb[37].mxu1  ;;  %v1208_v46 = vrot.slane %v19267_v45, 3 }
 0x496   :  { %v14200_v1 = vpop.f32.mrb[38].mxu1 }
 0x497   :  { %v3255_v23 = vpop.f32.mrb[8].mxu0  ;;  %19351 = vst [vmem:[#allocation69_spill] sm:$0xff] %v14200_v1 }
 0x498   :  { %v10759_v63 = vadd.f32 %v14151_v24, %v3255_v23  ;;  %v3257_v7 = vpop.f32.mrb[9].mxu0  ;;  %v19352_v23 = vld [vmem:[#allocation62_spill] sm:$0xff] }
 0x499   :  { %v3258_v37 = vpop.f32.mrb[10].mxu0  ;;  %v1209_v7 = vor.u32 %v1208_v46, %v1207_v6 }
 0x49a   :  { %v10760_v14 = vadd.f32 %v14151_v24, %v3258_v37  ;;  %v14192_v18 = vadd.f32 %v10759_v63, %v13992_v52  ;;  %v3260_v61 = vpop.f32.mrb[11].mxu0  ;;  %v14206_v52 = vpop.f32.mrb[39].mxu1  ;;  %v1465_v63 = vrot.slane %v1206_v47, 4  ;;  %v19354_v47 = vshll.u32 %v13187_v49, 16 }
 0x49c   :  { %v14203_v36 = vadd.f32 %v10760_v14, %v13997_v28  ;;  %3470 = vmatmul.mubr.bf16.gmra.mrb[116].mxu0 %v19352_v23  ;;  %v1466_v28 = vsel %vm1261_vm1, %v1451_v48, %v1465_v63  ;;  %v1210_v14 = vsel %vm665_vm6, %v1205_v59, %v1209_v7  ;;  %v19353_v23 = vshrl.u32 %v13187_v49, 16 }
 0x49d   :  { %3477 = vmatprep.mubr.bf16.mxu0 %v1452_v60  ;;  %v1212_v6 = vrot.slane %v19354_v47, 3  ;;  %v1219_v48 = vshll.u32 %v14065_v12, 16 }
 0x49e   :  { %v1211_v60 = vrot.slane %v19353_v23, 2 }
 0x49f   :  { %v3263_v62 = vpop.f32.mrb[12].mxu0 }
 0x4a0   :  { %v10761_v37 = vadd.f32 %v14151_v24, %v3263_v62  ;;  %v3265_v15 = vpop.f32.mrb[13].mxu0  ;;  %v19355_v62 = vld [vmem:[#allocation67_spill] sm:$0xff] }
 0x4a1   :  { %v3266_v61 = vpop.f32.mrb[14].mxu0  ;;  %v1213_v15 = vor.u32 %v1212_v6, %v1211_v60 }
 0x4a2   :  { %v14210_v16 = vadd.f32 %v10761_v37, %v13983_v26  ;;  %v10762_v45 = vadd.f32 %v14151_v24, %v3266_v61  ;;  %v3268_v1 = vpop.f32.mrb[15].mxu0  ;;  %v1479_v26 = vrot.slane %v1210_v14, 4  ;;  %v14226_v23 = vpop.f32.mrb[40].mxu1 }
 0x4a3   :  { %v1216_v1 = vshrl.u32 %v14065_v12, 16  ;;  %19356 = vst [vmem:[#allocation72_spill] sm:$0xff] %v14226_v23  ;;  %v14228_v47 = vpop.f32.mrb[41].mxu1  ;;  %v1214_v6 = vsel %vm665_vm6, %v1209_v7, %v1213_v15 }
 0x4a4   :  { %v14220_v46 = vadd.f32 %v10762_v45, %v13994_v50  ;;  %3478 = vmatmul.mubr.bf16.gmra.mrb[120].mxu0 %v19355_v62  ;;  %19357 = vst [vmem:[#allocation71_spill] sm:$0xff] %v14228_v47  ;;  %v1480_v14 = vsel %vm1261_vm1, %v1465_v63, %v1479_v26  ;;  %v14235_v60 = vpop.f32.mrb[42].mxu1 }
 0x4a5   :  { %3485 = vmatprep.mubr.bf16.mxu0 %v1466_v28  ;;  %19358 = vst [vmem:[#allocation9_spill] sm:$0xff] %v14235_v60  ;;  %v1218_v62 = vrot.slane %v1216_v1, 2 }
 0x4a7   :  { %v3271_v37 = vpop.f32.mrb[16].mxu0 }
 0x4a8   :  { %v10763_v59 = vadd.f32 %v14151_v24, %v3271_v37  ;;  %v3273_v61 = vpop.f32.mrb[17].mxu0  ;;  %v1221_v37 = vrot.slane %v1219_v48, 3 }
 0x4a9   :  { %v3274_v49 = vpop.f32.mrb[18].mxu0  ;;  %v14238_v61 = vpop.f32.mrb[43].mxu1 }
 0x4aa   :  { %v10764_v50 = vadd.f32 %v14151_v24, %v3274_v49  ;;  %v14232_v45 = vadd.f32 %v10763_v59, %v14022_v0  ;;  %v3276_v28 = vpop.f32.mrb[19].mxu0  ;;  %v1493_v49 = vrot.slane %v1214_v6, 4  ;;  %v1222_v59 = vor.u32 %v1221_v37, %v1218_v62  ;;  %v14257_v37 = vpop.f32.mrb[44].mxu1 }
 0x4ac   :  { %v14241_v23 = vadd.f32 %v10764_v50, %v14029_v27  ;;  %3486 = vmatmul.mubr.bf16.gmra.mrb[124].mxu0 %v13619_v29  ;;  %v1494_v48 = vsel %vm1261_vm1, %v1479_v26, %v1493_v49  ;;  %v1223_v27 = vsel %vm665_vm6, %v1213_v15, %v1222_v59 }
 0x4ad   :  { %3493 = vmatprep.mubr.bf16.mxu0 %v1480_v14  ;;  %v1507_v50 = vrot.slane %v1223_v27, 4  ;;  %v1142_v14 = vrot.slane %v14065_v12, 2 }
 0x4af   :  { %v3279_v0 = vpop.f32.mrb[20].mxu0  ;;  %v1143_v12 = vsel %vm605_vm3, %v13636_v54, %v1142_v14 }
 0x4b0   :  { %v10765_v28 = vadd.f32 %v14151_v24, %v3279_v0  ;;  %v3281_v63 = vpop.f32.mrb[21].mxu0  ;;  %v14259_v0 = vpop.f32.mrb[45].mxu1 }
 0x4b1   :  { %v3282_v47 = vpop.f32.mrb[22].mxu0 }
 0x4b2   :  { %v14246_v60 = vadd.f32 %v10765_v28, %v14011_v42  ;;  %v10766_v7 = vadd.f32 %v14151_v24, %v3282_v47  ;;  %v3284_v1 = vpop.f32.mrb[23].mxu0  ;;  %v14268_v28 = vpop.f32.mrb[46].mxu1 }
 0x4b3   :  { %v14270_v63 = vpop.f32.mrb[47].mxu1  ;;  %v1505_v1 = vrot.slane %v1143_v12, 4 }
 0x4b4   :  { %v14252_v29 = vadd.f32 %v10766_v7, %v14026_v51  ;;  %3494 = vmatmul.mubr.bf16.gmra.mrb[128].mxu0 %v13645_v39  ;;  %v1508_v39 = vsel %vm1261_vm1, %v1493_v49, %v1507_v50 }
 0x4b5   :  { %3501 = vmatprep.mubr.bf16.mxu0 %v1494_v48  ;;  %v1525_v48 = vrot.slane %v1222_v59, 4  ;;  %v1506_v54 = vsel %vm1261_vm1, %v13663_v21, %v1505_v1  ;;  %v1523_v59 = vrot.slane %v1142_v14, 4 }
 0x4b7   :  { %v3287_v6 = vpop.f32.mrb[24].mxu0 }
 0x4b8   :  { %v10767_v42 = vadd.f32 %v14151_v24, %v3287_v6  ;;  %v3289_v62 = vpop.f32.mrb[25].mxu0 }
 0x4b9   :  { %v3290_v47 = vpop.f32.mrb[26].mxu0 }
 0x4ba   :  { %v10768_v26 = vadd.f32 %v14151_v24, %v3290_v47  ;;  %v14263_v51 = vadd.f32 %v10767_v42, %v14056_v3  ;;  %v3292_v15 = vpop.f32.mrb[27].mxu0  ;;  %v1526_v47 = vsel %vm1261_vm1, %v1507_v50, %v1525_v48 }
 0x4bc   :  { %v14273_v7 = vadd.f32 %v10768_v26, %v14063_v35  ;;  %3502 = vmatmul.mubr.bf16.gmra.mrb[132].mxu0 %v13674_v8 }
 0x4bd   :  { %3509 = vmatprep.mubr.bf16.mxu0 %v1508_v39  ;;  %v14288_v12 = vpop.f32.mrb[48].mxu1 }
 0x4bf   :  { %v3295_v3 = vpop.f32.mrb[28].mxu0 }
 0x4c0   :  { %v10769_v27 = vadd.f32 %v14151_v24, %v3295_v3  ;;  %v3297_v6 = vpop.f32.mrb[29].mxu0  ;;  %v14291_v3 = vpop.f32.mrb[49].mxu1 }
 0x4c1   :  { %v3298_v49 = vpop.f32.mrb[30].mxu0  ;;  %v14297_v48 = vpop.f32.mrb[50].mxu1 }
 0x4c2   :  { %v14280_v42 = vadd.f32 %v10769_v27, %v14044_v22  ;;  %v10770_v62 = vadd.f32 %v14151_v24, %v3298_v49  ;;  %v3300_v35 = vpop.f32.mrb[31].mxu0  ;;  %v1524_v22 = vsel %vm1261_vm1, %v1505_v1, %v1523_v59  ;;  %v14299_v14 = vpop.f32.mrb[51].mxu1 }
 0x4c4   :  { %v14285_v8 = vadd.f32 %v10770_v62, %v14061_v11  ;;  %3510 = vmatmul.mubr.bf16.gmra.mrb[136].mxu0 %v1506_v54 }
 0x4c5   :  { %3517 = vmatprep.mubr.bf16.mxu0 %v1526_v47 }
 0x4c7   :  { %v3303_v26 = vpop.f32.mrb[32].mxu0 }
 0x4c8   :  { %v10771_v15 = vadd.f32 %v14151_v24, %v3303_v26  ;;  %v3305_v39 = vpop.f32.mrb[33].mxu0 }
 0x4c9   :  { %v3306_v21 = vpop.f32.mrb[34].mxu0 }
 0x4ca   :  { %v10772_v27 = vadd.f32 %v14151_v24, %v3306_v21  ;;  %v14295_v50 = vadd.f32 %v10771_v15, %v14079_v2  ;;  %v3308_v11 = vpop.f32.mrb[35].mxu0 }
 0x4cc   :  { %v14302_v6 = vadd.f32 %v10772_v27, %v14087_v53  ;;  %3518 = vmatmul.mubr.bf16.gmra.mrb[140].mxu0 %v1524_v22  ;;  %v14313_v39 = vpop.f32.mrb[52].mxu1 }
 0x4cd   :  { %19359 = vst [vmem:[#allocation8_spill] sm:$0xff] %v14313_v39  ;;  %v14315_v22 = vpop.f32.mrb[53].mxu1 }
 0x4cf   :  { %v3311_v49 = vpop.f32.mrb[36].mxu0 }
 0x4d0   :  { %v10773_v54 = vadd.f32 %v14151_v24, %v3311_v49  ;;  %v3313_v1 = vpop.f32.mrb[37].mxu0  ;;  %v14321_v49 = vpop.f32.mrb[54].mxu1 }
 0x4d1   :  { %v3314_v62 = vpop.f32.mrb[38].mxu0  ;;  %19360 = vst [vmem:[#allocation33_spill] sm:$0xff] %v14321_v49 }
 0x4d2   :  { %v14306_v35 = vadd.f32 %v10773_v54, %v14076_v19  ;;  %v10774_v2 = vadd.f32 %v14151_v24, %v3314_v62  ;;  %v3316_v47 = vpop.f32.mrb[39].mxu0  ;;  %v14323_v54 = vpop.f32.mrb[55].mxu1 }
 0x4d3   :  { %19361 = vst [vmem:[#allocation73_spill] sm:$0xff] %v14323_v54  ;;  %v14329_v47 = vpop.permute.xlu0 %3849 }
 0x4d4   :  { %v14310_v59 = vadd.f32 %v10774_v2, %v14084_v41  ;;  %19362 = vst [vmem:[#allocation11_spill] sm:$0xff] %v14329_v47 }
 0x4d7   :  { %v3319_v26 = vpop.f32.mrb[40].mxu0  ;;  %v14343_v49 = vpop.f32.mrb[56].mxu1 }
 0x4d8   :  { %v10775_v15 = vadd.f32 %v14151_v24, %v3319_v26  ;;  %v3321_v53 = vpop.f32.mrb[41].mxu0  ;;  %v14345_v54 = vpop.f32.mrb[57].mxu1 }
 0x4d9   :  { %v3322_v21 = vpop.f32.mrb[42].mxu0 }
 0x4da   :  { %v10776_v27 = vadd.f32 %v14151_v24, %v3322_v21  ;;  %v14319_v19 = vadd.f32 %v10775_v15, %v14097_v56  ;;  %v3324_v11 = vpop.f32.mrb[43].mxu0 }
 0x4db   :  { %v14338_v11 = vpop.permute.xlu1 %3859 }
 0x4dc   :  { %v14326_v41 = vadd.f32 %v10776_v27, %v14105_v17  ;;  %19363 = vst [vmem:[#allocation10_spill] sm:$0xff] %v14338_v11  ;;  %v14340_v17 = vpop.permute.xlu0 %3854 }
 0x4dd   :  { %19364 = vst [vmem:[#allocation74_spill] sm:$0xff] %v14340_v17 }
 0x4df   :  { %v3327_v1 = vpop.f32.mrb[44].mxu0 }
 0x4e0   :  { %v10777_v62 = vadd.f32 %v14151_v24, %v3327_v1  ;;  %v3329_v2 = vpop.f32.mrb[45].mxu0 }
 0x4e1   :  { %v3330_v26 = vpop.f32.mrb[46].mxu0 }
 0x4e2   :  { %v14332_v53 = vadd.f32 %v10777_v62, %v14094_v44  ;;  %v10778_v56 = vadd.f32 %v14151_v24, %v3330_v26  ;;  %v3332_v15 = vpop.f32.mrb[47].mxu0  ;;  %v14351_v26 = vpop.f32.mrb[58].mxu1 }
 0x4e3   :  { %19365 = vst [vmem:[#allocation34_spill] sm:$0xff] %v14351_v26  ;;  %v14357_v15 = vmul.f32 %v14340_v17, %v14167_v38  ;;  %v14375_v26 = vpop.permute.xlu0 %3869 }
 0x4e4   :  { %v14336_v21 = vadd.f32 %v10778_v56, %v14102_v32  ;;  %v14353_v56 = vpop.f32.mrb[59].mxu1  ;;  %19370 = vst [vmem:[#allocation15_spill] sm:$0xff] %v14375_v26 }
 0x4e5   :  { %19366 = vst [vmem:[#allocation38_spill] sm:$0xff] %v14357_v15 }
 0x4e7   :  { %v3335_v27 = vpop.f32.mrb[48].mxu0 }
 0x4e8   :  { %v10779_v1 = vadd.f32 %v14151_v24, %v3335_v27  ;;  %v3337_v2 = vpop.f32.mrb[49].mxu0 }
 0x4e9   :  { %v3338_v39 = vpop.f32.mrb[50].mxu0  ;;  %v14364_v2 = vmul.f32 %v14329_v47, %v14158_v13 }
 0x4ea   :  { %v10780_v44 = vadd.f32 %v14151_v24, %v3338_v39  ;;  %v14349_v62 = vadd.f32 %v10779_v1, %v14115_v31  ;;  %v3340_v32 = vpop.f32.mrb[51].mxu0  ;;  %v14368_v31 = vmul.f32 %v14338_v11, %v14176_v40  ;;  %v14370_v39 = vpop.permute.xlu1 %3864 }
 0x4eb   :  { %19367 = vst [vmem:[#allocation13_spill] sm:$0xff] %v14364_v2  ;;  %19369 = vst [vmem:[#allocation75_spill] sm:$0xff] %v14370_v39  ;;  %v4279_v32 = vadd.f32 %v14357_v15, %v14364_v2  ;;  %v14380_v13 = vmul.f32 %v14370_v39, %v14184_v20  ;;  %v14388_v15 = vmul.f32 %v14375_v26, %v14192_v18 }
 0x4ec   :  { %v14360_v27 = vadd.f32 %v10780_v44, %v14123_v9  ;;  %19368 = vst [vmem:[#allocation12_spill] sm:$0xff] %v14368_v31 }
 0x4ed   :  { %v4280_v44 = vadd.f32 %v4279_v32, %v14368_v31  ;;  %19371 = vst [vmem:[#allocation14_spill] sm:$0xff] %v14380_v13  ;;  %19372 = vst [vmem:[#allocation76_spill] sm:$0xff] %v14388_v15  ;;  %v14396_v31 = vpop.permute.xlu0 %3879 }
 0x4ee   :  { %19374 = vst [vmem:[#allocation16_spill] sm:$0xff] %v14396_v31 }
 0x4ef   :  { %v3343_v1 = vpop.f32.mrb[52].mxu0  ;;  %v4281_v32 = vadd.f32 %v4280_v44, %v14380_v13  ;;  %v14410_v44 = vmul.f32 %v14396_v31, %v14210_v16 }
 0x4f0   :  { %v10781_v38 = vadd.f32 %v14151_v24, %v3343_v1  ;;  %v3345_v17 = vpop.f32.mrb[53].mxu0  ;;  %v14393_v1 = vpop.permute.xlu1 %3874 }
 0x4f1   :  { %v3346_v9 = vpop.f32.mrb[54].mxu0  ;;  %19373 = vst [vmem:[#allocation17_spill] sm:$0xff] %v14393_v1  ;;  %19376 = vst [vmem:[#allocation19_spill] sm:$0xff] %v14410_v44 }
 0x4f2   :  { %v14383_v40 = vadd.f32 %v10781_v38, %v14112_v58  ;;  %v10782_v11 = vadd.f32 %v14151_v24, %v3346_v9  ;;  %v3348_v47 = vpop.f32.mrb[55].mxu0  ;;  %v4282_v58 = vadd.f32 %v4281_v32, %v14388_v15  ;;  %v14401_v38 = vmul.f32 %v14393_v1, %v14203_v36  ;;  %v14404_v9 = vpop.f32.mrb[60].mxu1 }
 0x4f4   :  { %v14391_v17 = vadd.f32 %v10782_v11, %v14120_v43  ;;  %19375 = vst [vmem:[#allocation77_spill] sm:$0xff] %v14401_v38  ;;  %v14406_v11 = vpop.f32.mrb[61].mxu1  ;;  %v14418_v1 = vpop.permute.xlu1 %3884 }
 0x4f5   :  { %v14416_v36 = vpop.f32.mrb[62].mxu1  ;;  %19377 = vst [vmem:[#allocation18_spill] sm:$0xff] %v14418_v1 }
 0x4f7   :  { %v3351_v20 = vpop.f32.mrb[56].mxu0 }
 0x4f8   :  { %v10783_v47 = vadd.f32 %v14151_v24, %v3351_v20  ;;  %v3353_v18 = vpop.f32.mrb[57].mxu0  ;;  %v14420_v20 = vpop.f32.mrb[63].mxu1 }
 0x4f9   :  { %v3354_v43 = vpop.f32.mrb[58].mxu0  ;;  %v4283_v18 = vadd.f32 %v4282_v58, %v14401_v38  ;;  %v14438_v58 = vpop.permute.xlu1 %3894 }
 0x4fa   :  { %v10784_v26 = vadd.f32 %v14151_v24, %v3354_v43  ;;  %v14414_v32 = vadd.f32 %v10783_v47, %v14133_v10  ;;  %v3356_v39 = vpop.f32.mrb[59].mxu0  ;;  %v14429_v43 = vmul.f32 %v14418_v1, %v14220_v46  ;;  %v14431_v10 = vpop.permute.xlu0 %3889  ;;  %19381 = vst [vmem:[#allocation79_spill] sm:$0xff] %v14438_v58 }
 0x4fb   :  { %v4284_v16 = vadd.f32 %v4283_v18, %v14410_v44  ;;  %19379 = vst [vmem:[#allocation21_spill] sm:$0xff] %v14431_v10  ;;  %v14435_v47 = vmul.f32 %v14431_v10, %v14232_v45  ;;  %v14448_v45 = vmul.f32 %v14438_v58, %v14241_v23  ;;  %v14463_v10 = vpop.f32.mrb[64].mxu1 }
 0x4fc   :  { %v14424_v15 = vadd.f32 %v10784_v26, %v14141_v4  ;;  %19378 = vst [vmem:[#allocation78_spill] sm:$0xff] %v14429_v43  ;;  %v14465_v58 = vpop.f32.mrb[65].mxu1 }
 0x4fd   :  { %19380 = vst [vmem:[#allocation20_spill] sm:$0xff] %v14435_v47  ;;  %v4285_v26 = vadd.f32 %v4284_v16, %v14429_v43  ;;  %19382 = vst [vmem:[#allocation23_spill] sm:$0xff] %v14448_v45 }
 0x4ff   :  { %v3359_v39 = vpop.f32.mrb[60].mxu0  ;;  %v4286_v44 = vadd.f32 %v4285_v26, %v14435_v47 }
 0x500   :  { %v10785_v31 = vadd.f32 %v14151_v24, %v3359_v39  ;;  %v3361_v13 = vpop.f32.mrb[61].mxu0 }
 0x501   :  { %v3362_v4 = vpop.f32.mrb[62].mxu0  ;;  %v14453_v13 = vpop.permute.xlu0 %3899 }
 0x502   :  { %v14442_v18 = vadd.f32 %v10785_v31, %v14130_v57  ;;  %v10786_v46 = vadd.f32 %v14151_v24, %v3362_v4  ;;  %v3364_v1 = vpop.f32.mrb[63].mxu0  ;;  %19383 = vst [vmem:[#allocation22_spill] sm:$0xff] %v14453_v13  ;;  %v14457_v16 = vmul.f32 %v14453_v13, %v14246_v60  ;;  %v14459_v57 = vpop.permute.xlu1 %3904 }
 0x503   :  { %19385 = vst [vmem:[#allocation25_spill] sm:$0xff] %v14459_v57  ;;  %v4287_v1 = vadd.f32 %v4286_v44, %v14448_v45  ;;  %v14476_v45 = vpop.f32.mrb[66].mxu1 }
 0x504   :  { %v14451_v39 = vadd.f32 %v10786_v46, %v14138_v55  ;;  %19384 = vst [vmem:[#allocation80_spill] sm:$0xff] %v14457_v16  ;;  %v14470_v46 = vmul.f32 %v14459_v57, %v14252_v29 }
 0x505   :  { %v4288_v55 = vadd.f32 %v4287_v1, %v14457_v16 }
 0x506   :  { %19386 = vst [vmem:[#allocation24_spill] sm:$0xff] %v14470_v46 }
 0x507   :  { %v3367_v31 = vpop.f32.mrb[64].mxu0  ;;  %v4289_v29 = vadd.f32 %v4288_v55, %v14470_v46 }
 0x508   :  { %v10787_v4 = vadd.f32 %v14151_v24, %v3367_v31  ;;  %v3369_v26 = vpop.f32.mrb[65].mxu0  ;;  %v14478_v31 = vpop.permute.xlu0 %3909 }
 0x509   :  { %v3370_v23 = vpop.f32.mrb[66].mxu0  ;;  %19387 = vst [vmem:[#allocation81_spill] sm:$0xff] %v14478_v31  ;;  %v14480_v26 = vpop.f32.mrb[67].mxu1  ;;  %v14484_v47 = vmul.f32 %v14478_v31, %v14263_v51 }
 0x50a   :  { %v10788_v60 = vadd.f32 %v14151_v24, %v3370_v23  ;;  %v14474_v13 = vadd.f32 %v10787_v4, %v14164_v30  ;;  %v3372_v44 = vpop.f32.mrb[67].mxu0  ;;  %v14490_v23 = vpop.permute.xlu1 %3914 }
 0x50b   :  { %19388 = vst [vmem:[#allocation27_spill] sm:$0xff] %v14484_v47  ;;  %19389 = vst [vmem:[#allocation26_spill] sm:$0xff] %v14490_v23  ;;  %v4290_v4 = vadd.f32 %v4289_v29, %v14484_v47  ;;  %v14495_v44 = vmul.f32 %v14490_v23, %v14273_v7  ;;  %v19393_v7 = vld [vmem:[#allocation66_spill] sm:$0xff] }
 0x50c   :  { %v14487_v1 = vadd.f32 %v10788_v60, %v14172_v25  ;;  %v14498_v43 = vpop.permute.xlu0 %3919 }
 0x50d   :  { %19390 = vst [vmem:[#allocation82_spill] sm:$0xff] %v14495_v44  ;;  %19391 = vst [vmem:[#allocation29_spill] sm:$0xff] %v14498_v43  ;;  %v14502_v25 = vmul.f32 %v14498_v43, %v14280_v42  ;;  %v4291_v31 = vadd.f32 %v4290_v4, %v14495_v44 }
 0x50f   :  { %v3375_v30 = vpop.f32.mrb[68].mxu0  ;;  %19392 = vst [vmem:[#allocation28_spill] sm:$0xff] %v14502_v25 }
 0x510   :  { %v10789_v57 = vadd.f32 %v14151_v24, %v3375_v30  ;;  %v3377_v16 = vpop.f32.mrb[69].mxu0  ;;  %v14512_v30 = vpop.permute.xlu1 %3924 }
 0x511   :  { %v3378_v51 = vpop.f32.mrb[70].mxu0  ;;  %19394 = vst [vmem:[#allocation83_spill] sm:$0xff] %v14512_v30  ;;  %v4292_v16 = vadd.f32 %v4291_v31, %v14502_v25  ;;  %v14517_v47 = vmul.f32 %v14512_v30, %v14285_v8  ;;  %v14519_v42 = vpop.permute.xlu0 %3929 }
 0x512   :  { %v14505_v55 = vadd.f32 %v10789_v57, %v14154_v5  ;;  %v10790_v60 = vadd.f32 %v14151_v24, %v3378_v51  ;;  %v3380_v29 = vpop.f32.mrb[71].mxu0  ;;  %19396 = vst [vmem:[#allocation30_spill] sm:$0xff] %v14519_v42  ;;  %v14523_v57 = vmul.f32 %v14519_v42, %v14295_v50 }
 0x513   :  { %19395 = vst [vmem:[#allocation31_spill] sm:$0xff] %v14517_v47  ;;  %v4293_v31 = vadd.f32 %v4292_v16, %v14517_v47 }
 0x514   :  { %v14510_v23 = vadd.f32 %v10790_v60, %v19393_v7  ;;  %19397 = vst [vmem:[#allocation84_spill] sm:$0xff] %v14523_v57  ;;  %v14526_v60 = vpop.f32.mrb[68].mxu1  ;;  %v14537_v50 = vpop.permute.xlu1 %3934 }
 0x515   :  { %v14528_v7 = vpop.f32.mrb[69].mxu1  ;;  %19398 = vst [vmem:[#allocation35_spill] sm:$0xff] %v14537_v50 }
 0x516   :  { %v14535_v25 = vpop.f32.mrb[70].mxu1 }
 0x517   :  { %v3383_v5 = vpop.f32.mrb[72].mxu0  ;;  %v14539_v42 = vpop.f32.mrb[71].mxu1 }
 0x518   :  { %v10791_v4 = vadd.f32 %v14151_v24, %v3383_v5  ;;  %v3385_v51 = vpop.f32.mrb[73].mxu0  ;;  %v4294_v5 = vadd.f32 %v4293_v31, %v14523_v57  ;;  %v14557_v31 = vpop.permute.xlu1 %3944 }
 0x519   :  { %v3386_v29 = vpop.f32.mrb[74].mxu0  ;;  %v14544_v51 = vmul.f32 %v14537_v50, %v14302_v6  ;;  %19402 = vst [vmem:[#allocation86_spill] sm:$0xff] %v14557_v31 }
 0x51a   :  { %v10792_v8 = vadd.f32 %v14151_v24, %v3386_v29  ;;  %v14533_v30 = vadd.f32 %v10791_v4, %v14195_v33  ;;  %v3388_v43 = vpop.f32.mrb[75].mxu0  ;;  %v14549_v29 = vpop.permute.xlu0 %3939 }
 0x51b   :  { %19399 = vst [vmem:[#allocation32_spill] sm:$0xff] %v14544_v51  ;;  %19400 = vst [vmem:[#allocation85_spill] sm:$0xff] %v14549_v29  ;;  %v14553_v33 = vmul.f32 %v14549_v29, %v14306_v35  ;;  %v4295_v4 = vadd.f32 %v4294_v5, %v14544_v51  ;;  %v19406_v5 = vld [vmem:[#allocation69_spill] sm:$0xff] }
 0x51c   :  { %v14547_v16 = vadd.f32 %v10792_v8, %v14206_v52  ;;  %v14562_v52 = vmul.f32 %v14557_v31, %v14310_v59 }
 0x51d   :  { %19401 = vst [vmem:[#allocation36_spill] sm:$0xff] %v14553_v33  ;;  %v4296_v6 = vadd.f32 %v4295_v4, %v14553_v33  ;;  %v14578_v33 = vpop.permute.xlu1 %3954 }
 0x51e   :  { %19403 = vst [vmem:[#allocation87_spill] sm:$0xff] %v14562_v52  ;;  %v14568_v50 = vpop.permute.xlu0 %3949  ;;  %19407 = vst [vmem:[#allocation41_spill] sm:$0xff] %v14578_v33 }
 0x51f   :  { %v3391_v43 = vpop.f32.mrb[76].mxu0  ;;  %19404 = vst [vmem:[#allocation39_spill] sm:$0xff] %v14568_v50  ;;  %v4297_v4 = vadd.f32 %v4296_v6, %v14562_v52 }
 0x520   :  { %v10793_v47 = vadd.f32 %v14151_v24, %v3391_v43  ;;  %v3393_v44 = vpop.f32.mrb[77].mxu0 }
 0x521   :  { %v3394_v57 = vpop.f32.mrb[78].mxu0  ;;  %v14572_v44 = vmul.f32 %v14568_v50, %v14319_v19 }
 0x522   :  { %v14565_v8 = vadd.f32 %v10793_v47, %v14188_v34  ;;  %v10794_v35 = vadd.f32 %v14151_v24, %v3394_v57  ;;  %v3396_v29 = vpop.f32.mrb[79].mxu0  ;;  %v14583_v47 = vmul.f32 %v14578_v33, %v14326_v41  ;;  %v14586_v31 = vpop.permute.xlu0 %3959 }
 0x523   :  { %19405 = vst [vmem:[#allocation37_spill] sm:$0xff] %v14572_v44  ;;  %v4298_v34 = vadd.f32 %v4297_v4, %v14572_v44  ;;  %19409 = vst [vmem:[#allocation88_spill] sm:$0xff] %v14586_v31 }
 0x524   :  { %v14575_v43 = vadd.f32 %v10794_v35, %v19406_v5  ;;  %19408 = vst [vmem:[#allocation40_spill] sm:$0xff] %v14583_v47  ;;  %v14590_v35 = vmul.f32 %v14586_v31, %v14332_v53  ;;  %v19411_v5 = vld [vmem:[#allocation71_spill] sm:$0xff] }
 0x525   :  { %v4299_v44 = vadd.f32 %v4298_v34, %v14583_v47 }
 0x526   :  { %19410 = vst [vmem:[#allocation89_spill] sm:$0xff] %v14590_v35  ;;  %v14607_v53 = vpop.permute.xlu0 %3969 }
 0x527   :  { %v3399_v59 = vpop.f32.mrb[80].mxu0  ;;  %19414 = vst [vmem:[#allocation49_spill] sm:$0xff] %v14607_v53 }
 0x528   :  { %v10795_v57 = vadd.f32 %v14151_v24, %v3399_v59  ;;  %v3401_v29 = vpop.f32.mrb[81].mxu0  ;;  %v14600_v59 = vpop.permute.xlu1 %3964 }
 0x529   :  { %v3402_v19 = vpop.f32.mrb[82].mxu0  ;;  %19412 = vst [vmem:[#allocation47_spill] sm:$0xff] %v14600_v59  ;;  %v4300_v29 = vadd.f32 %v4299_v44, %v14590_v35  ;;  %v14605_v33 = vmul.f32 %v14600_v59, %v14336_v21 }
 0x52a   :  { %v10796_v6 = vadd.f32 %v14151_v24, %v3402_v19  ;;  %v14594_v50 = vadd.f32 %v10795_v57, %v19411_v5  ;;  %v3404_v4 = vpop.f32.mrb[83].mxu0  ;;  %v14611_v57 = vmul.f32 %v14607_v53, %v14349_v62  ;;  %v19419_v53 = vld [vmem:[#allocation9_spill] sm:$0xff] }
 0x52b   :  { %19413 = vst [vmem:[#allocation46_spill] sm:$0xff] %v14605_v33  ;;  %v19416_v4 = vld [vmem:[#allocation72_spill] sm:$0xff] }
 0x52c   :  { %v14598_v41 = vadd.f32 %v10796_v6, %v14238_v61  ;;  %19415 = vst [vmem:[#allocation48_spill] sm:$0xff] %v14611_v57  ;;  %v4301_v6 = vadd.f32 %v4300_v29, %v14605_v33  ;;  %v14619_v59 = vpop.permute.xlu1 %3974 }
 0x52d   :  { %19417 = vst [vmem:[#allocation43_spill] sm:$0xff] %v14619_v59  ;;  %v14624_v62 = vmul.f32 %v14619_v59, %v14360_v27 }
 0x52e   :  { %v4302_v35 = vadd.f32 %v4301_v6, %v14611_v57 }
 0x52f   :  { %v3407_v19 = vpop.f32.mrb[84].mxu0  ;;  %19418 = vst [vmem:[#allocation42_spill] sm:$0xff] %v14624_v62 }
 0x530   :  { %v10797_v34 = vadd.f32 %v14151_v24, %v3407_v19  ;;  %v3409_v5 = vpop.f32.mrb[85].mxu0  ;;  %v14637_v6 = vpop.permute.xlu1 %3984 }
 0x531   :  { %v3410_v61 = vpop.f32.mrb[86].mxu0  ;;  %v14629_v5 = vpop.permute.xlu0 %3979  ;;  %19422 = vst [vmem:[#allocation45_spill] sm:$0xff] %v14637_v6 }
 0x532   :  { %v14616_v31 = vadd.f32 %v10797_v34, %v19416_v4  ;;  %v10798_v44 = vadd.f32 %v14151_v24, %v3410_v61  ;;  %v3412_v21 = vpop.f32.mrb[87].mxu0  ;;  %19420 = vst [vmem:[#allocation53_spill] sm:$0xff] %v14629_v5  ;;  %v14633_v29 = vmul.f32 %v14629_v5, %v14383_v40  ;;  %v4303_v61 = vadd.f32 %v4302_v35, %v14624_v62 }
 0x534   :  { %v14627_v19 = vadd.f32 %v10798_v44, %v19419_v53  ;;  %19421 = vst [vmem:[#allocation52_spill] sm:$0xff] %v14633_v29  ;;  %v4304_v27 = vadd.f32 %v4303_v61, %v14633_v29  ;;  %v14642_v53 = vmul.f32 %v14637_v6, %v14391_v17 }
 0x535   :  { %v14648_v59 = vpop.permute.xlu0 %3989 }
 0x536   :  { %19423 = vst [vmem:[#allocation44_spill] sm:$0xff] %v14642_v53  ;;  %19424 = vst [vmem:[#allocation57_spill] sm:$0xff] %v14648_v59  ;;  %v14652_v35 = vmul.f32 %v14648_v59, %v14414_v32  ;;  %v4305_v61 = vadd.f32 %v4304_v27, %v14642_v53 }
 0x537   :  { %v3415_v34 = vpop.f32.mrb[88].mxu0 }
 0x538   :  { %v10799_v4 = vadd.f32 %v14151_v24, %v3415_v34  ;;  %v3417_v21 = vpop.f32.mrb[89].mxu0  ;;  %19425 = vst [vmem:[#allocation56_spill] sm:$0xff] %v14652_v35 }
 0x539   :  { %v3418_v57 = vpop.f32.mrb[90].mxu0  ;;  %v14658_v21 = vpop.permute.xlu1 %3994 }
 0x53a   :  { %v10800_v44 = vadd.f32 %v14151_v24, %v3418_v57  ;;  %v14646_v40 = vadd.f32 %v10799_v4, %v14259_v0  ;;  %v3420_v5 = vpop.f32.mrb[91].mxu0  ;;  %19426 = vst [vmem:[#allocation51_spill] sm:$0xff] %v14658_v21  ;;  %v4306_v57 = vadd.f32 %v4305_v61, %v14652_v35  ;;  %v14663_v0 = vmul.f32 %v14658_v21, %v14424_v15  ;;  %v14666_v6 = vpop.permute.xlu0 %3999 }
 0x53b   :  { %19428 = vst [vmem:[#allocation61_spill] sm:$0xff] %v14666_v6 }
 0x53c   :  { %v14655_v34 = vadd.f32 %v10800_v44, %v14270_v63  ;;  %19427 = vst [vmem:[#allocation50_spill] sm:$0xff] %v14663_v0  ;;  %v14670_v63 = vmul.f32 %v14666_v6, %v14442_v18  ;;  %v4307_v59 = vadd.f32 %v4306_v57, %v14663_v0 }
 0x53e   :  { %19429 = vst [vmem:[#allocation60_spill] sm:$0xff] %v14670_v63  ;;  %v14687_v18 = vpop.permute.xlu0 %4009 }
 0x53f   :  { %v3423_v17 = vpop.f32.mrb[92].mxu0  ;;  %19432 = vst [vmem:[#allocation65_spill] sm:$0xff] %v14687_v18 }
 0x540   :  { %v10801_v5 = vadd.f32 %v14151_v24, %v3423_v17  ;;  %v3425_v4 = vpop.f32.mrb[93].mxu0  ;;  %v14680_v17 = vpop.permute.xlu1 %4004 }
 0x541   :  { %v3426_v32 = vpop.f32.mrb[94].mxu0  ;;  %19430 = vst [vmem:[#allocation55_spill] sm:$0xff] %v14680_v17  ;;  %v4308_v4 = vadd.f32 %v4307_v59, %v14670_v63  ;;  %v14685_v21 = vmul.f32 %v14680_v17, %v14451_v39 }
 0x542   :  { %v14673_v27 = vadd.f32 %v10801_v5, %v14257_v37  ;;  %v10802_v44 = vadd.f32 %v14151_v24, %v3426_v32  ;;  %v3428_v61 = vpop.f32.mrb[95].mxu0  ;;  %v14691_v5 = vmul.f32 %v14687_v18, %v14474_v13 }
 0x543   :  { %19431 = vst [vmem:[#allocation54_spill] sm:$0xff] %v14685_v21 }
 0x544   :  { %v14678_v15 = vadd.f32 %v10802_v44, %v14268_v28  ;;  %19433 = vst [vmem:[#allocation64_spill] sm:$0xff] %v14691_v5  ;;  %v4309_v44 = vadd.f32 %v4308_v4, %v14685_v21  ;;  %v14699_v17 = vpop.permute.xlu1 %4014 }
 0x545   :  { %19434 = vst [vmem:[#allocation59_spill] sm:$0xff] %v14699_v17  ;;  %v14704_v13 = vmul.f32 %v14699_v17, %v14487_v1 }
 0x546   :  { %v4310_v6 = vadd.f32 %v4309_v44, %v14691_v5 }
 0x547   :  { %v3431_v37 = vpop.f32.mrb[96].mxu0  ;;  %19435 = vst [vmem:[#allocation58_spill] sm:$0xff] %v14704_v13 }
 0x548   :  { %v10803_v57 = vadd.f32 %v14151_v24, %v3431_v37  ;;  %v3433_v32 = vpop.f32.mrb[97].mxu0  ;;  %v14717_v44 = vpop.permute.xlu1 %4024 }
 0x549   :  { %v3434_v28 = vpop.f32.mrb[98].mxu0  ;;  %v14709_v32 = vpop.permute.xlu0 %4019  ;;  %19438 = vst [vmem:[#allocation63_spill] sm:$0xff] %v14717_v44 }
 0x54a   :  { %v10804_v61 = vadd.f32 %v14151_v24, %v3434_v28  ;;  %v14697_v59 = vadd.f32 %v10803_v57, %v14291_v3  ;;  %v3436_v39 = vpop.f32.mrb[99].mxu0  ;;  %19436 = vst [vmem:[#allocation70_spill] sm:$0xff] %v14709_v32  ;;  %v14713_v4 = vmul.f32 %v14709_v32, %v14505_v55  ;;  %v4311_v57 = vadd.f32 %v4310_v6, %v14704_v13 }
 0x54c   :  { %v14707_v37 = vadd.f32 %v10804_v61, %v14299_v14  ;;  %19437 = vst [vmem:[#allocation68_spill] sm:$0xff] %v14713_v4  ;;  %v4312_v1 = vadd.f32 %v4311_v57, %v14713_v4  ;;  %v14722_v14 = vmul.f32 %v14717_v44, %v14510_v23 }
 0x54d   :  { %v14728_v17 = vpop.permute.xlu0 %4029 }
 0x54e   :  { %19439 = vst [vmem:[#allocation62_spill] sm:$0xff] %v14722_v14  ;;  %19440 = vst [vmem:[#allocation67_spill] sm:$0xff] %v14728_v17  ;;  %v14732_v6 = vmul.f32 %v14728_v17, %v14533_v30  ;;  %v4313_v57 = vadd.f32 %v4312_v1, %v14722_v14 }
 0x54f   :  { %v3439_v3 = vpop.f32.mrb[100].mxu0 }
 0x550   :  { %v10805_v28 = vadd.f32 %v14151_v24, %v3439_v3  ;;  %v3441_v39 = vpop.f32.mrb[101].mxu0  ;;  %19441 = vst [vmem:[#allocation66_spill] sm:$0xff] %v14732_v6 }
 0x551   :  { %v3442_v18 = vpop.f32.mrb[102].mxu0  ;;  %v14738_v39 = vpop.permute.xlu1 %4034 }
 0x552   :  { %v14725_v61 = vadd.f32 %v10805_v28, %v14288_v12  ;;  %v10806_v55 = vadd.f32 %v14151_v24, %v3442_v18  ;;  %v3444_v32 = vpop.f32.mrb[103].mxu0  ;;  %19442 = vst [vmem:[#allocation69_spill] sm:$0xff] %v14738_v39  ;;  %v4314_v12 = vadd.f32 %v4313_v57, %v14732_v6  ;;  %v14743_v18 = vmul.f32 %v14738_v39, %v14547_v16  ;;  %v14746_v44 = vpop.permute.xlu0 %4039  ;;  %v19445_v16 = vld [vmem:[#allocation73_spill] sm:$0xff] }
 0x553   :  { %19443 = vst [vmem:[#allocation71_spill] sm:$0xff] %v14746_v44 }
 0x554   :  { %v14735_v3 = vadd.f32 %v10806_v55, %v14297_v48  ;;  %v14750_v48 = vmul.f32 %v14746_v44, %v14565_v8  ;;  %v4315_v17 = vadd.f32 %v4314_v12, %v14743_v18 }
 0x556   :  { %19444 = vst [vmem:[#allocation72_spill] sm:$0xff] %v14750_v48  ;;  %v14767_v8 = vpop.permute.xlu0 %4049 }
 0x557   :  { %v3447_v23 = vpop.f32.mrb[104].mxu0  ;;  %19447 = vst [vmem:[#allocation73_spill] sm:$0xff] %v14767_v8 }
 0x558   :  { %v10807_v32 = vadd.f32 %v14151_v24, %v3447_v23  ;;  %v3449_v28 = vpop.f32.mrb[105].mxu0  ;;  %v14760_v23 = vpop.permute.xlu1 %4044 }
 0x559   :  { %v3450_v30 = vpop.f32.mrb[106].mxu0  ;;  %19446 = vst [vmem:[#allocation9_spill] sm:$0xff] %v14760_v23  ;;  %v4316_v28 = vadd.f32 %v4315_v17, %v14750_v48  ;;  %v14765_v6 = vmul.f32 %v14760_v23, %v14575_v43 }
 0x55a   :  { %v10808_v1 = vadd.f32 %v14151_v24, %v3450_v30  ;;  %v14754_v55 = vadd.f32 %v10807_v32, %v14315_v22  ;;  %v3452_v57 = vpop.f32.mrb[107].mxu0  ;;  %v14771_v22 = vmul.f32 %v14767_v8, %v14594_v50  ;;  %v19451_v8 = vld [vmem:[#allocation33_spill] sm:$0xff] }
 0x55b   :  { %v4317_v57 = vadd.f32 %v4316_v28, %v14765_v6 }
 0x55c   :  { %v14758_v39 = vadd.f32 %v10808_v1, %v19445_v16  ;;  %19448 = vst [vmem:[#allocation90_spill] sm:$0xff] %v14771_v22  ;;  %v19449_v16 = vld [vmem:[#allocation8_spill] sm:$0xff]  ;;  %v14779_v23 = vpop.permute.xlu1 %4054 }
 0x55d   :  { %19450 = vst [vmem:[#allocation8_spill] sm:$0xff] %v14779_v23  ;;  %v4318_v48 = vadd.f32 %v4317_v57, %v14771_v22  ;;  %v14784_v50 = vmul.f32 %v14779_v23, %v14598_v41 }
 0x55f   :  { %v3455_v30 = vpop.f32.mrb[108].mxu0 }
 0x560   :  { %v10809_v12 = vadd.f32 %v14151_v24, %v3455_v30  ;;  %v3457_v32 = vpop.f32.mrb[109].mxu0  ;;  %v14797_v57 = vpop.permute.xlu1 %4064 }
 0x561   :  { %v3458_v1 = vpop.f32.mrb[110].mxu0  ;;  %v14789_v32 = vpop.permute.xlu0 %4059  ;;  %19453 = vst [vmem:[#allocation91_spill] sm:$0xff] %v14797_v57 }
 0x562   :  { %v14776_v44 = vadd.f32 %v10809_v12, %v19449_v16  ;;  %v10810_v17 = vadd.f32 %v14151_v24, %v3458_v1  ;;  %v3460_v43 = vpop.f32.mrb[111].mxu0  ;;  %19452 = vst [vmem:[#allocation33_spill] sm:$0xff] %v14789_v32  ;;  %v14793_v28 = vmul.f32 %v14789_v32, %v14616_v31  ;;  %v4319_v1 = vadd.f32 %v4318_v48, %v14784_v50 }
 0x564   :  { %v14787_v30 = vadd.f32 %v10810_v17, %v19451_v8  ;;  %v4320_v41 = vadd.f32 %v4319_v1, %v14793_v28  ;;  %v14802_v8 = vmul.f32 %v14797_v57, %v14627_v19 }
 0x565   :  { %v14808_v23 = vpop.permute.xlu0 %4069 }
 0x566   :  { %19454 = vst [vmem:[#allocation92_spill] sm:$0xff] %v14808_v23  ;;  %v14812_v48 = vmul.f32 %v14808_v23, %v14646_v40  ;;  %v4321_v1 = vadd.f32 %v4320_v41, %v14802_v8 }
 0x567   :  { %v3463_v12 = vpop.f32.mrb[112].mxu0 }
 0x568   :  { %v10811_v16 = vadd.f32 %v14151_v24, %v3463_v12  ;;  %v3465_v43 = vpop.f32.mrb[113].mxu0  ;;  %19455 = vst [vmem:[#allocation93_spill] sm:$0xff] %v14812_v48 }
 0x569   :  { %v3466_v22 = vpop.f32.mrb[114].mxu0  ;;  %v14818_v43 = vpop.permute.xlu1 %4074 }
 0x56a   :  { %v10812_v17 = vadd.f32 %v14151_v24, %v3466_v22  ;;  %v14806_v31 = vadd.f32 %v10811_v16, %v14345_v54  ;;  %v3468_v32 = vpop.f32.mrb[115].mxu0  ;;  %19456 = vst [vmem:[#allocation94_spill] sm:$0xff] %v14818_v43  ;;  %v4322_v22 = vadd.f32 %v4321_v1, %v14812_v48  ;;  %v14823_v54 = vmul.f32 %v14818_v43, %v14655_v34  ;;  %v14826_v57 = vpop.permute.xlu0 %4079  ;;  %v19458_v34 = vld [vmem:[#allocation34_spill] sm:$0xff] }
 0x56b   :  { %19457 = vst [vmem:[#allocation95_spill] sm:$0xff] %v14826_v57 }
 0x56c   :  { %v14815_v12 = vadd.f32 %v10812_v17, %v14353_v56  ;;  %v14830_v56 = vmul.f32 %v14826_v57, %v14673_v27  ;;  %v4323_v23 = vadd.f32 %v4322_v22, %v14823_v54 }
 0x56e   :  { %v14847_v27 = vpop.permute.xlu0 %4089 }
 0x56f   :  { %v3471_v19 = vpop.f32.mrb[116].mxu0  ;;  %19460 = vst [vmem:[#allocation96_spill] sm:$0xff] %v14847_v27 }
 0x570   :  { %v10813_v32 = vadd.f32 %v14151_v24, %v3471_v19  ;;  %v3473_v16 = vpop.f32.mrb[117].mxu0  ;;  %v14840_v19 = vpop.permute.xlu1 %4084 }
 0x571   :  { %v3474_v40 = vpop.f32.mrb[118].mxu0  ;;  %19459 = vst [vmem:[#allocation34_spill] sm:$0xff] %v14840_v19  ;;  %v4324_v16 = vadd.f32 %v4323_v23, %v14830_v56  ;;  %v14845_v48 = vmul.f32 %v14840_v19, %v14678_v15 }
 0x572   :  { %v14833_v41 = vadd.f32 %v10813_v32, %v14343_v49  ;;  %v10814_v17 = vadd.f32 %v14151_v24, %v3474_v40  ;;  %v3476_v1 = vpop.f32.mrb[119].mxu0  ;;  %v14851_v32 = vmul.f32 %v14847_v27, %v14697_v59 }
 0x573   :  { %v4325_v1 = vadd.f32 %v4324_v16, %v14845_v48 }
 0x574   :  { %v14838_v43 = vadd.f32 %v10814_v17, %v19458_v34  ;;  %v14859_v19 = vpop.permute.xlu1 %4094 }
 0x575   :  { %19461 = vst [vmem:[#allocation97_spill] sm:$0xff] %v14859_v19  ;;  %v4326_v57 = vadd.f32 %v4325_v1, %v14851_v32  ;;  %v14864_v59 = vmul.f32 %v14859_v19, %v14707_v37 }
 0x577   :  { %v3479_v49 = vpop.f32.mrb[120].mxu0 }
 0x578   :  { %v10815_v22 = vadd.f32 %v14151_v24, %v3479_v49  ;;  %v3481_v40 = vpop.f32.mrb[121].mxu0  ;;  %v14877_v1 = vpop.permute.xlu1 %4104 }
 0x579   :  { %v3482_v17 = vpop.f32.mrb[122].mxu0  ;;  %v14869_v40 = vpop.permute.xlu0 %4099  ;;  %19463 = vst [vmem:[#allocation99_spill] sm:$0xff] %v14877_v1 }
 0x57a   :  { %v10816_v34 = vadd.f32 %v14151_v24, %v3482_v17  ;;  %v14857_v23 = vadd.f32 %v10815_v22, %v14406_v11  ;;  %v3484_v15 = vpop.f32.mrb[123].mxu0  ;;  %19462 = vst [vmem:[#allocation98_spill] sm:$0xff] %v14869_v40  ;;  %v14873_v16 = vmul.f32 %v14869_v40, %v14725_v61  ;;  %v4327_v22 = vadd.f32 %v4326_v57, %v14864_v59  ;;  %v14890_v61 = vld [vmem:[%s18498_s4] ss:$0 sm:$0xff] }
 0x57c   :  { %v14867_v49 = vadd.f32 %v10816_v34, %v14420_v20  ;;  %v4328_v37 = vadd.f32 %v4327_v22, %v14873_v16  ;;  %v14882_v20 = vmul.f32 %v14877_v1, %v14735_v3 }
 0x57f   :  { %v3487_v11 = vpop.f32.mrb[124].mxu0 }
 0x580   :  { %v10817_v17 = vadd.f32 %v14151_v24, %v3487_v11  ;;  %v3489_v15 = vpop.f32.mrb[125].mxu0  ;;  %v14893_v11 = vpop.permute.xlu0 %4109 }
 0x581   :  { %v3490_v27 = vpop.f32.mrb[126].mxu0  ;;  %19464 = vst [vmem:[#allocation100_spill] sm:$0xff] %v14893_v11  ;;  %v14897_v22 = vmul.f32 %v14893_v11, %v14754_v55 }
 0x582   :  { %v14885_v34 = vadd.f32 %v10817_v17, %v14404_v9  ;;  %v10818_v24 = vadd.f32 %v14890_v61, %v3490_v27  ;;  %v3492_v57 = vpop.f32.mrb[127].mxu0  ;;  %v4329_v9 = vadd.f32 %v4328_v37, %v14882_v20  ;;  %v14903_v17 = vpop.permute.xlu1 %4114 }
 0x583   :  { %19465 = vst [vmem:[#allocation101_spill] sm:$0xff] %v14897_v22  ;;  %19466 = vst [vmem:[#allocation102_spill] sm:$0xff] %v14903_v17  ;;  %v14908_v27 = vmul.f32 %v14903_v17, %v14758_v39 }
 0x584   :  { %v14900_v3 = vadd.f32 %v10818_v24, %v14416_v36  ;;  %v4330_v1 = vadd.f32 %v4329_v9, %v14897_v22  ;;  %v14911_v19 = vpop.permute.xlu0 %4119 }
 0x585   :  { %19467 = vst [vmem:[#allocation103_spill] sm:$0xff] %v14911_v19  ;;  %v14915_v36 = vmul.f32 %v14911_v19, %v14776_v44 }
 0x586   :  { %v4331_v9 = vadd.f32 %v4330_v1, %v14908_v27  ;;  %v14921_v17 = vpop.permute.xlu1 %4124 }
 0x587   :  { %v3495_v15 = vpop.f32.mrb[128].mxu0  ;;  %19468 = vst [vmem:[#allocation104_spill] sm:$0xff] %v14921_v17 }
 0x588   :  { %v10819_v57 = vadd.f32 %v14890_v61, %v3495_v15  ;;  %v3497_v40 = vpop.f32.mrb[129].mxu0  ;;  %v14926_v15 = vmul.f32 %v14921_v17, %v14787_v30  ;;  %v14928_v22 = vpop.permute.xlu0 %4129 }
 0x589   :  { %v3498_v55 = vpop.f32.mrb[130].mxu0  ;;  %v4332_v40 = vadd.f32 %v4331_v9, %v14915_v36  ;;  %19469 = vst [vmem:[#allocation105_spill] sm:$0xff] %v14928_v22 }
 0x58a   :  { %v10820_v37 = vadd.f32 %v14890_v61, %v3498_v55  ;;  %v3817_v24 = vadd.f32 %v10819_v57, %v14465_v58  ;;  %v3500_v11 = vpop.f32.mrb[131].mxu0  ;;  %v14932_v55 = vmul.f32 %v14928_v22, %v14806_v31  ;;  %v14938_v30 = vpop.permute.xlu1 %4134 }
 0x58b   :  { %19470 = vst [vmem:[#allocation106_spill] sm:$0xff] %v14938_v30  ;;  %v14943_v19 = vmul.f32 %v14938_v30, %v14815_v12 }
 0x58c   :  { %v3820_v39 = vadd.f32 %v10820_v37, %v14480_v26  ;;  %v4333_v26 = vadd.f32 %v4332_v40, %v14926_v15 }
 0x58e   :  { %v4334_v17 = vadd.f32 %v4333_v26, %v14932_v55 }
 0x58f   :  { %v3503_v44 = vpop.f32.mrb[132].mxu0 }
 0x590   :  { %v10821_v58 = vadd.f32 %v14890_v61, %v3503_v44  ;;  %v3505_v1 = vpop.f32.mrb[133].mxu0  ;;  %v14946_v44 = vpop.permute.xlu0 %4139 }
 0x591   :  { %v3506_v11 = vpop.f32.mrb[134].mxu0  ;;  %19471 = vst [vmem:[#allocation107_spill] sm:$0xff] %v14946_v44  ;;  %v14950_v40 = vmul.f32 %v14946_v44, %v14833_v41 }
 0x592   :  { %v3825_v57 = vadd.f32 %v10821_v58, %v14463_v10  ;;  %v10822_v37 = vadd.f32 %v14890_v61, %v3506_v11  ;;  %v3508_v9 = vpop.f32.mrb[135].mxu0  ;;  %v4335_v58 = vadd.f32 %v4334_v17, %v14943_v19 }
 0x593   :  { %v14954_v9 = vpop.permute.xlu1 %4144 }
 0x594   :  { %v3828_v31 = vadd.f32 %v10822_v37, %v14476_v45  ;;  %19472 = vst [vmem:[#allocation108_spill] sm:$0xff] %v14954_v9  ;;  %v4336_v12 = vadd.f32 %v4335_v58, %v14950_v40  ;;  %v14959_v45 = vmul.f32 %v14954_v9, %v14838_v43  ;;  %v14963_v30 = vpop.permute.xlu0 %4149 }
 0x595   :  { %19473 = vst [vmem:[#allocation109_spill] sm:$0xff] %v14963_v30  ;;  %v14967_v17 = vmul.f32 %v14963_v30, %v14857_v23 }
 0x597   :  { %v3511_v10 = vpop.f32.mrb[136].mxu0  ;;  %v14971_v58 = vpop.permute.xlu1 %4154 }
 0x598   :  { %v10823_v1 = vadd.f32 %v14890_v61, %v3511_v10  ;;  %v3513_v11 = vpop.f32.mrb[137].mxu0  ;;  %19474 = vst [vmem:[#allocation110_spill] sm:$0xff] %v14971_v58 }
 0x599   :  { %v3514_v26 = vpop.f32.mrb[138].mxu0  ;;  %v4337_v11 = vadd.f32 %v4336_v12, %v14959_v45 }
 0x59a   :  { %v10824_v37 = vadd.f32 %v14890_v61, %v3514_v26  ;;  %v3833_v41 = vadd.f32 %v10823_v1, %v14528_v7  ;;  %v3516_v44 = vpop.f32.mrb[139].mxu0  ;;  %v14976_v26 = vmul.f32 %v14971_v58, %v14867_v49  ;;  %v14979_v1 = vpop.permute.xlu0 %4159 }
 0x59b   :  { %v4338_v43 = vadd.f32 %v4337_v11, %v14967_v17  ;;  %19475 = vst [vmem:[#allocation111_spill] sm:$0xff] %v14979_v1  ;;  %v14989_v58 = vpop.permute.xlu1 %4164 }
 0x59c   :  { %v3836_v10 = vadd.f32 %v10824_v37, %v14539_v42  ;;  %v14983_v42 = vmul.f32 %v14979_v1, %v14885_v34  ;;  %19476 = vst [vmem:[#allocation112_spill] sm:$0xff] %v14989_v58 }
 0x59d   :  { %v4339_v11 = vadd.f32 %v4338_v43, %v14976_v26 }
 0x59e   :  { %v14996_v9 = vpop.permute.xlu0 %4169 }
 0x59f   :  { %v3519_v22 = vpop.f32.mrb[140].mxu0  ;;  %19478 = vst [vmem:[#allocation114_spill] sm:$0xff] %v14996_v9  ;;  %v14999_v34 = vmul.f32 %v14996_v9, %v3817_v24 }
 0x5a0   :  { %v10825_v7 = vadd.f32 %v14890_v61, %v3519_v22  ;;  %v3521_v44 = vpop.f32.mrb[141].mxu0  ;;  %v4340_v22 = vadd.f32 %v4339_v11, %v14983_v42 }
 0x5a1   :  { %v3522_v23 = vpop.f32.mrb[142].mxu0  ;;  %v14994_v44 = vmul.f32 %v14989_v58, %v14900_v3  ;;  %19479 = vst [vmem:[#allocation115_spill] sm:$0xff] %v14999_v34 }
 0x5a2   :  { %v3841_v12 = vadd.f32 %v10825_v7, %v14526_v60  ;;  %v10826_v37 = vadd.f32 %v14890_v61, %v3522_v23  ;;  %v3524_v30 = vpop.f32.mrb[143].mxu0  ;;  %v15002_v61 = vpop.permute.xlu1 %4174 }
 0x5a3   :  { %19477 = vst [vmem:[#allocation113_spill] sm:$0xff] %v14994_v44  ;;  %v4341_v60 = vadd.f32 %v4340_v22, %v14994_v44  ;;  %19480 = vst [vmem:[#allocation116_spill] sm:$0xff] %v15002_v61  ;;  %v15008_v43 = vpop.permute.xlu0 %4179 }
 0x5a4   :  { %v3844_v49 = vadd.f32 %v10826_v37, %v14535_v25  ;;  %v15006_v25 = vmul.f32 %v15002_v61, %v3820_v39  ;;  %19482 = vst [vmem:[#allocation118_spill] sm:$0xff] %v15008_v43  ;;  %v15011_v7 = vmul.f32 %v15008_v43, %v3825_v57 }
 0x5a5   :  { %v4342_v30 = vadd.f32 %v4341_v60, %v14999_v34 }
 0x5a6   :  { %19481 = vst [vmem:[#allocation117_spill] sm:$0xff] %v15006_v25  ;;  %19483 = vst [vmem:[#allocation119_spill] sm:$0xff] %v15011_v7  ;;  %v15014_v23 = vpop.permute.xlu1 %4184 }
 0x5a7   :  { %v4343_v3 = vadd.f32 %v4342_v30, %v15006_v25  ;;  %19484 = vst [vmem:[#allocation120_spill] sm:$0xff] %v15014_v23  ;;  %v15018_v37 = vmul.f32 %v15014_v23, %v3828_v31  ;;  %v15020_v11 = vpop.permute.xlu0 %4189 }
 0x5a8   :  { %19486 = vst [vmem:[#allocation122_spill] sm:$0xff] %v15020_v11  ;;  %v15023_v22 = vmul.f32 %v15020_v11, %v3833_v41 }
 0x5a9   :  { %v4344_v24 = vadd.f32 %v4343_v3, %v15011_v7  ;;  %19485 = vst [vmem:[#allocation121_spill] sm:$0xff] %v15018_v37 }
 0x5aa   :  { %19487 = vst [vmem:[#allocation123_spill] sm:$0xff] %v15023_v22  ;;  %v15026_v60 = vpop.permute.xlu1 %4194 }
 0x5ab   :  { %v4345_v39 = vadd.f32 %v4344_v24, %v15018_v37  ;;  %19488 = vst [vmem:[#allocation124_spill] sm:$0xff] %v15026_v60  ;;  %v15030_v30 = vmul.f32 %v15026_v60, %v3836_v10  ;;  %v15032_v43 = vpop.permute.xlu0 %4199 }
 0x5ac   :  { %19490 = vst [vmem:[#allocation126_spill] sm:$0xff] %v15032_v43  ;;  %v15035_v3 = vmul.f32 %v15032_v43, %v3841_v12 }
 0x5ad   :  { %v4346_v57 = vadd.f32 %v4345_v39, %v15023_v22  ;;  %19489 = vst [vmem:[#allocation125_spill] sm:$0xff] %v15030_v30 }
 0x5ae   :  { %19491 = vst [vmem:[#allocation127_spill] sm:$0xff] %v15035_v3  ;;  %v15038_v23 = vpop.permute.xlu1 %4204 }
 0x5af   :  { %v4347_v31 = vadd.f32 %v4346_v57, %v15030_v30  ;;  %19492 = vst [vmem:[#allocation128_spill] sm:$0xff] %v15038_v23  ;;  %v15042_v24 = vmul.f32 %v15038_v23, %v3844_v49  ;;  %v19494_v57 = vld [vmem:[#allocation38_spill] sm:$0xff]  ;;  %v19496_v23 = vld [vmem:[#allocation11_spill] sm:$0xff] }
 0x5b0   :  { %v19501_v30 = vld [vmem:[#allocation75_spill] sm:$0xff] }
 0x5b1   :  { %v4348_v41 = vadd.f32 %v4347_v31, %v15035_v3  ;;  %19493 = vst [vmem:[#allocation129_spill] sm:$0xff] %v15042_v24  ;;  %v19495_v31 = vld [vmem:[#allocation12_spill] sm:$0xff] }
 0x5b3   :  { %v4349_v11 = vadd.f32 %v4348_v41, %v15042_v24  ;;  %v19497_v41 = vld [vmem:[#allocation74_spill] sm:$0xff] }
 0x5b5   :  { %v4350_v39 = vrot.slane %v4349_v11, 4 }
 0x5b7   :  { %v4351_v22 = vadd.f32 %v4350_v39, %v4349_v11  ;;  %v19498_v11 = vld [vmem:[#allocation14_spill] sm:$0xff] }
 0x5b9   :  { %v4352_v10 = vrot.slane %v4351_v22, 2 }
 0x5bb   :  { %v4353_v60 = vadd.f32 %v4352_v10, %v4351_v22 }
 0x5bd   :  { %v4354_v61 = vrot.slane %v4353_v60, 1 }
 0x5bf   :  { %v4355_v37 = vadd.f32 %v4354_v61, %v4353_v60  ;;  %v19499_v61 = vld [vmem:[#allocation76_spill] sm:$0xff]  ;;  %v19500_v60 = vld [vmem:[#allocation10_spill] sm:$0xff] }
 0x5c1   :  { %v15045_v9 = vmul.f32 0.001953125, %v4355_v37 }
 0x5c3   :  { %v4357_v12 = vsub.f32 %v14364_v2, %v15045_v9  ;;  %v4358_v43 = vsub.f32 %v19494_v57, %v15045_v9  ;;  %v4359_v49 = vsub.f32 %v19495_v31, %v15045_v9  ;;  %v4360_v22 = vsub.f32 %v19498_v11, %v15045_v9  ;;  %v19502_v31 = vld [vmem:[#allocation19_spill] sm:$0xff]  ;;  %v19504_v11 = vld [vmem:[#allocation78_spill] sm:$0xff] }
 0x5c4   :  { %v4361_v37 = vsub.f32 %v19499_v61, %v15045_v9  ;;  %v4362_v57 = vsub.f32 %v14401_v38, %v15045_v9  ;;  %v4364_v25 = vsub.f32 %v19504_v11, %v15045_v9  ;;  %v19505_v61 = vld [vmem:[#allocation17_spill] sm:$0xff]  ;;  %v19507_v38 = vld [vmem:[#allocation16_spill] sm:$0xff] }
 0x5c5   :  { %v4429_v3 = vmul.f32 %v4357_v12, %v19496_v23  ;;  %v4430_v24 = vmul.f32 %v4358_v43, %v19497_v41  ;;  %v4431_v39 = vmul.f32 %v4359_v49, %v19500_v60  ;;  %v4432_v7 = vmul.f32 %v4360_v22, %v19501_v30  ;;  %v19503_v23 = vld [vmem:[#allocation15_spill] sm:$0xff] }
 0x5c6   :  { %v4363_v12 = vsub.f32 %v19502_v31, %v15045_v9  ;;  %v4433_v43 = vmul.f32 %v4361_v37, %v19503_v23  ;;  %v4434_v1 = vmul.f32 %v4362_v57, %v19505_v61  ;;  %v19508_v31 = vld [vmem:[#allocation23_spill] sm:$0xff]  ;;  %v19509_v37 = vld [vmem:[#allocation18_spill] sm:$0xff]  ;;  %v19510_v23 = vld [vmem:[#allocation80_spill] sm:$0xff]  ;;  %v4368_v61 = vsub.f32 %v14470_v46, %v15045_v9 }
 0x5c7   :  { %v4501_v10 = vmul.f32 %v4429_v3, %v4429_v3  ;;  %v4502_v2 = vmul.f32 %v4430_v24, %v4430_v24  ;;  %v4503_v41 = vmul.f32 %v4431_v39, %v4431_v39  ;;  %v4504_v49 = vmul.f32 %v4432_v7, %v4432_v7  ;;  %v19506_v24 = vld [vmem:[#allocation20_spill] sm:$0xff]  ;;  %v19511_v57 = vld [vmem:[#allocation21_spill] sm:$0xff] }
 0x5c8   :  { %v4365_v60 = vsub.f32 %v19506_v24, %v15045_v9  ;;  %v4435_v34 = vmul.f32 %v4363_v12, %v19507_v38  ;;  %v4505_v22 = vmul.f32 %v4433_v43, %v4433_v43  ;;  %v4366_v44 = vsub.f32 %v19508_v31, %v15045_v9  ;;  %v19512_v12 = vld [vmem:[#allocation79_spill] sm:$0xff] }
 0x5c9   :  { %v4573_v58 = vadd.f32 %v4502_v2, %v4501_v10  ;;  %v4436_v39 = vmul.f32 %v4364_v25, %v19509_v37  ;;  %v4506_v2 = vmul.f32 %v4434_v1, %v4434_v1  ;;  %v4367_v11 = vsub.f32 %v19510_v23, %v15045_v9  ;;  %v19513_v38 = vld [vmem:[#allocation27_spill] sm:$0xff]  ;;  %v19514_v25 = vld [vmem:[#allocation22_spill] sm:$0xff] }
 0x5ca   :  { %v4437_v7 = vmul.f32 %v4365_v60, %v19511_v57  ;;  %v4438_v43 = vmul.f32 %v4366_v44, %v19512_v12  ;;  %v4369_v31 = vsub.f32 %v19513_v38, %v15045_v9  ;;  %v19515_v37 = vld [vmem:[#allocation82_spill] sm:$0xff]  ;;  %v19516_v60 = vld [vmem:[#allocation25_spill] sm:$0xff]  ;;  %v19517_v57 = vld [vmem:[#allocation28_spill] sm:$0xff] }
 0x5cb   :  { %v4574_v3 = vadd.f32 %v4573_v58, %v4503_v41  ;;  %v4507_v58 = vmul.f32 %v4435_v34, %v4435_v34  ;;  %v4439_v1 = vmul.f32 %v4367_v11, %v19514_v25  ;;  %v4370_v23 = vsub.f32 %v19515_v37, %v15045_v9  ;;  %v19518_v44 = vld [vmem:[#allocation81_spill] sm:$0xff]  ;;  %v19519_v12 = vld [vmem:[#allocation31_spill] sm:$0xff]  ;;  %v19520_v11 = vld [vmem:[#allocation26_spill] sm:$0xff] }
 0x5cc   :  { %v4440_v34 = vmul.f32 %v4368_v61, %v19516_v60  ;;  %v4371_v46 = vsub.f32 %v19517_v57, %v15045_v9  ;;  %v4372_v38 = vsub.f32 %v19519_v12, %v15045_v9  ;;  %v19521_v25 = vld [vmem:[#allocation84_spill] sm:$0xff]  ;;  %v19522_v61 = vld [vmem:[#allocation29_spill] sm:$0xff]  ;;  %v4374_v60 = vsub.f32 %v14544_v51, %v15045_v9 }
 0x5cd   :  { %v4575_v30 = vadd.f32 %v4574_v3, %v4504_v49  ;;  %v4508_v49 = vmul.f32 %v4436_v39, %v4436_v39  ;;  %v4441_v39 = vmul.f32 %v4369_v31, %v19518_v44  ;;  %v4373_v37 = vsub.f32 %v19521_v25, %v15045_v9  ;;  %v19523_v31 = vld [vmem:[#allocation83_spill] sm:$0xff]  ;;  %v19524_v44 = vld [vmem:[#allocation36_spill] sm:$0xff] }
 0x5ce   :  { %v4375_v12 = vsub.f32 %v19524_v44, %v15045_v9 }
 0x5cf   :  { %v4576_v10 = vadd.f32 %v4575_v30, %v4505_v22  ;;  %v4509_v30 = vmul.f32 %v4437_v7, %v4437_v7  ;;  %v4442_v7 = vmul.f32 %v4370_v23, %v19520_v11  ;;  %v19525_v23 = vld [vmem:[#allocation30_spill] sm:$0xff]  ;;  %v4376_v11 = vsub.f32 %v14562_v52, %v15045_v9 }
 0x5d1   :  { %v4577_v41 = vadd.f32 %v4576_v10, %v4506_v2  ;;  %v4510_v2 = vmul.f32 %v4438_v43, %v4438_v43  ;;  %v4443_v43 = vmul.f32 %v4371_v46, %v19522_v61  ;;  %v19526_v46 = vld [vmem:[#allocation35_spill] sm:$0xff]  ;;  %v19527_v61 = vld [vmem:[#allocation37_spill] sm:$0xff] }
 0x5d2   :  { %v4377_v51 = vsub.f32 %v19527_v61, %v15045_v9 }
 0x5d3   :  { %v4578_v3 = vadd.f32 %v4577_v41, %v4507_v58  ;;  %v4511_v58 = vmul.f32 %v4439_v1, %v4439_v1  ;;  %v4444_v1 = vmul.f32 %v4372_v38, %v19523_v31  ;;  %v19528_v38 = vld [vmem:[#allocation85_spill] sm:$0xff]  ;;  %v4378_v31 = vsub.f32 %v14583_v47, %v15045_v9 }
 0x5d5   :  { %v4579_v22 = vadd.f32 %v4578_v3, %v4508_v49  ;;  %v4512_v49 = vmul.f32 %v4440_v34, %v4440_v34  ;;  %v4445_v34 = vmul.f32 %v4373_v37, %v19525_v23  ;;  %v19529_v37 = vld [vmem:[#allocation86_spill] sm:$0xff]  ;;  %v19530_v23 = vld [vmem:[#allocation89_spill] sm:$0xff] }
 0x5d6   :  { %v4379_v52 = vsub.f32 %v19530_v23, %v15045_v9 }
 0x5d7   :  { %v4580_v10 = vadd.f32 %v4579_v22, %v4509_v30  ;;  %v4513_v30 = vmul.f32 %v4441_v39, %v4441_v39  ;;  %v4446_v39 = vmul.f32 %v4374_v60, %v19526_v46  ;;  %v19531_v60 = vld [vmem:[#allocation39_spill] sm:$0xff]  ;;  %v4380_v46 = vsub.f32 %v14605_v33, %v15045_v9 }
 0x5d9   :  { %v4581_v41 = vadd.f32 %v4580_v10, %v4510_v2  ;;  %v4514_v2 = vmul.f32 %v4442_v7, %v4442_v7  ;;  %v4447_v7 = vmul.f32 %v4375_v12, %v19528_v38  ;;  %v19532_v12 = vld [vmem:[#allocation41_spill] sm:$0xff]  ;;  %v19533_v38 = vld [vmem:[#allocation48_spill] sm:$0xff] }
 0x5da   :  { %v4381_v47 = vsub.f32 %v19533_v38, %v15045_v9 }
 0x5db   :  { %v4582_v3 = vadd.f32 %v4581_v41, %v4511_v58  ;;  %v4515_v58 = vmul.f32 %v4443_v43, %v4443_v43  ;;  %v4448_v43 = vmul.f32 %v4376_v11, %v19529_v37  ;;  %v19534_v11 = vld [vmem:[#allocation88_spill] sm:$0xff]  ;;  %v4382_v37 = vsub.f32 %v14624_v62, %v15045_v9 }
 0x5dd   :  { %v4583_v22 = vadd.f32 %v4582_v3, %v4512_v49  ;;  %v4516_v49 = vmul.f32 %v4444_v1, %v4444_v1  ;;  %v4449_v1 = vmul.f32 %v4377_v51, %v19531_v60  ;;  %v19535_v51 = vld [vmem:[#allocation47_spill] sm:$0xff]  ;;  %v4383_v60 = vsub.f32 %v14633_v29, %v15045_v9 }
 0x5df   :  { %v4584_v10 = vadd.f32 %v4583_v22, %v4513_v30  ;;  %v4517_v30 = vmul.f32 %v4445_v34, %v4445_v34  ;;  %v4450_v34 = vmul.f32 %v4378_v31, %v19532_v12  ;;  %v19536_v31 = vld [vmem:[#allocation49_spill] sm:$0xff]  ;;  %v4384_v12 = vsub.f32 %v14642_v53, %v15045_v9 }
 0x5e1   :  { %v4585_v41 = vadd.f32 %v4584_v10, %v4514_v2  ;;  %v4518_v2 = vmul.f32 %v4446_v39, %v4446_v39  ;;  %v4451_v39 = vmul.f32 %v4379_v52, %v19534_v11  ;;  %v19537_v52 = vld [vmem:[#allocation43_spill] sm:$0xff]  ;;  %v4385_v11 = vsub.f32 %v14652_v35, %v15045_v9 }
 0x5e3   :  { %v4586_v3 = vadd.f32 %v4585_v41, %v4515_v58  ;;  %v4519_v58 = vmul.f32 %v4447_v7, %v4447_v7  ;;  %v4452_v7 = vmul.f32 %v4380_v46, %v19535_v51  ;;  %v19538_v46 = vld [vmem:[#allocation53_spill] sm:$0xff]  ;;  %v4386_v51 = vsub.f32 %v14663_v0, %v15045_v9 }
 0x5e5   :  { %v4587_v22 = vadd.f32 %v4586_v3, %v4516_v49  ;;  %v4520_v49 = vmul.f32 %v4448_v43, %v4448_v43  ;;  %v4453_v43 = vmul.f32 %v4381_v47, %v19536_v31  ;;  %v19539_v47 = vld [vmem:[#allocation45_spill] sm:$0xff]  ;;  %v4387_v31 = vsub.f32 %v14670_v63, %v15045_v9 }
 0x5e6   :  { %v19578_v63 = vmov 0  }
 0x5e7   :  { %v4588_v10 = vadd.f32 %v4587_v22, %v4517_v30  ;;  %v4521_v30 = vmul.f32 %v4449_v1, %v4449_v1  ;;  %v4454_v1 = vmul.f32 %v4382_v37, %v19537_v52  ;;  %v19540_v37 = vld [vmem:[#allocation57_spill] sm:$0xff]  ;;  %v4388_v52 = vsub.f32 %v14685_v21, %v15045_v9 }
 0x5e9   :  { %v4589_v41 = vadd.f32 %v4588_v10, %v4518_v2  ;;  %v4522_v2 = vmul.f32 %v4450_v34, %v4450_v34  ;;  %v4455_v34 = vmul.f32 %v4383_v60, %v19538_v46  ;;  %v19541_v60 = vld [vmem:[#allocation51_spill] sm:$0xff]  ;;  %v4389_v46 = vsub.f32 %v14691_v5, %v15045_v9 }
 0x5eb   :  { %v4590_v3 = vadd.f32 %v4589_v41, %v4519_v58  ;;  %v4523_v58 = vmul.f32 %v4451_v39, %v4451_v39  ;;  %v4456_v39 = vmul.f32 %v4384_v12, %v19539_v47  ;;  %v19542_v12 = vld [vmem:[#allocation61_spill] sm:$0xff]  ;;  %v4390_v47 = vsub.f32 %v14704_v13, %v15045_v9 }
 0x5ed   :  { %v4591_v22 = vadd.f32 %v4590_v3, %v4520_v49  ;;  %v4524_v49 = vmul.f32 %v4452_v7, %v4452_v7  ;;  %v4457_v7 = vmul.f32 %v4385_v11, %v19540_v37  ;;  %v19543_v11 = vld [vmem:[#allocation55_spill] sm:$0xff]  ;;  %v4391_v37 = vsub.f32 %v14713_v4, %v15045_v9 }
 0x5ef   :  { %v4592_v10 = vadd.f32 %v4591_v22, %v4521_v30  ;;  %v4525_v30 = vmul.f32 %v4453_v43, %v4453_v43  ;;  %v4458_v43 = vmul.f32 %v4386_v51, %v19541_v60  ;;  %v19544_v51 = vld [vmem:[#allocation65_spill] sm:$0xff]  ;;  %v4392_v60 = vsub.f32 %v14722_v14, %v15045_v9 }
 0x5f1   :  { %v4593_v41 = vadd.f32 %v4592_v10, %v4522_v2  ;;  %v4526_v2 = vmul.f32 %v4454_v1, %v4454_v1  ;;  %v4459_v1 = vmul.f32 %v4387_v31, %v19542_v12  ;;  %v19545_v31 = vld [vmem:[#allocation59_spill] sm:$0xff]  ;;  %v19546_v12 = vld [vmem:[#allocation66_spill] sm:$0xff] }
 0x5f2   :  { %v4393_v13 = vsub.f32 %v19546_v12, %v15045_v9 }
 0x5f3   :  { %v4594_v3 = vadd.f32 %v4593_v41, %v4523_v58  ;;  %v4527_v58 = vmul.f32 %v4455_v34, %v4455_v34  ;;  %v4460_v34 = vmul.f32 %v4388_v52, %v19543_v11  ;;  %v19547_v52 = vld [vmem:[#allocation70_spill] sm:$0xff]  ;;  %v4394_v11 = vsub.f32 %v14743_v18, %v15045_v9 }
 0x5f5   :  { %v4595_v22 = vadd.f32 %v4594_v3, %v4524_v49  ;;  %v4528_v49 = vmul.f32 %v4456_v39, %v4456_v39  ;;  %v4461_v39 = vmul.f32 %v4389_v46, %v19544_v51  ;;  %v19548_v46 = vld [vmem:[#allocation63_spill] sm:$0xff]  ;;  %v19549_v51 = vld [vmem:[#allocation72_spill] sm:$0xff] }
 0x5f6   :  { %v4395_v14 = vsub.f32 %v19549_v51, %v15045_v9 }
 0x5f7   :  { %v4596_v10 = vadd.f32 %v4595_v22, %v4525_v30  ;;  %v4529_v30 = vmul.f32 %v4457_v7, %v4457_v7  ;;  %v4462_v7 = vmul.f32 %v4390_v47, %v19545_v31  ;;  %v19550_v47 = vld [vmem:[#allocation67_spill] sm:$0xff]  ;;  %v4396_v31 = vsub.f32 %v14765_v6, %v15045_v9 }
 0x5f9   :  { %v4597_v41 = vadd.f32 %v4596_v10, %v4526_v2  ;;  %v4530_v2 = vmul.f32 %v4458_v43, %v4458_v43  ;;  %v4463_v43 = vmul.f32 %v4391_v37, %v19547_v52  ;;  %v19551_v37 = vld [vmem:[#allocation69_spill] sm:$0xff]  ;;  %v19552_v52 = vld [vmem:[#allocation90_spill] sm:$0xff] }
 0x5fa   :  { %v4397_v4 = vsub.f32 %v19552_v52, %v15045_v9 }
 0x5fb   :  { %v4598_v3 = vadd.f32 %v4597_v41, %v4527_v58  ;;  %v4531_v58 = vmul.f32 %v4459_v1, %v4459_v1  ;;  %v4464_v1 = vmul.f32 %v4392_v60, %v19548_v46  ;;  %v19553_v60 = vld [vmem:[#allocation71_spill] sm:$0xff]  ;;  %v4398_v46 = vsub.f32 %v14784_v50, %v15045_v9 }
 0x5fd   :  { %v4599_v22 = vadd.f32 %v4598_v3, %v4528_v49  ;;  %v4532_v49 = vmul.f32 %v4460_v34, %v4460_v34  ;;  %v4465_v34 = vmul.f32 %v4393_v13, %v19550_v47  ;;  %v19554_v13 = vld [vmem:[#allocation9_spill] sm:$0xff]  ;;  %v4399_v47 = vsub.f32 %v14793_v28, %v15045_v9 }
 0x5ff   :  { %v4600_v10 = vadd.f32 %v4599_v22, %v4529_v30  ;;  %v4533_v30 = vmul.f32 %v4461_v39, %v4461_v39  ;;  %v4466_v39 = vmul.f32 %v4394_v11, %v19551_v37  ;;  %v19555_v11 = vld [vmem:[#allocation73_spill] sm:$0xff]  ;;  %v4400_v37 = vsub.f32 %v14802_v8, %v15045_v9 }
 0x601   :  { %v4601_v41 = vadd.f32 %v4600_v10, %v4530_v2  ;;  %v4534_v2 = vmul.f32 %v4462_v7, %v4462_v7  ;;  %v4467_v7 = vmul.f32 %v4395_v14, %v19553_v60  ;;  %v19556_v14 = vld [vmem:[#allocation8_spill] sm:$0xff]  ;;  %v19557_v60 = vld [vmem:[#allocation93_spill] sm:$0xff] }
 0x602   :  { %v4401_v5 = vsub.f32 %v19557_v60, %v15045_v9 }
 0x603   :  { %v4602_v3 = vadd.f32 %v4601_v41, %v4531_v58  ;;  %v4535_v58 = vmul.f32 %v4463_v43, %v4463_v43  ;;  %v4468_v43 = vmul.f32 %v4396_v31, %v19554_v13  ;;  %v19558_v31 = vld [vmem:[#allocation33_spill] sm:$0xff]  ;;  %v4402_v13 = vsub.f32 %v14823_v54, %v15045_v9 }
 0x605   :  { %v4603_v22 = vadd.f32 %v4602_v3, %v4532_v49  ;;  %v4536_v49 = vmul.f32 %v4464_v1, %v4464_v1  ;;  %v4469_v1 = vmul.f32 %v4397_v4, %v19555_v11  ;;  %v19559_v4 = vld [vmem:[#allocation91_spill] sm:$0xff]  ;;  %v4403_v11 = vsub.f32 %v14830_v56, %v15045_v9 }
 0x607   :  { %v4604_v10 = vadd.f32 %v4603_v22, %v4533_v30  ;;  %v4537_v30 = vmul.f32 %v4465_v34, %v4465_v34  ;;  %v4470_v34 = vmul.f32 %v4398_v46, %v19556_v14  ;;  %v19560_v46 = vld [vmem:[#allocation92_spill] sm:$0xff]  ;;  %v4404_v14 = vsub.f32 %v14845_v48, %v15045_v9 }
 0x609   :  { %v4605_v41 = vadd.f32 %v4604_v10, %v4534_v2  ;;  %v4538_v2 = vmul.f32 %v4466_v39, %v4466_v39  ;;  %v4471_v39 = vmul.f32 %v4399_v47, %v19558_v31  ;;  %v19561_v47 = vld [vmem:[#allocation94_spill] sm:$0xff]  ;;  %v4405_v31 = vsub.f32 %v14851_v32, %v15045_v9 }
 0x60b   :  { %v4606_v3 = vadd.f32 %v4605_v41, %v4535_v58  ;;  %v4539_v58 = vmul.f32 %v4467_v7, %v4467_v7  ;;  %v4472_v7 = vmul.f32 %v4400_v37, %v19559_v4  ;;  %v19562_v37 = vld [vmem:[#allocation95_spill] sm:$0xff]  ;;  %v4406_v4 = vsub.f32 %v14864_v59, %v15045_v9 }
 0x60d   :  { %v4607_v22 = vadd.f32 %v4606_v3, %v4536_v49  ;;  %v4540_v49 = vmul.f32 %v4468_v43, %v4468_v43  ;;  %v4473_v43 = vmul.f32 %v4401_v5, %v19560_v46  ;;  %v19563_v5 = vld [vmem:[#allocation34_spill] sm:$0xff]  ;;  %v4407_v46 = vsub.f32 %v14873_v16, %v15045_v9 }
 0x60f   :  { %v4608_v10 = vadd.f32 %v4607_v22, %v4537_v30  ;;  %v4541_v30 = vmul.f32 %v4469_v1, %v4469_v1  ;;  %v4474_v1 = vmul.f32 %v4402_v13, %v19561_v47  ;;  %v19564_v13 = vld [vmem:[#allocation96_spill] sm:$0xff]  ;;  %v4408_v47 = vsub.f32 %v14882_v20, %v15045_v9 }
 0x611   :  { %v4609_v41 = vadd.f32 %v4608_v10, %v4538_v2  ;;  %v4542_v2 = vmul.f32 %v4470_v34, %v4470_v34  ;;  %v4475_v34 = vmul.f32 %v4403_v11, %v19562_v37  ;;  %v19565_v11 = vld [vmem:[#allocation97_spill] sm:$0xff] }
 0x612   :  { %v19566_v37 = vld [vmem:[#allocation101_spill] sm:$0xff] }
 0x613   :  { %v4610_v3 = vadd.f32 %v4609_v41, %v4539_v58  ;;  %v4543_v58 = vmul.f32 %v4471_v39, %v4471_v39  ;;  %v4476_v39 = vmul.f32 %v4404_v14, %v19563_v5  ;;  %v4409_v21 = vsub.f32 %v19566_v37, %v15045_v9  ;;  %v19567_v14 = vld [vmem:[#allocation98_spill] sm:$0xff] }
 0x614   :  { %v4410_v5 = vsub.f32 %v14908_v27, %v15045_v9 }
 0x615   :  { %v4611_v22 = vadd.f32 %v4610_v3, %v4540_v49  ;;  %v4544_v49 = vmul.f32 %v4472_v7, %v4472_v7  ;;  %v4477_v7 = vmul.f32 %v4405_v31, %v19564_v13  ;;  %v19568_v31 = vld [vmem:[#allocation99_spill] sm:$0xff]  ;;  %v4411_v13 = vsub.f32 %v14915_v36, %v15045_v9 }
 0x617   :  { %v4612_v10 = vadd.f32 %v4611_v22, %v4541_v30  ;;  %v4545_v30 = vmul.f32 %v4473_v43, %v4473_v43  ;;  %v4478_v43 = vmul.f32 %v4406_v4, %v19565_v11  ;;  %v19569_v4 = vld [vmem:[#allocation100_spill] sm:$0xff]  ;;  %v4412_v11 = vsub.f32 %v14926_v15, %v15045_v9 }
 0x619   :  { %v4613_v41 = vadd.f32 %v4612_v10, %v4542_v2  ;;  %v4546_v2 = vmul.f32 %v4474_v1, %v4474_v1  ;;  %v4479_v1 = vmul.f32 %v4407_v46, %v19567_v14  ;;  %v19570_v46 = vld [vmem:[#allocation102_spill] sm:$0xff]  ;;  %v4413_v14 = vsub.f32 %v14932_v55, %v15045_v9 }
 0x61b   :  { %v4614_v3 = vadd.f32 %v4613_v41, %v4543_v58  ;;  %v4547_v58 = vmul.f32 %v4475_v34, %v4475_v34  ;;  %v4480_v34 = vmul.f32 %v4408_v47, %v19568_v31  ;;  %v19571_v47 = vld [vmem:[#allocation103_spill] sm:$0xff]  ;;  %v4414_v31 = vsub.f32 %v14943_v19, %v15045_v9 }
 0x61d   :  { %v4615_v22 = vadd.f32 %v4614_v3, %v4544_v49  ;;  %v4548_v49 = vmul.f32 %v4476_v39, %v4476_v39  ;;  %v4481_v39 = vmul.f32 %v4409_v21, %v19569_v4  ;;  %v19572_v21 = vld [vmem:[#allocation104_spill] sm:$0xff]  ;;  %v4415_v4 = vsub.f32 %v14950_v40, %v15045_v9 }
 0x61f   :  { %v4616_v10 = vadd.f32 %v4615_v22, %v4545_v30  ;;  %v4549_v30 = vmul.f32 %v4477_v7, %v4477_v7  ;;  %v4482_v7 = vmul.f32 %v4410_v5, %v19570_v46  ;;  %v19573_v5 = vld [vmem:[#allocation105_spill] sm:$0xff]  ;;  %v4416_v46 = vsub.f32 %v14959_v45, %v15045_v9 }
 0x621   :  { %v4617_v41 = vadd.f32 %v4616_v10, %v4546_v2  ;;  %v4550_v2 = vmul.f32 %v4478_v43, %v4478_v43  ;;  %v4483_v43 = vmul.f32 %v4411_v13, %v19571_v47  ;;  %v19574_v13 = vld [vmem:[#allocation106_spill] sm:$0xff]  ;;  %v4417_v47 = vsub.f32 %v14967_v17, %v15045_v9 }
 0x623   :  { %v4618_v3 = vadd.f32 %v4617_v41, %v4547_v58  ;;  %v4551_v58 = vmul.f32 %v4479_v1, %v4479_v1  ;;  %v4484_v1 = vmul.f32 %v4412_v11, %v19572_v21  ;;  %v19575_v11 = vld [vmem:[#allocation107_spill] sm:$0xff]  ;;  %v4418_v21 = vsub.f32 %v14976_v26, %v15045_v9 }
 0x625   :  { %v4619_v22 = vadd.f32 %v4618_v3, %v4548_v49  ;;  %v4552_v49 = vmul.f32 %v4480_v34, %v4480_v34  ;;  %v4485_v34 = vmul.f32 %v4413_v14, %v19573_v5  ;;  %v19576_v14 = vld [vmem:[#allocation108_spill] sm:$0xff]  ;;  %v11846_v5 = vld [vmem:[#allocation2] sm:$0xff]  }
 0x626   :  { %6995 = vmatpush1.bf16.msra.mxu1 %v11846_v5  ;;  %v19583_v5 = vld [vmem:[#allocation117_spill] sm:$0xff] }
 0x627   :  { %v4620_v10 = vadd.f32 %v4619_v22, %v4549_v30  ;;  %v4553_v30 = vmul.f32 %v4481_v39, %v4481_v39  ;;  %v4486_v39 = vmul.f32 %v4414_v31, %v19574_v13  ;;  %v4419_v31 = vsub.f32 %v14983_v42, %v15045_v9  ;;  %6996 = vmatprep.subr.bf16.mxu1 %v19578_v63 }
 0x629   :  { %v4621_v41 = vadd.f32 %v4620_v10, %v4550_v2  ;;  %v4554_v2 = vmul.f32 %v4482_v7, %v4482_v7  ;;  %v4487_v7 = vmul.f32 %v4415_v4, %v19575_v11  ;;  %v19579_v4 = vld [vmem:[#allocation113_spill] sm:$0xff] }
 0x62b   :  { %v4622_v3 = vadd.f32 %v4621_v41, %v4551_v58  ;;  %v4555_v58 = vmul.f32 %v4483_v43, %v4483_v43  ;;  %v4488_v43 = vmul.f32 %v4416_v46, %v19576_v14  ;;  %v19582_v14 = vld [vmem:[#allocation111_spill] sm:$0xff] }
 0x62c   :  { %v4491_v0 = vmul.f32 %v4419_v31, %v19582_v14 }
 0x62d   :  { %v4623_v22 = vadd.f32 %v4622_v3, %v4552_v49  ;;  %v4556_v49 = vmul.f32 %v4484_v1, %v4484_v1  ;;  %v19577_v1 = vld [vmem:[#allocation109_spill] sm:$0xff]  ;;  %v4560_v11 = vmul.f32 %v4488_v43, %v4488_v43  ;;  %v11848_v43 = vld [vmem:[#allocation2 + $0x10] sm:$0xff]  }
 0x62e   :  { %v4563_v29 = vmul.f32 %v4491_v0, %v4491_v0  ;;  %v19591_v0 = vld [vmem:[#allocation125_spill] sm:$0xff] }
 0x62f   :  { %v4624_v10 = vadd.f32 %v4623_v22, %v4553_v30  ;;  %v4557_v30 = vmul.f32 %v4485_v34, %v4485_v34  ;;  %v4420_v34 = vsub.f32 %v19579_v4, %v15045_v9 }
 0x631   :  { %v4625_v41 = vadd.f32 %v4624_v10, %v4554_v2  ;;  %v4558_v2 = vmul.f32 %v4486_v39, %v4486_v39  ;;  %v11847_v39 = vld [vmem:[#allocation2 + $0x8] sm:$0xff]  }
 0x632   :  { %6997 = vmatpush1.bf16.msra.mxu1 %v11847_v39 }
 0x633   :  { %v4626_v3 = vadd.f32 %v4625_v41, %v4555_v58  ;;  %v4489_v58 = vmul.f32 %v4417_v47, %v19577_v1  ;;  %v4559_v41 = vmul.f32 %v4487_v7, %v4487_v7  ;;  %6998 = vmatprep.subr.bf16.mxu1 %v19578_v63  ;;  %v4422_v7 = vsub.f32 %v19583_v5, %v15045_v9 }
 0x635   :  { %v4627_v22 = vadd.f32 %v4626_v3, %v4556_v49  ;;  %v19580_v49 = vld [vmem:[#allocation110_spill] sm:$0xff]  ;;  %v4561_v35 = vmul.f32 %v4489_v58, %v4489_v58 }
 0x636   :  { %v4490_v3 = vmul.f32 %v4418_v21, %v19580_v49  ;;  %v19586_v49 = vld [vmem:[#allocation114_spill] sm:$0xff]  ;;  %6999 = vmatpush1.bf16.msra.mxu1 %v11848_v43 }
 0x637   :  { %v4628_v10 = vadd.f32 %v4627_v22, %v4557_v30  ;;  %v19581_v30 = vld [vmem:[#allocation115_spill] sm:$0xff]  ;;  %7000 = vmatprep.subr.bf16.mxu1 %v19578_v63 }
 0x638   :  { %v4421_v22 = vsub.f32 %v19581_v30, %v15045_v9  ;;  %v4562_v1 = vmul.f32 %v4490_v3, %v4490_v3  ;;  %v11849_v3 = vld [vmem:[#allocation2 + $0x18] sm:$0xff]  }
 0x639   :  { %v4629_v13 = vadd.f32 %v4628_v10, %v4558_v2  ;;  %v19584_v2 = vld [vmem:[#allocation112_spill] sm:$0xff] }
 0x63a   :  { %v4492_v10 = vmul.f32 %v4420_v34, %v19584_v2  ;;  %v4493_v53 = vmul.f32 %v4421_v22, %v19586_v49  ;;  %v19590_v2 = vld [vmem:[#allocation118_spill] sm:$0xff]  ;;  %7001 = vmatpush1.bf16.msra.mxu1 %v11849_v3 }
 0x63b   :  { %v4630_v46 = vadd.f32 %v4629_v13, %v4559_v41  ;;  %v19585_v13 = vld [vmem:[#allocation119_spill] sm:$0xff]  ;;  %7002 = vmatprep.subr.bf16.mxu1 %v19578_v63 }
 0x63c   :  { %v4423_v41 = vsub.f32 %v19585_v13, %v15045_v9  ;;  %v4564_v14 = vmul.f32 %v4492_v10, %v4492_v10  ;;  %v4565_v38 = vmul.f32 %v4493_v53, %v4493_v53  ;;  %v11850_v10 = vld [vmem:[#allocation2 + $0x20] sm:$0xff]   ;;  %v19595_v53 = vld [vmem:[#allocation129_spill] sm:$0xff] }
 0x63d   :  { %v4631_v47 = vadd.f32 %v4630_v46, %v4560_v11  ;;  %v19587_v11 = vld [vmem:[#allocation121_spill] sm:$0xff]  ;;  %v19588_v46 = vld [vmem:[#allocation116_spill] sm:$0xff] }
 0x63e   :  { %v4424_v58 = vsub.f32 %v19587_v11, %v15045_v9  ;;  %v4494_v39 = vmul.f32 %v4422_v7, %v19588_v46  ;;  %v4495_v62 = vmul.f32 %v4423_v41, %v19590_v2  ;;  %v19594_v46 = vld [vmem:[#allocation122_spill] sm:$0xff]  ;;  %7003 = vmatpush1.bf16.msra.mxu1 %v11850_v10  ;;  %v11852_v10 = vld [vmem:[#allocation2 + $0x30] sm:$0xff]  }
 0x63f   :  { %v4632_v21 = vadd.f32 %v4631_v47, %v4561_v35  ;;  %v19589_v35 = vld [vmem:[#allocation123_spill] sm:$0xff]  ;;  %7004 = vmatprep.subr.bf16.mxu1 %v19578_v63 }
 0x640   :  { %v4425_v47 = vsub.f32 %v19589_v35, %v15045_v9  ;;  %v4566_v49 = vmul.f32 %v4494_v39, %v4494_v39  ;;  %v4567_v23 = vmul.f32 %v4495_v62, %v4495_v62  ;;  %v11851_v39 = vld [vmem:[#allocation2 + $0x28] sm:$0xff]   ;;  %v19598_v62 = vld [vmem:[#allocation128_spill] sm:$0xff] }
 0x641   :  { %v4633_v31 = vadd.f32 %v4632_v21, %v4562_v1  ;;  %v4426_v1 = vsub.f32 %v19591_v0, %v15045_v9  ;;  %v19592_v21 = vld [vmem:[#allocation120_spill] sm:$0xff] }
 0x642   :  { %v4496_v43 = vmul.f32 %v4424_v58, %v19592_v21  ;;  %v4497_v33 = vmul.f32 %v4425_v47, %v19594_v46  ;;  %7005 = vmatpush1.bf16.msra.mxu1 %v11851_v39  ;;  %v11859_v39 = vld [vmem:[#allocation2 + $0x50] sm:$0xff]  }
 0x643   :  { %v4634_v34 = vadd.f32 %v4633_v31, %v4563_v29  ;;  %v19593_v29 = vld [vmem:[#allocation127_spill] sm:$0xff]  ;;  %7006 = vmatprep.subr.bf16.mxu1 %v19578_v63 }
 0x644   :  { %v4427_v31 = vsub.f32 %v19593_v29, %v15045_v9  ;;  %v4568_v2 = vmul.f32 %v4496_v43, %v4496_v43  ;;  %v4569_v21 = vmul.f32 %v4497_v33, %v4497_v33  ;;  %v11853_v43 = vld [vmem:[#allocation2 + $0x38] sm:$0xff]  }
 0x645   :  { %v4635_v22 = vadd.f32 %v4634_v34, %v4564_v14  ;;  %v4428_v14 = vsub.f32 %v19595_v53, %v15045_v9  ;;  %v19596_v34 = vld [vmem:[#allocation124_spill] sm:$0xff] }
 0x646   :  { %v4498_v3 = vmul.f32 %v4426_v1, %v19596_v34  ;;  %7007 = vmatpush1.bf16.msra.mxu1 %v11852_v10  ;;  %v11862_v10 = vld [vmem:[#allocation2 + $0x220] sm:$0xff]   ;;  %v19634_v34 = vld [vmem:[#allocation87_spill] sm:$0xff] }
 0x647   :  { %v4636_v7 = vadd.f32 %v4635_v22, %v4565_v38  ;;  %v19597_v38 = vld [vmem:[#allocation126_spill] sm:$0xff]  ;;  %7008 = vmatprep.subr.bf16.mxu1 %v19578_v63 }
 0x648   :  { %v4499_v22 = vmul.f32 %v4427_v31, %v19597_v38  ;;  %v4570_v47 = vmul.f32 %v4498_v3, %v4498_v3  ;;  %v11857_v3 = vld [vmem:[#allocation2 + $0x48] sm:$0xff]  }
 0x649   :  { %v4637_v41 = vadd.f32 %v4636_v7, %v4566_v49  ;;  %v4500_v49 = vmul.f32 %v4428_v14, %v19598_v62  ;;  %v11856_v14 = vld [vmem:[#allocation2 + $0x208] sm:$0xff]  }
 0x64a   :  { %v4571_v46 = vmul.f32 %v4499_v22, %v4499_v22  ;;  %7009 = vmatpush1.bf16.msra.mxu1 %v11853_v43  ;;  %v11860_v22 = vld [vmem:[#allocation2 + $0x218] sm:$0xff]   ;;  %v4659_v43 = vlaneseq }
 0x64b   :  { %v4638_v58 = vadd.f32 %v4637_v41, %v4567_v23  ;;  %v4572_v1 = vmul.f32 %v4500_v49, %v4500_v49  ;;  %v11854_v41 = vld [vmem:[#allocation2 + $0x200] sm:$0xff]   ;;  %7010 = vmatprep.subr.bf16.mxu1 %v19578_v63 }
 0x64c   :  { %10515 = vmatprep.subr.bf16.mxu0 %v11854_v41 }
 0x64d   :  { %v4639_v61 = vadd.f32 %v4638_v58, %v4568_v2  ;;  %10516 = vmatpush3.bf16.msra.mxu0 %v11854_v41  ;;  %v11855_v2 = vld [vmem:[#allocation2 + $0x40] sm:$0xff]   ;;  %v11864_v41 = vld [vmem:[#allocation2 + $0x228] sm:$0xff]  }
 0x64e   :  { %7011 = vmatpush1.bf16.msra.mxu1 %v11855_v2  ;;  %10517 = vmatprep.subr.bf16.mxu0 %v11856_v14  ;;  %v11866_v2 = vld [vmem:[#allocation2 + $0x230] sm:$0xff]  }
 0x64f   :  { %v4640_v7 = vadd.f32 %v4639_v61, %v4569_v21  ;;  %7012 = vmatprep.subr.bf16.mxu1 %v19578_v63 }
 0x651   :  { %v4641_v44 = vadd.f32 %v4640_v7, %v4570_v47  ;;  %10518 = vmatpush3.bf16.msra.mxu0 %v11856_v14  ;;  %v11861_v7 = vld [vmem:[#allocation2 + $0x58] sm:$0xff]   ;;  %v4651_v14 = vld [vmem:[%s18499_s5] sm:$0x1] }
 0x652   :  { %7013 = vmatpush1.bf16.msra.mxu1 %v11857_v3 }
 0x653   :  { %v4642_v23 = vadd.f32 %v4641_v44, %v4571_v46  ;;  %v11858_v44 = vld [vmem:[#allocation2 + $0x210] sm:$0xff]   ;;  %7014 = vmatprep.subr.bf16.mxu1 %v19578_v63 }
 0x654   :  { %10519 = vmatprep.subr.bf16.mxu0 %v11858_v44 }
 0x655   :  { %v4643_v31 = vadd.f32 %v4642_v23, %v4572_v1  ;;  %10520 = vmatpush3.bf16.msra.mxu0 %v11858_v44  ;;  %v11863_v23 = vld [vmem:[#allocation2 + $0x60] sm:$0xff]  }
 0x656   :  { %7015 = vmatpush1.bf16.msra.mxu1 %v11859_v39  ;;  %10521 = vmatprep.subr.bf16.mxu0 %v11860_v22  ;;  %v4655_v39 = vld [vmem:[%s18500_s6] sm:$0x1] }
 0x657   :  { %v4644_v33 = vrot.slane %v4643_v31, 4  ;;  %7016 = vmatprep.subr.bf16.mxu1 %v19578_v63 }
 0x659   :  { %v4645_v61 = vadd.f32 %v4644_v33, %v4643_v31  ;;  %10522 = vmatpush3.bf16.msra.mxu0 %v11860_v22  ;;  %v11865_v31 = vld [vmem:[#allocation2 + $0x68] sm:$0xff]   ;;  %v4660_v33 = vshrl.u32 %v4659_v43, 7 }
 0x65a   :  { %7017 = vmatpush1.bf16.msra.mxu1 %v11861_v7  ;;  %10523 = vmatprep.subr.bf16.mxu0 %v11862_v10 }
 0x65b   :  { %v4646_v21 = vrot.slane %v4645_v61, 2  ;;  %7018 = vmatprep.subr.bf16.mxu1 %v19578_v63  ;;  %v4661_v3 = vsub.s32 0, %v4660_v33 }
 0x65d   :  { %v4647_v46 = vadd.f32 %v4646_v21, %v4645_v61  ;;  %10524 = vmatpush3.bf16.msra.mxu0 %v11862_v10  ;;  %v11867_v61 = vld [vmem:[#allocation2 + $0x70] sm:$0xff]   ;;  %v11868_v21 = vld [vmem:[#allocation2 + $0x238] sm:$0xff]  }
 0x65e   :  { %7019 = vmatpush1.bf16.msra.mxu1 %v11863_v23  ;;  %10525 = vmatprep.subr.bf16.mxu0 %v11864_v41 }
 0x65f   :  { %v4648_v58 = vrot.slane %v4647_v46, 1  ;;  %7020 = vmatprep.subr.bf16.mxu1 %v19578_v63 }
 0x661   :  { %v4649_v49 = vadd.f32 %v4648_v58, %v4647_v46  ;;  %10526 = vmatpush3.bf16.msra.mxu0 %v11864_v41  ;;  %v11869_v46 = vld [vmem:[#allocation2 + $0x78] sm:$0xff]  }
 0x662   :  { %7021 = vmatpush1.bf16.msra.mxu1 %v11865_v31  ;;  %10527 = vmatprep.subr.bf16.mxu0 %v11866_v2 }
 0x663   :  { %v4650_v47 = vmul.f32 0.001953125, %v4649_v49  ;;  %7022 = vmatprep.subr.bf16.mxu1 %v19578_v63 }
 0x665   :  { %v4652_v1 = vadd.f32 1e-05, %v4650_v47  ;;  %10528 = vmatpush3.bf16.msra.mxu0 %v11866_v2 }
 0x666   :  { %7023 = vmatpush1.bf16.msra.mxu1 %v11867_v61  ;;  %10529 = vmatprep.subr.bf16.mxu0 %v11868_v21 }
 0x667   :  { %11953 = vrsqrt.f32 %v4652_v1  ;;  %7024 = vmatprep.subr.bf16.mxu1 %v19578_v63 }
 0x669   :  { %10530 = vmatpush3.bf16.msra.mxu0 %v11868_v21 }
 0x66a   :  { %7025 = vmatpush1.bf16.msra.mxu1 %v11869_v46 }
 0x66b   :  { %7315 = vmatprep.subr.bf16.mxu1 %v19578_v63 }
 0x671   :  { %v11954_v44 = vpop.eup %11953 }
 0x672   :  { %v4654_v58 = vmul.f32 %v11954_v44, %v4651_v14  ;;  %v15303_v14 = vrot.slane %v19578_v63, 1  ;;  %v19632_v63 = vld [vmem:[#allocation32_spill] sm:$0xff] }
 0x674   :  { %v4656_v22 = vmul.f32 %v4654_v58, %v15045_v9  ;;  %v15285_v49 = vrot.slane %v4654_v58, %v4661_v3  ;;  %19600 = vst [vmem:[#allocation28_spill] sm:$0xff] %v15303_v14  ;;  %v19633_v14 = vld [vmem:[#allocation36_spill] sm:$0xff] }
 0x676   :  { %v4657_v47 = vsub.f32 %v4655_v39, %v4656_v22  ;;  %v4734_v7 = vmul.f32 %v15285_v49, %v19593_v29  ;;  %v4735_v10 = vmul.f32 %v15285_v49, %v19595_v53  ;;  %v4700_v29 = vmul.f32 %v15285_v49, %v19546_v12 }
 0x677   :  { %v4701_v53 = vmul.f32 %v15285_v49, %v14743_v18  ;;  %v4702_v61 = vmul.f32 %v15285_v49, %v19549_v51  ;;  %v4703_v21 = vmul.f32 %v15285_v49, %v14765_v6  ;;  %v4706_v12 = vmul.f32 %v15285_v49, %v14793_v28 }
 0x678   :  { %v15292_v1 = vrot.slane %v4657_v47, %v4661_v3  ;;  %v4707_v3 = vmul.f32 %v15285_v49, %v14802_v8  ;;  %v4708_v18 = vmul.f32 %v15285_v49, %v19557_v60  ;;  %v4709_v51 = vmul.f32 %v15285_v49, %v14823_v54 }
 0x679   :  { %v4710_v6 = vmul.f32 %v15285_v49, %v14830_v56  ;;  %v4713_v28 = vmul.f32 %v15285_v49, %v14864_v59  ;;  %v4714_v8 = vmul.f32 %v15285_v49, %v14873_v16  ;;  %v4715_v60 = vmul.f32 %v15285_v49, %v14882_v20 }
 0x67a   :  { %v4812_v23 = vadd.f32 %v15292_v1, %v4734_v7  ;;  %v4813_v43 = vadd.f32 %v15292_v1, %v4735_v10  ;;  %v4716_v54 = vmul.f32 %v15285_v49, %v19566_v37  ;;  %v4717_v56 = vmul.f32 %v15285_v49, %v14908_v27 }
 0x67b   :  { %v4720_v59 = vmul.f32 %v15285_v49, %v14932_v55  ;;  %v4721_v16 = vmul.f32 %v15285_v49, %v14943_v19  ;;  %v4722_v20 = vmul.f32 %v15285_v49, %v14950_v40  ;;  %v4723_v37 = vmul.f32 %v15285_v49, %v14959_v45 }
 0x67c   :  { %v4884_v41 = vmax.f32 %v4812_v23, 0.0  ;;  %v4885_v9 = vmax.f32 %v4813_v43, 0.0  ;;  %v4724_v27 = vmul.f32 %v15285_v49, %v14967_v17  ;;  %v4727_v55 = vmul.f32 %v15285_v49, %v19579_v4 }
 0x67d   :  { %v4728_v19 = vmul.f32 %v15285_v49, %v19581_v30  ;;  %v4729_v40 = vmul.f32 %v15285_v49, %v19583_v5  ;;  %v4730_v45 = vmul.f32 %v15285_v49, %v19585_v13  ;;  %v4731_v17 = vmul.f32 %v15285_v49, %v19587_v11 }
 0x67e   :  { %v4956_v31 = vmul.f32 %v4884_v41, %v19597_v38  ;;  %v4957_v33 = vmul.f32 %v4885_v9, %v19598_v62  ;;  %v4704_v38 = vmul.f32 %v15285_v49, %v19552_v52  ;;  %v4705_v62 = vmul.f32 %v15285_v49, %v14784_v50 }
 0x67f   :  { %v4711_v52 = vmul.f32 %v15285_v49, %v14845_v48  ;;  %v4712_v50 = vmul.f32 %v15285_v49, %v14851_v32  ;;  %v4718_v48 = vmul.f32 %v15285_v49, %v14915_v36  ;;  %v4719_v32 = vmul.f32 %v15285_v49, %v14926_v15 }
 0x680   :  { %v15298_v2 = vpack.c.bf16 %v4957_v33, %v4956_v31  ;;  %v4725_v36 = vmul.f32 %v15285_v49, %v14976_v26  ;;  %v4726_v15 = vmul.f32 %v15285_v49, %v14983_v42  ;;  %v4732_v26 = vmul.f32 %v15285_v49, %v19589_v35 }
 0x681   :  { %v4733_v42 = vmul.f32 %v15285_v49, %v19591_v0  ;;  %v15372_v4 = vadd.f32 %v15292_v1, %v4700_v29  ;;  %v15375_v30 = vadd.f32 %v15292_v1, %v4701_v53  ;;  %v15378_v5 = vadd.f32 %v15292_v1, %v4702_v61 }
 0x682   :  { %19599 = vst [vmem:[#allocation20_spill] sm:$0xff] %v15298_v2  ;;  %v15381_v13 = vadd.f32 %v15292_v1, %v4703_v21  ;;  %v15384_v11 = vadd.f32 %v15292_v1, %v4704_v38  ;;  %v15387_v35 = vadd.f32 %v15292_v1, %v4705_v62  ;;  %v15390_v0 = vadd.f32 %v15292_v1, %v4706_v12 }
 0x683   :  { %v15393_v44 = vadd.f32 %v15292_v1, %v4707_v3  ;;  %v15396_v46 = vadd.f32 %v15292_v1, %v4708_v18  ;;  %v15399_v58 = vadd.f32 %v15292_v1, %v4709_v51  ;;  %v15402_v39 = vadd.f32 %v15292_v1, %v4710_v6  ;;  %v19615_v6 = vld [vmem:[#allocation13_spill] sm:$0xff] }
 0x684   :  { %v15405_v22 = vadd.f32 %v15292_v1, %v4711_v52  ;;  %v15408_v47 = vadd.f32 %v15292_v1, %v4712_v50  ;;  %v15411_v7 = vadd.f32 %v15292_v1, %v4713_v28  ;;  %v15414_v10 = vadd.f32 %v15292_v1, %v4714_v8 }
 0x685   :  { %v15417_v23 = vadd.f32 %v15292_v1, %v4715_v60  ;;  %v15420_v43 = vadd.f32 %v15292_v1, %v4716_v54  ;;  %v15423_v41 = vadd.f32 %v15292_v1, %v4717_v56  ;;  %v15426_v9 = vadd.f32 %v15292_v1, %v4718_v48  ;;  %v19619_v60 = vld [vmem:[#allocation38_spill] sm:$0xff]  ;;  %v19620_v56 = vld [vmem:[#allocation12_spill] sm:$0xff] }
 0x686   :  { %v15429_v31 = vadd.f32 %v15292_v1, %v4719_v32  ;;  %v15432_v33 = vadd.f32 %v15292_v1, %v4720_v59  ;;  %v15435_v29 = vadd.f32 %v15292_v1, %v4721_v16  ;;  %v15438_v53 = vadd.f32 %v15292_v1, %v4722_v20  ;;  %v19621_v32 = vld [vmem:[#allocation14_spill] sm:$0xff]  ;;  %v19622_v16 = vld [vmem:[#allocation76_spill] sm:$0xff] }
 0x687   :  { %19601 = vst [vmem:[#allocation84_spill] sm:$0xff] %v15423_v41  ;;  %19602 = vst [vmem:[#allocation66_spill] sm:$0xff] %v15426_v9  ;;  %v15441_v61 = vadd.f32 %v15292_v1, %v4723_v37  ;;  %v15444_v21 = vadd.f32 %v15292_v1, %v4724_v27  ;;  %v15447_v38 = vadd.f32 %v15292_v1, %v4725_v36  ;;  %v19623_v37 = vld [vmem:[#allocation77_spill] sm:$0xff]  ;;  %v19624_v36 = vld [vmem:[#allocation19_spill] sm:$0xff]  ;;  %v4852_v2 = vmax.f32 %v15378_v5, 0.0 }
 0x688   :  { %19603 = vst [vmem:[#allocation72_spill] sm:$0xff] %v15429_v31  ;;  %19604 = vst [vmem:[#allocation90_spill] sm:$0xff] %v15432_v33  ;;  %v15450_v62 = vadd.f32 %v15292_v1, %v4726_v15  ;;  %v15453_v12 = vadd.f32 %v15292_v1, %v4727_v55  ;;  %v15456_v3 = vadd.f32 %v15292_v1, %v4728_v19  ;;  %v19625_v55 = vld [vmem:[#allocation78_spill] sm:$0xff]  ;;  %v19649_v31 = vld [vmem:[#allocation68_spill] sm:$0xff]  ;;  %v4859_v41 = vmax.f32 %v15399_v58, 0.0 }
 0x689   :  { %19605 = vst [vmem:[#allocation93_spill] sm:$0xff] %v15435_v29  ;;  %19606 = vst [vmem:[#allocation101_spill] sm:$0xff] %v15438_v53  ;;  %v15459_v18 = vadd.f32 %v15292_v1, %v4729_v40  ;;  %v15462_v51 = vadd.f32 %v15292_v1, %v4730_v45  ;;  %v4664_v52 = vmul.f32 %v15285_v49, %v19615_v6  ;;  %v19626_v45 = vld [vmem:[#allocation23_spill] sm:$0xff]  ;;  %v19628_v6 = vld [vmem:[#allocation24_spill] sm:$0xff]  ;;  %v4862_v5 = vmax.f32 %v15408_v47, 0.0 }
 0x68a   :  { %19607 = vst [vmem:[#allocation113_spill] sm:$0xff] %v15441_v61  ;;  %19608 = vst [vmem:[#allocation115_spill] sm:$0xff] %v15444_v21  ;;  %v15467_v50 = vadd.f32 %v15292_v1, %v4731_v17  ;;  %v15470_v28 = vadd.f32 %v15292_v1, %v4732_v26  ;;  %v15473_v8 = vadd.f32 %v15292_v1, %v4733_v42  ;;  %v19627_v26 = vld [vmem:[#allocation80_spill] sm:$0xff]  ;;  %v19644_v21 = vld [vmem:[#allocation50_spill] sm:$0xff] }
 0x68b   :  { %19609 = vst [vmem:[#allocation117_spill] sm:$0xff] %v15447_v38  ;;  %19610 = vst [vmem:[#allocation119_spill] sm:$0xff] %v15450_v62  ;;  %v4665_v54 = vmul.f32 %v15285_v49, %v19619_v60  ;;  %v4666_v48 = vmul.f32 %v15285_v49, %v19620_v56  ;;  %v4667_v59 = vmul.f32 %v15285_v49, %v19621_v32  ;;  %v19629_v56 = vld [vmem:[#allocation27_spill] sm:$0xff]  ;;  %v19642_v62 = vld [vmem:[#allocation44_spill] sm:$0xff] }
 0x68c   :  { %19611 = vst [vmem:[#allocation121_spill] sm:$0xff] %v15453_v12  ;;  %19612 = vst [vmem:[#allocation123_spill] sm:$0xff] %v15456_v3  ;;  %v4668_v20 = vmul.f32 %v15285_v49, %v19622_v16  ;;  %v4669_v27 = vmul.f32 %v15285_v49, %v19623_v37  ;;  %v4670_v15 = vmul.f32 %v15285_v49, %v19624_v36  ;;  %v19630_v16 = vld [vmem:[#allocation82_spill] sm:$0xff]  ;;  %v19641_v12 = vld [vmem:[#allocation52_spill] sm:$0xff] }
 0x68d   :  { %19613 = vst [vmem:[#allocation125_spill] sm:$0xff] %v15459_v18  ;;  %19614 = vst [vmem:[#allocation127_spill] sm:$0xff] %v15462_v51  ;;  %v4671_v19 = vmul.f32 %v15285_v49, %v19625_v55  ;;  %v4672_v40 = vmul.f32 %v15285_v49, %v19506_v24  ;;  %v4673_v17 = vmul.f32 %v15285_v49, %v19626_v45  ;;  %v19631_v55 = vld [vmem:[#allocation31_spill] sm:$0xff]  ;;  %v19638_v51 = vld [vmem:[#allocation46_spill] sm:$0xff] }
 0x68e   :  { %19616 = vst [vmem:[#allocation129_spill] sm:$0xff] %v15467_v50  ;;  %19617 = vst [vmem:[#allocation126_spill] sm:$0xff] %v15470_v28  ;;  %v4674_v42 = vmul.f32 %v15285_v49, %v19627_v26  ;;  %v4675_v60 = vmul.f32 %v15285_v49, %v19628_v6  ;;  %v4676_v32 = vmul.f32 %v15285_v49, %v19629_v56  ;;  %v19636_v28 = vld [vmem:[#allocation40_spill] sm:$0xff]  ;;  %v19637_v50 = vld [vmem:[#allocation89_spill] sm:$0xff] }
 0x68f   :  { %19618 = vst [vmem:[#allocation128_spill] sm:$0xff] %v15473_v8  ;;  %v4677_v37 = vmul.f32 %v15285_v49, %v19630_v16  ;;  %v4678_v36 = vmul.f32 %v15285_v49, %v19517_v57  ;;  %v4679_v24 = vmul.f32 %v15285_v49, %v19631_v55  ;;  %v4680_v45 = vmul.f32 %v15285_v49, %v19521_v25  ;;  %v19635_v8 = vld [vmem:[#allocation37_spill] sm:$0xff]  ;;  %v19639_v18 = vld [vmem:[#allocation48_spill] sm:$0xff]  ;;  %v19640_v3 = vld [vmem:[#allocation42_spill] sm:$0xff] }
 0x690   :  { %v4681_v26 = vmul.f32 %v15285_v49, %v19632_v63  ;;  %v4682_v6 = vmul.f32 %v15285_v49, %v19633_v14  ;;  %v4683_v56 = vmul.f32 %v15285_v49, %v19634_v34  ;;  %v4684_v16 = vmul.f32 %v15285_v49, %v19635_v8  ;;  %v19643_v38 = vld [vmem:[#allocation56_spill] sm:$0xff]  ;;  %v19646_v53 = vld [vmem:[#allocation54_spill] sm:$0xff] }
 0x691   :  { %v4685_v57 = vmul.f32 %v15285_v49, %v19636_v28  ;;  %v4686_v55 = vmul.f32 %v15285_v49, %v19637_v50  ;;  %v4687_v25 = vmul.f32 %v15285_v49, %v19638_v51  ;;  %v4688_v63 = vmul.f32 %v15285_v49, %v19639_v18  ;;  %v19645_v61 = vld [vmem:[#allocation60_spill] sm:$0xff]  ;;  %v19648_v33 = vld [vmem:[#allocation58_spill] sm:$0xff] }
 0x692   :  { %v4689_v14 = vmul.f32 %v15285_v49, %v19640_v3  ;;  %v4690_v34 = vmul.f32 %v15285_v49, %v19641_v12  ;;  %v4691_v8 = vmul.f32 %v15285_v49, %v19642_v62  ;;  %v4692_v28 = vmul.f32 %v15285_v49, %v19643_v38  ;;  %v19647_v29 = vld [vmem:[#allocation64_spill] sm:$0xff]  ;;  %v19650_v9 = vld [vmem:[#allocation62_spill] sm:$0xff] }
 0x693   :  { %v4693_v50 = vmul.f32 %v15285_v49, %v19644_v21  ;;  %v4694_v51 = vmul.f32 %v15285_v49, %v19645_v61  ;;  %v4695_v18 = vmul.f32 %v15285_v49, %v19646_v53  ;;  %v4696_v3 = vmul.f32 %v15285_v49, %v19647_v29 }
 0x694   :  { %v4697_v62 = vmul.f32 %v15285_v49, %v19648_v33  ;;  %v4698_v38 = vmul.f32 %v15285_v49, %v19649_v31  ;;  %v4699_v21 = vmul.f32 %v15285_v49, %v19650_v9  ;;  %v15548_v61 = vadd.f32 %v15292_v1, %v4664_v52 }
 0x695   :  { %v15551_v53 = vadd.f32 %v15292_v1, %v4665_v54  ;;  %v15554_v29 = vadd.f32 %v15292_v1, %v4666_v48  ;;  %v15557_v12 = vadd.f32 %v15292_v1, %v4667_v59  ;;  %v15560_v33 = vadd.f32 %v15292_v1, %v4668_v20 }
 0x696   :  { %19651 = vst [vmem:[#allocation13_spill] sm:$0xff] %v15548_v61  ;;  %v15563_v31 = vadd.f32 %v15292_v1, %v4669_v27  ;;  %v15566_v49 = vadd.f32 %v15292_v1, %v4670_v15  ;;  %v15569_v9 = vadd.f32 %v15292_v1, %v4671_v19  ;;  %v15572_v52 = vadd.f32 %v15292_v1, %v4672_v40  ;;  %v19694_v61 = vld [vmem:[#allocation128_spill] sm:$0xff] }
 0x697   :  { %19652 = vst [vmem:[#allocation38_spill] sm:$0xff] %v15551_v53  ;;  %19653 = vst [vmem:[#allocation12_spill] sm:$0xff] %v15554_v29  ;;  %v15575_v54 = vadd.f32 %v15292_v1, %v4673_v17  ;;  %v15578_v48 = vadd.f32 %v15292_v1, %v4674_v42  ;;  %v15581_v59 = vadd.f32 %v15292_v1, %v4675_v60  ;;  %v19692_v29 = vld [vmem:[#allocation129_spill] sm:$0xff]  ;;  %v19693_v53 = vld [vmem:[#allocation126_spill] sm:$0xff] }
 0x698   :  { %19654 = vst [vmem:[#allocation14_spill] sm:$0xff] %v15557_v12  ;;  %19655 = vst [vmem:[#allocation76_spill] sm:$0xff] %v15560_v33  ;;  %v15584_v20 = vadd.f32 %v15292_v1, %v4676_v32  ;;  %v15587_v27 = vadd.f32 %v15292_v1, %v4677_v37  ;;  %v15590_v15 = vadd.f32 %v15292_v1, %v4678_v36  ;;  %v19690_v33 = vld [vmem:[#allocation125_spill] sm:$0xff]  ;;  %v19691_v12 = vld [vmem:[#allocation127_spill] sm:$0xff] }
 0x699   :  { %19656 = vst [vmem:[#allocation77_spill] sm:$0xff] %v15563_v31  ;;  %19657 = vst [vmem:[#allocation19_spill] sm:$0xff] %v15566_v49  ;;  %v15593_v19 = vadd.f32 %v15292_v1, %v4679_v24  ;;  %v15596_v40 = vadd.f32 %v15292_v1, %v4680_v45  ;;  %v15599_v17 = vadd.f32 %v15292_v1, %v4681_v26  ;;  %v19688_v49 = vld [vmem:[#allocation121_spill] sm:$0xff]  ;;  %v19689_v31 = vld [vmem:[#allocation123_spill] sm:$0xff] }
 0x69a   :  { %19658 = vst [vmem:[#allocation78_spill] sm:$0xff] %v15569_v9  ;;  %19659 = vst [vmem:[#allocation23_spill] sm:$0xff] %v15572_v52  ;;  %v15602_v42 = vadd.f32 %v15292_v1, %v4682_v6  ;;  %v15605_v60 = vadd.f32 %v15292_v1, %v4683_v56  ;;  %v15608_v32 = vadd.f32 %v15292_v1, %v4684_v16  ;;  %v19686_v52 = vld [vmem:[#allocation117_spill] sm:$0xff]  ;;  %v19687_v9 = vld [vmem:[#allocation119_spill] sm:$0xff] }
 0x69b   :  { %19660 = vst [vmem:[#allocation80_spill] sm:$0xff] %v15575_v54  ;;  %19661 = vst [vmem:[#allocation24_spill] sm:$0xff] %v15578_v48  ;;  %v15611_v37 = vadd.f32 %v15292_v1, %v4685_v57  ;;  %v15614_v36 = vadd.f32 %v15292_v1, %v4686_v55  ;;  %v15617_v24 = vadd.f32 %v15292_v1, %v4687_v25  ;;  %v19684_v48 = vld [vmem:[#allocation113_spill] sm:$0xff]  ;;  %v19685_v54 = vld [vmem:[#allocation115_spill] sm:$0xff] }
 0x69c   :  { %19662 = vst [vmem:[#allocation27_spill] sm:$0xff] %v15581_v59  ;;  %19663 = vst [vmem:[#allocation82_spill] sm:$0xff] %v15584_v20  ;;  %v15620_v45 = vadd.f32 %v15292_v1, %v4688_v63  ;;  %v15623_v26 = vadd.f32 %v15292_v1, %v4689_v14  ;;  %v15626_v6 = vadd.f32 %v15292_v1, %v4690_v34  ;;  %v19682_v20 = vld [vmem:[#allocation93_spill] sm:$0xff] }
 0x69d   :  { %19664 = vst [vmem:[#allocation31_spill] sm:$0xff] %v15587_v27  ;;  %19665 = vst [vmem:[#allocation32_spill] sm:$0xff] %v15590_v15  ;;  %v15629_v56 = vadd.f32 %v15292_v1, %v4691_v8  ;;  %v15632_v16 = vadd.f32 %v15292_v1, %v4692_v28  ;;  %v15635_v57 = vadd.f32 %v15292_v1, %v4693_v50  ;;  %v4855_v50 = vmax.f32 %v15387_v35, 0.0  ;;  %v19678_v28 = vld [vmem:[#allocation84_spill] sm:$0xff]  ;;  %v19681_v27 = vld [vmem:[#allocation90_spill] sm:$0xff] }
 0x69e   :  { %19666 = vst [vmem:[#allocation36_spill] sm:$0xff] %v15593_v19  ;;  %19667 = vst [vmem:[#allocation87_spill] sm:$0xff] %v15623_v26  ;;  %v15638_v55 = vadd.f32 %v15292_v1, %v4694_v51  ;;  %v15641_v25 = vadd.f32 %v15292_v1, %v4695_v18  ;;  %v15644_v63 = vadd.f32 %v15292_v1, %v4696_v3  ;;  %v4856_v51 = vmax.f32 %v15390_v0, 0.0  ;;  %v19679_v19 = vld [vmem:[#allocation66_spill] sm:$0xff]  ;;  %v19680_v15 = vld [vmem:[#allocation72_spill] sm:$0xff] }
 0x69f   :  { %19668 = vst [vmem:[#allocation37_spill] sm:$0xff] %v15626_v6  ;;  %19669 = vst [vmem:[#allocation40_spill] sm:$0xff] %v15629_v56  ;;  %v15647_v14 = vadd.f32 %v15292_v1, %v4697_v62  ;;  %v15650_v34 = vadd.f32 %v15292_v1, %v4698_v38  ;;  %v15653_v8 = vadd.f32 %v15292_v1, %v4699_v21  ;;  %v4850_v62 = vmax.f32 %v15372_v4, 0.0  ;;  %v19683_v59 = vld [vmem:[#allocation101_spill] sm:$0xff]  ;;  %v19703_v56 = vld [vmem:[#allocation92_spill] sm:$0xff] }
 0x6a0   :  { %19670 = vst [vmem:[#allocation89_spill] sm:$0xff] %v15632_v16  ;;  %19671 = vst [vmem:[#allocation46_spill] sm:$0xff] %v15635_v57  ;;  %v4851_v38 = vmax.f32 %v15375_v30, 0.0  ;;  %v4853_v1 = vmax.f32 %v15381_v13, 0.0  ;;  %v4854_v21 = vmax.f32 %v15384_v11, 0.0  ;;  %v4857_v18 = vmax.f32 %v15393_v44, 0.0 }
 0x6a1   :  { %19672 = vst [vmem:[#allocation48_spill] sm:$0xff] %v15638_v55  ;;  %19673 = vst [vmem:[#allocation42_spill] sm:$0xff] %v15641_v25  ;;  %v4858_v3 = vmax.f32 %v15396_v46, 0.0  ;;  %v4860_v4 = vmax.f32 %v15402_v39, 0.0  ;;  %v4861_v30 = vmax.f32 %v15405_v22, 0.0  ;;  %v4863_v13 = vmax.f32 %v15411_v7, 0.0 }
 0x6a2   :  { %19674 = vst [vmem:[#allocation52_spill] sm:$0xff] %v15644_v63  ;;  %19675 = vst [vmem:[#allocation44_spill] sm:$0xff] %v15647_v14  ;;  %v4864_v11 = vmax.f32 %v15414_v10, 0.0  ;;  %v4865_v35 = vmax.f32 %v15417_v23, 0.0  ;;  %v4866_v0 = vmax.f32 %v15420_v43, 0.0  ;;  %v4867_v44 = vmax.f32 %v19678_v28, 0.0 }
 0x6a3   :  { %19676 = vst [vmem:[#allocation56_spill] sm:$0xff] %v15650_v34  ;;  %19677 = vst [vmem:[#allocation50_spill] sm:$0xff] %v15653_v8  ;;  %v4868_v46 = vmax.f32 %v19679_v19, 0.0  ;;  %v4869_v58 = vmax.f32 %v19680_v15, 0.0  ;;  %v4870_v39 = vmax.f32 %v19681_v27, 0.0  ;;  %v4871_v22 = vmax.f32 %v19682_v20, 0.0 }
 0x6a4   :  { %v4872_v47 = vmax.f32 %v19683_v59, 0.0  ;;  %v4873_v7 = vmax.f32 %v19684_v48, 0.0  ;;  %v4874_v10 = vmax.f32 %v19685_v54, 0.0  ;;  %v4875_v23 = vmax.f32 %v19686_v52, 0.0  ;;  %v19695_v8 = vld [vmem:[#allocation67_spill] sm:$0xff]  ;;  %v19696_v34 = vld [vmem:[#allocation69_spill] sm:$0xff] }
 0x6a5   :  { %v4876_v43 = vmax.f32 %v19687_v9, 0.0  ;;  %v4877_v28 = vmax.f32 %v19688_v49, 0.0  ;;  %v4878_v19 = vmax.f32 %v19689_v31, 0.0  ;;  %v4879_v15 = vmax.f32 %v19690_v33, 0.0  ;;  %v19697_v14 = vld [vmem:[#allocation71_spill] sm:$0xff]  ;;  %v19698_v63 = vld [vmem:[#allocation9_spill] sm:$0xff] }
 0x6a6   :  { %v4880_v27 = vmax.f32 %v19691_v12, 0.0  ;;  %v4881_v20 = vmax.f32 %v19692_v29, 0.0  ;;  %v4882_v59 = vmax.f32 %v19693_v53, 0.0  ;;  %v4883_v48 = vmax.f32 %v19694_v61, 0.0  ;;  %v19699_v25 = vld [vmem:[#allocation73_spill] sm:$0xff]  ;;  %v19700_v55 = vld [vmem:[#allocation8_spill] sm:$0xff] }
 0x6a7   :  { %v4922_v54 = vmul.f32 %v4850_v62, %v19695_v8  ;;  %v4923_v52 = vmul.f32 %v4851_v38, %v19696_v34  ;;  %v4924_v9 = vmul.f32 %v4852_v2, %v19697_v14  ;;  %v4925_v49 = vmul.f32 %v4853_v1, %v19698_v63  ;;  %v19701_v57 = vld [vmem:[#allocation33_spill] sm:$0xff]  ;;  %v19702_v16 = vld [vmem:[#allocation91_spill] sm:$0xff]  ;;  %v19704_v6 = vld [vmem:[#allocation94_spill] sm:$0xff] }
 0x6a8   :  { %v4926_v31 = vmul.f32 %v4854_v21, %v19699_v25  ;;  %v4927_v33 = vmul.f32 %v4855_v50, %v19700_v55  ;;  %v4928_v12 = vmul.f32 %v4856_v51, %v19701_v57  ;;  %v4929_v29 = vmul.f32 %v4857_v18, %v19702_v16  ;;  %v19705_v26 = vld [vmem:[#allocation95_spill] sm:$0xff]  ;;  %v19706_v62 = vld [vmem:[#allocation34_spill] sm:$0xff]  ;;  %v19707_v38 = vld [vmem:[#allocation96_spill] sm:$0xff] }
 0x6a9   :  { %v4930_v53 = vmul.f32 %v4858_v3, %v19703_v56  ;;  %v4931_v61 = vmul.f32 %v4859_v41, %v19704_v6  ;;  %v4932_v8 = vmul.f32 %v4860_v4, %v19705_v26  ;;  %v4933_v34 = vmul.f32 %v4861_v30, %v19706_v62  ;;  %v19708_v14 = vld [vmem:[#allocation97_spill] sm:$0xff]  ;;  %v19709_v1 = vld [vmem:[#allocation98_spill] sm:$0xff]  ;;  %v19710_v21 = vld [vmem:[#allocation99_spill] sm:$0xff] }
 0x6aa   :  { %v4934_v2 = vmul.f32 %v4862_v5, %v19707_v38  ;;  %v4935_v63 = vmul.f32 %v4863_v13, %v19708_v14  ;;  %v4936_v25 = vmul.f32 %v4864_v11, %v19709_v1  ;;  %v4937_v55 = vmul.f32 %v4865_v35, %v19710_v21  ;;  %v19711_v50 = vld [vmem:[#allocation100_spill] sm:$0xff]  ;;  %v19712_v51 = vld [vmem:[#allocation102_spill] sm:$0xff]  ;;  %v19713_v18 = vld [vmem:[#allocation103_spill] sm:$0xff] }
 0x6ab   :  { %v4938_v57 = vmul.f32 %v4866_v0, %v19711_v50  ;;  %v4939_v16 = vmul.f32 %v4867_v44, %v19712_v51  ;;  %v4940_v56 = vmul.f32 %v4868_v46, %v19713_v18  ;;  %v19714_v3 = vld [vmem:[#allocation104_spill] sm:$0xff]  ;;  %v19715_v6 = vld [vmem:[#allocation105_spill] sm:$0xff]  ;;  %v19716_v4 = vld [vmem:[#allocation106_spill] sm:$0xff] }
 0x6ac   :  { %v4941_v41 = vmul.f32 %v4869_v58, %v19714_v3  ;;  %v4942_v26 = vmul.f32 %v4870_v39, %v19715_v6  ;;  %v4943_v30 = vmul.f32 %v4871_v22, %v19716_v4  ;;  %v19717_v62 = vld [vmem:[#allocation107_spill] sm:$0xff]  ;;  %v19718_v38 = vld [vmem:[#allocation108_spill] sm:$0xff]  ;;  %v19719_v14 = vld [vmem:[#allocation109_spill] sm:$0xff] }
 0x6ad   :  { %v4944_v5 = vmul.f32 %v4872_v47, %v19717_v62  ;;  %v4945_v13 = vmul.f32 %v4873_v7, %v19718_v38  ;;  %v4946_v11 = vmul.f32 %v4874_v10, %v19719_v14  ;;  %v19720_v1 = vld [vmem:[#allocation110_spill] sm:$0xff]  ;;  %v19721_v21 = vld [vmem:[#allocation111_spill] sm:$0xff]  ;;  %v19722_v50 = vld [vmem:[#allocation112_spill] sm:$0xff]  ;;  %v15739_v38 = vpack.c.bf16 %v4923_v52, %v4922_v54 }
 0x6ae   :  { %v4947_v35 = vmul.f32 %v4875_v23, %v19720_v1  ;;  %v4948_v0 = vmul.f32 %v4876_v43, %v19721_v21  ;;  %v4949_v44 = vmul.f32 %v4877_v28, %v19722_v50  ;;  %v19723_v51 = vld [vmem:[#allocation114_spill] sm:$0xff]  ;;  %v19724_v18 = vld [vmem:[#allocation116_spill] sm:$0xff]  ;;  %v15741_v10 = vpack.c.bf16 %v4925_v49, %v4924_v9  ;;  %v19750_v21 = vld [vmem:[#allocation11_spill] sm:$0xff] }
 0x6af   :  { %v4950_v46 = vmul.f32 %v4878_v19, %v19723_v51  ;;  %v4951_v58 = vmul.f32 %v4879_v15, %v19724_v18  ;;  %v19725_v3 = vld [vmem:[#allocation118_spill] sm:$0xff]  ;;  %v19726_v6 = vld [vmem:[#allocation120_spill] sm:$0xff]  ;;  %v15743_v23 = vpack.c.bf16 %v4927_v33, %v4926_v31  ;;  %v15745_v43 = vpack.c.bf16 %v4929_v29, %v4928_v12 }
 0x6b0   :  { %v4952_v39 = vmul.f32 %v4880_v27, %v19725_v3  ;;  %v4953_v22 = vmul.f32 %v4881_v20, %v19726_v6  ;;  %v19727_v4 = vld [vmem:[#allocation122_spill] sm:$0xff]  ;;  %v19728_v62 = vld [vmem:[#allocation124_spill] sm:$0xff]  ;;  %v15747_v28 = vpack.c.bf16 %v4931_v61, %v4930_v53  ;;  %v15749_v19 = vpack.c.bf16 %v4933_v34, %v4932_v8 }
 0x6b1   :  { %v4954_v47 = vmul.f32 %v4882_v59, %v19727_v4  ;;  %v4955_v7 = vmul.f32 %v4883_v48, %v19728_v62  ;;  %v15751_v15 = vpack.c.bf16 %v4935_v63, %v4934_v2  ;;  %v15753_v27 = vpack.c.bf16 %v4937_v55, %v4936_v25  ;;  %v19739_v25 = vld [vmem:[#allocation87_spill] sm:$0xff]  ;;  %v19740_v55 = vld [vmem:[#allocation37_spill] sm:$0xff]  ;;  %v19747_v14 = vld [vmem:[#allocation44_spill] sm:$0xff] }
 0x6b2   :  { %v15755_v20 = vpack.c.bf16 %v4939_v16, %v4938_v57  ;;  %v15757_v59 = vpack.c.bf16 %v4941_v41, %v4940_v56  ;;  %v15759_v48 = vpack.c.bf16 %v4943_v30, %v4942_v26  ;;  %v15761_v54 = vpack.c.bf16 %v4945_v13, %v4944_v5  ;;  %v19741_v16 = vld [vmem:[#allocation40_spill] sm:$0xff]  ;;  %v19742_v41 = vld [vmem:[#allocation89_spill] sm:$0xff]  ;;  %v19743_v26 = vld [vmem:[#allocation46_spill] sm:$0xff] }
 0x6b3   :  { %19729 = vst [vmem:[#allocation60_spill] sm:$0xff] %v15753_v27  ;;  %v15763_v52 = vpack.c.bf16 %v4947_v35, %v4946_v11  ;;  %v15765_v9 = vpack.c.bf16 %v4949_v44, %v4948_v0  ;;  %v15767_v49 = vpack.c.bf16 %v4951_v58, %v4950_v46  ;;  %v4830_v31 = vmax.f32 %v15596_v40, 0.0  ;;  %v19744_v30 = vld [vmem:[#allocation48_spill] sm:$0xff]  ;;  %v19745_v5 = vld [vmem:[#allocation42_spill] sm:$0xff]  ;;  %v19751_v0 = vld [vmem:[#allocation13_spill] sm:$0xff] }
 0x6b4   :  { %19730 = vst [vmem:[#allocation54_spill] sm:$0xff] %v15755_v20  ;;  %19731 = vst [vmem:[#allocation64_spill] sm:$0xff] %v15757_v59  ;;  %v4831_v33 = vmax.f32 %v15599_v17, 0.0  ;;  %v15771_v12 = vpack.c.bf16 %v4953_v22, %v4952_v39  ;;  %v15773_v29 = vpack.c.bf16 %v4955_v7, %v4954_v47  ;;  %v4832_v53 = vmax.f32 %v15602_v42, 0.0  ;;  %v19746_v13 = vld [vmem:[#allocation52_spill] sm:$0xff]  ;;  %v19749_v1 = vld [vmem:[#allocation50_spill] sm:$0xff] }
 0x6b5   :  { %19732 = vst [vmem:[#allocation58_spill] sm:$0xff] %v15759_v48  ;;  %19733 = vst [vmem:[#allocation68_spill] sm:$0xff] %v15761_v54  ;;  %v4833_v61 = vmax.f32 %v15605_v60, 0.0  ;;  %v4834_v8 = vmax.f32 %v15608_v32, 0.0  ;;  %v4835_v34 = vmax.f32 %v15611_v37, 0.0  ;;  %v4836_v2 = vmax.f32 %v15614_v36, 0.0 }
 0x6b6   :  { %19734 = vst [vmem:[#allocation62_spill] sm:$0xff] %v15763_v52  ;;  %19735 = vst [vmem:[#allocation84_spill] sm:$0xff] %v15765_v9  ;;  %v4837_v63 = vmax.f32 %v15617_v24, 0.0  ;;  %v4838_v40 = vmax.f32 %v15620_v45, 0.0  ;;  %v4839_v17 = vmax.f32 %v19739_v25, 0.0  ;;  %v4840_v57 = vmax.f32 %v19740_v55, 0.0 }
 0x6b7   :  { %19736 = vst [vmem:[#allocation66_spill] sm:$0xff] %v15767_v49  ;;  %19737 = vst [vmem:[#allocation72_spill] sm:$0xff] %v15771_v12  ;;  %v4841_v56 = vmax.f32 %v19741_v16, 0.0  ;;  %v4842_v42 = vmax.f32 %v19742_v41, 0.0  ;;  %v4843_v60 = vmax.f32 %v19743_v26, 0.0  ;;  %v4844_v32 = vmax.f32 %v19744_v30, 0.0 }
 0x6b8   :  { %19738 = vst [vmem:[#allocation90_spill] sm:$0xff] %v15773_v29  ;;  %v4845_v37 = vmax.f32 %v19745_v5, 0.0  ;;  %v4846_v36 = vmax.f32 %v19746_v13, 0.0  ;;  %v4847_v24 = vmax.f32 %v19747_v14, 0.0  ;;  %v19748_v11 = vld [vmem:[#allocation56_spill] sm:$0xff]  ;;  %v4849_v35 = vmax.f32 %v19749_v1, 0.0 }
 0x6b9   :  { %v4848_v45 = vmax.f32 %v19748_v11, 0.0  ;;  %v19752_v50 = vmax.f32 %v19751_v0, 0.0  ;;  %v19753_v51 = vld [vmem:[#allocation74_spill] sm:$0xff]  ;;  %v19757_v39 = vld [vmem:[#allocation12_spill] sm:$0xff]  ;;  %v19759_v4 = vld [vmem:[#allocation75_spill] sm:$0xff] }
 0x6ba   :  { %v19754_v46 = vld [vmem:[#allocation38_spill] sm:$0xff]  ;;  %v19758_v6 = vmax.f32 %v19757_v39, 0.0  ;;  %v19762_v25 = vld [vmem:[#allocation15_spill] sm:$0xff]  ;;  %v19763_v55 = vld [vmem:[#allocation76_spill] sm:$0xff] }
 0x6bb   :  { %v4886_v44 = vmul.f32 %v19752_v50, %v19750_v21  ;;  %v19755_v18 = vmax.f32 %v19754_v46, 0.0  ;;  %v19756_v3 = vld [vmem:[#allocation10_spill] sm:$0xff]  ;;  %v19764_v16 = vmax.f32 %v19763_v55, 0.0  ;;  %v19765_v26 = vld [vmem:[#allocation17_spill] sm:$0xff]  ;;  %v19768_v14 = vld [vmem:[#allocation16_spill] sm:$0xff] }
 0x6bc   :  { %v4888_v22 = vmul.f32 %v19758_v6, %v19756_v3  ;;  %v19760_v47 = vld [vmem:[#allocation14_spill] sm:$0xff]  ;;  %v19766_v30 = vld [vmem:[#allocation77_spill] sm:$0xff]  ;;  %v19769_v11 = vld [vmem:[#allocation19_spill] sm:$0xff] }
 0x6bd   :  { %v4887_v58 = vmul.f32 %v19755_v18, %v19753_v51  ;;  %v19761_v62 = vmax.f32 %v19760_v47, 0.0  ;;  %v4890_v41 = vmul.f32 %v19764_v16, %v19762_v25  ;;  %v19767_v5 = vmax.f32 %v19766_v30, 0.0  ;;  %v19771_v0 = vld [vmem:[#allocation18_spill] sm:$0xff]  ;;  %v19774_v18 = vld [vmem:[#allocation21_spill] sm:$0xff]  ;;  %v19775_v3 = vld [vmem:[#allocation23_spill] sm:$0xff] }
 0x6be   :  { %v19770_v1 = vmax.f32 %v19769_v11, 0.0  ;;  %v19772_v50 = vld [vmem:[#allocation78_spill] sm:$0xff]  ;;  %v19776_v39 = vmax.f32 %v19775_v3, 0.0  ;;  %v19778_v47 = vld [vmem:[#allocation80_spill] sm:$0xff]  ;;  %v19784_v29 = vld [vmem:[#allocation27_spill] sm:$0xff] }
 0x6bf   :  { %v4889_v7 = vmul.f32 %v19761_v62, %v19759_v4  ;;  %v4891_v13 = vmul.f32 %v19767_v5, %v19765_v26  ;;  %v19773_v51 = vmax.f32 %v19772_v50, 0.0  ;;  %v19777_v4 = vld [vmem:[#allocation79_spill] sm:$0xff]  ;;  %v19779_v62 = vmax.f32 %v19778_v47, 0.0  ;;  %v19780_v55 = vld [vmem:[#allocation22_spill] sm:$0xff]  ;;  %v19781_v16 = vld [vmem:[#allocation24_spill] sm:$0xff] }
 0x6c0   :  { %v4892_v21 = vmul.f32 %v19770_v1, %v19768_v14  ;;  %v4894_v6 = vmul.f32 %v19776_v39, %v19774_v18  ;;  %v19782_v30 = vmax.f32 %v19781_v16, 0.0  ;;  %v19783_v5 = vld [vmem:[#allocation25_spill] sm:$0xff]  ;;  %v19785_v11 = vmax.f32 %v19784_v29, 0.0  ;;  %v19787_v12 = vld [vmem:[#allocation82_spill] sm:$0xff]  ;;  %v19790_v49 = vld [vmem:[#allocation31_spill] sm:$0xff] }
 0x6c1   :  { %v4893_v46 = vmul.f32 %v19773_v51, %v19771_v0  ;;  %v4895_v25 = vmul.f32 %v19779_v62, %v19777_v4  ;;  %v19786_v1 = vld [vmem:[#allocation81_spill] sm:$0xff]  ;;  %v19788_v50 = vmax.f32 %v19787_v12, 0.0  ;;  %v19789_v51 = vld [vmem:[#allocation26_spill] sm:$0xff]  ;;  %v19791_v3 = vmax.f32 %v19790_v49, 0.0  ;;  %v19793_v9 = vld [vmem:[#allocation32_spill] sm:$0xff] }
 0x6c2   :  { %v4896_v26 = vmul.f32 %v19782_v30, %v19780_v55  ;;  %v4897_v14 = vmul.f32 %v19785_v11, %v19783_v5  ;;  %v19792_v39 = vld [vmem:[#allocation29_spill] sm:$0xff]  ;;  %v19794_v47 = vmax.f32 %v19793_v9, 0.0  ;;  %v19795_v62 = vld [vmem:[#allocation83_spill] sm:$0xff]  ;;  %v19796_v52 = vld [vmem:[#allocation36_spill] sm:$0xff] }
 0x6c3   :  { %v4898_v0 = vmul.f32 %v19788_v50, %v19786_v1  ;;  %v4899_v18 = vmul.f32 %v19791_v3, %v19789_v51  ;;  %v19797_v16 = vmax.f32 %v19796_v52, 0.0  ;;  %v19798_v30 = vld [vmem:[#allocation30_spill] sm:$0xff]  ;;  %v19799_v29 = vld [vmem:[#allocation35_spill] sm:$0xff]  ;;  %v19800_v11 = vld [vmem:[#allocation85_spill] sm:$0xff] }
 0x6c4   :  { %v4900_v4 = vmul.f32 %v19794_v47, %v19792_v39  ;;  %v4902_v54 = vmul.f32 %v4830_v31, %v19798_v30  ;;  %v4903_v5 = vmul.f32 %v4831_v33, %v19799_v29  ;;  %v4904_v48 = vmul.f32 %v4832_v53, %v19800_v11  ;;  %v19801_v12 = vld [vmem:[#allocation86_spill] sm:$0xff]  ;;  %v19802_v50 = vld [vmem:[#allocation39_spill] sm:$0xff]  ;;  %v19803_v49 = vld [vmem:[#allocation41_spill] sm:$0xff] }
 0x6c5   :  { %v4901_v55 = vmul.f32 %v19797_v16, %v19795_v62  ;;  %v4905_v1 = vmul.f32 %v4833_v61, %v19801_v12  ;;  %v4906_v59 = vmul.f32 %v4834_v8, %v19802_v50  ;;  %v4907_v51 = vmul.f32 %v4835_v34, %v19803_v49  ;;  %v19804_v3 = vld [vmem:[#allocation88_spill] sm:$0xff]  ;;  %v19805_v9 = vld [vmem:[#allocation47_spill] sm:$0xff]  ;;  %v19806_v47 = vld [vmem:[#allocation49_spill] sm:$0xff] }
 0x6c6   :  { %v4908_v20 = vmul.f32 %v4836_v2, %v19804_v3  ;;  %v4909_v39 = vmul.f32 %v4837_v63, %v19805_v9  ;;  %v4910_v27 = vmul.f32 %v4838_v40, %v19806_v47  ;;  %v19807_v52 = vld [vmem:[#allocation43_spill] sm:$0xff]  ;;  %v19808_v16 = vld [vmem:[#allocation53_spill] sm:$0xff]  ;;  %v4958_v11 = vpack.c.bf16 %v4887_v58, %v4886_v44  ;;  %v19816_v47 = vld [vmem:[#allocation70_spill] sm:$0xff] }
 0x6c7   :  { %v4911_v62 = vmul.f32 %v4839_v17, %v19807_v52  ;;  %v4912_v31 = vmul.f32 %v4840_v57, %v19808_v16  ;;  %v19809_v30 = vld [vmem:[#allocation45_spill] sm:$0xff]  ;;  %v19811_v61 = vld [vmem:[#allocation51_spill] sm:$0xff]  ;;  %v4961_v2 = vpack.c.bf16 %v4893_v46, %v4892_v21  ;;  %v4920_v17 = vmul.f32 %v4848_v45, %v19816_v47 }
 0x6c8   :  { %v4913_v33 = vmul.f32 %v4841_v56, %v19809_v30  ;;  %v19810_v29 = vld [vmem:[#allocation57_spill] sm:$0xff]  ;;  %v4915_v12 = vmul.f32 %v4843_v60, %v19811_v61  ;;  %v19813_v34 = vld [vmem:[#allocation55_spill] sm:$0xff]  ;;  %v4959_v16 = vpack.c.bf16 %v4889_v7, %v4888_v22  ;;  %v4960_v56 = vpack.c.bf16 %v4891_v13, %v4890_v41 }
 0x6c9   :  { %v4914_v53 = vmul.f32 %v4842_v42, %v19810_v29  ;;  %v19812_v8 = vld [vmem:[#allocation61_spill] sm:$0xff]  ;;  %v4917_v49 = vmul.f32 %v4845_v37, %v19813_v34  ;;  %v19815_v9 = vld [vmem:[#allocation59_spill] sm:$0xff]  ;;  %v4962_v30 = vpack.c.bf16 %v4895_v25, %v4894_v6  ;;  %v4963_v42 = vpack.c.bf16 %v4897_v14, %v4896_v26 }
 0x6ca   :  { %v4916_v50 = vmul.f32 %v4844_v32, %v19812_v8  ;;  %v19814_v3 = vld [vmem:[#allocation65_spill] sm:$0xff]  ;;  %v4919_v40 = vmul.f32 %v4847_v24, %v19815_v9  ;;  %v19817_v52 = vld [vmem:[#allocation63_spill] sm:$0xff]  ;;  %v4964_v44 = vpack.c.bf16 %v4899_v18, %v4898_v0  ;;  %v4965_v58 = vpack.c.bf16 %v4901_v55, %v4900_v4 }
 0x6cb   :  { %v4918_v63 = vmul.f32 %v4846_v36, %v19814_v3  ;;  %v4921_v57 = vmul.f32 %v4849_v35, %v19817_v52  ;;  %v4996_v60 = vshrl.u32 %v4958_v11, 16  ;;  %v4999_v29 = vshll.u32 %v4958_v11, 16 }
 0x6cc   :  { %v4966_v32 = vpack.c.bf16 %v4903_v5, %v4902_v54  ;;  %v4967_v61 = vpack.c.bf16 %v4905_v1, %v4904_v48  ;;  %v5022_v37 = vshrl.u32 %v4961_v2, 16  ;;  %v5025_v21 = vshll.u32 %v4961_v2, 16 }
 0x6cd   :  { %v4968_v46 = vpack.c.bf16 %v4907_v51, %v4906_v59  ;;  %v4969_v36 = vpack.c.bf16 %v4909_v39, %v4908_v20  ;;  %v15861_v8 = vpack.c.bf16 %v4911_v62, %v4910_v27  ;;  %v15863_v24 = vpack.c.bf16 %v4913_v33, %v4912_v31 }
 0x6ce   :  { %v15865_v45 = vpack.c.bf16 %v4915_v12, %v4914_v53  ;;  %v15867_v35 = vpack.c.bf16 %v4917_v49, %v4916_v50  ;;  %v5004_v22 = vshrl.u32 %v4959_v16, 16  ;;  %v5007_v7 = vshll.u32 %v4959_v16, 16 }
 0x6cf   :  { %v4998_v41 = vrot.slane %v4996_v60, 6  ;;  %v5001_v13 = vrot.slane %v4999_v29, 7  ;;  %v5013_v54 = vshrl.u32 %v4960_v56, 16  ;;  %v5016_v48 = vshll.u32 %v4960_v56, 16 }
 0x6d0   :  { %v15869_v6 = vpack.c.bf16 %v4919_v40, %v4918_v63  ;;  %v5024_v59 = vrot.slane %v5022_v37, 6  ;;  %v5027_v20 = vrot.slane %v5025_v21, 7  ;;  %v5031_v27 = vshrl.u32 %v4962_v30, 16 }
 0x6d1   :  { %v5034_v25 = vshll.u32 %v4962_v30, 16  ;;  %v5040_v26 = vshrl.u32 %v4963_v42, 16  ;;  %v5043_v14 = vshll.u32 %v4963_v42, 16  ;;  %v5049_v0 = vshrl.u32 %v4964_v44, 16 }
 0x6d2   :  { %v15871_v18 = vpack.c.bf16 %v4921_v57, %v4920_v17  ;;  %v5006_v4 = vrot.slane %v5004_v22, 6  ;;  %v5052_v55 = vshll.u32 %v4964_v44, 16  ;;  %v5058_v5 = vshrl.u32 %v4965_v58, 16 }
 0x6d3   :  { %v5002_v1 = vor.u32 %v5001_v13, %v4998_v41  ;;  %v5009_v51 = vrot.slane %v5007_v7, 7  ;;  %v5015_v39 = vrot.slane %v5013_v54, 6  ;;  %v5018_v62 = vrot.slane %v5016_v48, 7 }
 0x6d4   :  { %v15873_v31 = vor.u32 %v5027_v20, %v5024_v59  ;;  %v5033_v33 = vrot.slane %v5031_v27, 6  ;;  %v5061_v53 = vshll.u32 %v4965_v58, 16  ;;  %v5067_v11 = vshrl.u32 %v4966_v32, 16 }
 0x6d5   :  { %v5036_v12 = vrot.slane %v5034_v25, 7  ;;  %v15875_v50 = vrot.slane %v5040_v26, 6  ;;  %v15877_v34 = vrot.slane %v5043_v14, 7  ;;  %v15879_v49 = vrot.slane %v5049_v0, 6 }
 0x6d6   :  { %v15881_v2 = vrot.slane %v5052_v55, 7  ;;  %v15883_v3 = vrot.slane %v5058_v5, 6  ;;  %v5070_v63 = vshll.u32 %v4966_v32, 16  ;;  %v5076_v9 = vshrl.u32 %v4967_v61, 16 }
 0x6d7   :  { %v5079_v40 = vshll.u32 %v4967_v61, 16  ;;  %v5085_v47 = vshrl.u32 %v4968_v46, 16  ;;  %v5088_v17 = vshll.u32 %v4968_v46, 16  ;;  %v5094_v52 = vshrl.u32 %v4969_v36, 16 }
 0x6d8   :  { %v15885_v57 = vrot.slane %v5061_v53, 7  ;;  %v15887_v16 = vrot.slane %v5067_v11, 6  ;;  %v5097_v56 = vshll.u32 %v4969_v36, 16  ;;  %v5103_v30 = vshrl.u32 %v15861_v8, 16 }
 0x6d9   :  { %v5106_v44 = vshll.u32 %v15861_v8, 16  ;;  %v5112_v58 = vshrl.u32 %v15863_v24, 16  ;;  %v5115_v60 = vshll.u32 %v15863_v24, 16  ;;  %v5121_v29 = vshrl.u32 %v15865_v45, 16 }
 0x6da   :  { %v15900_v32 = vrot.slane %v5070_v63, 7  ;;  %v15902_v61 = vrot.slane %v5076_v9, 6  ;;  %v5124_v37 = vshll.u32 %v15865_v45, 16  ;;  %v5130_v21 = vshrl.u32 %v15867_v35, 16 }
 0x6db   :  { %v15906_v46 = vrot.slane %v5079_v40, 7  ;;  %v15908_v36 = vrot.slane %v5085_v47, 6  ;;  %v15910_v22 = vrot.slane %v5088_v17, 7  ;;  %v15912_v8 = vrot.slane %v5094_v52, 6  ;;  %v19822_v47 = vld [vmem:[#allocation28_spill] sm:$0xff] }
 0x6dc   :  { %v15914_v7 = vrot.slane %v5097_v56, 7  ;;  %v15916_v24 = vrot.slane %v5103_v30, 6  ;;  %v5133_v41 = vshll.u32 %v15867_v35, 16  ;;  %v15921_v13 = vsel %vm15892_vm9, 0, %v5002_v1 }
 0x6dd   :  { %19820 = vst [vmem:[#allocation93_spill] sm:$0xff] %v15921_v13  ;;  %v15923_v45 = vrot.slane %v5106_v44, 7  ;;  %v15925_v54 = vrot.slane %v5112_v58, 6  ;;  %v15927_v48 = vrot.slane %v5115_v60, 7  ;;  %v15929_v59 = vrot.slane %v5121_v29, 6 }
 0x6de   :  { %v15931_v20 = vrot.slane %v5124_v37, 7  ;;  %v15933_v27 = vrot.slane %v5130_v21, 6  ;;  %v5139_v25 = vshrl.u32 %v15869_v6, 16  ;;  %v5142_v35 = vshll.u32 %v15869_v6, 16 }
 0x6df   :  { %v5148_v26 = vshrl.u32 %v15871_v18, 16  ;;  %v5010_v14 = vor.u32 %v5009_v51, %v5006_v4  ;;  %v5019_v0 = vor.u32 %v5018_v62, %v5015_v39  ;;  %v18936_v55 = vshll.u32 %v15921_v13, 16 }
 0x6e0   :  { %v15939_v5 = vrot.slane %v5133_v41, 7  ;;  %v5037_v11 = vor.u32 %v5036_v12, %v5033_v33  ;;  %v18935_v63 = vshrl.u32 %v15921_v13, 16  ;;  %v15955_v51 = vrot.slane %v5139_v25, 6 }
 0x6e1   :  { %v15944_v9 = vsel %vm4994_vm7, %v5002_v1, %v5010_v14  ;;  %v15947_v40 = vsel %vm4994_vm7, %v5010_v14, %v5019_v0  ;;  %v15951_v6 = vsel %vm4994_vm7, %v5019_v0, %v15873_v31  ;;  %v5369_v4 = vrot.slane %v18936_v55, 1  ;;  %v11870_v1 = vld [vmem:[#allocation2 + $0x80] sm:$0xff]  }
 0x6e2   :  { %19821 = vst [vmem:[#allocation101_spill] sm:$0xff] %v15944_v9  ;;  %v5837_v39 = vrot.slane %v15944_v9, 3  ;;  %v5838_v62 = vrot.slane %v15947_v40, 3  ;;  %v5840_v33 = vrot.slane %v15951_v6, 3  ;;  %v5179_v12 = vshrl.u32 %v15739_v38, 16 }
 0x6e3   :  { %v5370_v17 = vsel %vm258_vm0, %v19822_v47, %v5369_v4  ;;  %v15965_v52 = vsel %vm4994_vm7, %v15873_v31, %v5037_v11  ;;  %v5373_v56 = vor.u32 %v18935_v63, %v5369_v4  ;;  %v15973_v60 = vshll.u32 %v15944_v9, 16 }
 0x6e4   :  { %v5839_v30 = vsel %vm764_vm5, %v5837_v39, %v5838_v62  ;;  %v5841_v44 = vsel %vm764_vm5, %v5838_v62, %v5840_v33  ;;  %7026 = vmatprep.mubr.bf16.mxu1 %v5370_v17  ;;  %v5842_v58 = vrot.slane %v15965_v52, 3  ;;  %v15975_v29 = vrot.slane %v5142_v35, 7 }
 0x6e5   :  { %19823 = vst [vmem:[#allocation113_spill] sm:$0xff] %v15973_v60  ;;  %v5182_v37 = vshll.u32 %v15739_v38, 16  ;;  %10531 = vmatprep.mubr.bf16.mxu0 %v5839_v30  ;;  %v19824_v31 = vmov 0   ;;  %v5046_v21 = vor.u32 %v15877_v34, %v15875_v50  ;;  %v5055_v41 = vor.u32 %v15881_v2, %v15879_v49 }
 0x6e6   :  { %7027 = vmatmul.mubr.bf16.vlgmr.msra.gmra.mrb[72].mxu1 %v19824_v31  ;;  %v5187_v25 = vshrl.u32 %v15741_v10, 16  ;;  %v5190_v14 = vshll.u32 %v15741_v10, 16  ;;  %10532 = vmatmul.mubr.bf16.vlgmr.msra.gmra.mrb[144].mxu0 %v5841_v44  ;;  %v5843_v0 = vsel %vm764_vm5, %v5840_v33, %v5842_v58  ;;  %v5377_v35 = vrot.slane %v15973_v60, 1  ;;  %v11871_v10 = vld [vmem:[#allocation2 + $0x88] sm:$0xff]  }
 0x6e7   :  { %7316 = vmatpush1.bf16.msra.mxu1 %v11870_v1  ;;  %10535 = vmatprep.mubr.bf16.mxu0 %v5843_v0  ;;  %v15988_v38 = vsel %vm4994_vm7, %v5037_v11, %v5046_v21  ;;  %v15991_v4 = vsel %vm4994_vm7, %v5046_v21, %v5055_v41  ;;  %v15994_v50 = vshrl.u32 %v15944_v9, 16  ;;  %v15997_v34 = vshll.u32 %v15947_v40, 16 }
 0x6e8   :  { %7317 = vmatprep.subr.bf16.mxu1 %v19824_v31  ;;  %v16000_v49 = vrot.slane %v5148_v26, 6  ;;  %v5196_v2 = vshrl.u32 %v15743_v23, 16  ;;  %v5199_v39 = vshll.u32 %v15743_v23, 16  ;;  %v5378_v11 = vsel %vm258_vm0, %v5373_v56, %v5377_v35 }
 0x6e9   :  { %19825 = vst [vmem:[#allocation115_spill] sm:$0xff] %v15994_v50  ;;  %19826 = vst [vmem:[#allocation117_spill] sm:$0xff] %v15997_v34  ;;  %v16005_v62 = vrot.slane %v5179_v12, 6  ;;  %v5205_v33 = vshrl.u32 %v15745_v43, 16  ;;  %7034 = vmatprep.mubr.bf16.mxu1 %v5378_v11  ;;  %v5844_v1 = vrot.slane %v15988_v38, 3  ;;  %v5381_v17 = vor.u32 %v15994_v50, %v5377_v35 }
 0x6ea   :  { %v16010_v30 = vrot.slane %v5182_v37, 7  ;;  %v16012_v44 = vrot.slane %v5187_v25, 6  ;;  %v5846_v26 = vrot.slane %v15991_v4, 3  ;;  %v5064_v23 = vor.u32 %v15885_v57, %v15883_v3 }
 0x6eb   :  { %7318 = vmatpush1.bf16.msra.mxu1 %v11871_v10  ;;  %v16017_v56 = vrot.slane %v5190_v14, 7  ;;  %v5208_v12 = vshll.u32 %v15745_v43, 16  ;;  %v5385_v21 = vrot.slane %v15997_v34, 1  ;;  %v5073_v0 = vor.u32 %v15900_v32, %v15887_v16 }
 0x6ec   :  { %7319 = vmatprep.subr.bf16.mxu1 %v19824_v31  ;;  %v16024_v37 = vrot.slane %v5196_v2, 6  ;;  %v16026_v25 = vrot.slane %v5199_v39, 7  ;;  %v5214_v35 = vshrl.u32 %v15747_v28, 16  ;;  %v5217_v3 = vshll.u32 %v15747_v28, 16 }
 0x6ed   :  { %v16030_v57 = vrot.slane %v5205_v33, 6  ;;  %v5223_v14 = vshrl.u32 %v15749_v19, 16  ;;  %v5845_v43 = vsel %vm764_vm5, %v5842_v58, %v5844_v1  ;;  %v5386_v16 = vsel %vm258_vm0, %v5381_v17, %v5385_v21 }
 0x6ee   :  { %7035 = vmatmul.mubr.bf16.gmra.mrb[76].mxu1 %v15921_v13  ;;  %v5226_v32 = vshll.u32 %v15749_v19, 16  ;;  %v5232_v10 = vshrl.u32 %v15751_v15, 16  ;;  %10536 = vmatmul.mubr.bf16.gmra.mrb[148].mxu0 %v5845_v43  ;;  %v5847_v2 = vsel %vm764_vm5, %v5844_v1, %v5846_v26  ;;  %v16040_v28 = vsel %vm4994_vm7, %v5055_v41, %v5064_v23  ;;  %v19830_v41 = vld [vmem:[#allocation60_spill] sm:$0xff] }
 0x6ef   :  { %7042 = vmatprep.mubr.bf16.mxu1 %v5386_v16  ;;  %v16042_v39 = vrot.slane %v5208_v12, 7  ;;  %10539 = vmatprep.mubr.bf16.mxu0 %v5847_v2  ;;  %v16045_v58 = vsel %vm4994_vm7, %v5064_v23, %v5073_v0  ;;  %v16048_v11 = vshrl.u32 %v15947_v40, 16  ;;  %v16051_v19 = vshll.u32 %v15951_v6, 16 }
 0x6f0   :  { %19827 = vst [vmem:[#allocation119_spill] sm:$0xff] %v16045_v58  ;;  %v16053_v33 = vrot.slane %v5214_v35, 6  ;;  %v16055_v17 = vrot.slane %v5217_v3, 7  ;;  %v5235_v1 = vshll.u32 %v15751_v15, 16  ;;  %v5241_v43 = vshrl.u32 %v19830_v41, 16  ;;  %v19831_v15 = vld [vmem:[#allocation54_spill] sm:$0xff] }
 0x6f1   :  { %19828 = vst [vmem:[#allocation121_spill] sm:$0xff] %v16048_v11  ;;  %19829 = vst [vmem:[#allocation123_spill] sm:$0xff] %v16051_v19  ;;  %v16059_v12 = vrot.slane %v5223_v14, 6  ;;  %v5244_v16 = vshll.u32 %v19830_v41, 16  ;;  %v5848_v23 = vrot.slane %v16040_v28, 3  ;;  %v5389_v2 = vor.u32 %v16048_v11, %v5385_v21 }
 0x6f2   :  { %v16064_v63 = vrot.slane %v5226_v32, 7  ;;  %v16066_v55 = vrot.slane %v5232_v10, 6  ;;  %v5850_v35 = vrot.slane %v16045_v58, 3  ;;  %v5082_v3 = vor.u32 %v15906_v46, %v15902_v61  ;;  %v19832_v32 = vld [vmem:[#allocation64_spill] sm:$0xff]  ;;  %v19833_v61 = vld [vmem:[#allocation58_spill] sm:$0xff] }
 0x6f3   :  { %v5250_v53 = vshrl.u32 %v19831_v15, 16  ;;  %v5253_v14 = vshll.u32 %v19831_v15, 16  ;;  %v5393_v34 = vrot.slane %v16051_v19, 1  ;;  %v5091_v41 = vor.u32 %v15910_v22, %v15908_v36  ;;  %v19834_v22 = vld [vmem:[#allocation68_spill] sm:$0xff] }
 0x6f4   :  { %v16076_v60 = vrot.slane %v5235_v1, 7  ;;  %v16078_v21 = vrot.slane %v5241_v43, 6  ;;  %v5259_v10 = vshrl.u32 %v19832_v32, 16  ;;  %v5262_v11 = vshll.u32 %v19832_v32, 16 }
 0x6f5   :  { %v16082_v50 = vrot.slane %v5244_v16, 7  ;;  %v5268_v46 = vshrl.u32 %v19833_v61, 16  ;;  %v5849_v47 = vsel %vm764_vm5, %v5846_v26, %v5848_v23  ;;  %v5394_v15 = vsel %vm258_vm0, %v5389_v2, %v5393_v34  ;;  %v11872_v16 = vld [vmem:[#allocation2 + $0x90] sm:$0xff]  }
 0x6f6   :  { %7043 = vmatmul.mubr.bf16.gmra.mrb[80].mxu1 %v15944_v9  ;;  %v5271_v36 = vshll.u32 %v19833_v61, 16  ;;  %v5277_v1 = vshrl.u32 %v19834_v22, 16  ;;  %10540 = vmatmul.mubr.bf16.gmra.mrb[152].mxu0 %v5849_v47  ;;  %v5851_v43 = vsel %vm764_vm5, %v5848_v23, %v5850_v35  ;;  %v16092_v32 = vsel %vm4994_vm7, %v5073_v0, %v5082_v3 }
 0x6f7   :  { %7050 = vmatprep.mubr.bf16.mxu1 %v5394_v15  ;;  %19835 = vst [vmem:[#allocation125_spill] sm:$0xff] %v16092_v32  ;;  %v5280_v19 = vshll.u32 %v19834_v22, 16  ;;  %10543 = vmatprep.mubr.bf16.mxu0 %v5851_v43  ;;  %v16096_v26 = vsel %vm4994_vm7, %v5082_v3, %v5091_v41  ;;  %v16099_v2 = vshrl.u32 %v15951_v6, 16  ;;  %v16102_v61 = vshll.u32 %v15965_v52, 16  ;;  %v19837_v22 = vld [vmem:[#allocation62_spill] sm:$0xff] }
 0x6f8   :  { %v16104_v47 = vrot.slane %v5250_v53, 6  ;;  %v16106_v23 = vrot.slane %v5253_v14, 7  ;;  %v16108_v15 = vrot.slane %v5259_v10, 6  ;;  %v16110_v0 = vrot.slane %v5262_v11, 7  ;;  %7320 = vmatpush1.bf16.msra.mxu1 %v11872_v16 }
 0x6f9   :  { %19836 = vst [vmem:[#allocation127_spill] sm:$0xff] %v16102_v61  ;;  %v5286_v43 = vshrl.u32 %v19837_v22, 16  ;;  %v5852_v3 = vrot.slane %v16092_v32, 3  ;;  %v5397_v9 = vor.u32 %v16099_v2, %v5393_v34  ;;  %v5100_v13 = vor.u32 %v15914_v7, %v15912_v8  ;;  %7321 = vmatprep.subr.bf16.mxu1 %v19824_v31  ;;  %v19838_v8 = vld [vmem:[#allocation84_spill] sm:$0xff] }
 0x6fa   :  { %v16118_v53 = vrot.slane %v5268_v46, 6  ;;  %v16120_v14 = vrot.slane %v5271_v36, 7  ;;  %v5289_v10 = vshll.u32 %v19837_v22, 16  ;;  %v5854_v11 = vrot.slane %v16096_v26, 3 }
 0x6fb   :  { %v16124_v16 = vrot.slane %v5277_v1, 6  ;;  %v16126_v58 = vrot.slane %v5280_v19, 7  ;;  %v5401_v32 = vrot.slane %v16102_v61, 1  ;;  %v5109_v34 = vor.u32 %v15923_v45, %v15916_v24 }
 0x6fc   :  { %v5295_v7 = vshrl.u32 %v19838_v8, 16  ;;  %v16134_v46 = vor.u32 %v16010_v30, %v16005_v62  ;;  %v5193_v36 = vor.u32 %v16017_v56, %v16012_v44  ;;  %v5202_v1 = vor.u32 %v16026_v25, %v16024_v37 }
 0x6fd   :  { %v16140_v22 = vrot.slane %v5286_v43, 6  ;;  %v5853_v19 = vsel %vm764_vm5, %v5850_v35, %v5852_v3  ;;  %v5402_v24 = vsel %vm258_vm0, %v5397_v9, %v5401_v32  ;;  %v16146_v45 = vsel %vm4994_vm7, %v5091_v41, %v5100_v13 }
 0x6fe   :  { %7051 = vmatmul.mubr.bf16.gmra.mrb[84].mxu1 %v15947_v40  ;;  %10544 = vmatmul.mubr.bf16.gmra.mrb[156].mxu0 %v5853_v19  ;;  %v5855_v62 = vsel %vm764_vm5, %v5852_v3, %v5854_v11  ;;  %v16150_v30 = vshrl.u32 %v15965_v52, 16  ;;  %v16154_v44 = vsel %vm4994_vm7, %v16134_v46, %v5193_v36  ;;  %v16157_v56 = vsel %vm4994_vm7, %v5193_v36, %v5202_v1 }
 0x6ff   :  { %7058 = vmatprep.mubr.bf16.mxu1 %v5402_v24  ;;  %10547 = vmatprep.mubr.bf16.mxu0 %v5855_v62  ;;  %v16160_v9 = vsel %vm4994_vm7, %v5100_v13, %v5109_v34  ;;  %v16163_v37 = vshll.u32 %v15988_v38, 16  ;;  %v5211_v25 = vor.u32 %v16042_v39, %v16030_v57  ;;  %v5220_v35 = vor.u32 %v16055_v17, %v16053_v33  ;;  %v19839_v33 = vld [vmem:[#allocation66_spill] sm:$0xff] }
 0x700   :  { %v5291_v41 = vrot.slane %v5289_v10, 7  ;;  %v5298_v43 = vshll.u32 %v19838_v8, 16  ;;  %v5856_v3 = vrot.slane %v16146_v45, 3  ;;  %v5229_v36 = vor.u32 %v16064_v63, %v16059_v12 }
 0x701   :  { %v5405_v13 = vor.u32 %v16150_v30, %v5401_v32  ;;  %v16175_v19 = vsel %vm4994_vm7, %v5202_v1, %v5211_v25  ;;  %v16178_v24 = vsel %vm4994_vm7, %v5211_v25, %v5220_v35  ;;  %v5238_v57 = vor.u32 %v16076_v60, %v16066_v55  ;;  %v19840_v60 = vld [vmem:[#allocation72_spill] sm:$0xff]  ;;  %v19841_v25 = vld [vmem:[#allocation90_spill] sm:$0xff] }
 0x702   :  { %v5297_v39 = vrot.slane %v5295_v7, 6  ;;  %v5304_v17 = vshrl.u32 %v19839_v33, 16  ;;  %v5858_v10 = vrot.slane %v16160_v9, 3  ;;  %v5118_v8 = vor.u32 %v15927_v48, %v15925_v54 }
 0x703   :  { %v5409_v63 = vrot.slane %v16163_v37, 1  ;;  %v5127_v12 = vor.u32 %v15931_v20, %v15929_v59  ;;  %v16190_v32 = vsel %vm4994_vm7, %v5220_v35, %v5229_v36  ;;  %v16193_v1 = vsel %vm4994_vm7, %v5229_v36, %v5238_v57 }
 0x704   :  { %v5307_v55 = vshll.u32 %v19839_v33, 16  ;;  %v5313_v7 = vshrl.u32 %v19840_v60, 16  ;;  %v5316_v62 = vshll.u32 %v19840_v60, 16  ;;  %v5322_v61 = vshrl.u32 %v19841_v25, 16  ;;  %v11873_v60 = vld [vmem:[#allocation2 + $0x98] sm:$0xff]  }
 0x705   :  { %v5325_v54 = vshll.u32 %v19841_v25, 16  ;;  %v5857_v48 = vsel %vm764_vm5, %v5854_v11, %v5856_v3  ;;  %v5410_v59 = vsel %vm258_vm0, %v5405_v13, %v5409_v63  ;;  %v5247_v20 = vor.u32 %v16082_v50, %v16078_v21  ;;  %7322 = vmatpush1.bf16.msra.mxu1 %v11873_v60 }
 0x706   :  { %7059 = vmatmul.mubr.bf16.gmra.mrb[88].mxu1 %v15951_v6  ;;  %10548 = vmatmul.mubr.bf16.gmra.mrb[160].mxu0 %v5857_v48  ;;  %v5859_v35 = vsel %vm764_vm5, %v5856_v3, %v5858_v10  ;;  %v16207_v36 = vsel %vm4994_vm7, %v5109_v34, %v5118_v8  ;;  %v16210_v33 = vshrl.u32 %v15988_v38, 16  ;;  %v5256_v11 = vor.u32 %v16106_v23, %v16104_v47 }
 0x707   :  { %7066 = vmatprep.mubr.bf16.mxu1 %v5410_v59  ;;  %10551 = vmatprep.mubr.bf16.mxu0 %v5859_v35  ;;  %v16215_v13 = vsel %vm4994_vm7, %v5118_v8, %v5127_v12  ;;  %v16218_v50 = vshll.u32 %v15991_v4, 16  ;;  %v16221_v21 = vsel %vm4994_vm7, %v5238_v57, %v5247_v20  ;;  %v5265_v34 = vor.u32 %v16110_v0, %v16108_v15 }
 0x708   :  { %v5306_v3 = vrot.slane %v5304_v17, 6  ;;  %v5309_v25 = vrot.slane %v5307_v55, 7  ;;  %v16226_v48 = vsel %vm4994_vm7, %v5247_v20, %v5256_v11  ;;  %v5274_v47 = vor.u32 %v16120_v14, %v16118_v53  ;;  %7323 = vmatprep.subr.bf16.mxu1 %v19824_v31 }
 0x709   :  { %v5300_v23 = vrot.slane %v5298_v43, 7  ;;  %v5860_v8 = vrot.slane %v16207_v36, 3  ;;  %v5413_v59 = vor.u32 %v16210_v33, %v5409_v63  ;;  %v5136_v57 = vor.u32 %v15939_v5, %v15933_v27 }
 0x70a   :  { %v5292_v15 = vor.u32 %v5291_v41, %v16140_v22  ;;  %v5862_v0 = vrot.slane %v16215_v13, 3  ;;  %v16238_v17 = vsel %vm4994_vm7, %v5256_v11, %v5265_v34  ;;  %v16241_v53 = vsel %vm4994_vm7, %v5265_v34, %v5274_v47  ;;  %v19844_v34 = vld [vmem:[#allocation20_spill] sm:$0xff] }
 0x70b   :  { %v5324_v14 = vrot.slane %v5322_v61, 6  ;;  %v5327_v43 = vrot.slane %v5325_v54, 7  ;;  %v5417_v55 = vrot.slane %v16218_v50, 1  ;;  %v5145_v63 = vor.u32 %v15975_v29, %v15955_v51 }
 0x70c   :  { %v5310_v27 = vor.u32 %v5309_v25, %v5306_v3  ;;  %v5315_v5 = vrot.slane %v5313_v7, 6  ;;  %v5318_v20 = vrot.slane %v5316_v62, 7  ;;  %v5283_v22 = vor.u32 %v16126_v58, %v16124_v16 }
 0x70d   :  { %v5861_v41 = vsel %vm764_vm5, %v5858_v10, %v5860_v8  ;;  %v5418_v35 = vsel %vm258_vm0, %v5413_v59, %v5417_v55  ;;  %v16252_v61 = vsel %vm4994_vm7, %v5127_v12, %v5136_v57  ;;  %v5301_v54 = vor.u32 %v5300_v23, %v5297_v39 }
 0x70e   :  { %7067 = vmatmul.mubr.bf16.gmra.mrb[92].mxu1 %v15965_v52  ;;  %v19842_v11 = vshll.u32 %v15871_v18, 16  ;;  %10552 = vmatmul.mubr.bf16.gmra.mrb[164].mxu0 %v5861_v41  ;;  %v5863_v51 = vsel %vm764_vm5, %v5860_v8, %v5862_v0  ;;  %v16258_v29 = vsel %vm4994_vm7, %v5274_v47, %v5283_v22  ;;  %v16261_v58 = vsel %vm4994_vm7, %v5283_v22, %v5292_v15 }
 0x70f   :  { %7074 = vmatprep.mubr.bf16.mxu1 %v5418_v35  ;;  %v5328_v16 = vor.u32 %v5327_v43, %v5324_v14  ;;  %10555 = vmatprep.mubr.bf16.mxu0 %v5863_v51  ;;  %v16264_v10 = vsel %vm4994_vm7, %v5136_v57, %v5145_v63  ;;  %v16267_v39 = vshrl.u32 %v15991_v4, 16  ;;  %v16270_v18 = vshll.u32 %v16040_v28, 16  ;;  %v19849_v35 = vld [vmem:[#allocation119_spill] sm:$0xff] }
 0x710   :  { %v5153_v60 = vrot.slane %v19842_v11, 7  ;;  %v16273_v12 = vsel %vm4994_vm7, %v5292_v15, %v5301_v54  ;;  %v16276_v7 = vsel %vm4994_vm7, %v5301_v54, %v5310_v27  ;;  %v5319_v62 = vor.u32 %v5318_v20, %v5315_v5 }
 0x711   :  { %19843 = vst [vmem:[#allocation129_spill] sm:$0xff] %v16270_v18  ;;  %v19845_v3 = vshrl.u32 %v19844_v34, 16  ;;  %v19846_v47 = vshll.u32 %v19844_v34, 16  ;;  %v5864_v8 = vrot.slane %v16252_v61, 3  ;;  %v5421_v59 = vor.u32 %v16267_v39, %v5417_v55 }
 0x712   :  { %v5866_v57 = vrot.slane %v16264_v10, 3  ;;  %v5154_v14 = vor.u32 %v5153_v60, %v16000_v49  ;;  %v16287_v15 = vsel %vm4994_vm7, %v5310_v27, %v5319_v62  ;;  %v5425_v43 = vrot.slane %v16270_v18, 1 }
 0x713   :  { %v5333_v25 = vrot.slane %v19845_v3, 6  ;;  %v5336_v23 = vrot.slane %v19846_v47, 7  ;;  %v16291_v5 = vsel %vm4994_vm7, %v5319_v62, %v5328_v16  ;;  %v5865_v20 = vsel %vm764_vm5, %v5862_v0, %v5864_v8 }
 0x714   :  { %v5426_v22 = vsel %vm258_vm0, %v5421_v59, %v5425_v43  ;;  %v5867_v55 = vsel %vm764_vm5, %v5864_v8, %v5866_v57  ;;  %v16300_v49 = vsel %vm4994_vm7, %v5145_v63, %v5154_v14  ;;  %v16304_v27 = vsel %vm15892_vm9, %v5154_v14, 0 }
 0x715   :  { %v16296_v41 = vor.u32 %v5336_v23, %v5333_v25  ;;  %19847 = vst [vmem:[#allocation126_spill] sm:$0xff] %v16304_v27  ;;  %v16307_v0 = vshrl.u32 %v16040_v28, 16  ;;  %v16310_v54 = vshll.u32 %v19849_v35, 16  ;;  %v5868_v60 = vrot.slane %v16300_v49, 3  ;;  %v19852_v23 = vld [vmem:[#allocation125_spill] sm:$0xff] }
 0x716   :  { %7075 = vmatmul.mubr.bf16.gmra.mrb[96].mxu1 %v15988_v38  ;;  %10556 = vmatmul.mubr.bf16.gmra.mrb[168].mxu0 %v5865_v20  ;;  %v5870_v51 = vrot.slane %v16304_v27, 3  ;;  %v16325_v47 = vshrl.u32 %v19849_v35, 16  ;;  %v16328_v8 = vshll.u32 %v19852_v23, 16  ;;  %v16331_v59 = vrot.slane %v19824_v31, 3 }
 0x717   :  { %7082 = vmatprep.mubr.bf16.mxu1 %v5426_v22  ;;  %10559 = vmatprep.mubr.bf16.mxu0 %v5867_v55  ;;  %19848 = vst [vmem:[#allocation128_spill] sm:$0xff] %v16307_v0  ;;  %19850 = vst [vmem:[#allocation67_spill] sm:$0xff] %v16310_v54  ;;  %v16314_v11 = vsel %vm4994_vm7, %v5328_v16, %v16296_v41  ;;  %v5429_v63 = vor.u32 %v16307_v0, %v5425_v43  ;;  %v5433_v62 = vrot.slane %v16310_v54, 1  ;;  %v11874_v16 = vld [vmem:[#allocation2 + $0xa0] sm:$0xff]  }
 0x718   :  { %v5869_v34 = vsel %vm764_vm5, %v5866_v57, %v5868_v60  ;;  %v5871_v25 = vsel %vm764_vm5, %v5868_v60, %v5870_v51  ;;  %19851 = vst [vmem:[#allocation69_spill] sm:$0xff] %v16325_v47  ;;  %19853 = vst [vmem:[#allocation71_spill] sm:$0xff] %v16328_v8  ;;  %7324 = vmatpush1.bf16.msra.mxu1 %v11874_v16  ;;  %v6357_v14 = vrot.slane %v16154_v44, 3  ;;  %v6358_v43 = vrot.slane %v16157_v56, 3 }
 0x719   :  { %v5434_v3 = vsel %vm258_vm0, %v5429_v63, %v5433_v62  ;;  %v5437_v57 = vor.u32 %v16325_v47, %v5433_v62  ;;  %7325 = vmatprep.subr.bf16.mxu1 %v19824_v31  ;;  %v5441_v20 = vrot.slane %v16328_v8, 1  ;;  %v5873_v22 = vsel %vm764_vm5, %v5870_v51, %v16331_v59 }
 0x71a   :  { %v6359_v60 = vsel %vm764_vm5, %v6357_v14, %v6358_v43  ;;  %v16344_v63 = vshrl.u32 %v19852_v23, 16  ;;  %v16347_v62 = vshll.u32 %v16096_v26, 16  ;;  %v6362_v51 = vrot.slane %v16178_v24, 3 }
 0x71b   :  { %v5442_v55 = vsel %vm258_vm0, %v5437_v57, %v5441_v20 }
 0x71c   :  { %19854 = vst [vmem:[#allocation9_spill] sm:$0xff] %v16344_v63  ;;  %19855 = vst [vmem:[#allocation73_spill] sm:$0xff] %v16347_v62 }
 0x71e   :  { %7083 = vmatmul.mubr.bf16.gmra.mrb[100].mxu1 %v15991_v4  ;;  %10560 = vmatmul.mubr.bf16.gmra.mrb[172].mxu0 %v5869_v34  ;;  %v6360_v34 = vrot.slane %v16175_v19, 3 }
 0x71f   :  { %7090 = vmatprep.mubr.bf16.mxu1 %v5434_v3  ;;  %10563 = vmatprep.mubr.bf16.mxu0 %v5871_v25  ;;  %v5445_v3 = vor.u32 %v16344_v63, %v5441_v20  ;;  %v5449_v25 = vrot.slane %v16347_v62, 1  ;;  %v16361_v20 = vshll.u32 %v16146_v45, 16  ;;  %v6368_v62 = vrot.slane %v16221_v21, 3 }
 0x720   :  { %v6361_v16 = vsel %vm764_vm5, %v6358_v43, %v6360_v34  ;;  %v6363_v14 = vsel %vm764_vm5, %v6360_v34, %v6362_v51 }
 0x721   :  { %v5450_v57 = vsel %vm258_vm0, %v5445_v3, %v5449_v25  ;;  %19857 = vst [vmem:[#allocation33_spill] sm:$0xff] %v16361_v20  ;;  %v6366_v3 = vrot.slane %v16193_v1, 3  ;;  %v5457_v34 = vrot.slane %v16361_v20, 1 }
 0x726   :  { %7091 = vmatmul.mubr.bf16.gmra.mrb[104].mxu1 %v16040_v28  ;;  %10564 = vmatmul.mubr.bf16.gmra.mrb[176].mxu0 %v5873_v22  ;;  %v11875_v22 = vld [vmem:[#allocation2 + $0xa8] sm:$0xff]  }
 0x727   :  { %7098 = vmatprep.mubr.bf16.mxu1 %v5442_v55  ;;  %10567 = vmatprep.mubr.bf16.mxu0 %v6359_v60  ;;  %v16358_v55 = vshrl.u32 %v16096_v26, 16  ;;  %v6364_v60 = vrot.slane %v16190_v32, 3 }
 0x728   :  { %7326 = vmatpush1.bf16.msra.mxu1 %v11875_v22  ;;  %v16373_v22 = vshrl.u32 %v16146_v45, 16 }
 0x729   :  { %19856 = vst [vmem:[#allocation8_spill] sm:$0xff] %v16358_v55  ;;  %v5453_v43 = vor.u32 %v16358_v55, %v5449_v25  ;;  %7327 = vmatprep.subr.bf16.mxu1 %v19824_v31  ;;  %v16376_v25 = vshll.u32 %v16160_v9, 16 }
 0x72a   :  { %19858 = vst [vmem:[#allocation91_spill] sm:$0xff] %v16373_v22  ;;  %v5461_v20 = vor.u32 %v16373_v22, %v5457_v34  ;;  %v6374_v22 = vrot.slane %v16241_v53, 3 }
 0x72b   :  { %19859 = vst [vmem:[#allocation92_spill] sm:$0xff] %v16376_v25  ;;  %v5465_v55 = vrot.slane %v16376_v25, 1  ;;  %v16395_v25 = vshrl.u32 %v16160_v9, 16 }
 0x72d   :  { %19863 = vst [vmem:[#allocation94_spill] sm:$0xff] %v16395_v25 }
 0x72e   :  { %7099 = vmatmul.mubr.bf16.gmra.mrb[108].mxu1 %v19849_v35  ;;  %10568 = vmatmul.mubr.bf16.gmra.mrb[180].mxu0 %v6361_v16  ;;  %v6365_v16 = vsel %vm764_vm5, %v6362_v51, %v6364_v60  ;;  %v6370_v51 = vrot.slane %v16226_v48, 3 }
 0x72f   :  { %7106 = vmatprep.mubr.bf16.mxu1 %v5450_v57  ;;  %10571 = vmatprep.mubr.bf16.mxu0 %v6363_v14  ;;  %v5458_v57 = vsel %vm258_vm0, %v5453_v43, %v5457_v34  ;;  %v6367_v14 = vsel %vm764_vm5, %v6364_v60, %v6366_v3  ;;  %v6369_v43 = vsel %vm764_vm5, %v6366_v3, %v6368_v62  ;;  %v16398_v3 = vshll.u32 %v16207_v36, 16 }
 0x730   :  { %v5466_v60 = vsel %vm258_vm0, %v5461_v20, %v5465_v55  ;;  %v6371_v34 = vsel %vm764_vm5, %v6368_v62, %v6370_v51  ;;  %v6372_v20 = vrot.slane %v16238_v17, 3  ;;  %v11876_v62 = vld [vmem:[#allocation2 + $0xb0] sm:$0xff]  }
 0x731   :  { %19864 = vst [vmem:[#allocation95_spill] sm:$0xff] %v16398_v3  ;;  %7328 = vmatpush1.bf16.msra.mxu1 %v11876_v62  ;;  %v16426_v62 = vshrl.u32 %v16215_v13, 16 }
 0x732   :  { %v6375_v54 = vsel %vm764_vm5, %v6372_v20, %v6374_v22  ;;  %7329 = vmatprep.subr.bf16.mxu1 %v19824_v31 }
 0x733   :  { %19867 = vst [vmem:[#allocation97_spill] sm:$0xff] %v16426_v62 }
 0x736   :  { %7107 = vmatmul.mubr.bf16.gmra.mrb[112].mxu1 %v19852_v23  ;;  %10572 = vmatmul.mubr.bf16.gmra.mrb[184].mxu0 %v6365_v16  ;;  %v19860_v16 = vld [vmem:[#allocation93_spill] sm:$0xff] }
 0x737   :  { %7114 = vmatprep.mubr.bf16.mxu1 %v5458_v57  ;;  %10575 = vmatprep.mubr.bf16.mxu0 %v6367_v14  ;;  %v19861_v57 = vshll.u32 %v19860_v16, 16  ;;  %v19862_v8 = vshrl.u32 %v19860_v16, 16 }
 0x739   :  { %v16387_v14 = vrot.slane %v19861_v57, 2  ;;  %v16391_v63 = vrot.slane %v19862_v8, 1  ;;  %v5469_v57 = vor.u32 %v16395_v25, %v5465_v55  ;;  %v16411_v55 = vshrl.u32 %v16207_v36, 16 }
 0x73a   :  { %v16414_v25 = vshll.u32 %v16215_v13, 16 }
 0x73b   :  { %19865 = vst [vmem:[#allocation34_spill] sm:$0xff] %v16411_v55 }
 0x73c   :  { %19866 = vst [vmem:[#allocation96_spill] sm:$0xff] %v16414_v25 }
 0x73e   :  { %7115 = vmatmul.mubr.bf16.gmra.mrb[116].mxu1 %v16096_v26  ;;  %10576 = vmatmul.mubr.bf16.gmra.mrb[188].mxu0 %v6369_v43  ;;  %v5473_v43 = vrot.slane %v16398_v3, 1  ;;  %v6380_v3 = vrot.slane %v16273_v12, 3 }
 0x73f   :  { %7122 = vmatprep.mubr.bf16.mxu1 %v5466_v60  ;;  %10579 = vmatprep.mubr.bf16.mxu0 %v6371_v34  ;;  %v6373_v60 = vsel %vm764_vm5, %v6370_v51, %v6372_v20  ;;  %v6376_v51 = vrot.slane %v16258_v29, 3 }
 0x740   :  { %v5474_v34 = vsel %vm258_vm0, %v5469_v57, %v5473_v43  ;;  %v5477_v8 = vor.u32 %v16411_v55, %v5473_v43  ;;  %v6378_v57 = vrot.slane %v16261_v58, 3  ;;  %v16429_v43 = vshll.u32 %v16252_v61, 16 }
 0x741   :  { %v6377_v20 = vsel %vm764_vm5, %v6374_v22, %v6376_v51  ;;  %v6382_v22 = vrot.slane %v16276_v7, 3 }
 0x742   :  { %19868 = vst [vmem:[#allocation98_spill] sm:$0xff] %v16429_v43  ;;  %v5489_v55 = vrot.slane %v16429_v43, 1 }
 0x746   :  { %7123 = vmatmul.mubr.bf16.gmra.mrb[120].mxu1 %v16146_v45  ;;  %10580 = vmatmul.mubr.bf16.gmra.mrb[192].mxu0 %v6373_v60  ;;  %v5481_v60 = vrot.slane %v16414_v25, 1 }
 0x747   :  { %7130 = vmatprep.mubr.bf16.mxu1 %v5474_v34  ;;  %10583 = vmatprep.mubr.bf16.mxu0 %v6375_v54  ;;  %v6379_v34 = vsel %vm764_vm5, %v6376_v51, %v6378_v57 }
 0x748   :  { %v5482_v54 = vsel %vm258_vm0, %v5477_v8, %v5481_v60  ;;  %v5485_v25 = vor.u32 %v16426_v62, %v5481_v60  ;;  %v11877_v8 = vld [vmem:[#allocation2 + $0xb8] sm:$0xff]   ;;  %v16443_v60 = vshll.u32 %v16264_v10, 16 }
 0x749   :  { %7330 = vmatpush1.bf16.msra.mxu1 %v11877_v8  ;;  %v16457_v8 = vsel %vm15892_vm9, %v16296_v41, 0 }
 0x74a   :  { %v5490_v51 = vsel %vm258_vm0, %v5485_v25, %v5489_v55  ;;  %19870 = vst [vmem:[#allocation100_spill] sm:$0xff] %v16443_v60  ;;  %7331 = vmatprep.subr.bf16.mxu1 %v19824_v31  ;;  %v6386_v25 = vrot.slane %v16291_v5, 3  ;;  %19871 = vst [vmem:[#allocation102_spill] sm:$0xff] %v16457_v8 }
 0x74e   :  { %7131 = vmatmul.mubr.bf16.gmra.mrb[124].mxu1 %v16160_v9  ;;  %10584 = vmatmul.mubr.bf16.gmra.mrb[196].mxu0 %v6377_v20  ;;  %v6381_v20 = vsel %vm764_vm5, %v6378_v57, %v6380_v3  ;;  %v6384_v57 = vrot.slane %v16287_v15, 3 }
 0x74f   :  { %7138 = vmatprep.mubr.bf16.mxu1 %v5482_v54  ;;  %10587 = vmatprep.mubr.bf16.mxu0 %v6379_v34  ;;  %v6383_v54 = vsel %vm764_vm5, %v6380_v3, %v6382_v22  ;;  %v16440_v34 = vshrl.u32 %v16252_v61, 16 }
 0x750   :  { %v6385_v3 = vsel %vm764_vm5, %v6382_v22, %v6384_v57  ;;  %v6388_v22 = vrot.slane %v16314_v11, 3 }
 0x751   :  { %19869 = vst [vmem:[#allocation99_spill] sm:$0xff] %v16440_v34  ;;  %v5493_v43 = vor.u32 %v16440_v34, %v5489_v55  ;;  %v16460_v55 = vshrl.u32 %v16264_v10, 16 }
 0x753   :  { %19872 = vst [vmem:[#allocation103_spill] sm:$0xff] %v16460_v55 }
 0x756   :  { %7139 = vmatmul.mubr.bf16.gmra.mrb[128].mxu1 %v16207_v36  ;;  %10588 = vmatmul.mubr.bf16.gmra.mrb[200].mxu0 %v6381_v20  ;;  %v5497_v20 = vrot.slane %v16443_v60, 1  ;;  %v16463_v60 = vshll.u32 %v16300_v49, 16 }
 0x757   :  { %7146 = vmatprep.mubr.bf16.mxu1 %v5490_v51  ;;  %10591 = vmatprep.mubr.bf16.mxu0 %v6383_v54  ;;  %v6387_v54 = vsel %vm764_vm5, %v6384_v57, %v6386_v25  ;;  %v16471_v57 = vsel %vm15892_vm9, 0, %v16134_v46  ;;  %v11879_v46 = vld [vmem:[#allocation2 + $0xc8] sm:$0xff]  }
 0x758   :  { %v5498_v51 = vsel %vm258_vm0, %v5493_v43, %v5497_v20  ;;  %19873 = vst [vmem:[#allocation104_spill] sm:$0xff] %v16463_v60  ;;  %v5501_v43 = vor.u32 %v16460_v55, %v5497_v20  ;;  %v5505_v41 = vrot.slane %v16463_v60, 1  ;;  %v18989_v34 = vshll.u32 %v16471_v57, 16  ;;  %v11878_v55 = vld [vmem:[#allocation2 + $0xc0] sm:$0xff]  }
 0x759   :  { %7332 = vmatpush1.bf16.msra.mxu1 %v11878_v55  ;;  %v16489_v55 = vshll.u32 %v16154_v44, 16 }
 0x75a   :  { %v5895_v42 = vrot.slane %v18989_v34, 1  ;;  %7333 = vmatprep.subr.bf16.mxu1 %v19824_v31  ;;  %v11882_v34 = vld [vmem:[#allocation2 + $0xe0] sm:$0xff]  }
 0x75b   :  { %19875 = vst [vmem:[#allocation105_spill] sm:$0xff] %v16489_v55 }
 0x75d   :  { %7334 = vmatpush1.bf16.msra.mxu1 %v11879_v46  ;;  %v16502_v46 = vshll.u32 %v16157_v56, 16 }
 0x75e   :  { %7147 = vmatmul.mubr.bf16.gmra.mrb[132].mxu1 %v16215_v13  ;;  %10592 = vmatmul.mubr.bf16.gmra.mrb[204].mxu0 %v6385_v3  ;;  %v6390_v3 = vrot.slane %v16457_v8, 3 }
 0x75f   :  { %7154 = vmatprep.mubr.bf16.mxu1 %v5498_v51  ;;  %10595 = vmatprep.mubr.bf16.mxu0 %v6387_v54  ;;  %v6389_v51 = vsel %vm764_vm5, %v6386_v25, %v6388_v22  ;;  %v5506_v54 = vsel %vm258_vm0, %v5501_v43, %v5505_v41  ;;  %v19874_v43 = vld [vmem:[#allocation28_spill] sm:$0xff]  ;;  %19877 = vst [vmem:[#allocation107_spill] sm:$0xff] %v16502_v46 }
 0x760   :  { %v6391_v20 = vsel %vm764_vm5, %v6388_v22, %v6390_v3  ;;  %v6392_v25 = vsel %vm764_vm5, %v6390_v3, %v16331_v59  ;;  %v5896_v41 = vsel %vm258_vm0, %v19874_v43, %v5895_v42  ;;  %v18990_v22 = vshrl.u32 %v16471_v57, 16  ;;  %7335 = vmatprep.subr.bf16.mxu1 %v19824_v31 }
 0x761   :  { %v5903_v3 = vrot.slane %v16489_v55, 1  ;;  %v11884_v55 = vld [vmem:[#allocation2 + $0xf0] sm:$0xff]  }
 0x766   :  { %7155 = vmatmul.mubr.bf16.gmra.mrb[136].mxu1 %v16252_v61  ;;  %10596 = vmatmul.mubr.bf16.gmra.mrb[208].mxu0 %v6389_v51  ;;  %v11880_v51 = vld [vmem:[#allocation2 + $0xd0] sm:$0xff]  }
 0x767   :  { %7162 = vmatprep.mubr.bf16.mxu1 %v5506_v54  ;;  %10599 = vmatprep.mubr.bf16.mxu0 %v6391_v20  ;;  %v5899_v54 = vor.u32 %v18990_v22, %v5895_v42  ;;  %v11881_v20 = vld [vmem:[#allocation2 + $0xd8] sm:$0xff]   ;;  %v11883_v22 = vld [vmem:[#allocation2 + $0xe8] sm:$0xff]  }
 0x768   :  { %7336 = vmatpush1.bf16.msra.mxu1 %v11880_v51  ;;  %v5911_v51 = vrot.slane %v16502_v46, 1  ;;  %v11885_v46 = vld [vmem:[#allocation2 + $0xf8] sm:$0xff]  }
 0x769   :  { %7337 = vmatprep.subr.bf16.mxu1 %v19824_v31 }
 0x76c   :  { %7338 = vmatpush1.bf16.msra.mxu1 %v11881_v20  ;;  %v16514_v20 = vshll.u32 %v16175_v19, 16 }
 0x76d   :  { %7339 = vmatprep.subr.bf16.mxu1 %v19824_v31 }
 0x76e   :  { %7163 = vmatmul.mubr.bf16.gmra.mrb[140].mxu1 %v16264_v10  ;;  %10600 = vmatmul.mubr.bf16.gmra.mrb[212].mxu0 %v6392_v25  ;;  %v5904_v25 = vsel %vm258_vm0, %v5899_v54, %v5903_v3  ;;  %19879 = vst [vmem:[#allocation109_spill] sm:$0xff] %v16514_v20 }
 0x76f   :  { %7170 = vmatprep.mubr.bf16.mxu1 %v5896_v41  ;;  %v16499_v41 = vshrl.u32 %v16154_v44, 16 }
 0x770   :  { %7340 = vmatpush1.bf16.msra.mxu1 %v11882_v34 }
 0x771   :  { %19876 = vst [vmem:[#allocation106_spill] sm:$0xff] %v16499_v41  ;;  %v5907_v42 = vor.u32 %v16499_v41, %v5903_v3  ;;  %7341 = vmatprep.subr.bf16.mxu1 %v19824_v31  ;;  %v5919_v3 = vrot.slane %v16514_v20, 1  ;;  %v16527_v41 = vshll.u32 %v16178_v24, 16 }
 0x773   :  { %v5912_v54 = vsel %vm258_vm0, %v5907_v42, %v5911_v51  ;;  %19881 = vst [vmem:[#allocation111_spill] sm:$0xff] %v16527_v41 }
 0x774   :  { %7342 = vmatpush1.bf16.msra.mxu1 %v11883_v22  ;;  %v16524_v22 = vshrl.u32 %v16175_v19, 16 }
 0x775   :  { %7343 = vmatprep.subr.bf16.mxu1 %v19824_v31 }
 0x776   :  { %7171 = vmatmul.mubr.bf16.gmra.mrb[144].mxu1 %v19824_v31  ;;  %19880 = vst [vmem:[#allocation110_spill] sm:$0xff] %v16524_v22  ;;  %v5923_v20 = vor.u32 %v16524_v22, %v5919_v3 }
 0x777   :  { %7178 = vmatprep.mubr.bf16.mxu1 %v5904_v25  ;;  %v16511_v25 = vshrl.u32 %v16157_v56, 16 }
 0x778   :  { %7344 = vmatpush1.bf16.msra.mxu1 %v11884_v55  ;;  %v19011_v55 = vshll.u32 %v16304_v27, 16 }
 0x779   :  { %19878 = vst [vmem:[#allocation108_spill] sm:$0xff] %v16511_v25  ;;  %v5915_v34 = vor.u32 %v16511_v25, %v5911_v51  ;;  %7345 = vmatprep.subr.bf16.mxu1 %v19824_v31  ;;  %v19010_v51 = vshrl.u32 %v16304_v27, 16  ;;  %v5927_v25 = vrot.slane %v16527_v41, 1  ;;  %v16551_v41 = vshll.u32 %v16190_v32, 16 }
 0x77b   :  { %v5920_v42 = vsel %vm258_vm0, %v5915_v34, %v5919_v3  ;;  %v5811_v62 = vrot.slane %v19010_v51, 2  ;;  %v5928_v18 = vsel %vm258_vm0, %v5923_v20, %v5927_v25  ;;  %19885 = vst [vmem:[#allocation118_spill] sm:$0xff] %v16551_v41  ;;  %v16566_v20 = vshll.u32 %v16193_v1, 16 }
 0x77c   :  { %7346 = vmatpush1.bf16.msra.mxu1 %v11885_v46  ;;  %v5812_v46 = vrot.slane %v19011_v55, 3 }
 0x77d   :  { %7636 = vmatprep.subr.bf16.mxu1 %v19824_v31  ;;  %19888 = vst [vmem:[#allocation124_spill] sm:$0xff] %v16566_v20 }
 0x77e   :  { %7179 = vmatmul.mubr.bf16.gmra.mrb[148].mxu1 %v16471_v57  ;;  %v16545_v3 = vor.u32 %v5812_v46, %v5811_v62  ;;  %v19022_v46 = vshrl.u32 %v16314_v11, 16 }
 0x77f   :  { %7186 = vmatprep.mubr.bf16.mxu1 %v5912_v54  ;;  %v19007_v54 = vshrl.u32 %v16300_v49, 16 }
 0x780   :  { %19883 = vst [vmem:[#allocation114_spill] sm:$0xff] %v16545_v3 }
 0x781   :  { %v5807_v34 = vrot.slane %v19007_v54, 2  ;;  %v16548_v54 = vshrl.u32 %v16178_v24, 16 }
 0x783   :  { %19884 = vst [vmem:[#allocation116_spill] sm:$0xff] %v16548_v54 }
 0x786   :  { %7187 = vmatmul.mubr.bf16.gmra.mrb[152].mxu1 %v16154_v44 }
 0x787   :  { %7194 = vmatprep.mubr.bf16.mxu1 %v5920_v42  ;;  %v5808_v42 = vrot.slane %v16463_v60, 3  ;;  %v16603_v60 = vshll.u32 %v16221_v21, 16 }
 0x789   :  { %v16541_v47 = vor.u32 %v5808_v42, %v5807_v34  ;;  %v5931_v34 = vor.u32 %v16548_v54, %v5927_v25  ;;  %v5935_v42 = vrot.slane %v16551_v41, 1  ;;  %v19026_v25 = vshrl.u32 %v16457_v8, 16  ;;  %19894 = vst [vmem:[#allocation46_spill] sm:$0xff] %v16603_v60 }
 0x78a   :  { %v6330_v41 = vrot.slane %v19022_v46, 2  ;;  %v19892_v46 = vrot.slane %v16457_v8, 2 }
 0x78b   :  { %19882 = vst [vmem:[#allocation112_spill] sm:$0xff] %v16541_v47  ;;  %v16556_v51 = vsel %vm665_vm6, %v16541_v47, %v16545_v3  ;;  %v5936_v62 = vsel %vm258_vm0, %v5931_v34, %v5935_v42  ;;  %v16571_v3 = vshll.u32 %v16314_v11, 16  ;;  %v19027_v34 = vshll.u32 %v16457_v8, 16 }
 0x78c   :  { %19886 = vst [vmem:[#allocation120_spill] sm:$0xff] %v16556_v51  ;;  %v5943_v47 = vrot.slane %v16566_v20, 1  ;;  %v6334_v54 = vrot.slane %v19026_v25, 2 }
 0x78d   :  { %19889 = vst [vmem:[#allocation87_spill] sm:$0xff] %v16571_v3  ;;  %v6335_v20 = vrot.slane %v19027_v34, 3 }
 0x78e   :  { %7195 = vmatmul.mubr.bf16.gmra.mrb[156].mxu1 %v16157_v56 }
 0x78f   :  { %7202 = vmatprep.mubr.bf16.mxu1 %v5928_v18  ;;  %v16563_v18 = vshrl.u32 %v16190_v32, 16  ;;  %v6336_v25 = vor.u32 %v6335_v20, %v6334_v54 }
 0x791   :  { %19887 = vst [vmem:[#allocation122_spill] sm:$0xff] %v16563_v18  ;;  %v5939_v55 = vor.u32 %v16563_v18, %v5935_v42  ;;  %v6331_v18 = vrot.slane %v16571_v3, 3 }
 0x793   :  { %v5944_v42 = vsel %vm258_vm0, %v5939_v55, %v5943_v47  ;;  %v16600_v55 = vshrl.u32 %v16193_v1, 16 }
 0x796   :  { %7203 = vmatmul.mubr.bf16.gmra.mrb[160].mxu1 %v16175_v19 }
 0x797   :  { %7210 = vmatprep.mubr.bf16.mxu1 %v5936_v62  ;;  %v16577_v62 = vrot.slane %v19824_v31, 2 }
 0x799   :  { %19890 = vst [vmem:[#allocation37_spill] sm:$0xff] %v16577_v62  ;;  %v16589_v51 = vor.u32 %v16331_v59, %v16577_v62  ;;  %v16597_v22 = vsel %vm605_vm3, %v19892_v46, %v16577_v62  ;;  %v5947_v59 = vor.u32 %v16600_v55, %v5943_v47  ;;  %v5951_v46 = vrot.slane %v16603_v60, 1 }
 0x79a   :  { %19893 = vst [vmem:[#allocation89_spill] sm:$0xff] %v16597_v22  ;;  %v16623_v47 = vshll.u32 %v16226_v48, 16 }
 0x79b   :  { %19891 = vst [vmem:[#allocation40_spill] sm:$0xff] %v16589_v51  ;;  %v16614_v0 = vsel %vm665_vm6, %v6336_v25, %v16589_v51  ;;  %v5952_v22 = vsel %vm258_vm0, %v5947_v59, %v5951_v46 }
 0x79c   :  { %19897 = vst [vmem:[#allocation52_spill] sm:$0xff] %v16614_v0  ;;  %19898 = vst [vmem:[#allocation44_spill] sm:$0xff] %v16623_v47 }
 0x79e   :  { %7211 = vmatmul.mubr.bf16.gmra.mrb[164].mxu1 %v16178_v24 }
 0x79f   :  { %7218 = vmatprep.mubr.bf16.mxu1 %v5944_v42  ;;  %v16605_v42 = vor.u32 %v6331_v18, %v6330_v41  ;;  %v16620_v41 = vshrl.u32 %v16221_v21, 16  ;;  %v5959_v18 = vrot.slane %v16623_v47, 1 }
 0x7a1   :  { %19895 = vst [vmem:[#allocation48_spill] sm:$0xff] %v16605_v42  ;;  %v16610_v34 = vsel %vm665_vm6, %v16605_v42, %v6336_v25  ;;  %v5955_v54 = vor.u32 %v16620_v41, %v5951_v46  ;;  %v16630_v25 = vshrl.u32 %v16226_v48, 16 }
 0x7a2   :  { %19896 = vst [vmem:[#allocation42_spill] sm:$0xff] %v16610_v34  ;;  %v16640_v34 = vshrl.u32 %v16238_v17, 16 }
 0x7a3   :  { %v5960_v20 = vsel %vm258_vm0, %v5955_v54, %v5959_v18  ;;  %19899 = vst [vmem:[#allocation56_spill] sm:$0xff] %v16630_v25  ;;  %v5963_v59 = vor.u32 %v16630_v25, %v5959_v18  ;;  %v16643_v54 = vshll.u32 %v16241_v53, 16 }
 0x7a4   :  { %19901 = vst [vmem:[#allocation11_spill] sm:$0xff] %v16640_v34 }
 0x7a5   :  { %19902 = vst [vmem:[#allocation13_spill] sm:$0xff] %v16643_v54  ;;  %v5975_v51 = vrot.slane %v16643_v54, 1 }
 0x7a6   :  { %7219 = vmatmul.mubr.bf16.gmra.mrb[168].mxu1 %v16190_v32 }
 0x7a7   :  { %7226 = vmatprep.mubr.bf16.mxu1 %v5952_v22  ;;  %v16633_v22 = vshll.u32 %v16238_v17, 16 }
 0x7a9   :  { %19900 = vst [vmem:[#allocation50_spill] sm:$0xff] %v16633_v22  ;;  %v5967_v0 = vrot.slane %v16633_v22, 1 }
 0x7ab   :  { %v5968_v46 = vsel %vm258_vm0, %v5963_v59, %v5967_v0  ;;  %v5971_v42 = vor.u32 %v16640_v34, %v5967_v0 }
 0x7ad   :  { %v5976_v59 = vsel %vm258_vm0, %v5971_v42, %v5975_v51 }
 0x7ae   :  { %7227 = vmatmul.mubr.bf16.gmra.mrb[172].mxu1 %v16193_v1 }
 0x7af   :  { %7234 = vmatprep.mubr.bf16.mxu1 %v5960_v20 }
 0x7b6   :  { %7235 = vmatmul.mubr.bf16.gmra.mrb[176].mxu1 %v16221_v21 }
 0x7b7   :  { %7242 = vmatprep.mubr.bf16.mxu1 %v5968_v46  ;;  %v16658_v46 = vshrl.u32 %v16241_v53, 16 }
 0x7b9   :  { %v16645_v20 = vpop.f32.mrb[144].mxu0  ;;  %19907 = vst [vmem:[#allocation75_spill] sm:$0xff] %v16658_v46 }
 0x7ba   :  { %19903 = vst [vmem:[#allocation74_spill] sm:$0xff] %v16645_v20  ;;  %v16648_v62 = vpop.f32.mrb[145].mxu0  ;;  %v16661_v20 = vshll.u32 %v16258_v29, 16 }
 0x7bb   :  { %19904 = vst [vmem:[#allocation38_spill] sm:$0xff] %v16648_v62  ;;  %v16650_v18 = vpop.f32.mrb[146].mxu0  ;;  %v5979_v62 = vor.u32 %v16658_v46, %v5975_v51 }
 0x7bc   :  { %19905 = vst [vmem:[#allocation10_spill] sm:$0xff] %v16650_v18  ;;  %v16653_v22 = vpop.f32.mrb[147].mxu0  ;;  %19908 = vst [vmem:[#allocation14_spill] sm:$0xff] %v16661_v20 }
 0x7bd   :  { %19906 = vst [vmem:[#allocation12_spill] sm:$0xff] %v16653_v22  ;;  %v5983_v22 = vrot.slane %v16661_v20, 1 }
 0x7be   :  { %7243 = vmatmul.mubr.bf16.gmra.mrb[180].mxu1 %v16226_v48 }
 0x7bf   :  { %7250 = vmatprep.mubr.bf16.mxu1 %v5976_v59  ;;  %v5984_v42 = vsel %vm258_vm0, %v5979_v62, %v5983_v22  ;;  %v16676_v59 = vshrl.u32 %v16258_v29, 16 }
 0x7c1   :  { %v16663_v0 = vpop.f32.mrb[148].mxu0  ;;  %19913 = vst [vmem:[#allocation16_spill] sm:$0xff] %v16676_v59 }
 0x7c2   :  { %19909 = vst [vmem:[#allocation15_spill] sm:$0xff] %v16663_v0  ;;  %v16666_v18 = vpop.f32.mrb[149].mxu0  ;;  %v16679_v0 = vshll.u32 %v16261_v58, 16 }
 0x7c3   :  { %19910 = vst [vmem:[#allocation76_spill] sm:$0xff] %v16666_v18  ;;  %v16668_v54 = vpop.f32.mrb[150].mxu0  ;;  %v5987_v18 = vor.u32 %v16676_v59, %v5983_v22 }
 0x7c4   :  { %19911 = vst [vmem:[#allocation17_spill] sm:$0xff] %v16668_v54  ;;  %v16671_v34 = vpop.f32.mrb[151].mxu0  ;;  %19914 = vst [vmem:[#allocation19_spill] sm:$0xff] %v16679_v0 }
 0x7c5   :  { %19912 = vst [vmem:[#allocation77_spill] sm:$0xff] %v16671_v34  ;;  %v5991_v34 = vrot.slane %v16679_v0, 1 }
 0x7c6   :  { %7251 = vmatmul.mubr.bf16.gmra.mrb[184].mxu1 %v16238_v17 }
 0x7c7   :  { %7258 = vmatprep.mubr.bf16.mxu1 %v5984_v42  ;;  %v5992_v62 = vsel %vm258_vm0, %v5987_v18, %v5991_v34  ;;  %v16694_v42 = vshrl.u32 %v16261_v58, 16 }
 0x7c9   :  { %v16681_v51 = vpop.f32.mrb[152].mxu0  ;;  %19919 = vst [vmem:[#allocation79_spill] sm:$0xff] %v16694_v42 }
 0x7ca   :  { %19915 = vst [vmem:[#allocation18_spill] sm:$0xff] %v16681_v51  ;;  %v16684_v54 = vpop.f32.mrb[153].mxu0  ;;  %v16697_v51 = vshll.u32 %v16273_v12, 16 }
 0x7cb   :  { %19916 = vst [vmem:[#allocation78_spill] sm:$0xff] %v16684_v54  ;;  %v16686_v20 = vpop.f32.mrb[154].mxu0  ;;  %v5995_v54 = vor.u32 %v16694_v42, %v5991_v34 }
 0x7cc   :  { %19917 = vst [vmem:[#allocation21_spill] sm:$0xff] %v16686_v20  ;;  %v16689_v46 = vpop.f32.mrb[155].mxu0  ;;  %19920 = vst [vmem:[#allocation80_spill] sm:$0xff] %v16697_v51 }
 0x7cd   :  { %19918 = vst [vmem:[#allocation23_spill] sm:$0xff] %v16689_v46  ;;  %v5999_v46 = vrot.slane %v16697_v51, 1 }
 0x7ce   :  { %7259 = vmatmul.mubr.bf16.gmra.mrb[188].mxu1 %v16241_v53 }
 0x7cf   :  { %7266 = vmatprep.mubr.bf16.mxu1 %v5992_v62  ;;  %v6000_v18 = vsel %vm258_vm0, %v5995_v54, %v5999_v46  ;;  %v16712_v62 = vshrl.u32 %v16273_v12, 16 }
 0x7d1   :  { %v16699_v22 = vpop.f32.mrb[156].mxu0  ;;  %19925 = vst [vmem:[#allocation81_spill] sm:$0xff] %v16712_v62 }
 0x7d2   :  { %19921 = vst [vmem:[#allocation22_spill] sm:$0xff] %v16699_v22  ;;  %v16702_v20 = vpop.f32.mrb[157].mxu0  ;;  %v16715_v22 = vshll.u32 %v16276_v7, 16 }
 0x7d3   :  { %19922 = vst [vmem:[#allocation24_spill] sm:$0xff] %v16702_v20  ;;  %v16704_v0 = vpop.f32.mrb[158].mxu0  ;;  %v6003_v20 = vor.u32 %v16712_v62, %v5999_v46 }
 0x7d4   :  { %19923 = vst [vmem:[#allocation25_spill] sm:$0xff] %v16704_v0  ;;  %v16707_v59 = vpop.f32.mrb[159].mxu0  ;;  %19926 = vst [vmem:[#allocation82_spill] sm:$0xff] %v16715_v22 }
 0x7d5   :  { %19924 = vst [vmem:[#allocation27_spill] sm:$0xff] %v16707_v59  ;;  %v6007_v59 = vrot.slane %v16715_v22, 1 }
 0x7d6   :  { %7267 = vmatmul.mubr.bf16.gmra.mrb[192].mxu1 %v16258_v29 }
 0x7d7   :  { %7274 = vmatprep.mubr.bf16.mxu1 %v6000_v18  ;;  %v6008_v54 = vsel %vm258_vm0, %v6003_v20, %v6007_v59  ;;  %v16730_v18 = vshrl.u32 %v16276_v7, 16 }
 0x7d9   :  { %v16717_v34 = vpop.f32.mrb[160].mxu0  ;;  %19931 = vst [vmem:[#allocation83_spill] sm:$0xff] %v16730_v18 }
 0x7da   :  { %19927 = vst [vmem:[#allocation26_spill] sm:$0xff] %v16717_v34  ;;  %v16720_v0 = vpop.f32.mrb[161].mxu0  ;;  %v16733_v34 = vshll.u32 %v16287_v15, 16 }
 0x7db   :  { %19928 = vst [vmem:[#allocation31_spill] sm:$0xff] %v16720_v0  ;;  %v16722_v51 = vpop.f32.mrb[162].mxu0  ;;  %v6011_v0 = vor.u32 %v16730_v18, %v6007_v59 }
 0x7dc   :  { %19929 = vst [vmem:[#allocation29_spill] sm:$0xff] %v16722_v51  ;;  %v16725_v42 = vpop.f32.mrb[163].mxu0  ;;  %19932 = vst [vmem:[#allocation36_spill] sm:$0xff] %v16733_v34 }
 0x7dd   :  { %19930 = vst [vmem:[#allocation32_spill] sm:$0xff] %v16725_v42  ;;  %v6015_v42 = vrot.slane %v16733_v34, 1 }
 0x7de   :  { %7275 = vmatmul.mubr.bf16.gmra.mrb[196].mxu1 %v16261_v58 }
 0x7df   :  { %7282 = vmatprep.mubr.bf16.mxu1 %v6008_v54  ;;  %v6016_v20 = vsel %vm258_vm0, %v6011_v0, %v6015_v42  ;;  %v16748_v54 = vshrl.u32 %v16287_v15, 16 }
 0x7e1   :  { %v16735_v46 = vpop.f32.mrb[164].mxu0  ;;  %19937 = vst [vmem:[#allocation39_spill] sm:$0xff] %v16748_v54 }
 0x7e2   :  { %19933 = vst [vmem:[#allocation30_spill] sm:$0xff] %v16735_v46  ;;  %v16738_v51 = vpop.f32.mrb[165].mxu0  ;;  %v16751_v46 = vshll.u32 %v16291_v5, 16 }
 0x7e3   :  { %19934 = vst [vmem:[#allocation35_spill] sm:$0xff] %v16738_v51  ;;  %v16740_v22 = vpop.f32.mrb[166].mxu0  ;;  %v6019_v51 = vor.u32 %v16748_v54, %v6015_v42 }
 0x7e4   :  { %19935 = vst [vmem:[#allocation85_spill] sm:$0xff] %v16740_v22  ;;  %v16743_v62 = vpop.f32.mrb[167].mxu0  ;;  %19938 = vst [vmem:[#allocation41_spill] sm:$0xff] %v16751_v46 }
 0x7e5   :  { %19936 = vst [vmem:[#allocation86_spill] sm:$0xff] %v16743_v62  ;;  %v6023_v62 = vrot.slane %v16751_v46, 1 }
 0x7e6   :  { %7283 = vmatmul.mubr.bf16.gmra.mrb[200].mxu1 %v16273_v12 }
 0x7e7   :  { %7290 = vmatprep.mubr.bf16.mxu1 %v6016_v20  ;;  %v6024_v0 = vsel %vm258_vm0, %v6019_v51, %v6023_v62  ;;  %v16766_v20 = vshrl.u32 %v16291_v5, 16 }
 0x7e9   :  { %v16753_v59 = vpop.f32.mrb[168].mxu0  ;;  %19943 = vst [vmem:[#allocation53_spill] sm:$0xff] %v16766_v20  ;;  %v6027_v42 = vor.u32 %v16766_v20, %v6023_v62 }
 0x7ea   :  { %19939 = vst [vmem:[#allocation88_spill] sm:$0xff] %v16753_v59  ;;  %v16756_v22 = vpop.f32.mrb[169].mxu0 }
 0x7eb   :  { %19940 = vst [vmem:[#allocation47_spill] sm:$0xff] %v16756_v22  ;;  %v16758_v34 = vpop.f32.mrb[170].mxu0 }
 0x7ec   :  { %19941 = vst [vmem:[#allocation49_spill] sm:$0xff] %v16758_v34  ;;  %v16761_v18 = vpop.f32.mrb[171].mxu0  ;;  %v6031_v34 = vrot.slane %v16571_v3, 1 }
 0x7ed   :  { %19942 = vst [vmem:[#allocation43_spill] sm:$0xff] %v16761_v18  ;;  %v5528_v18 = vrot.slane %v19860_v16, 1 }
 0x7ee   :  { %7291 = vmatmul.mubr.bf16.gmra.mrb[204].mxu1 %v16276_v7  ;;  %v6032_v51 = vsel %vm258_vm0, %v6027_v42, %v6031_v34  ;;  %v5532_v34 = vrot.slane %v15947_v40, 1 }
 0x7ef   :  { %7298 = vmatprep.mubr.bf16.mxu1 %v6024_v0 }
 0x7f1   :  { %v16768_v47 = vpop.f32.mrb[172].mxu0 }
 0x7f2   :  { %19944 = vst [vmem:[#allocation45_spill] sm:$0xff] %v16768_v47  ;;  %v16771_v59 = vpop.f32.mrb[173].mxu0  ;;  %v19949_v47 = vld [vmem:[#allocation101_spill] sm:$0xff] }
 0x7f3   :  { %19945 = vst [vmem:[#allocation57_spill] sm:$0xff] %v16771_v59  ;;  %v16773_v22 = vpop.f32.mrb[174].mxu0  ;;  %v5530_v54 = vrot.slane %v19949_v47, 1 }
 0x7f4   :  { %19946 = vst [vmem:[#allocation51_spill] sm:$0xff] %v16773_v22  ;;  %v16776_v46 = vpop.f32.mrb[175].mxu0 }
 0x7f5   :  { %19947 = vst [vmem:[#allocation61_spill] sm:$0xff] %v16776_v46  ;;  %v5531_v46 = vsel %vm444_vm2, %v5528_v18, %v5530_v54 }
 0x7f6   :  { %7299 = vmatmul.mubr.bf16.gmra.mrb[208].mxu1 %v16287_v15 }
 0x7f7   :  { %7306 = vmatprep.mubr.bf16.mxu1 %v6032_v51  ;;  %v11886_v51 = vld [vmem:[#allocation2 + $0x100] sm:$0xff]  }
 0x7f9   :  { %v16780_v0 = vpop.f32.mrb[176].mxu0 }
 0x7fa   :  { %19948 = vst [vmem:[#allocation55_spill] sm:$0xff] %v16780_v0  ;;  %v16784_v62 = vpop.f32.mrb[177].mxu0 }
 0x7fb   :  { %19950 = vst [vmem:[#allocation65_spill] sm:$0xff] %v16784_v62  ;;  %v16786_v59 = vpop.f32.mrb[178].mxu0  ;;  %v11887_v62 = vld [vmem:[#allocation2 + $0x108] sm:$0xff]  }
 0x7fc   :  { %19951 = vst [vmem:[#allocation59_spill] sm:$0xff] %v16786_v59  ;;  %v16788_v22 = vpop.f32.mrb[179].mxu0  ;;  %v5529_v59 = vsel %vm444_vm2, %v19874_v43, %v5528_v18 }
 0x7fd   :  { %19952 = vst [vmem:[#allocation70_spill] sm:$0xff] %v16788_v22  ;;  %v5533_v22 = vsel %vm444_vm2, %v5530_v54, %v5532_v34 }
 0x7fe   :  { %7307 = vmatmul.mubr.bf16.gmra.mrb[212].mxu1 %v16291_v5 }
 0x7ff   :  { %7347 = vmatprep.mubr.bf16.mxu1 %v5531_v46 }
 0x801   :  { %v16792_v3 = vpop.f32.mrb[180].mxu0 }
 0x802   :  { %19953 = vst [vmem:[#allocation63_spill] sm:$0xff] %v16792_v3  ;;  %v16795_v42 = vpop.f32.mrb[181].mxu0 }
 0x803   :  { %19954 = vst [vmem:[#allocation60_spill] sm:$0xff] %v16795_v42  ;;  %v16797_v0 = vpop.f32.mrb[182].mxu0  ;;  %v5534_v42 = vrot.slane %v15951_v6, 1 }
 0x804   :  { %19955 = vst [vmem:[#allocation54_spill] sm:$0xff] %v16797_v0  ;;  %v16799_v20 = vpop.f32.mrb[183].mxu0 }
 0x805   :  { %19956 = vst [vmem:[#allocation64_spill] sm:$0xff] %v16799_v20  ;;  %v5535_v54 = vsel %vm444_vm2, %v5532_v34, %v5534_v42  ;;  %v5538_v34 = vrot.slane %v15988_v38, 1 }
 0x806   :  { %7348 = vmatmul.mubr.bf16.vlgmr.msra.gmra.mrb[72].mxu1 %v5529_v59 }
 0x807   :  { %7355 = vmatprep.mubr.bf16.mxu1 %v5533_v22  ;;  %7637 = vmatpush1.bf16.msra.mxu1 %v11886_v51  ;;  %v5536_v51 = vrot.slane %v15965_v52, 1 }
 0x808   :  { %7638 = vmatprep.subr.bf16.mxu1 %v19824_v31 }
 0x809   :  { %v16805_v3 = vpop.f32.mrb[184].mxu0 }
 0x80a   :  { %19957 = vst [vmem:[#allocation58_spill] sm:$0xff] %v16805_v3  ;;  %v16808_v25 = vpop.f32.mrb[185].mxu0 }
 0x80b   :  { %19958 = vst [vmem:[#allocation68_spill] sm:$0xff] %v16808_v25  ;;  %7639 = vmatpush1.bf16.msra.mxu1 %v11887_v62  ;;  %v16810_v0 = vpop.f32.mrb[186].mxu0  ;;  %v5537_v62 = vsel %vm444_vm2, %v5534_v42, %v5536_v51 }
 0x80c   :  { %19959 = vst [vmem:[#allocation62_spill] sm:$0xff] %v16810_v0  ;;  %7640 = vmatprep.subr.bf16.mxu1 %v19824_v31  ;;  %v16813_v18 = vpop.f32.mrb[187].mxu0  ;;  %v11888_v0 = vld [vmem:[#allocation2 + $0x110] sm:$0xff]  }
 0x80d   :  { %19960 = vst [vmem:[#allocation84_spill] sm:$0xff] %v16813_v18 }
 0x80e   :  { %7356 = vmatmul.mubr.bf16.gmra.mrb[76].mxu1 %v5531_v46 }
 0x80f   :  { %7363 = vmatprep.mubr.bf16.mxu1 %v5535_v54  ;;  %7641 = vmatpush1.bf16.msra.mxu1 %v11888_v0  ;;  %v5540_v0 = vrot.slane %v15991_v4, 1 }
 0x810   :  { %7642 = vmatprep.subr.bf16.mxu1 %v19824_v31 }
 0x811   :  { %v16816_v59 = vpop.f32.mrb[188].mxu0 }
 0x812   :  { %19961 = vst [vmem:[#allocation66_spill] sm:$0xff] %v16816_v59  ;;  %v16819_v3 = vpop.f32.mrb[189].mxu0 }
 0x813   :  { %19962 = vst [vmem:[#allocation72_spill] sm:$0xff] %v16819_v3  ;;  %v16821_v20 = vpop.f32.mrb[190].mxu0 }
 0x814   :  { %19963 = vst [vmem:[#allocation90_spill] sm:$0xff] %v16821_v20  ;;  %v16823_v25 = vpop.f32.mrb[191].mxu0 }
 0x815   :  { %19964 = vst [vmem:[#allocation20_spill] sm:$0xff] %v16823_v25 }
 0x816   :  { %7364 = vmatmul.mubr.bf16.gmra.mrb[80].mxu1 %v5533_v22  ;;  %v5539_v22 = vsel %vm444_vm2, %v5536_v51, %v5538_v34  ;;  %v5542_v51 = vrot.slane %v16040_v28, 1 }
 0x817   :  { %7371 = vmatprep.mubr.bf16.mxu1 %v5537_v62 }
 0x819   :  { %v16826_v46 = vpop.f32.mrb[192].mxu0 }
 0x81a   :  { %19965 = vst [vmem:[#allocation119_spill] sm:$0xff] %v16826_v46  ;;  %v16830_v59 = vpop.f32.mrb[193].mxu0 }
 0x81b   :  { %19966 = vst [vmem:[#allocation125_spill] sm:$0xff] %v16830_v59  ;;  %v16832_v18 = vpop.f32.mrb[194].mxu0  ;;  %v5541_v59 = vsel %vm444_vm2, %v5538_v34, %v5540_v0 }
 0x81c   :  { %19967 = vst [vmem:[#allocation93_spill] sm:$0xff] %v16832_v18  ;;  %v16834_v3 = vpop.f32.mrb[195].mxu0  ;;  %v11889_v18 = vld [vmem:[#allocation2 + $0x118] sm:$0xff]  }
 0x81d   :  { %19968 = vst [vmem:[#allocation28_spill] sm:$0xff] %v16834_v3  ;;  %7643 = vmatpush1.bf16.msra.mxu1 %v11889_v18  ;;  %v5544_v18 = vrot.slane %v19849_v35, 1 }
 0x81e   :  { %7372 = vmatmul.mubr.bf16.gmra.mrb[84].mxu1 %v5535_v54  ;;  %7644 = vmatprep.subr.bf16.mxu1 %v19824_v31 }
 0x81f   :  { %7379 = vmatprep.mubr.bf16.mxu1 %v5539_v22 }
 0x821   :  { %v16837_v42 = vpop.f32.mrb[196].mxu0 }
 0x822   :  { %19969 = vst [vmem:[#allocation101_spill] sm:$0xff] %v16837_v42  ;;  %v16840_v20 = vpop.f32.mrb[197].mxu0 }
 0x823   :  { %19970 = vst [vmem:[#allocation130_spill] sm:$0xff] %v16840_v20  ;;  %v16842_v46 = vpop.f32.mrb[198].mxu0 }
 0x824   :  { %19971 = vst [vmem:[#allocation131_spill] sm:$0xff] %v16842_v46  ;;  %v16844_v25 = vpop.f32.mrb[199].mxu0 }
 0x825   :  { %19972 = vst [vmem:[#allocation132_spill] sm:$0xff] %v16844_v25 }
 0x826   :  { %7380 = vmatmul.mubr.bf16.gmra.mrb[88].mxu1 %v5537_v62  ;;  %v5543_v62 = vsel %vm444_vm2, %v5540_v0, %v5542_v51 }
 0x827   :  { %7387 = vmatprep.mubr.bf16.mxu1 %v5541_v59 }
 0x829   :  { %v16847_v54 = vpop.f32.mrb[200].mxu0 }
 0x82a   :  { %19973 = vst [vmem:[#allocation133_spill] sm:$0xff] %v16847_v54  ;;  %v16851_v42 = vpop.f32.mrb[201].mxu0 }
 0x82b   :  { %19974 = vst [vmem:[#allocation134_spill] sm:$0xff] %v16851_v42  ;;  %v16853_v3 = vpop.f32.mrb[202].mxu0  ;;  %v5545_v42 = vsel %vm444_vm2, %v5542_v51, %v5544_v18  ;;  %v5548_v51 = vrot.slane %v16096_v26, 1 }
 0x82c   :  { %19975 = vst [vmem:[#allocation135_spill] sm:$0xff] %v16853_v3  ;;  %v16855_v20 = vpop.f32.mrb[203].mxu0 }
 0x82d   :  { %19976 = vst [vmem:[#allocation136_spill] sm:$0xff] %v16855_v20 }
 0x82e   :  { %7388 = vmatmul.mubr.bf16.gmra.mrb[92].mxu1 %v5539_v22  ;;  %v5546_v22 = vrot.slane %v19852_v23, 1 }
 0x82f   :  { %7395 = vmatprep.mubr.bf16.mxu1 %v5543_v62 }
 0x831   :  { %v16858_v34 = vpop.f32.mrb[204].mxu0 }
 0x832   :  { %19977 = vst [vmem:[#allocation137_spill] sm:$0xff] %v16858_v34  ;;  %v16861_v46 = vpop.f32.mrb[205].mxu0 }
 0x833   :  { %19978 = vst [vmem:[#allocation138_spill] sm:$0xff] %v16861_v46  ;;  %v16863_v54 = vpop.f32.mrb[206].mxu0  ;;  %v5547_v46 = vsel %vm444_vm2, %v5544_v18, %v5546_v22  ;;  %v5550_v18 = vrot.slane %v16146_v45, 1 }
 0x834   :  { %19979 = vst [vmem:[#allocation139_spill] sm:$0xff] %v16863_v54  ;;  %v16865_v25 = vpop.f32.mrb[207].mxu0  ;;  %v11890_v54 = vld [vmem:[#allocation2 + $0x120] sm:$0xff]  }
 0x835   :  { %19980 = vst [vmem:[#allocation140_spill] sm:$0xff] %v16865_v25  ;;  %7645 = vmatpush1.bf16.msra.mxu1 %v11890_v54  ;;  %v5551_v54 = vsel %vm444_vm2, %v5548_v51, %v5550_v18 }
 0x836   :  { %7396 = vmatmul.mubr.bf16.gmra.mrb[96].mxu1 %v5541_v59  ;;  %7646 = vmatprep.subr.bf16.mxu1 %v19824_v31 }
 0x837   :  { %7403 = vmatprep.mubr.bf16.mxu1 %v5545_v42 }
 0x839   :  { %v16868_v3 = vpop.f32.mrb[208].mxu0 }
 0x83a   :  { %19981 = vst [vmem:[#allocation141_spill] sm:$0xff] %v16868_v3  ;;  %v16871_v0 = vpop.f32.mrb[209].mxu0 }
 0x83b   :  { %19982 = vst [vmem:[#allocation142_spill] sm:$0xff] %v16871_v0  ;;  %v16873_v20 = vpop.f32.mrb[210].mxu0 }
 0x83c   :  { %19983 = vst [vmem:[#allocation143_spill] sm:$0xff] %v16873_v20  ;;  %v16875_v34 = vpop.f32.mrb[211].mxu0  ;;  %v5552_v20 = vrot.slane %v16160_v9, 1 }
 0x83d   :  { %19984 = vst [vmem:[#allocation144_spill] sm:$0xff] %v16875_v34  ;;  %v5689_v34 = vrot.slane %v15947_v40, 2 }
 0x83e   :  { %7404 = vmatmul.mubr.bf16.gmra.mrb[100].mxu1 %v5543_v62  ;;  %v5549_v62 = vsel %vm444_vm2, %v5546_v22, %v5548_v51  ;;  %v5556_v51 = vrot.slane %v16215_v13, 1 }
 0x83f   :  { %7411 = vmatprep.mubr.bf16.mxu1 %v5547_v46 }
 0x841   :  { %v16878_v59 = vpop.f32.mrb[212].mxu0 }
 0x842   :  { %19985 = vst [vmem:[#allocation145_spill] sm:$0xff] %v16878_v59  ;;  %v16882_v3 = vpop.f32.mrb[213].mxu0  ;;  %v11891_v59 = vld [vmem:[#allocation2 + $0x128] sm:$0xff]  }
 0x843   :  { %19986 = vst [vmem:[#allocation146_spill] sm:$0xff] %v16882_v3  ;;  %v16884_v25 = vpop.f32.mrb[214].mxu0  ;;  %7647 = vmatpush1.bf16.msra.mxu1 %v11891_v59 }
 0x844   :  { %19987 = vst [vmem:[#allocation147_spill] sm:$0xff] %v16884_v25  ;;  %v16886_v0 = vpop.f32.mrb[215].mxu0  ;;  %7648 = vmatprep.subr.bf16.mxu1 %v19824_v31  ;;  %v5553_v25 = vsel %vm444_vm2, %v5550_v18, %v5552_v20 }
 0x845   :  { %19988 = vst [vmem:[#allocation148_spill] sm:$0xff] %v16886_v0  ;;  %v11895_v0 = vld [vmem:[#allocation2 + $0x148] sm:$0xff]  }
 0x846   :  { %7412 = vmatmul.mubr.bf16.gmra.mrb[104].mxu1 %v5545_v42  ;;  %v5554_v42 = vrot.slane %v16207_v36, 1 }
 0x847   :  { %7419 = vmatprep.mubr.bf16.mxu1 %v5549_v62 }
 0x848   :  { %v5555_v22 = vsel %vm444_vm2, %v5552_v20, %v5554_v42  ;;  %v5557_v59 = vsel %vm444_vm2, %v5554_v42, %v5556_v51  ;;  %v5560_v20 = vrot.slane %v16264_v10, 1 }
 0x84e   :  { %7420 = vmatmul.mubr.bf16.gmra.mrb[108].mxu1 %v5547_v46  ;;  %v11892_v46 = vld [vmem:[#allocation2 + $0x130] sm:$0xff]  }
 0x84f   :  { %7427 = vmatprep.mubr.bf16.mxu1 %v5551_v54  ;;  %7649 = vmatpush1.bf16.msra.mxu1 %v11892_v46 }
 0x850   :  { %7650 = vmatprep.subr.bf16.mxu1 %v19824_v31 }
 0x856   :  { %7428 = vmatmul.mubr.bf16.gmra.mrb[112].mxu1 %v5549_v62  ;;  %v5558_v62 = vrot.slane %v16252_v61, 1 }
 0x857   :  { %7435 = vmatprep.mubr.bf16.mxu1 %v5553_v25 }
 0x858   :  { %v5559_v18 = vsel %vm444_vm2, %v5556_v51, %v5558_v62  ;;  %v5561_v46 = vsel %vm444_vm2, %v5558_v62, %v5560_v20  ;;  %v6054_v62 = vrot.slane %v16154_v44, 1 }
 0x85e   :  { %7436 = vmatmul.mubr.bf16.gmra.mrb[116].mxu1 %v5551_v54  ;;  %v11893_v54 = vld [vmem:[#allocation2 + $0x138] sm:$0xff]  }
 0x85f   :  { %7443 = vmatprep.mubr.bf16.mxu1 %v5555_v22  ;;  %7651 = vmatpush1.bf16.msra.mxu1 %v11893_v54  ;;  %v11894_v54 = vld [vmem:[#allocation2 + $0x140] sm:$0xff]  }
 0x860   :  { %7652 = vmatprep.subr.bf16.mxu1 %v19824_v31 }
 0x863   :  { %7653 = vmatpush1.bf16.msra.mxu1 %v11894_v54  ;;  %v6058_v54 = vrot.slane %v16175_v19, 1 }
 0x864   :  { %7654 = vmatprep.subr.bf16.mxu1 %v19824_v31 }
 0x866   :  { %7444 = vmatmul.mubr.bf16.gmra.mrb[120].mxu1 %v5553_v25  ;;  %v5562_v25 = vrot.slane %v16300_v49, 1 }
 0x867   :  { %7451 = vmatprep.mubr.bf16.mxu1 %v5557_v59  ;;  %7655 = vmatpush1.bf16.msra.mxu1 %v11895_v0 }
 0x868   :  { %v5563_v42 = vsel %vm444_vm2, %v5560_v20, %v5562_v25  ;;  %7656 = vmatprep.subr.bf16.mxu1 %v19824_v31  ;;  %v11896_v20 = vld [vmem:[#allocation2 + $0x150] sm:$0xff]  }
 0x86b   :  { %7657 = vmatpush1.bf16.msra.mxu1 %v11896_v20 }
 0x86c   :  { %7658 = vmatprep.subr.bf16.mxu1 %v19824_v31 }
 0x86e   :  { %7452 = vmatmul.mubr.bf16.gmra.mrb[124].mxu1 %v5555_v22  ;;  %v5583_v22 = vrot.slane %v16304_v27, 1 }
 0x86f   :  { %7459 = vmatprep.mubr.bf16.mxu1 %v5559_v18 }
 0x870   :  { %v5584_v51 = vsel %vm444_vm2, %v5562_v25, %v5583_v22  ;;  %v6056_v25 = vrot.slane %v16157_v56, 1 }
 0x872   :  { %v6057_v0 = vsel %vm444_vm2, %v6054_v62, %v6056_v25  ;;  %v6059_v20 = vsel %vm444_vm2, %v6056_v25, %v6058_v54 }
 0x876   :  { %7460 = vmatmul.mubr.bf16.gmra.mrb[128].mxu1 %v5557_v59  ;;  %v6052_v59 = vrot.slane %v16471_v57, 1 }
 0x877   :  { %7467 = vmatprep.mubr.bf16.mxu1 %v5561_v46 }
 0x878   :  { %v6053_v22 = vsel %vm444_vm2, %v19874_v43, %v6052_v59  ;;  %v11900_v43 = vld [vmem:[#allocation2 + $0x170] sm:$0xff]  }
 0x87e   :  { %7468 = vmatmul.mubr.bf16.gmra.mrb[132].mxu1 %v5559_v18  ;;  %v6055_v18 = vsel %vm444_vm2, %v6052_v59, %v6054_v62  ;;  %v11901_v59 = vld [vmem:[#allocation2 + $0x178] sm:$0xff]   ;;  %v6060_v62 = vrot.slane %v16178_v24, 1 }
 0x87f   :  { %7475 = vmatprep.mubr.bf16.mxu1 %v5563_v42 }
 0x886   :  { %7476 = vmatmul.mubr.bf16.gmra.mrb[136].mxu1 %v5561_v46  ;;  %v11897_v46 = vld [vmem:[#allocation2 + $0x158] sm:$0xff]  }
 0x887   :  { %7483 = vmatprep.mubr.bf16.mxu1 %v5584_v51  ;;  %7659 = vmatpush1.bf16.msra.mxu1 %v11897_v46  ;;  %v11899_v51 = vld [vmem:[#allocation2 + $0x168] sm:$0xff]   ;;  %v6061_v46 = vsel %vm444_vm2, %v6058_v54, %v6060_v62  ;;  %v6068_v54 = vrot.slane %v16226_v48, 1 }
 0x888   :  { %7660 = vmatprep.subr.bf16.mxu1 %v19824_v31 }
 0x88e   :  { %7484 = vmatmul.mubr.bf16.gmra.mrb[140].mxu1 %v5563_v42  ;;  %v11898_v42 = vld [vmem:[#allocation2 + $0x160] sm:$0xff]  }
 0x88f   :  { %7491 = vmatprep.mubr.bf16.mxu1 %v6055_v18  ;;  %7661 = vmatpush1.bf16.msra.mxu1 %v11898_v42 }
 0x890   :  { %7662 = vmatprep.subr.bf16.mxu1 %v19824_v31 }
 0x893   :  { %7663 = vmatpush1.bf16.msra.mxu1 %v11899_v51  ;;  %v6066_v51 = vrot.slane %v16221_v21, 1 }
 0x894   :  { %7664 = vmatprep.subr.bf16.mxu1 %v19824_v31 }
 0x896   :  { %7492 = vmatmul.mubr.bf16.gmra.mrb[144].mxu1 %v6053_v22  ;;  %v6064_v22 = vrot.slane %v16193_v1, 1 }
 0x897   :  { %7499 = vmatprep.mubr.bf16.mxu1 %v6057_v0  ;;  %7665 = vmatpush1.bf16.msra.mxu1 %v11900_v43  ;;  %v6070_v43 = vrot.slane %v16238_v17, 1 }
 0x898   :  { %7666 = vmatprep.subr.bf16.mxu1 %v19824_v31 }
 0x89b   :  { %7667 = vmatpush1.bf16.msra.mxu1 %v11901_v59  ;;  %v6071_v59 = vsel %vm444_vm2, %v6068_v54, %v6070_v43 }
 0x89c   :  { %7957 = vmatprep.subr.bf16.mxu1 %v19824_v31 }
 0x89e   :  { %7500 = vmatmul.mubr.bf16.gmra.mrb[148].mxu1 %v6055_v18  ;;  %v6062_v18 = vrot.slane %v16190_v32, 1 }
 0x89f   :  { %7507 = vmatprep.mubr.bf16.mxu1 %v6059_v20 }
 0x8a0   :  { %v6063_v25 = vsel %vm444_vm2, %v6060_v62, %v6062_v18  ;;  %v6065_v42 = vsel %vm444_vm2, %v6062_v18, %v6064_v22  ;;  %v6072_v62 = vrot.slane %v16241_v53, 1  ;;  %v6074_v18 = vrot.slane %v16258_v29, 1 }
 0x8a6   :  { %7508 = vmatmul.mubr.bf16.gmra.mrb[152].mxu1 %v6057_v0  ;;  %v6067_v0 = vsel %vm444_vm2, %v6064_v22, %v6066_v51  ;;  %v6076_v22 = vrot.slane %v16261_v58, 1 }
 0x8a7   :  { %7515 = vmatprep.mubr.bf16.mxu1 %v6061_v46 }
 0x8ae   :  { %7516 = vmatmul.mubr.bf16.gmra.mrb[156].mxu1 %v6059_v20  ;;  %v6069_v20 = vsel %vm444_vm2, %v6066_v51, %v6068_v54  ;;  %v6078_v51 = vrot.slane %v16273_v12, 1  ;;  %v6080_v54 = vrot.slane %v16276_v7, 1 }
 0x8af   :  { %7523 = vmatprep.mubr.bf16.mxu1 %v6063_v25 }
 0x8b6   :  { %7524 = vmatmul.mubr.bf16.gmra.mrb[160].mxu1 %v6061_v46  ;;  %v6073_v46 = vsel %vm444_vm2, %v6070_v43, %v6072_v62  ;;  %v6082_v43 = vrot.slane %v16287_v15, 1 }
 0x8b7   :  { %7531 = vmatprep.mubr.bf16.mxu1 %v6065_v42 }
 0x8be   :  { %7532 = vmatmul.mubr.bf16.gmra.mrb[164].mxu1 %v6063_v25  ;;  %v6075_v25 = vsel %vm444_vm2, %v6072_v62, %v6074_v18  ;;  %v6084_v62 = vrot.slane %v16291_v5, 1 }
 0x8bf   :  { %7539 = vmatprep.mubr.bf16.mxu1 %v6067_v0 }
 0x8c6   :  { %7540 = vmatmul.mubr.bf16.gmra.mrb[168].mxu1 %v6065_v42  ;;  %v6077_v42 = vsel %vm444_vm2, %v6074_v18, %v6076_v22  ;;  %v6086_v18 = vrot.slane %v16314_v11, 1 }
 0x8c7   :  { %7547 = vmatprep.mubr.bf16.mxu1 %v6069_v20 }
 0x8ce   :  { %7548 = vmatmul.mubr.bf16.gmra.mrb[172].mxu1 %v6067_v0  ;;  %v6079_v0 = vsel %vm444_vm2, %v6076_v22, %v6078_v51  ;;  %v6107_v22 = vrot.slane %v16457_v8, 1  ;;  %v11902_v8 = vld [vmem:[#allocation2 + $0x180] sm:$0xff]  }
 0x8cf   :  { %7555 = vmatprep.mubr.bf16.mxu1 %v6071_v59 }
 0x8d6   :  { %7556 = vmatmul.mubr.bf16.gmra.mrb[176].mxu1 %v6069_v20  ;;  %v6081_v20 = vsel %vm444_vm2, %v6078_v51, %v6080_v54  ;;  %v5686_v51 = vrot.slane %v19860_v16, 2  ;;  %v19992_v16 = vld [vmem:[#allocation121_spill] sm:$0xff] }
 0x8d7   :  { %7563 = vmatprep.mubr.bf16.mxu1 %v6073_v46 }
 0x8de   :  { %7564 = vmatmul.mubr.bf16.gmra.mrb[180].mxu1 %v6071_v59  ;;  %v6083_v59 = vsel %vm444_vm2, %v6080_v54, %v6082_v43  ;;  %v19989_v54 = vld [vmem:[#allocation115_spill] sm:$0xff] }
 0x8df   :  { %7571 = vmatprep.mubr.bf16.mxu1 %v6075_v25 }
 0x8e6   :  { %7572 = vmatmul.mubr.bf16.gmra.mrb[184].mxu1 %v6073_v46  ;;  %v6085_v46 = vsel %vm444_vm2, %v6082_v43, %v6084_v62  ;;  %v19990_v43 = vld [vmem:[#allocation113_spill] sm:$0xff] }
 0x8e7   :  { %7579 = vmatprep.mubr.bf16.mxu1 %v6077_v42  ;;  %v5590_v3 = vrot.slane %v19990_v43, 2 }
 0x8ee   :  { %7580 = vmatmul.mubr.bf16.gmra.mrb[188].mxu1 %v6075_v25  ;;  %v6087_v25 = vsel %vm444_vm2, %v6084_v62, %v6086_v18 }
 0x8ef   :  { %7587 = vmatprep.mubr.bf16.mxu1 %v6079_v0 }
 0x8f6   :  { %7588 = vmatmul.mubr.bf16.gmra.mrb[192].mxu1 %v6077_v42  ;;  %v6108_v42 = vsel %vm444_vm2, %v6086_v18, %v6107_v22  ;;  %v5593_v22 = vrot.slane %v19992_v16, 1 }
 0x8f7   :  { %7595 = vmatprep.mubr.bf16.mxu1 %v6081_v20 }
 0x8fe   :  { %7596 = vmatmul.mubr.bf16.gmra.mrb[196].mxu1 %v6079_v0  ;;  %v5687_v0 = vrot.slane %v19949_v47, 2  ;;  %v19993_v47 = vld [vmem:[#allocation117_spill] sm:$0xff] }
 0x8ff   :  { %7603 = vmatprep.mubr.bf16.mxu1 %v6083_v59 }
 0x900   :  { %v16968_v43 = vsel %vm605_vm3, %v5687_v0, %v5689_v34 }
 0x906   :  { %7604 = vmatmul.mubr.bf16.gmra.mrb[200].mxu1 %v6081_v20  ;;  %v5589_v20 = vrot.slane %v19989_v54, 1 }
 0x907   :  { %7611 = vmatprep.mubr.bf16.mxu1 %v6085_v46 }
 0x908   :  { %v5591_v62 = vor.u32 %v5590_v3, %v5589_v20  ;;  %v11903_v3 = vld [vmem:[#allocation2 + $0x188] sm:$0xff]  }
 0x90e   :  { %7612 = vmatmul.mubr.bf16.gmra.mrb[204].mxu1 %v6083_v59  ;;  %v5688_v59 = vsel %vm605_vm3, %v5686_v51, %v5687_v0  ;;  %v19994_v51 = vld [vmem:[#allocation123_spill] sm:$0xff] }
 0x90f   :  { %7619 = vmatprep.mubr.bf16.mxu1 %v6087_v25  ;;  %v5598_v20 = vrot.slane %v19994_v51, 2 }
 0x916   :  { %7620 = vmatmul.mubr.bf16.gmra.mrb[208].mxu1 %v6085_v46  ;;  %v19991_v46 = vor.u32 %v16387_v14, %v16391_v63  ;;  %v5597_v14 = vrot.slane %v16099_v2, 1 }
 0x917   :  { %7627 = vmatprep.mubr.bf16.mxu1 %v6108_v42  ;;  %v5594_v42 = vrot.slane %v19993_v47, 2 }
 0x918   :  { %v5592_v18 = vsel %vm504_vm4, %v19991_v46, %v5591_v62  ;;  %v5601_v46 = vrot.slane %v16150_v30, 1 }
 0x919   :  { %v5595_v40 = vor.u32 %v5594_v42, %v5593_v22  ;;  %v11904_v42 = vld [vmem:[#allocation2 + $0x190] sm:$0xff]  }
 0x91b   :  { %v5596_v63 = vsel %vm504_vm4, %v5591_v62, %v5595_v40 }
 0x91e   :  { %7628 = vmatmul.mubr.bf16.gmra.mrb[212].mxu1 %v6087_v25  ;;  %v5691_v25 = vrot.slane %v15951_v6, 2 }
 0x91f   :  { %7668 = vmatprep.mubr.bf16.mxu1 %v5688_v59  ;;  %v5693_v59 = vrot.slane %v15965_v52, 2 }
 0x920   :  { %v16978_v0 = vsel %vm605_vm3, %v5689_v34, %v5691_v25 }
 0x921   :  { %v16986_v62 = vsel %vm605_vm3, %v5691_v25, %v5693_v59 }
 0x926   :  { %7669 = vmatmul.mubr.bf16.vlgmr.msra.gmra.mrb[72].mxu1 %v5592_v18  ;;  %v19995_v18 = vld [vmem:[#allocation127_spill] sm:$0xff] }
 0x927   :  { %7676 = vmatprep.mubr.bf16.mxu1 %v16968_v43  ;;  %7958 = vmatpush1.bf16.msra.mxu1 %v11902_v8  ;;  %v5599_v8 = vor.u32 %v5598_v20, %v5597_v14  ;;  %v5602_v22 = vrot.slane %v19995_v18, 2  ;;  %v5697_v20 = vrot.slane %v15991_v4, 2 }
 0x928   :  { %7959 = vmatprep.subr.bf16.mxu1 %v19824_v31 }
 0x929   :  { %v5600_v6 = vsel %vm504_vm4, %v5595_v40, %v5599_v8  ;;  %v5603_v34 = vor.u32 %v5602_v22, %v5601_v46  ;;  %v5605_v40 = vrot.slane %v16210_v33, 1  ;;  %v5610_v46 = vrot.slane %v16218_v50, 2  ;;  %v11905_v22 = vld [vmem:[#allocation2 + $0x198] sm:$0xff]  }
 0x92b   :  { %7960 = vmatpush1.bf16.msra.mxu1 %v11903_v3  ;;  %v5695_v3 = vrot.slane %v15988_v38, 2  ;;  %v5604_v52 = vsel %vm504_vm4, %v5599_v8, %v5603_v34  ;;  %v5609_v38 = vrot.slane %v16267_v39, 1 }
 0x92c   :  { %7961 = vmatprep.subr.bf16.mxu1 %v19824_v31 }
 0x92d   :  { %v16995_v14 = vsel %vm605_vm3, %v5693_v59, %v5695_v3  ;;  %v17003_v8 = vsel %vm605_vm3, %v5695_v3, %v5697_v20  ;;  %v5611_v59 = vor.u32 %v5610_v46, %v5609_v38  ;;  %v5701_v38 = vrot.slane %v19849_v35, 2  ;;  %v20005_v35 = vld [vmem:[#allocation71_spill] sm:$0xff] }
 0x92e   :  { %7677 = vmatmul.mubr.bf16.gmra.mrb[76].mxu1 %v5596_v63  ;;  %v5606_v63 = vrot.slane %v16163_v37, 2  ;;  %19996 = vst [vmem:[#allocation115_spill] sm:$0xff] %v16995_v14  ;;  %19997 = vst [vmem:[#allocation121_spill] sm:$0xff] %v17003_v8 }
 0x92f   :  { %7684 = vmatprep.mubr.bf16.mxu1 %v16978_v0  ;;  %7962 = vmatpush1.bf16.msra.mxu1 %v11904_v42  ;;  %v5699_v42 = vrot.slane %v16040_v28, 2  ;;  %v20001_v28 = vld [vmem:[#allocation69_spill] sm:$0xff] }
 0x930   :  { %7963 = vmatprep.subr.bf16.mxu1 %v19824_v31  ;;  %v5607_v25 = vor.u32 %v5606_v63, %v5605_v40  ;;  %v19999_v40 = vld [vmem:[#allocation129_spill] sm:$0xff] }
 0x931   :  { %v5614_v63 = vrot.slane %v19999_v40, 2  ;;  %v5622_v40 = vrot.slane %v20005_v35, 2 }
 0x932   :  { %v5612_v4 = vsel %vm504_vm4, %v5607_v25, %v5611_v59 }
 0x933   :  { %7964 = vmatpush1.bf16.msra.mxu1 %v11905_v22  ;;  %v5617_v22 = vrot.slane %v20001_v28, 1 }
 0x934   :  { %7965 = vmatprep.subr.bf16.mxu1 %v19824_v31 }
 0x936   :  { %7685 = vmatmul.mubr.bf16.gmra.mrb[80].mxu1 %v5600_v6  ;;  %v5608_v6 = vsel %vm504_vm4, %v5603_v34, %v5607_v25  ;;  %v19998_v34 = vld [vmem:[#allocation128_spill] sm:$0xff]  ;;  %v17020_v25 = vsel %vm605_vm3, %v5699_v42, %v5701_v38 }
 0x937   :  { %7692 = vmatprep.mubr.bf16.mxu1 %v16986_v62  ;;  %20003 = vst [vmem:[#allocation123_spill] sm:$0xff] %v17020_v25 }
 0x93e   :  { %7693 = vmatmul.mubr.bf16.gmra.mrb[84].mxu1 %v5604_v52  ;;  %v5613_v52 = vrot.slane %v19998_v34, 1 }
 0x93f   :  { %7700 = vmatprep.mubr.bf16.mxu1 %v16995_v14 }
 0x940   :  { %v5615_v3 = vor.u32 %v5614_v63, %v5613_v52  ;;  %v20004_v52 = vld [vmem:[#allocation9_spill] sm:$0xff] }
 0x941   :  { %v5621_v63 = vrot.slane %v20004_v52, 1 }
 0x942   :  { %v5616_v46 = vsel %vm504_vm4, %v5611_v59, %v5615_v3 }
 0x946   :  { %7701 = vmatmul.mubr.bf16.gmra.mrb[88].mxu1 %v5608_v6  ;;  %v17012_v6 = vsel %vm605_vm3, %v5697_v20, %v5699_v42  ;;  %v5703_v20 = vrot.slane %v19852_v23, 2  ;;  %v5623_v42 = vor.u32 %v5622_v40, %v5621_v63  ;;  %v5707_v40 = vrot.slane %v16146_v45, 2 }
 0x947   :  { %7708 = vmatprep.mubr.bf16.mxu1 %v17003_v8  ;;  %20000 = vst [vmem:[#allocation117_spill] sm:$0xff] %v17012_v6  ;;  %v20002_v8 = vld [vmem:[#allocation67_spill] sm:$0xff] }
 0x948   :  { %v5618_v14 = vrot.slane %v20002_v8, 2  ;;  %v17028_v59 = vsel %vm605_vm3, %v5701_v38, %v5703_v20 }
 0x949   :  { %20006 = vst [vmem:[#allocation127_spill] sm:$0xff] %v17028_v59 }
 0x94e   :  { %7709 = vmatmul.mubr.bf16.gmra.mrb[92].mxu1 %v5612_v4  ;;  %v5619_v4 = vor.u32 %v5618_v14, %v5617_v22  ;;  %v20007_v14 = vld [vmem:[#allocation8_spill] sm:$0xff]  ;;  %v20008_v22 = vld [vmem:[#allocation73_spill] sm:$0xff] }
 0x94f   :  { %7716 = vmatprep.mubr.bf16.mxu1 %v17012_v6  ;;  %v5626_v52 = vrot.slane %v20008_v22, 2 }
 0x950   :  { %v5620_v6 = vsel %vm504_vm4, %v5615_v3, %v5619_v4  ;;  %v5624_v23 = vsel %vm504_vm4, %v5619_v4, %v5623_v42  ;;  %v5625_v3 = vrot.slane %v20007_v14, 1 }
 0x952   :  { %v5627_v38 = vor.u32 %v5626_v52, %v5625_v3  ;;  %v20013_v52 = vld [vmem:[#allocation94_spill] sm:$0xff]  ;;  %v20014_v3 = vld [vmem:[#allocation92_spill] sm:$0xff] }
 0x954   :  { %v5628_v63 = vsel %vm504_vm4, %v5623_v42, %v5627_v38  ;;  %v5633_v42 = vrot.slane %v20013_v52, 1 }
 0x956   :  { %7717 = vmatmul.mubr.bf16.gmra.mrb[96].mxu1 %v5616_v46  ;;  %v11906_v46 = vld [vmem:[#allocation2 + $0x1a0] sm:$0xff]  }
 0x957   :  { %7724 = vmatprep.mubr.bf16.mxu1 %v17020_v25  ;;  %7966 = vmatpush1.bf16.msra.mxu1 %v11906_v46  ;;  %v5705_v25 = vrot.slane %v16096_v26, 2  ;;  %v20010_v26 = vld [vmem:[#allocation91_spill] sm:$0xff] }
 0x958   :  { %7967 = vmatprep.subr.bf16.mxu1 %v19824_v31  ;;  %v5629_v46 = vrot.slane %v20010_v26, 1  ;;  %v5634_v26 = vrot.slane %v20014_v3, 2 }
 0x959   :  { %v17045_v4 = vsel %vm605_vm3, %v5705_v25, %v5707_v40 }
 0x95a   :  { %20012 = vst [vmem:[#allocation69_spill] sm:$0xff] %v17045_v4 }
 0x95e   :  { %7725 = vmatmul.mubr.bf16.gmra.mrb[100].mxu1 %v5620_v6  ;;  %v17037_v6 = vsel %vm605_vm3, %v5703_v20, %v5705_v25  ;;  %v5635_v25 = vor.u32 %v5634_v26, %v5633_v42  ;;  %v20019_v26 = vld [vmem:[#allocation97_spill] sm:$0xff]  ;;  %v20020_v42 = vld [vmem:[#allocation96_spill] sm:$0xff] }
 0x95f   :  { %7732 = vmatprep.mubr.bf16.mxu1 %v17028_v59  ;;  %20009 = vst [vmem:[#allocation128_spill] sm:$0xff] %v17037_v6  ;;  %v20011_v59 = vld [vmem:[#allocation33_spill] sm:$0xff] }
 0x960   :  { %v5630_v35 = vrot.slane %v20011_v59, 2 }
 0x962   :  { %v5631_v20 = vor.u32 %v5630_v35, %v5629_v46  ;;  %v5711_v35 = vrot.slane %v16207_v36, 2 }
 0x964   :  { %v5632_v45 = vsel %vm504_vm4, %v5627_v38, %v5631_v20  ;;  %v5636_v46 = vsel %vm504_vm4, %v5631_v20, %v5635_v25  ;;  %v5641_v20 = vrot.slane %v20019_v26, 1 }
 0x966   :  { %7733 = vmatmul.mubr.bf16.gmra.mrb[104].mxu1 %v5624_v23  ;;  %v11907_v23 = vld [vmem:[#allocation2 + $0x1a8] sm:$0xff]  }
 0x967   :  { %7740 = vmatprep.mubr.bf16.mxu1 %v17037_v6  ;;  %7968 = vmatpush1.bf16.msra.mxu1 %v11907_v23  ;;  %v5709_v6 = vrot.slane %v16160_v9, 2  ;;  %v20016_v9 = vld [vmem:[#allocation34_spill] sm:$0xff] }
 0x968   :  { %7969 = vmatprep.subr.bf16.mxu1 %v19824_v31  ;;  %v5637_v23 = vrot.slane %v20016_v9, 1  ;;  %v5642_v9 = vrot.slane %v20020_v42, 2 }
 0x969   :  { %v17062_v38 = vsel %vm605_vm3, %v5709_v6, %v5711_v35 }
 0x96a   :  { %20018 = vst [vmem:[#allocation8_spill] sm:$0xff] %v17062_v38 }
 0x96e   :  { %7741 = vmatmul.mubr.bf16.gmra.mrb[108].mxu1 %v5628_v63  ;;  %v17054_v63 = vsel %vm605_vm3, %v5707_v40, %v5709_v6  ;;  %v5643_v6 = vor.u32 %v5642_v9, %v5641_v20  ;;  %v20025_v9 = vld [vmem:[#allocation103_spill] sm:$0xff]  ;;  %v20026_v20 = vld [vmem:[#allocation100_spill] sm:$0xff] }
 0x96f   :  { %7748 = vmatprep.mubr.bf16.mxu1 %v17045_v4  ;;  %20015 = vst [vmem:[#allocation67_spill] sm:$0xff] %v17054_v63  ;;  %v20017_v4 = vld [vmem:[#allocation95_spill] sm:$0xff] }
 0x970   :  { %v5638_v59 = vrot.slane %v20017_v4, 2 }
 0x972   :  { %v5639_v40 = vor.u32 %v5638_v59, %v5637_v23  ;;  %v5715_v59 = vrot.slane %v16252_v61, 2 }
 0x974   :  { %v5640_v36 = vsel %vm504_vm4, %v5635_v25, %v5639_v40  ;;  %v5644_v23 = vsel %vm504_vm4, %v5639_v40, %v5643_v6  ;;  %v5649_v40 = vrot.slane %v20025_v9, 1 }
 0x976   :  { %7749 = vmatmul.mubr.bf16.gmra.mrb[112].mxu1 %v5632_v45  ;;  %v11908_v45 = vld [vmem:[#allocation2 + $0x1b0] sm:$0xff]  }
 0x977   :  { %7756 = vmatprep.mubr.bf16.mxu1 %v17054_v63  ;;  %7970 = vmatpush1.bf16.msra.mxu1 %v11908_v45  ;;  %v5713_v63 = vrot.slane %v16215_v13, 2  ;;  %v20022_v13 = vld [vmem:[#allocation99_spill] sm:$0xff] }
 0x978   :  { %7971 = vmatprep.subr.bf16.mxu1 %v19824_v31  ;;  %v5645_v45 = vrot.slane %v20022_v13, 1  ;;  %v5650_v13 = vrot.slane %v20026_v20, 2 }
 0x979   :  { %v17079_v25 = vsel %vm605_vm3, %v5713_v63, %v5715_v59 }
 0x97a   :  { %20024 = vst [vmem:[#allocation94_spill] sm:$0xff] %v17079_v25 }
 0x97e   :  { %7757 = vmatmul.mubr.bf16.gmra.mrb[116].mxu1 %v5636_v46  ;;  %v17071_v46 = vsel %vm605_vm3, %v5711_v35, %v5713_v63  ;;  %v5651_v63 = vor.u32 %v5650_v13, %v5649_v40  ;;  %v20031_v40 = vshrl.u32 %v16304_v27, 16 }
 0x97f   :  { %7764 = vmatprep.mubr.bf16.mxu1 %v17062_v38  ;;  %20021 = vst [vmem:[#allocation73_spill] sm:$0xff] %v17071_v46  ;;  %v20023_v38 = vld [vmem:[#allocation98_spill] sm:$0xff] }
 0x980   :  { %v5646_v4 = vrot.slane %v20023_v38, 2 }
 0x982   :  { %v5647_v35 = vor.u32 %v5646_v4, %v5645_v45  ;;  %v5719_v4 = vrot.slane %v16300_v49, 2 }
 0x984   :  { %v5648_v61 = vsel %vm504_vm4, %v5643_v6, %v5647_v35  ;;  %v5652_v45 = vsel %vm504_vm4, %v5647_v35, %v5651_v63  ;;  %v20032_v35 = vshll.u32 %v16304_v27, 16 }
 0x986   :  { %7765 = vmatmul.mubr.bf16.gmra.mrb[120].mxu1 %v5640_v36  ;;  %v11909_v36 = vld [vmem:[#allocation2 + $0x1b8] sm:$0xff]  }
 0x987   :  { %7772 = vmatprep.mubr.bf16.mxu1 %v17071_v46  ;;  %7972 = vmatpush1.bf16.msra.mxu1 %v11909_v36  ;;  %v5717_v46 = vrot.slane %v16264_v10, 2  ;;  %v20028_v10 = vshrl.u32 %v16300_v49, 16  ;;  %v5665_v49 = vrot.slane %v20032_v35, 2 }
 0x988   :  { %7973 = vmatprep.subr.bf16.mxu1 %v19824_v31 }
 0x989   :  { %v5655_v36 = vrot.slane %v20028_v10, 1  ;;  %v17097_v9 = vsel %vm605_vm3, %v5717_v46, %v5719_v4  ;;  %v11911_v10 = vld [vmem:[#allocation2 + $0x1c8] sm:$0xff]  }
 0x98a   :  { %20030 = vst [vmem:[#allocation97_spill] sm:$0xff] %v17097_v9 }
 0x98e   :  { %7773 = vmatmul.mubr.bf16.gmra.mrb[124].mxu1 %v5644_v23  ;;  %v17088_v23 = vsel %vm605_vm3, %v5715_v59, %v5717_v46  ;;  %v11910_v46 = vld [vmem:[#allocation2 + $0x1c0] sm:$0xff]  }
 0x98f   :  { %7780 = vmatprep.mubr.bf16.mxu1 %v17079_v25  ;;  %20027 = vst [vmem:[#allocation92_spill] sm:$0xff] %v17088_v23  ;;  %v20029_v25 = vld [vmem:[#allocation104_spill] sm:$0xff]  ;;  %7974 = vmatpush1.bf16.msra.mxu1 %v11910_v46 }
 0x990   :  { %v5656_v6 = vrot.slane %v20029_v25, 2  ;;  %7975 = vmatprep.subr.bf16.mxu1 %v19824_v31 }
 0x992   :  { %v5657_v59 = vor.u32 %v5656_v6, %v5655_v36  ;;  %v6211_v36 = vrot.slane %v16154_v44, 2  ;;  %v20034_v6 = vshrl.u32 %v16471_v57, 16  ;;  %v11912_v44 = vld [vmem:[#allocation2 + $0x1d0] sm:$0xff]  }
 0x993   :  { %7976 = vmatpush1.bf16.msra.mxu1 %v11911_v10  ;;  %v20039_v10 = vld [vmem:[#allocation107_spill] sm:$0xff] }
 0x994   :  { %v5658_v13 = vsel %vm504_vm4, %v5651_v63, %v5657_v59  ;;  %v6210_v63 = vrot.slane %v16471_v57, 2  ;;  %7977 = vmatprep.subr.bf16.mxu1 %v19824_v31 }
 0x996   :  { %7781 = vmatmul.mubr.bf16.gmra.mrb[128].mxu1 %v5648_v61  ;;  %v19084_v61 = vrot.slane %v16304_v27, 2 }
 0x997   :  { %7788 = vmatprep.mubr.bf16.mxu1 %v17088_v23  ;;  %v5662_v23 = vrot.slane %v20031_v40, 1  ;;  %7978 = vmatpush1.bf16.msra.mxu1 %v11912_v44 }
 0x998   :  { %v17109_v25 = vsel %vm605_vm3, %v5719_v4, %v19084_v61  ;;  %v20035_v4 = vshll.u32 %v16471_v57, 16  ;;  %v20036_v61 = vld [vmem:[#allocation106_spill] sm:$0xff]  ;;  %7979 = vmatprep.subr.bf16.mxu1 %v19824_v31 }
 0x999   :  { %20033 = vst [vmem:[#allocation96_spill] sm:$0xff] %v17109_v25  ;;  %v6113_v27 = vrot.slane %v20036_v61, 1 }
 0x99a   :  { %v6111_v35 = vrot.slane %v20035_v4, 2 }
 0x99e   :  { %7789 = vmatmul.mubr.bf16.gmra.mrb[132].mxu1 %v5652_v45  ;;  %v5666_v45 = vor.u32 %v5665_v49, %v5662_v23  ;;  %v6212_v49 = vsel %vm605_vm3, %v6210_v63, %v6211_v36 }
 0x99f   :  { %7796 = vmatprep.mubr.bf16.mxu1 %v17097_v9 }
 0x9a0   :  { %v5667_v40 = vsel %vm504_vm4, %v5657_v59, %v5666_v45  ;;  %v6213_v59 = vrot.slane %v16157_v56, 2  ;;  %v20038_v45 = vld [vmem:[#allocation108_spill] sm:$0xff]  ;;  %v11915_v56 = vld [vmem:[#allocation2 + $0x1e8] sm:$0xff]  }
 0x9a1   :  { %v6117_v4 = vrot.slane %v20038_v45, 1 }
 0x9a2   :  { %v17130_v63 = vsel %vm605_vm3, %v6211_v36, %v6213_v59 }
 0x9a3   :  { %20040 = vst [vmem:[#allocation98_spill] sm:$0xff] %v17130_v63 }
 0x9a6   :  { %7797 = vmatmul.mubr.bf16.gmra.mrb[136].mxu1 %v5658_v13  ;;  %v6110_v13 = vrot.slane %v20034_v6, 1  ;;  %v11913_v6 = vld [vmem:[#allocation2 + $0x1d8] sm:$0xff]  }
 0x9a7   :  { %7804 = vmatprep.mubr.bf16.mxu1 %v17109_v25  ;;  %v20037_v25 = vld [vmem:[#allocation105_spill] sm:$0xff]  ;;  %7980 = vmatpush1.bf16.msra.mxu1 %v11913_v6 }
 0x9a8   :  { %v6114_v23 = vrot.slane %v20037_v25, 2  ;;  %v6112_v46 = vor.u32 %v6111_v35, %v6110_v13  ;;  %7981 = vmatprep.subr.bf16.mxu1 %v19824_v31  ;;  %v6215_v35 = vrot.slane %v16175_v19, 2  ;;  %v11917_v19 = vld [vmem:[#allocation2 + $0x1f8] sm:$0xff]  }
 0x9aa   :  { %v6115_v9 = vor.u32 %v6114_v23, %v6113_v27  ;;  %v11914_v27 = vld [vmem:[#allocation2 + $0x1e0] sm:$0xff]   ;;  %v17140_v36 = vsel %vm605_vm3, %v6213_v59, %v6215_v35 }
 0x9ab   :  { %7982 = vmatpush1.bf16.msra.mxu1 %v11914_v27  ;;  %20043 = vst [vmem:[#allocation100_spill] sm:$0xff] %v17140_v36  ;;  %v20044_v27 = vld [vmem:[#allocation116_spill] sm:$0xff] }
 0x9ac   :  { %v6116_v57 = vsel %vm504_vm4, %v6112_v46, %v6115_v9  ;;  %7983 = vmatprep.subr.bf16.mxu1 %v19824_v31  ;;  %v20042_v46 = vld [vmem:[#allocation109_spill] sm:$0xff] }
 0x9ad   :  { %v6122_v6 = vrot.slane %v20042_v46, 2 }
 0x9ae   :  { %7805 = vmatmul.mubr.bf16.gmra.mrb[140].mxu1 %v5667_v40  ;;  %v6118_v40 = vrot.slane %v20039_v10, 2 }
 0x9af   :  { %7812 = vmatprep.mubr.bf16.mxu1 %v6212_v49  ;;  %v20041_v49 = vld [vmem:[#allocation110_spill] sm:$0xff]  ;;  %7984 = vmatpush1.bf16.msra.mxu1 %v11915_v56  ;;  %v6125_v56 = vrot.slane %v20044_v27, 1 }
 0x9b0   :  { %v6119_v13 = vor.u32 %v6118_v40, %v6117_v4  ;;  %v6121_v44 = vrot.slane %v20041_v49, 1  ;;  %7985 = vmatprep.subr.bf16.mxu1 %v19824_v31  ;;  %v6217_v40 = vrot.slane %v16178_v24, 2 }
 0x9b2   :  { %v6120_v23 = vsel %vm504_vm4, %v6115_v9, %v6119_v13  ;;  %v6123_v4 = vor.u32 %v6122_v6, %v6121_v44  ;;  %v17150_v59 = vsel %vm605_vm3, %v6215_v35, %v6217_v40  ;;  %v6219_v6 = vrot.slane %v16190_v32, 2  ;;  %v20049_v32 = vld [vmem:[#allocation124_spill] sm:$0xff] }
 0x9b3   :  { %v6221_v35 = vrot.slane %v16193_v1, 2  ;;  %v6138_v1 = vrot.slane %v16603_v60, 2 }
 0x9b4   :  { %v6124_v9 = vsel %vm504_vm4, %v6119_v13, %v6123_v4  ;;  %v17158_v27 = vsel %vm605_vm3, %v6217_v40, %v6219_v6  ;;  %v6223_v40 = vrot.slane %v16221_v21, 2  ;;  %v20053_v21 = vld [vmem:[#allocation44_spill] sm:$0xff] }
 0x9b5   :  { %20048 = vst [vmem:[#allocation104_spill] sm:$0xff] %v17158_v27 }
 0x9b6   :  { %7813 = vmatmul.mubr.bf16.gmra.mrb[144].mxu1 %v6116_v57  ;;  %v11916_v57 = vld [vmem:[#allocation2 + $0x1f0] sm:$0xff]  }
 0x9b7   :  { %7820 = vmatprep.mubr.bf16.mxu1 %v17130_v63  ;;  %7986 = vmatpush1.bf16.msra.mxu1 %v11916_v57  ;;  %v20046_v57 = vld [vmem:[#allocation122_spill] sm:$0xff] }
 0x9b8   :  { %7987 = vmatprep.subr.bf16.mxu1 %v19824_v31  ;;  %v6129_v31 = vrot.slane %v20046_v57, 1 }
 0x9bb   :  { %7988 = vmatpush1.bf16.msra.mxu1 %v11917_v19 }
 0x9be   :  { %7821 = vmatmul.mubr.bf16.gmra.mrb[148].mxu1 %v6120_v23  ;;  %v20045_v23 = vld [vmem:[#allocation111_spill] sm:$0xff] }
 0x9bf   :  { %7828 = vmatprep.mubr.bf16.mxu1 %v17140_v36  ;;  %v6126_v63 = vrot.slane %v20045_v23, 2  ;;  %v20047_v36 = vld [vmem:[#allocation118_spill] sm:$0xff] }
 0x9c0   :  { %v6130_v13 = vrot.slane %v20047_v36, 2 }
 0x9c1   :  { %v6127_v44 = vor.u32 %v6126_v63, %v6125_v56  ;;  %v6133_v63 = vrot.slane %v16600_v55, 1  ;;  %v6134_v56 = vrot.slane %v20049_v32, 2 }
 0x9c2   :  { %v6131_v19 = vor.u32 %v6130_v13, %v6129_v31  ;;  %v6137_v31 = vrot.slane %v16620_v41, 1 }
 0x9c3   :  { %v6128_v24 = vsel %vm504_vm4, %v6123_v4, %v6127_v44  ;;  %v17166_v4 = vsel %vm605_vm3, %v6219_v6, %v6221_v35  ;;  %v6225_v6 = vrot.slane %v16226_v48, 2  ;;  %v20056_v48 = vld [vmem:[#allocation50_spill] sm:$0xff] }
 0x9c4   :  { %20050 = vst [vmem:[#allocation106_spill] sm:$0xff] %v17166_v4  ;;  %v6139_v13 = vor.u32 %v6138_v1, %v6137_v31  ;;  %v20055_v31 = vld [vmem:[#allocation11_spill] sm:$0xff]  ;;  %v6146_v60 = vrot.slane %v20056_v48, 2 }
 0x9c5   :  { %v6145_v1 = vrot.slane %v20055_v31, 1 }
 0x9c6   :  { %7829 = vmatmul.mubr.bf16.gmra.mrb[152].mxu1 %v6124_v9  ;;  %v6132_v9 = vsel %vm504_vm4, %v6127_v44, %v6131_v19  ;;  %v17174_v44 = vsel %vm605_vm3, %v6221_v35, %v6223_v40  ;;  %v6227_v35 = vrot.slane %v16238_v17, 2  ;;  %v20059_v17 = vld [vmem:[#allocation13_spill] sm:$0xff] }
 0x9c7   :  { %7836 = vmatprep.mubr.bf16.mxu1 %v17150_v59  ;;  %20051 = vst [vmem:[#allocation105_spill] sm:$0xff] %v17174_v44 }
 0x9ce   :  { %7837 = vmatmul.mubr.bf16.gmra.mrb[156].mxu1 %v6128_v24  ;;  %v6135_v24 = vor.u32 %v6134_v56, %v6133_v63  ;;  %v20052_v63 = vld [vmem:[#allocation56_spill] sm:$0xff] }
 0x9cf   :  { %7844 = vmatprep.mubr.bf16.mxu1 %v17158_v27  ;;  %v6141_v56 = vrot.slane %v20052_v63, 1 }
 0x9d0   :  { %v6136_v27 = vsel %vm504_vm4, %v6131_v19, %v6135_v24  ;;  %v17182_v19 = vsel %vm605_vm3, %v6223_v40, %v6225_v6  ;;  %v6229_v40 = vrot.slane %v16241_v53, 2  ;;  %v20062_v53 = vld [vmem:[#allocation14_spill] sm:$0xff] }
 0x9d1   :  { %20054 = vst [vmem:[#allocation108_spill] sm:$0xff] %v17182_v19  ;;  %v6154_v48 = vrot.slane %v20062_v53, 2 }
 0x9d6   :  { %7845 = vmatmul.mubr.bf16.gmra.mrb[160].mxu1 %v6132_v9  ;;  %v6140_v9 = vsel %vm504_vm4, %v6135_v24, %v6139_v13  ;;  %v17190_v24 = vsel %vm605_vm3, %v6225_v6, %v6227_v35  ;;  %v6231_v6 = vrot.slane %v16258_v29, 2  ;;  %v20065_v29 = vld [vmem:[#allocation19_spill] sm:$0xff] }
 0x9d7   :  { %7852 = vmatprep.mubr.bf16.mxu1 %v17166_v4  ;;  %v6142_v4 = vrot.slane %v20053_v21, 2  ;;  %20057 = vst [vmem:[#allocation107_spill] sm:$0xff] %v17190_v24  ;;  %v6150_v21 = vrot.slane %v20059_v17, 2  ;;  %v6158_v17 = vrot.slane %v20065_v29, 2 }
 0x9de   :  { %7853 = vmatmul.mubr.bf16.gmra.mrb[164].mxu1 %v6136_v27  ;;  %v6143_v27 = vor.u32 %v6142_v4, %v6141_v56  ;;  %v20058_v4 = vld [vmem:[#allocation75_spill] sm:$0xff] }
 0x9df   :  { %7860 = vmatprep.mubr.bf16.mxu1 %v17174_v44  ;;  %v6149_v56 = vrot.slane %v20058_v4, 1 }
 0x9e0   :  { %v6144_v44 = vsel %vm504_vm4, %v6139_v13, %v6143_v27  ;;  %v17198_v13 = vsel %vm605_vm3, %v6227_v35, %v6229_v40  ;;  %v6233_v35 = vrot.slane %v16261_v58, 2  ;;  %v20068_v58 = vld [vmem:[#allocation80_spill] sm:$0xff] }
 0x9e1   :  { %20060 = vst [vmem:[#allocation110_spill] sm:$0xff] %v17198_v13  ;;  %v6162_v53 = vrot.slane %v20068_v58, 2 }
 0x9e6   :  { %7861 = vmatmul.mubr.bf16.gmra.mrb[168].mxu1 %v6140_v9  ;;  %v6147_v9 = vor.u32 %v6146_v60, %v6145_v1  ;;  %v20061_v60 = vld [vmem:[#allocation16_spill] sm:$0xff] }
 0x9e7   :  { %7868 = vmatprep.mubr.bf16.mxu1 %v17182_v19  ;;  %v6153_v1 = vrot.slane %v20061_v60, 1 }
 0x9e8   :  { %v6148_v19 = vsel %vm504_vm4, %v6143_v27, %v6147_v9  ;;  %v17206_v27 = vsel %vm605_vm3, %v6229_v40, %v6231_v6  ;;  %v6235_v40 = vrot.slane %v16273_v12, 2  ;;  %v20071_v12 = vld [vmem:[#allocation82_spill] sm:$0xff] }
 0x9e9   :  { %20063 = vst [vmem:[#allocation109_spill] sm:$0xff] %v17206_v27  ;;  %v6166_v29 = vrot.slane %v20071_v12, 2 }
 0x9ee   :  { %7869 = vmatmul.mubr.bf16.gmra.mrb[172].mxu1 %v6144_v44  ;;  %v6151_v44 = vor.u32 %v6150_v21, %v6149_v56  ;;  %v20064_v21 = vld [vmem:[#allocation79_spill] sm:$0xff] }
 0x9ef   :  { %7876 = vmatprep.mubr.bf16.mxu1 %v17190_v24  ;;  %v6157_v56 = vrot.slane %v20064_v21, 1 }
 0x9f0   :  { %v6152_v24 = vsel %vm504_vm4, %v6147_v9, %v6151_v44  ;;  %v17214_v9 = vsel %vm605_vm3, %v6231_v6, %v6233_v35  ;;  %v6237_v6 = vrot.slane %v16276_v7, 2  ;;  %v20074_v7 = vld [vmem:[#allocation36_spill] sm:$0xff] }
 0x9f1   :  { %20066 = vst [vmem:[#allocation111_spill] sm:$0xff] %v17214_v9  ;;  %v6170_v58 = vrot.slane %v20074_v7, 2 }
 0x9f6   :  { %7877 = vmatmul.mubr.bf16.gmra.mrb[176].mxu1 %v6148_v19  ;;  %v6155_v19 = vor.u32 %v6154_v48, %v6153_v1  ;;  %v20067_v48 = vld [vmem:[#allocation81_spill] sm:$0xff] }
 0x9f7   :  { %7884 = vmatprep.mubr.bf16.mxu1 %v17198_v13  ;;  %v6161_v1 = vrot.slane %v20067_v48, 1 }
 0x9f8   :  { %v6156_v13 = vsel %vm504_vm4, %v6151_v44, %v6155_v19  ;;  %v17222_v44 = vsel %vm605_vm3, %v6233_v35, %v6235_v40  ;;  %v6239_v35 = vrot.slane %v16287_v15, 2  ;;  %v20077_v15 = vld [vmem:[#allocation41_spill] sm:$0xff] }
 0x9f9   :  { %20069 = vst [vmem:[#allocation122_spill] sm:$0xff] %v17222_v44  ;;  %v6174_v12 = vrot.slane %v20077_v15, 2 }
 0x9fe   :  { %7885 = vmatmul.mubr.bf16.gmra.mrb[180].mxu1 %v6152_v24  ;;  %v6159_v24 = vor.u32 %v6158_v17, %v6157_v56  ;;  %v20070_v17 = vld [vmem:[#allocation83_spill] sm:$0xff] }
 0x9ff   :  { %7892 = vmatprep.mubr.bf16.mxu1 %v17206_v27  ;;  %v6165_v56 = vrot.slane %v20070_v17, 1 }
 0xa00   :  { %v6160_v27 = vsel %vm504_vm4, %v6155_v19, %v6159_v24  ;;  %v17230_v19 = vsel %vm605_vm3, %v6235_v40, %v6237_v6  ;;  %v6241_v40 = vrot.slane %v16291_v5, 2 }
 0xa01   :  { %20072 = vst [vmem:[#allocation118_spill] sm:$0xff] %v17230_v19 }
 0xa06   :  { %7893 = vmatmul.mubr.bf16.gmra.mrb[184].mxu1 %v6156_v13  ;;  %v6163_v13 = vor.u32 %v6162_v53, %v6161_v1  ;;  %v20073_v53 = vld [vmem:[#allocation39_spill] sm:$0xff] }
 0xa07   :  { %7900 = vmatprep.mubr.bf16.mxu1 %v17214_v9  ;;  %v6169_v1 = vrot.slane %v20073_v53, 1 }
 0xa08   :  { %v6164_v9 = vsel %vm504_vm4, %v6159_v24, %v6163_v13  ;;  %v17238_v24 = vsel %vm605_vm3, %v6237_v6, %v6239_v35  ;;  %v6243_v6 = vrot.slane %v16314_v11, 2 }
 0xa09   :  { %20075 = vst [vmem:[#allocation124_spill] sm:$0xff] %v17238_v24 }
 0xa0e   :  { %7901 = vmatmul.mubr.bf16.gmra.mrb[188].mxu1 %v6160_v27  ;;  %v6167_v27 = vor.u32 %v6166_v29, %v6165_v56  ;;  %v20076_v29 = vld [vmem:[#allocation53_spill] sm:$0xff] }
 0xa0f   :  { %7908 = vmatprep.mubr.bf16.mxu1 %v17222_v44  ;;  %v6173_v56 = vrot.slane %v20076_v29, 1  ;;  %v17255_v29 = vsel %vm605_vm3, %v6241_v40, %v6243_v6 }
 0xa10   :  { %v6168_v44 = vsel %vm504_vm4, %v6163_v13, %v6167_v27  ;;  %v17246_v13 = vsel %vm605_vm3, %v6239_v35, %v6241_v40  ;;  %v20085_v40 = vld [vmem:[#allocation113_spill] sm:$0xff] }
 0xa11   :  { %20078 = vst [vmem:[#allocation56_spill] sm:$0xff] %v17246_v13 }
 0xa16   :  { %7909 = vmatmul.mubr.bf16.gmra.mrb[192].mxu1 %v6164_v9  ;;  %v6171_v9 = vor.u32 %v6170_v58, %v6169_v1  ;;  %v20079_v58 = vshrl.u32 %v16314_v11, 16  ;;  %v20080_v1 = vld [vmem:[#allocation87_spill] sm:$0xff]  ;;  %v5744_v11 = vrot.slane %v19989_v54, 2 }
 0xa17   :  { %7916 = vmatprep.mubr.bf16.mxu1 %v17230_v19 }
 0xa18   :  { %v6172_v19 = vsel %vm504_vm4, %v6167_v27, %v6171_v9  ;;  %v6179_v5 = vrot.slane %v20079_v58, 1  ;;  %v6180_v27 = vrot.slane %v20080_v1, 2  ;;  %v5745_v1 = vrot.slane %v20085_v40, 3 }
 0xa19   :  { %v5755_v40 = vrot.slane %v16150_v30, 2  ;;  %v5763_v30 = vrot.slane %v16267_v39, 2 }
 0xa1e   :  { %7917 = vmatmul.mubr.bf16.gmra.mrb[196].mxu1 %v6168_v44  ;;  %v6175_v44 = vor.u32 %v6174_v12, %v6173_v56 }
 0xa1f   :  { %7924 = vmatprep.mubr.bf16.mxu1 %v17238_v24 }
 0xa20   :  { %v6176_v24 = vsel %vm504_vm4, %v6171_v9, %v6175_v44 }
 0xa26   :  { %7925 = vmatmul.mubr.bf16.gmra.mrb[200].mxu1 %v6172_v19  ;;  %v6181_v19 = vor.u32 %v6180_v27, %v6179_v5  ;;  %v5747_v5 = vrot.slane %v19992_v16, 2  ;;  %v11918_v27 = vld [vmem:[%s18503_s9] sm:$0xff]   ;;  %v5752_v16 = vrot.slane %v19994_v51, 3  ;;  %v5760_v51 = vrot.slane %v16163_v37, 3 }
 0xa27   :  { %7932 = vmatprep.mubr.bf16.mxu1 %v17246_v13  ;;  %v20081_v13 = vld [vmem:[#allocation102_spill] sm:$0xff]  ;;  %10603 = vmatprep.subr.bf16.mxu1 %v11918_v27 }
 0xa28   :  { %v6182_v35 = vsel %vm504_vm4, %v6175_v44, %v6181_v19  ;;  %v20082_v12 = vshrl.u32 %v20081_v13, 16  ;;  %v20083_v15 = vshll.u32 %v20081_v13, 16  ;;  %v20084_v58 = vrot.slane %v20081_v13, 2 }
 0xa29   :  { %v5748_v44 = vrot.slane %v19993_v47, 3 }
 0xa2a   :  { %v6186_v56 = vrot.slane %v20082_v12, 1  ;;  %v6189_v9 = vrot.slane %v20083_v15, 2  ;;  %v5746_v15 = vor.u32 %v5745_v1, %v5744_v11  ;;  %v5751_v12 = vrot.slane %v16099_v2, 2 }
 0xa2b   :  { %v5759_v2 = vrot.slane %v16210_v33, 2  ;;  %v20086_v33 = vld [vmem:[#allocation115_spill] sm:$0xff] }
 0xa2c   :  { %v6190_v54 = vor.u32 %v6189_v9, %v6186_v56  ;;  %v5753_v47 = vor.u32 %v5752_v16, %v5751_v12  ;;  %v5756_v56 = vrot.slane %v19995_v18, 3  ;;  %v5764_v18 = vrot.slane %v16218_v50, 3  ;;  %v20090_v12 = vld [vmem:[#allocation9_spill] sm:$0xff]  ;;  %v20091_v16 = vld [vmem:[#allocation71_spill] sm:$0xff] }
 0xa2d   :  { %v5761_v11 = vor.u32 %v5760_v51, %v5759_v2  ;;  %v20094_v51 = vld [vmem:[#allocation91_spill] sm:$0xff] }
 0xa2e   :  { %7933 = vmatmul.mubr.bf16.gmra.mrb[204].mxu1 %v6176_v24  ;;  %v17267_v24 = vsel %vm605_vm3, %v6243_v6, %v20084_v58  ;;  %v6191_v13 = vsel %vm504_vm4, %v6181_v19, %v6190_v54  ;;  %v5757_v19 = vor.u32 %v5756_v56, %v5755_v40  ;;  %v5765_v1 = vor.u32 %v5764_v18, %v5763_v30  ;;  %v20092_v40 = vld [vmem:[#allocation123_spill] sm:$0xff]  ;;  %v11920_v18 = vld [vmem:[%s18503_s9 + $0x10] sm:$0xff]  }
 0xa2f   :  { %7940 = vmatprep.mubr.bf16.mxu1 %v17255_v29  ;;  %v5771_v54 = vrot.slane %v20001_v28, 2  ;;  %v5779_v28 = vrot.slane %v20007_v14, 2 }
 0xa30   :  { %v5758_v9 = vsel %vm665_vm6, %v5753_v47, %v5757_v19  ;;  %v5766_v37 = vsel %vm665_vm6, %v5761_v11, %v5765_v1 }
 0xa36   :  { %7941 = vmatmul.mubr.bf16.gmra.mrb[208].mxu1 %v6182_v35  ;;  %v5749_v35 = vor.u32 %v5748_v44, %v5747_v5  ;;  %v20087_v5 = vld [vmem:[#allocation129_spill] sm:$0xff] }
 0xa37   :  { %7948 = vmatprep.mubr.bf16.mxu1 %v17267_v24  ;;  %v5768_v44 = vrot.slane %v20087_v5, 3 }
 0xa38   :  { %v5750_v6 = vsel %vm665_vm6, %v5746_v15, %v5749_v35  ;;  %v5754_v58 = vsel %vm665_vm6, %v5749_v35, %v5753_v47  ;;  %v5772_v15 = vrot.slane %v20002_v8, 3  ;;  %v5776_v47 = vrot.slane %v20091_v16, 3 }
 0xa39   :  { %v5780_v8 = vrot.slane %v20008_v22, 3 }
 0xa3a   :  { %v5773_v35 = vor.u32 %v5772_v15, %v5771_v54  ;;  %v20100_v15 = vld [vmem:[#allocation67_spill] sm:$0xff] }
 0xa3e   :  { %7949 = vmatmul.mubr.bf16.gmra.mrb[212].mxu1 %v6191_v13  ;;  %v20089_v13 = vld [vmem:[#allocation117_spill] sm:$0xff] }
 0xa3f   :  { %7989 = vmatprep.mubr.bf16.mxu1 %v5750_v6 }
 0xa46   :  { %7990 = vmatmul.mubr.bf16.vlgmr.msra.gmra.mrb[72].mxu1 %v16968_v43  ;;  %v5762_v43 = vsel %vm665_vm6, %v5757_v19, %v5761_v11  ;;  %v5781_v19 = vor.u32 %v5780_v8, %v5779_v28  ;;  %v5783_v11 = vrot.slane %v20094_v51, 2  ;;  %v5804_v8 = vrot.slane %v20026_v20, 3  ;;  %v20107_v51 = vld [vmem:[#allocation112_spill] sm:$0xff] }
 0xa47   :  { %7997 = vmatprep.mubr.bf16.mxu1 %v5754_v58  ;;  %10604 = vmatpush3.bf16.msra.mxu1 %v11918_v27  ;;  %v20088_v27 = vld [vmem:[#allocation121_spill] sm:$0xff]  ;;  %v6267_v20 = vrot.slane %v20036_v61, 2 }
 0xa4e   :  { %7998 = vmatmul.mubr.bf16.gmra.mrb[76].mxu1 %v16978_v0  ;;  %v11919_v0 = vld [vmem:[%s18503_s9 + $0x8] sm:$0xff]  }
 0xa4f   :  { %8005 = vmatprep.mubr.bf16.mxu1 %v5758_v9  ;;  %10605 = vmatprep.subr.bf16.mxu1 %v11919_v0  ;;  %v20093_v9 = vld [vmem:[#allocation127_spill] sm:$0xff] }
 0xa50   :  { %10606 = vmatpush3.bf16.msra.mxu1 %v11919_v0  ;;  %v20096_v0 = vld [vmem:[#allocation128_spill] sm:$0xff] }
 0xa51   :  { %10607 = vmatprep.subr.bf16.mxu1 %v11920_v18 }
 0xa54   :  { %10608 = vmatpush3.bf16.msra.mxu1 %v11920_v18  ;;  %v20110_v18 = vld [vmem:[#allocation96_spill] sm:$0xff] }
 0xa56   :  { %8006 = vmatmul.mubr.bf16.gmra.mrb[80].mxu1 %v16986_v62  ;;  %v5767_v62 = vrot.slane %v19998_v34, 2  ;;  %v5775_v34 = vrot.slane %v20090_v12, 2 }
 0xa57   :  { %8013 = vmatprep.mubr.bf16.mxu1 %v5762_v43  ;;  %v20095_v43 = vld [vmem:[#allocation33_spill] sm:$0xff] }
 0xa58   :  { %v5769_v39 = vor.u32 %v5768_v44, %v5767_v62  ;;  %v5777_v58 = vor.u32 %v5776_v47, %v5775_v34  ;;  %v5784_v30 = vrot.slane %v20095_v43, 3  ;;  %v20097_v62 = vld [vmem:[#allocation69_spill] sm:$0xff]  ;;  %v20098_v44 = vld [vmem:[#allocation34_spill] sm:$0xff]  ;;  %v20102_v34 = vld [vmem:[#allocation99_spill] sm:$0xff]  ;;  %v5800_v47 = vrot.slane %v20023_v38, 3 }
 0xa59   :  { %v5799_v16 = vrot.slane %v20102_v34, 2  ;;  %v20108_v43 = vld [vmem:[#allocation97_spill] sm:$0xff]  ;;  %v20118_v34 = vld [vmem:[#allocation100_spill] sm:$0xff] }
 0xa5a   :  { %v5770_v50 = vsel %vm665_vm6, %v5765_v1, %v5769_v39  ;;  %v5774_v6 = vsel %vm665_vm6, %v5769_v39, %v5773_v35  ;;  %v5778_v56 = vsel %vm665_vm6, %v5773_v35, %v5777_v58  ;;  %v5782_v2 = vsel %vm665_vm6, %v5777_v58, %v5781_v19 }
 0xa5b   :  { %v5785_v14 = vor.u32 %v5784_v30, %v5783_v11  ;;  %v5787_v1 = vrot.slane %v20013_v52, 2  ;;  %v5791_v39 = vrot.slane %v20098_v44, 2  ;;  %v5795_v52 = vrot.slane %v20019_v26, 2  ;;  %v20109_v30 = vld [vmem:[#allocation120_spill] sm:$0xff]  ;;  %v20113_v44 = vld [vmem:[#allocation37_spill] sm:$0xff] }
 0xa5c   :  { %v5801_v58 = vor.u32 %v5800_v47, %v5799_v16  ;;  %v6283_v16 = vrot.slane %v20047_v36, 3  ;;  %v11924_v47 = vld [vmem:[%s18503_s9 + $0x30] sm:$0xff]   ;;  %v6286_v36 = vrot.slane %v16600_v55, 2 }
 0xa5d   :  { %v5786_v22 = vsel %vm665_vm6, %v5781_v19, %v5785_v14 }
 0xa5e   :  { %8014 = vmatmul.mubr.bf16.gmra.mrb[84].mxu1 %v20086_v33  ;;  %v5788_v33 = vrot.slane %v20014_v3, 3  ;;  %v5796_v3 = vrot.slane %v20020_v42, 3  ;;  %v20104_v42 = vld [vmem:[#allocation103_spill] sm:$0xff] }
 0xa5f   :  { %8021 = vmatprep.mubr.bf16.mxu1 %v5766_v37  ;;  %v5803_v28 = vrot.slane %v20104_v42, 2 }
 0xa60   :  { %v5789_v37 = vor.u32 %v5788_v33, %v5787_v1  ;;  %v6268_v1 = vrot.slane %v20037_v25, 3  ;;  %v6270_v33 = vrot.slane %v20038_v45, 2  ;;  %v6274_v45 = vrot.slane %v20041_v49, 2 }
 0xa61   :  { %v5805_v19 = vor.u32 %v5804_v8, %v5803_v28  ;;  %v6290_v28 = vrot.slane %v16620_v41, 2  ;;  %v20120_v8 = vld [vmem:[#allocation46_spill] sm:$0xff]  ;;  %v6298_v41 = vrot.slane %v20055_v31, 2  ;;  %v6306_v31 = vrot.slane %v20061_v60, 2 }
 0xa62   :  { %v5790_v5 = vsel %vm665_vm6, %v5785_v14, %v5789_v37  ;;  %v20111_v14 = vld [vmem:[#allocation40_spill] sm:$0xff]  ;;  %v6269_v61 = vor.u32 %v6268_v1, %v6267_v20 }
 0xa63   :  { %v5806_v38 = vsel %vm665_vm6, %v5801_v58, %v5805_v19  ;;  %v5810_v11 = vsel %vm665_vm6, %v5805_v19, %v20107_v51  ;;  %v6291_v19 = vrot.slane %v20120_v8, 3  ;;  %v20136_v8 = vld [vmem:[#allocation10_spill] sm:$0xff] }
 0xa66   :  { %8022 = vmatmul.mubr.bf16.gmra.mrb[88].mxu1 %v20088_v27  ;;  %v20099_v27 = vld [vmem:[#allocation95_spill] sm:$0xff] }
 0xa67   :  { %8029 = vmatprep.mubr.bf16.mxu1 %v5770_v50  ;;  %v5792_v50 = vrot.slane %v20099_v27, 3 }
 0xa69   :  { %v5793_v54 = vor.u32 %v5792_v50, %v5791_v39  ;;  %v20114_v39 = vld [vmem:[#allocation126_spill] sm:$0xff] }
 0xa6a   :  { %v20115_v27 = vrot.slane %v20114_v39, 2  ;;  %v20129_v39 = vld [vmem:[#allocation110_spill] sm:$0xff] }
 0xa6b   :  { %v5794_v35 = vsel %vm665_vm6, %v5789_v37, %v5793_v54  ;;  %v6271_v37 = vrot.slane %v20039_v10, 3  ;;  %v6275_v10 = vrot.slane %v20042_v46, 3  ;;  %v6282_v46 = vrot.slane %v20046_v57, 2 }
 0xa6c   :  { %v5742_v50 = vsel %vm605_vm3, %v20115_v27, %v20113_v44 }
 0xa6e   :  { %8030 = vmatmul.mubr.bf16.gmra.mrb[92].mxu1 %v20089_v13  ;;  %v5797_v13 = vor.u32 %v5796_v3, %v5795_v52  ;;  %v20117_v52 = vld [vmem:[#allocation116_spill] sm:$0xff] }
 0xa6f   :  { %8037 = vmatprep.mubr.bf16.mxu1 %v5774_v6  ;;  %v20101_v6 = vld [vmem:[#allocation8_spill] sm:$0xff]  ;;  %v6278_v3 = vrot.slane %v20117_v52, 2  ;;  %v20131_v52 = vld [vmem:[#allocation38_spill] sm:$0xff] }
 0xa70   :  { %v5798_v12 = vsel %vm665_vm6, %v5793_v54, %v5797_v13  ;;  %v5802_v26 = vsel %vm665_vm6, %v5797_v13, %v5801_v58  ;;  %v6276_v54 = vor.u32 %v6275_v10, %v6274_v45  ;;  %v6279_v13 = vrot.slane %v20045_v23, 3  ;;  %v11925_v58 = vld [vmem:[%s18503_s9 + $0x38] sm:$0xff]   ;;  %v17414_v45 = vld [vmem:[%s18502_s8] ss:$0 sm:$0xff] }
 0xa71   :  { %v6284_v23 = vor.u32 %v6283_v16, %v6282_v46  ;;  %v6314_v46 = vrot.slane %v20067_v48, 2  ;;  %v20134_v16 = vld [vmem:[#allocation80_spill] sm:$0xff] }
 0xa76   :  { %8038 = vmatmul.mubr.bf16.gmra.mrb[96].mxu1 %v20092_v40  ;;  %v11921_v40 = vld [vmem:[%s18503_s9 + $0x18] sm:$0xff]  }
 0xa77   :  { %8045 = vmatprep.mubr.bf16.mxu1 %v5778_v56  ;;  %v20103_v56 = vld [vmem:[#allocation73_spill] sm:$0xff]  ;;  %10609 = vmatprep.subr.bf16.mxu1 %v11921_v40 }
 0xa78   :  { %10610 = vmatpush3.bf16.msra.mxu1 %v11921_v40  ;;  %v6287_v40 = vrot.slane %v20049_v32, 3  ;;  %v6294_v32 = vrot.slane %v20052_v63, 2  ;;  %v6302_v63 = vrot.slane %v20058_v4, 2  ;;  %v6310_v4 = vrot.slane %v20064_v21, 2 }
 0xa7e   :  { %8046 = vmatmul.mubr.bf16.gmra.mrb[100].mxu1 %v20093_v9  ;;  %v20105_v9 = vld [vmem:[#allocation94_spill] sm:$0xff] }
 0xa7f   :  { %8053 = vmatprep.mubr.bf16.mxu1 %v5782_v2  ;;  %v20106_v2 = vld [vmem:[#allocation92_spill] sm:$0xff] }
 0xa86   :  { %8054 = vmatmul.mubr.bf16.gmra.mrb[104].mxu1 %v20096_v0  ;;  %v20112_v0 = vld [vmem:[#allocation114_spill] sm:$0xff] }
 0xa87   :  { %8061 = vmatprep.mubr.bf16.mxu1 %v5786_v22  ;;  %v5818_v22 = vsel %vm665_vm6, %v20112_v0, %v20111_v14  ;;  %v20125_v14 = vld [vmem:[#allocation108_spill] sm:$0xff] }
 0xa8e   :  { %8062 = vmatmul.mubr.bf16.gmra.mrb[108].mxu1 %v20097_v62  ;;  %v11922_v62 = vld [vmem:[%s18503_s9 + $0x20] sm:$0xff]  }
 0xa8f   :  { %8069 = vmatprep.mubr.bf16.mxu1 %v5790_v5  ;;  %10611 = vmatprep.subr.bf16.mxu1 %v11922_v62  ;;  %v6272_v5 = vor.u32 %v6271_v37, %v6270_v33  ;;  %v20127_v37 = vld [vmem:[#allocation107_spill] sm:$0xff] }
 0xa90   :  { %10612 = vmatpush3.bf16.msra.mxu1 %v11922_v62 }
 0xa91   :  { %v6273_v25 = vsel %vm665_vm6, %v6269_v61, %v6272_v5  ;;  %v20128_v61 = vld [vmem:[#allocation14_spill] sm:$0xff] }
 0xa96   :  { %8070 = vmatmul.mubr.bf16.gmra.mrb[112].mxu1 %v20100_v15  ;;  %v20116_v15 = vld [vmem:[#allocation98_spill] sm:$0xff] }
 0xa97   :  { %8077 = vmatprep.mubr.bf16.mxu1 %v5794_v35  ;;  %v6277_v35 = vsel %vm665_vm6, %v6272_v5, %v6276_v54  ;;  %v6307_v5 = vrot.slane %v20128_v61, 3 }
 0xa99   :  { %v6308_v44 = vor.u32 %v6307_v5, %v6306_v31  ;;  %v20142_v5 = vld [vmem:[#allocation15_spill] sm:$0xff] }
 0xa9e   :  { %8078 = vmatmul.mubr.bf16.gmra.mrb[116].mxu1 %v20101_v6  ;;  %v6280_v6 = vor.u32 %v6279_v13, %v6278_v3 }
 0xa9f   :  { %8085 = vmatprep.mubr.bf16.mxu1 %v5798_v12  ;;  %v11923_v12 = vld [vmem:[%s18503_s9 + $0x28] sm:$0xff]  }
 0xaa0   :  { %v6281_v49 = vsel %vm665_vm6, %v6276_v54, %v6280_v6  ;;  %10613 = vmatprep.subr.bf16.mxu1 %v11923_v12  ;;  %v6285_v57 = vsel %vm665_vm6, %v6280_v6, %v6284_v23  ;;  %v20132_v6 = vld [vmem:[#allocation12_spill] sm:$0xff] }
 0xaa1   :  { %10614 = vmatpush3.bf16.msra.mxu1 %v11923_v12 }
 0xaa2   :  { %10615 = vmatprep.subr.bf16.mxu1 %v11924_v47 }
 0xaa5   :  { %10616 = vmatpush3.bf16.msra.mxu1 %v11924_v47  ;;  %v6315_v47 = vrot.slane %v20134_v16, 3  ;;  %v20148_v16 = vld [vmem:[#allocation23_spill] sm:$0xff] }
 0xaa6   :  { %8086 = vmatmul.mubr.bf16.gmra.mrb[120].mxu1 %v20103_v56  ;;  %10617 = vmatprep.subr.bf16.mxu1 %v11925_v58  ;;  %v6288_v56 = vor.u32 %v6287_v40, %v6286_v36 }
 0xaa7   :  { %8093 = vmatprep.mubr.bf16.mxu1 %v5802_v26  ;;  %v20119_v26 = vld [vmem:[#allocation104_spill] sm:$0xff]  ;;  %v6316_v36 = vor.u32 %v6315_v47, %v6314_v46 }
 0xaa8   :  { %v6289_v42 = vsel %vm665_vm6, %v6284_v23, %v6288_v56 }
 0xaa9   :  { %10618 = vmatpush3.bf16.msra.mxu1 %v11925_v58 }
 0xaae   :  { %8094 = vmatmul.mubr.bf16.gmra.mrb[124].mxu1 %v20105_v9  ;;  %v20121_v9 = vld [vmem:[#allocation106_spill] sm:$0xff] }
 0xaaf   :  { %8101 = vmatprep.mubr.bf16.mxu1 %v5806_v38  ;;  %v20122_v38 = vld [vmem:[#allocation44_spill] sm:$0xff] }
 0xab6   :  { %8102 = vmatmul.mubr.bf16.gmra.mrb[128].mxu1 %v20106_v2  ;;  %v6295_v2 = vrot.slane %v20122_v38, 3 }
 0xab7   :  { %8109 = vmatprep.mubr.bf16.mxu1 %v5810_v11  ;;  %v20123_v11 = vld [vmem:[#allocation105_spill] sm:$0xff] }
 0xab8   :  { %v6296_v51 = vor.u32 %v6295_v2, %v6294_v32 }
 0xabe   :  { %8110 = vmatmul.mubr.bf16.gmra.mrb[132].mxu1 %v20108_v43 }
 0xabf   :  { %8117 = vmatprep.mubr.bf16.mxu1 %v20109_v30  ;;  %v20124_v30 = vld [vmem:[#allocation50_spill] sm:$0xff] }
 0xac0   :  { %v6299_v20 = vrot.slane %v20124_v30, 3 }
 0xac6   :  { %8118 = vmatmul.mubr.bf16.gmra.mrb[136].mxu1 %v20110_v18  ;;  %v6300_v18 = vor.u32 %v6299_v20, %v6298_v41  ;;  %v20139_v41 = vld [vmem:[#allocation76_spill] sm:$0xff] }
 0xac7   :  { %8125 = vmatprep.mubr.bf16.mxu1 %v5818_v22  ;;  %v20126_v22 = vld [vmem:[#allocation13_spill] sm:$0xff] }
 0xac8   :  { %v6301_v0 = vsel %vm665_vm6, %v6296_v51, %v6300_v18  ;;  %v6303_v1 = vrot.slane %v20126_v22, 3  ;;  %v6322_v22 = vrot.slane %v20073_v53, 2 }
 0xaca   :  { %v6304_v33 = vor.u32 %v6303_v1, %v6302_v63  ;;  %v20141_v63 = vld [vmem:[#allocation122_spill] sm:$0xff]  ;;  %v6323_v1 = vrot.slane %v20074_v7, 3  ;;  %v20145_v7 = vld [vmem:[#allocation53_spill] sm:$0xff] }
 0xacc   :  { %v6305_v62 = vsel %vm665_vm6, %v6300_v18, %v6304_v33  ;;  %v6309_v27 = vsel %vm665_vm6, %v6304_v33, %v6308_v44  ;;  %v6324_v31 = vor.u32 %v6323_v1, %v6322_v22  ;;  %v20156_v22 = vld [vmem:[#allocation42_spill] sm:$0xff] }
 0xace   :  { %8126 = vmatmul.mubr.bf16.gmra.mrb[140].mxu1 %v5742_v50  ;;  %v20130_v50 = vld [vmem:[#allocation19_spill] sm:$0xff] }
 0xacf   :  { %8133 = vmatprep.mubr.bf16.mxu1 %v6273_v25  ;;  %v6311_v25 = vrot.slane %v20130_v50, 3 }
 0xad6   :  { %8134 = vmatmul.mubr.bf16.gmra.mrb[144].mxu1 %v20116_v15  ;;  %v6312_v15 = vor.u32 %v6311_v25, %v6310_v4  ;;  %v20143_v4 = vld [vmem:[#allocation17_spill] sm:$0xff]  ;;  %v20144_v25 = vld [vmem:[#allocation118_spill] sm:$0xff] }
 0xad7   :  { %8141 = vmatprep.mubr.bf16.mxu1 %v6277_v35 }
 0xad8   :  { %v6317_v48 = vsel %vm665_vm6, %v6312_v15, %v6316_v36 }
 0xade   :  { %8142 = vmatmul.mubr.bf16.gmra.mrb[148].mxu1 %v20118_v34  ;;  %v20133_v34 = vld [vmem:[#allocation109_spill] sm:$0xff] }
 0xadf   :  { %8149 = vmatprep.mubr.bf16.mxu1 %v6281_v49  ;;  %v6313_v49 = vsel %vm665_vm6, %v6308_v44, %v6312_v15 }
 0xae6   :  { %8150 = vmatmul.mubr.bf16.gmra.mrb[152].mxu1 %v17150_v59  ;;  %v6292_v59 = vor.u32 %v6291_v19, %v6290_v28 }
 0xae7   :  { %8157 = vmatprep.mubr.bf16.mxu1 %v6285_v57 }
 0xae8   :  { %v6293_v55 = vsel %vm665_vm6, %v6288_v56, %v6292_v59  ;;  %v6297_v43 = vsel %vm665_vm6, %v6292_v59, %v6296_v51  ;;  %v20135_v56 = vld [vmem:[#allocation74_spill] sm:$0xff]  ;;  %v20137_v59 = vld [vmem:[#allocation111_spill] sm:$0xff] }
 0xaee   :  { %8158 = vmatmul.mubr.bf16.gmra.mrb[156].mxu1 %v20119_v26 }
 0xaef   :  { %8165 = vmatprep.mubr.bf16.mxu1 %v6289_v42 }
 0xaf6   :  { %8166 = vmatmul.mubr.bf16.gmra.mrb[160].mxu1 %v20121_v9  ;;  %v6318_v9 = vrot.slane %v20070_v17, 2 }
 0xaf7   :  { %8173 = vmatprep.mubr.bf16.mxu1 %v6293_v55  ;;  %v20138_v55 = vld [vmem:[#allocation82_spill] sm:$0xff] }
 0xaf8   :  { %v6319_v32 = vrot.slane %v20138_v55, 3  ;;  %v20152_v55 = vld [vmem:[#allocation56_spill] sm:$0xff] }
 0xafe   :  { %8174 = vmatmul.mubr.bf16.gmra.mrb[164].mxu1 %v20123_v11  ;;  %v6320_v11 = vor.u32 %v6319_v32, %v6318_v9  ;;  %v20153_v32 = vld [vmem:[#allocation48_spill] sm:$0xff] }
 0xaff   :  { %8181 = vmatprep.mubr.bf16.mxu1 %v6297_v43 }
 0xb00   :  { %v6321_v17 = vsel %vm665_vm6, %v6316_v36, %v6320_v11  ;;  %v6325_v53 = vsel %vm665_vm6, %v6320_v11, %v6324_v31 }
 0xb06   :  { %8182 = vmatmul.mubr.bf16.gmra.mrb[168].mxu1 %v20125_v14  ;;  %v20140_v14 = vld [vmem:[#allocation77_spill] sm:$0xff] }
 0xb07   :  { %8189 = vmatprep.mubr.bf16.mxu1 %v6301_v0 }
 0xb0e   :  { %8190 = vmatmul.mubr.bf16.gmra.mrb[172].mxu1 %v20127_v37 }
 0xb0f   :  { %8197 = vmatprep.mubr.bf16.mxu1 %v6305_v62 }
 0xb16   :  { %8198 = vmatmul.mubr.bf16.gmra.mrb[176].mxu1 %v20129_v39 }
 0xb17   :  { %8205 = vmatprep.mubr.bf16.mxu1 %v6309_v27 }
 0xb19   :  { %v7991_v10 = vpop.f32.mrb[72].mxu1 }
 0xb1a   :  { %v10827_v60 = vadd.f32 %v17414_v45, %v7991_v10  ;;  %v7993_v54 = vpop.f32.mrb[73].mxu1  ;;  %v6326_v10 = vrot.slane %v20145_v7, 2 }
 0xb1b   :  { %v7994_v35 = vpop.f32.mrb[74].mxu1 }
 0xb1c   :  { %v17418_v3 = vadd.f32 %v10827_v60, %v20131_v52  ;;  %v10828_v13 = vadd.f32 %v17414_v45, %v7994_v35  ;;  %v7996_v21 = vpop.f32.mrb[75].mxu1  ;;  %v20146_v60 = vld [vmem:[#allocation41_spill] sm:$0xff] }
 0xb1d   :  { %v6327_v54 = vrot.slane %v20146_v60, 3 }
 0xb1e   :  { %v17422_v12 = vadd.f32 %v10828_v13, %v20132_v6  ;;  %8206 = vmatmul.mubr.bf16.gmra.mrb[180].mxu1 %v20133_v34  ;;  %v20147_v6 = vld [vmem:[#allocation78_spill] sm:$0xff] }
 0xb1f   :  { %8213 = vmatprep.mubr.bf16.mxu1 %v6313_v49  ;;  %v6328_v13 = vor.u32 %v6327_v54, %v6326_v10  ;;  %v20158_v10 = vld [vmem:[#allocation25_spill] sm:$0xff]  ;;  %v20159_v54 = vld [vmem:[#allocation52_spill] sm:$0xff] }
 0xb21   :  { %v7999_v23 = vpop.f32.mrb[76].mxu1 }
 0xb22   :  { %v10829_v58 = vadd.f32 %v17414_v45, %v7999_v23  ;;  %v8001_v57 = vpop.f32.mrb[77].mxu1  ;;  %v20149_v23 = vld [vmem:[#allocation124_spill] sm:$0xff] }
 0xb23   :  { %v8002_v40 = vpop.f32.mrb[78].mxu1 }
 0xb24   :  { %v17430_v26 = vadd.f32 %v10829_v58, %v20135_v56  ;;  %v10830_v42 = vadd.f32 %v17414_v45, %v8002_v40  ;;  %v8004_v28 = vpop.f32.mrb[79].mxu1  ;;  %v6329_v58 = vsel %vm665_vm6, %v6324_v31, %v6328_v13  ;;  %v11956_v31 = vld [vmem:[%s18494_s0 + $0x10] sm:$0xff] }
 0xb26   :  { %v17434_v19 = vadd.f32 %v10830_v42, %v20136_v8  ;;  %8214 = vmatmul.mubr.bf16.gmra.mrb[184].mxu1 %v20137_v59  ;;  %v20150_v42 = vld [vmem:[#allocation18_spill] sm:$0xff] }
 0xb27   :  { %8221 = vmatprep.mubr.bf16.mxu1 %v6317_v48  ;;  %v20151_v48 = vld [vmem:[#allocation21_spill] sm:$0xff] }
 0xb29   :  { %v8007_v38 = vpop.f32.mrb[80].mxu1 }
 0xb2a   :  { %v10831_v2 = vadd.f32 %v17414_v45, %v8007_v38  ;;  %v8009_v51 = vpop.f32.mrb[81].mxu1  ;;  %v6333_v38 = vsel %vm665_vm6, %v6328_v13, %v20153_v32  ;;  %v20162_v32 = vld [vmem:[#allocation89_spill] sm:$0xff] }
 0xb2b   :  { %v8010_v43 = vpop.f32.mrb[82].mxu1 }
 0xb2c   :  { %v17442_v30 = vadd.f32 %v10831_v2, %v20139_v41  ;;  %v10832_v20 = vadd.f32 %v17414_v45, %v8010_v43  ;;  %v8012_v18 = vpop.f32.mrb[83].mxu1  ;;  %v20154_v41 = vld [vmem:[#allocation24_spill] sm:$0xff] }
 0xb2e   :  { %v17446_v0 = vadd.f32 %v10832_v20, %v20140_v14  ;;  %8222 = vmatmul.mubr.bf16.gmra.mrb[188].mxu1 %v20141_v63  ;;  %v20155_v63 = vld [vmem:[#allocation27_spill] sm:$0xff] }
 0xb2f   :  { %8229 = vmatprep.mubr.bf16.mxu1 %v6321_v17 }
 0xb31   :  { %v8015_v33 = vpop.f32.mrb[84].mxu1 }
 0xb32   :  { %v10833_v37 = vadd.f32 %v17414_v45, %v8015_v33  ;;  %v8017_v62 = vpop.f32.mrb[85].mxu1 }
 0xb33   :  { %v8018_v61 = vpop.f32.mrb[86].mxu1 }
 0xb34   :  { %v17454_v44 = vadd.f32 %v10833_v37, %v20142_v5  ;;  %v10834_v39 = vadd.f32 %v17414_v45, %v8018_v61  ;;  %v8020_v27 = vpop.f32.mrb[87].mxu1  ;;  %v8637_v61 = vrot.slane %v11956_v31, 3  ;;  %v20157_v5 = vld [vmem:[#allocation22_spill] sm:$0xff] }
 0xb35   :  { %v20163_v31 = vld [vmem:[#allocation26_spill] sm:$0xff] }
 0xb36   :  { %v17458_v50 = vadd.f32 %v10834_v39, %v20143_v4  ;;  %8230 = vmatmul.mubr.bf16.gmra.mrb[192].mxu1 %v20144_v25 }
 0xb37   :  { %8237 = vmatprep.mubr.bf16.mxu1 %v6325_v53  ;;  %v11958_v53 = vld [vmem:[%s18494_s0 + $0x20] sm:$0xff] }
 0xb38   :  { %v8640_v7 = vrot.slane %v11958_v53, 3 }
 0xb39   :  { %v8023_v15 = vpop.f32.mrb[88].mxu1 }
 0xb3a   :  { %v10835_v35 = vadd.f32 %v17414_v45, %v8023_v15  ;;  %v8025_v52 = vpop.f32.mrb[89].mxu1 }
 0xb3b   :  { %v8026_v21 = vpop.f32.mrb[90].mxu1 }
 0xb3c   :  { %v17466_v34 = vadd.f32 %v10835_v35, %v20147_v6  ;;  %v10836_v49 = vadd.f32 %v17414_v45, %v8026_v21  ;;  %v8028_v46 = vpop.f32.mrb[91].mxu1 }
 0xb3d   :  { %v11959_v46 = vld [vmem:[%s18494_s0 + $0x28] sm:$0xff] }
 0xb3e   :  { %v17470_v47 = vadd.f32 %v10836_v49, %v20148_v16  ;;  %8238 = vmatmul.mubr.bf16.gmra.mrb[196].mxu1 %v20149_v23  ;;  %v8642_v16 = vrot.slane %v11959_v46, 3 }
 0xb3f   :  { %8245 = vmatprep.mubr.bf16.mxu1 %v6329_v58  ;;  %v20160_v58 = vld [vmem:[#allocation31_spill] sm:$0xff] }
 0xb41   :  { %v8031_v57 = vpop.f32.mrb[92].mxu1 }
 0xb42   :  { %v10837_v36 = vadd.f32 %v17414_v45, %v8031_v57  ;;  %v8033_v40 = vpop.f32.mrb[93].mxu1 }
 0xb43   :  { %v8034_v56 = vpop.f32.mrb[94].mxu1 }
 0xb44   :  { %v17476_v28 = vadd.f32 %v10837_v36, %v20150_v42  ;;  %v10838_v8 = vadd.f32 %v17414_v45, %v8034_v56  ;;  %v8036_v59 = vpop.f32.mrb[95].mxu1  ;;  %v11961_v56 = vld [vmem:[%s18494_s0 + $0x38] sm:$0xff] }
 0xb45   :  { %v8646_v42 = vrot.slane %v11961_v56, 3 }
 0xb46   :  { %v17480_v9 = vadd.f32 %v10838_v8, %v20151_v48  ;;  %8246 = vmatmul.mubr.bf16.gmra.mrb[200].mxu1 %v20152_v55  ;;  %v11962_v8 = vld [vmem:[%s18494_s0 + $0x40] sm:$0xff]  ;;  %v20161_v48 = vld [vmem:[#allocation32_spill] sm:$0xff] }
 0xb47   :  { %8253 = vmatprep.mubr.bf16.mxu1 %v6333_v38  ;;  %v8648_v59 = vrot.slane %v11962_v8, 3  ;;  %v8643_v38 = vsel %vm764_vm5, %v8640_v7, %v8642_v16 }
 0xb49   :  { %v8039_v2 = vpop.f32.mrb[96].mxu1 }
 0xb4a   :  { %v10839_v51 = vadd.f32 %v17414_v45, %v8039_v2  ;;  %v8041_v11 = vpop.f32.mrb[97].mxu1 }
 0xb4b   :  { %v8042_v43 = vpop.f32.mrb[98].mxu1  ;;  %v8649_v11 = vsel %vm764_vm5, %v8646_v42, %v8648_v59 }
 0xb4c   :  { %v17487_v20 = vadd.f32 %v10839_v51, %v20154_v41  ;;  %v10840_v18 = vadd.f32 %v17414_v45, %v8042_v43  ;;  %v8044_v14 = vpop.f32.mrb[99].mxu1 }
 0xb4e   :  { %v17491_v17 = vadd.f32 %v10840_v18, %v20155_v63  ;;  %8254 = vmatmul.mubr.bf16.gmra.mrb[204].mxu1 %v17255_v29  ;;  %v11957_v29 = vld [vmem:[%s18494_s0 + $0x18] sm:$0xff] }
 0xb4f   :  { %8261 = vmatprep.mubr.bf16.mxu1 %v20156_v22  ;;  %v8638_v25 = vrot.slane %v11957_v29, 3 }
 0xb51   :  { %v8047_v1 = vpop.f32.mrb[100].mxu1  ;;  %v8639_v15 = vsel %vm764_vm5, %v8637_v61, %v8638_v25  ;;  %v8641_v35 = vsel %vm764_vm5, %v8638_v25, %v8640_v7  ;;  %v11966_v25 = vld [vmem:[%s18494_s0 + $0x60] sm:$0xff]  ;;  %v20164_v7 = vld [vmem:[#allocation29_spill] sm:$0xff] }
 0xb52   :  { %v10841_v33 = vadd.f32 %v17414_v45, %v8047_v1  ;;  %v8049_v37 = vpop.f32.mrb[101].mxu1  ;;  %v8892_v49 = vpack.c.bf16 %v8641_v35, %v8639_v15  ;;  %v11963_v1 = vld [vmem:[%s18494_s0 + $0x48] sm:$0xff]  ;;  %v8656_v53 = vrot.slane %v11966_v25, 3 }
 0xb53   :  { %v8050_v62 = vpop.f32.mrb[102].mxu1  ;;  %v11964_v37 = vld [vmem:[%s18494_s0 + $0x50] sm:$0xff] }
 0xb54   :  { %v17500_v39 = vadd.f32 %v10841_v33, %v20157_v5  ;;  %v10842_v27 = vadd.f32 %v17414_v45, %v8050_v62  ;;  %v8052_v4 = vpop.f32.mrb[103].mxu1  ;;  %v8650_v33 = vrot.slane %v11963_v1, 3  ;;  %v8652_v62 = vrot.slane %v11964_v37, 3 }
 0xb55   :  { %v11965_v4 = vld [vmem:[%s18494_s0 + $0x58] sm:$0xff] }
 0xb56   :  { %v17510_v60 = vadd.f32 %v10842_v27, %v20158_v10  ;;  %8262 = vmatmul.mubr.bf16.gmra.mrb[208].mxu1 %v17267_v24  ;;  %v11960_v24 = vld [vmem:[%s18494_s0 + $0x30] sm:$0xff]  ;;  %v8654_v29 = vrot.slane %v11965_v4, 3  ;;  %v8653_v15 = vsel %vm764_vm5, %v8650_v33, %v8652_v62  ;;  %v20167_v4 = vld [vmem:[#allocation30_spill] sm:$0xff] }
 0xb57   :  { %8269 = vmatprep.mubr.bf16.mxu1 %v20159_v54  ;;  %v8644_v23 = vrot.slane %v11960_v24, 3  ;;  %v8651_v54 = vsel %vm764_vm5, %v8648_v59, %v8650_v33  ;;  %v11967_v24 = vld [vmem:[%s18494_s0 + $0x68] sm:$0xff]  ;;  %v11969_v59 = vld [vmem:[%s18494_s0 + $0x78] sm:$0xff] }
 0xb58   :  { %v8655_v35 = vsel %vm764_vm5, %v8652_v62, %v8654_v29  ;;  %v11971_v62 = vld [vmem:[%s18494_s0 + $0x88] sm:$0xff] }
 0xb59   :  { %v8055_v52 = vpop.f32.mrb[104].mxu1  ;;  %v8645_v2 = vsel %vm764_vm5, %v8642_v16, %v8644_v23  ;;  %v8647_v51 = vsel %vm764_vm5, %v8644_v23, %v8646_v42  ;;  %v8658_v23 = vrot.slane %v11967_v24, 3 }
 0xb5a   :  { %v10843_v13 = vadd.f32 %v17414_v45, %v8055_v52  ;;  %v8057_v21 = vpop.f32.mrb[105].mxu1  ;;  %v8893_v14 = vpack.c.bf16 %v8645_v2, %v8643_v38  ;;  %v8894_v22 = vpack.c.bf16 %v8649_v11, %v8647_v51  ;;  %v8657_v52 = vsel %vm764_vm5, %v8654_v29, %v8656_v53  ;;  %v20166_v2 = vld [vmem:[#allocation86_spill] sm:$0xff] }
 0xb5b   :  { %v8058_v6 = vpop.f32.mrb[106].mxu1  ;;  %v8896_v16 = vpack.c.bf16 %v8657_v52, %v8655_v35  ;;  %v8659_v11 = vsel %vm764_vm5, %v8656_v53, %v8658_v23  ;;  %v20168_v52 = vld [vmem:[#allocation85_spill] sm:$0xff] }
 0xb5c   :  { %v17524_v57 = vadd.f32 %v10843_v13, %v20160_v58  ;;  %v10844_v36 = vadd.f32 %v17414_v45, %v8058_v6  ;;  %v8060_v40 = vpop.f32.mrb[107].mxu1  ;;  %v11968_v58 = vld [vmem:[%s18494_s0 + $0x70] sm:$0xff] }
 0xb5d   :  { %v20165_v40 = vld [vmem:[#allocation35_spill] sm:$0xff] }
 0xb5e   :  { %v17534_v55 = vadd.f32 %v10844_v36, %v20161_v48  ;;  %8270 = vmatmul.mubr.bf16.gmra.mrb[212].mxu1 %v20162_v32  ;;  %v8660_v36 = vrot.slane %v11968_v58, 3  ;;  %v8662_v48 = vrot.slane %v11969_v59, 3  ;;  %v11970_v32 = vld [vmem:[%s18494_s0 + $0x80] sm:$0xff]  ;;  %v11976_v59 = vld [vmem:[%s18494_s0 + $0xb0] sm:$0xff] }
 0xb5f   :  { %10619 = vmatprep.mubr.bf16.mxu1 %v8892_v49  ;;  %v8895_v49 = vpack.c.bf16 %v8653_v15, %v8651_v54  ;;  %v8664_v38 = vrot.slane %v11970_v32, 3  ;;  %v11974_v15 = vld [vmem:[%s18494_s0 + $0xa0] sm:$0xff]  ;;  %v20169_v32 = vld [vmem:[#allocation47_spill] sm:$0xff] }
 0xb60   :  { %v8672_v35 = vrot.slane %v11974_v15, 3  ;;  %v11980_v15 = vld [vmem:[%s18494_s0 + $0xd0] sm:$0xff] }
 0xb61   :  { %v8063_v43 = vpop.f32.mrb[108].mxu1 }
 0xb62   :  { %v10845_v41 = vadd.f32 %v17414_v45, %v8063_v43  ;;  %v8065_v18 = vpop.f32.mrb[109].mxu1  ;;  %v8661_v43 = vsel %vm764_vm5, %v8658_v23, %v8660_v36 }
 0xb63   :  { %v8066_v63 = vpop.f32.mrb[110].mxu1  ;;  %v8665_v18 = vsel %vm764_vm5, %v8662_v48, %v8664_v38  ;;  %v8897_v1 = vpack.c.bf16 %v8661_v43, %v8659_v11  ;;  %v11977_v43 = vld [vmem:[%s18494_s0 + $0xb8] sm:$0xff] }
 0xb64   :  { %v17549_v61 = vadd.f32 %v10845_v41, %v20163_v31  ;;  %v10846_v5 = vadd.f32 %v17414_v45, %v8066_v63  ;;  %v8068_v27 = vpop.f32.mrb[111].mxu1  ;;  %v8663_v41 = vsel %vm764_vm5, %v8660_v36, %v8662_v48  ;;  %v8666_v31 = vrot.slane %v11971_v62, 3 }
 0xb65   :  { %v8898_v37 = vpack.c.bf16 %v8665_v18, %v8663_v41  ;;  %v8676_v48 = vrot.slane %v11976_v59, 3  ;;  %v8678_v41 = vrot.slane %v11977_v43, 3  ;;  %v11978_v18 = vld [vmem:[%s18494_s0 + $0xc0] sm:$0xff] }
 0xb66   :  { %v17559_v10 = vadd.f32 %v10846_v5, %v20164_v7  ;;  %10620 = vmatmul.mubr.bf16.vlgmr.msra.gmra.mrb[216].mxu1 %v8893_v14  ;;  %v11972_v5 = vld [vmem:[%s18494_s0 + $0x90] sm:$0xff]  ;;  %v11973_v7 = vld [vmem:[%s18494_s0 + $0x98] sm:$0xff] }
 0xb67   :  { %10623 = vmatprep.mubr.bf16.mxu1 %v8894_v22  ;;  %v8668_v27 = vrot.slane %v11972_v5, 3  ;;  %v8670_v54 = vrot.slane %v11973_v7, 3  ;;  %v11979_v7 = vld [vmem:[%s18494_s0 + $0xc8] sm:$0xff] }
 0xb69   :  { %v8071_v13 = vpop.f32.mrb[112].mxu1 }
 0xb6a   :  { %v10847_v21 = vadd.f32 %v17414_v45, %v8071_v13  ;;  %v8073_v6 = vpop.f32.mrb[113].mxu1 }
 0xb6b   :  { %v8074_v46 = vpop.f32.mrb[114].mxu1  ;;  %v8669_v6 = vsel %vm764_vm5, %v8666_v31, %v8668_v27 }
 0xb6c   :  { %v17573_v56 = vadd.f32 %v10847_v21, %v20165_v40  ;;  %v10848_v42 = vadd.f32 %v17414_v45, %v8074_v46  ;;  %v8076_v8 = vpop.f32.mrb[115].mxu1  ;;  %v8667_v21 = vsel %vm764_vm5, %v8664_v38, %v8666_v31  ;;  %v8673_v46 = vsel %vm764_vm5, %v8670_v54, %v8672_v35 }
 0xb6d   :  { %v8899_v58 = vpack.c.bf16 %v8669_v6, %v8667_v21 }
 0xb6e   :  { %v17583_v51 = vadd.f32 %v10848_v42, %v20166_v2  ;;  %10624 = vmatmul.mubr.bf16.gmra.mrb[220].mxu1 %v8895_v49  ;;  %v8671_v49 = vsel %vm764_vm5, %v8668_v27, %v8670_v54  ;;  %v11975_v42 = vld [vmem:[%s18494_s0 + $0xa8] sm:$0xff]  ;;  %v8682_v54 = vrot.slane %v11979_v7, 3 }
 0xb6f   :  { %10627 = vmatprep.mubr.bf16.mxu1 %v8896_v16  ;;  %v8900_v40 = vpack.c.bf16 %v8673_v46, %v8671_v49  ;;  %v8674_v8 = vrot.slane %v11975_v42, 3  ;;  %v11981_v46 = vld [vmem:[%s18494_s0 + $0xd8] sm:$0xff] }
 0xb71   :  { %v8079_v14 = vpop.f32.mrb[116].mxu1 }
 0xb72   :  { %v10849_v63 = vadd.f32 %v17414_v45, %v8079_v14  ;;  %v8081_v22 = vpop.f32.mrb[117].mxu1  ;;  %v8680_v14 = vrot.slane %v11978_v18, 3  ;;  %v11983_v18 = vld [vmem:[%s18494_s0 + $0xe8] sm:$0xff] }
 0xb73   :  { %v8082_v33 = vpop.f32.mrb[118].mxu1 }
 0xb74   :  { %v17597_v29 = vadd.f32 %v10849_v63, %v20167_v4  ;;  %v10850_v25 = vadd.f32 %v17414_v45, %v8082_v33  ;;  %v8084_v53 = vpop.f32.mrb[119].mxu1  ;;  %v20170_v63 = vld [vmem:[#allocation43_spill] sm:$0xff]  ;;  %v8677_v33 = vsel %vm764_vm5, %v8674_v8, %v8676_v48  ;;  %v8681_v62 = vsel %vm764_vm5, %v8678_v41, %v8680_v14 }
 0xb76   :  { %v17607_v13 = vadd.f32 %v10850_v25, %v20168_v52  ;;  %10628 = vmatmul.mubr.bf16.gmra.mrb[224].mxu1 %v8897_v1  ;;  %v8675_v1 = vsel %vm764_vm5, %v8672_v35, %v8674_v8  ;;  %v8684_v35 = vrot.slane %v11980_v15, 3  ;;  %v20171_v52 = vld [vmem:[#allocation88_spill] sm:$0xff] }
 0xb77   :  { %10631 = vmatprep.mubr.bf16.mxu1 %v8898_v37  ;;  %v8679_v37 = vsel %vm764_vm5, %v8676_v48, %v8678_v41  ;;  %v8901_v4 = vpack.c.bf16 %v8677_v33, %v8675_v1  ;;  %v20173_v33 = vld [vmem:[#allocation57_spill] sm:$0xff] }
 0xb78   :  { %v8902_v53 = vpack.c.bf16 %v8681_v62, %v8679_v37  ;;  %v8685_v42 = vsel %vm764_vm5, %v8682_v54, %v8684_v35 }
 0xb79   :  { %v8087_v16 = vpop.f32.mrb[120].mxu1 }
 0xb7a   :  { %v10851_v24 = vadd.f32 %v17414_v45, %v8087_v16  ;;  %v8089_v23 = vpop.f32.mrb[121].mxu1  ;;  %v8686_v16 = vrot.slane %v11981_v46, 3 }
 0xb7b   :  { %v8090_v36 = vpop.f32.mrb[122].mxu1 }
 0xb7c   :  { %v17621_v38 = vadd.f32 %v10851_v24, %v20169_v32  ;;  %v10852_v2 = vadd.f32 %v17414_v45, %v8090_v36  ;;  %v8092_v11 = vpop.f32.mrb[123].mxu1  ;;  %v11982_v24 = vld [vmem:[%s18494_s0 + $0xe0] sm:$0xff]  ;;  %v8687_v8 = vsel %vm764_vm5, %v8684_v35, %v8686_v16 }
 0xb7d   :  { %v8688_v23 = vrot.slane %v11982_v24, 3 }
 0xb7e   :  { %v17631_v22 = vadd.f32 %v10852_v2, %v20170_v63  ;;  %10632 = vmatmul.mubr.bf16.gmra.mrb[228].mxu1 %v8899_v58  ;;  %v20172_v58 = vld [vmem:[#allocation49_spill] sm:$0xff]  ;;  %v8690_v63 = vrot.slane %v11983_v18, 3 }
 0xb7f   :  { %10635 = vmatprep.mubr.bf16.mxu1 %v8900_v40  ;;  %v8683_v40 = vsel %vm764_vm5, %v8680_v14, %v8682_v54  ;;  %v8689_v59 = vsel %vm764_vm5, %v8686_v16, %v8688_v23  ;;  %v11984_v14 = vld [vmem:[%s18494_s0 + $0xf0] sm:$0xff] }
 0xb80   :  { %v8903_v11 = vpack.c.bf16 %v8685_v42, %v8683_v40  ;;  %v8904_v41 = vpack.c.bf16 %v8689_v59, %v8687_v8  ;;  %v8692_v1 = vrot.slane %v11984_v14, 3  ;;  %v8691_v54 = vsel %vm764_vm5, %v8688_v23, %v8690_v63  ;;  %v11987_v40 = vld [vmem:[%s18494_s0 + $0x108] sm:$0xff]  ;;  %v11988_v23 = vld [vmem:[%s18494_s0 + $0x110] sm:$0xff]  ;;  %v20175_v59 = vld [vmem:[#allocation45_spill] sm:$0xff] }
 0xb81   :  { %v8095_v31 = vpop.f32.mrb[124].mxu1  ;;  %v8698_v42 = vrot.slane %v11987_v40, 3  ;;  %v8700_v8 = vrot.slane %v11988_v23, 3 }
 0xb82   :  { %v10853_v5 = vadd.f32 %v17414_v45, %v8095_v31  ;;  %v8097_v27 = vpop.f32.mrb[125].mxu1  ;;  %v8693_v15 = vsel %vm764_vm5, %v8690_v63, %v8692_v1  ;;  %v20176_v63 = vld [vmem:[#allocation51_spill] sm:$0xff] }
 0xb83   :  { %v8098_v25 = vpop.f32.mrb[126].mxu1  ;;  %v8905_v16 = vpack.c.bf16 %v8693_v15, %v8691_v54 }
 0xb84   :  { %v17645_v21 = vadd.f32 %v10853_v5, %v20171_v52  ;;  %v10854_v6 = vadd.f32 %v17414_v45, %v8098_v25  ;;  %v8100_v49 = vpop.f32.mrb[127].mxu1  ;;  %v11985_v5 = vld [vmem:[%s18494_s0 + $0xf8] sm:$0xff] }
 0xb85   :  { %v8694_v27 = vrot.slane %v11985_v5, 3 }
 0xb86   :  { %v17655_v36 = vadd.f32 %v10854_v6, %v20172_v58  ;;  %10636 = vmatmul.mubr.bf16.gmra.mrb[232].mxu1 %v8901_v4  ;;  %v11986_v4 = vld [vmem:[%s18494_s0 + $0x100] sm:$0xff] }
 0xb87   :  { %10639 = vmatprep.mubr.bf16.mxu1 %v8902_v53  ;;  %v8696_v25 = vrot.slane %v11986_v4, 3  ;;  %v20174_v53 = vld [vmem:[#allocation61_spill] sm:$0xff]  ;;  %v8695_v35 = vsel %vm764_vm5, %v8692_v1, %v8694_v27 }
 0xb89   :  { %v8103_v48 = vpop.f32.mrb[128].mxu1  ;;  %v8697_v52 = vsel %vm764_vm5, %v8694_v27, %v8696_v25  ;;  %v8699_v1 = vsel %vm764_vm5, %v8696_v25, %v8698_v42  ;;  %v11992_v25 = vld [vmem:[%s18494_s0 + $0x130] sm:$0xff] }
 0xb8a   :  { %v10855_v32 = vadd.f32 %v17414_v45, %v8103_v48  ;;  %v8105_v2 = vpop.f32.mrb[129].mxu1  ;;  %v8906_v58 = vpack.c.bf16 %v8697_v52, %v8695_v35  ;;  %v11991_v35 = vld [vmem:[%s18494_s0 + $0x128] sm:$0xff] }
 0xb8b   :  { %v8106_v43 = vpop.f32.mrb[130].mxu1  ;;  %v8706_v52 = vrot.slane %v11991_v35, 3 }
 0xb8c   :  { %v17669_v37 = vadd.f32 %v10855_v32, %v20173_v33  ;;  %v10856_v62 = vadd.f32 %v17414_v45, %v8106_v43  ;;  %v8108_v31 = vpop.f32.mrb[131].mxu1  ;;  %v8701_v33 = vsel %vm764_vm5, %v8698_v42, %v8700_v8  ;;  %v11994_v42 = vld [vmem:[%s18494_s0 + $0x160] sm:$0xff] }
 0xb8d   :  { %v8784_v23 = vrot.slane %v11994_v42, 3 }
 0xb8e   :  { %v17679_v7 = vadd.f32 %v10856_v62, %v20174_v53  ;;  %10640 = vmatmul.mubr.bf16.gmra.mrb[236].mxu1 %v8903_v11  ;;  %v11989_v11 = vld [vmem:[%s18494_s0 + $0x118] sm:$0xff]  ;;  %v8907_v53 = vpack.c.bf16 %v8701_v33, %v8699_v1 }
 0xb8f   :  { %10643 = vmatprep.mubr.bf16.mxu1 %v8904_v41  ;;  %v8702_v43 = vrot.slane %v11989_v11, 3  ;;  %v11990_v41 = vld [vmem:[%s18494_s0 + $0x120] sm:$0xff] }
 0xb90   :  { %v8704_v18 = vrot.slane %v11990_v41, 3 }
 0xb91   :  { %v8111_v6 = vpop.f32.mrb[132].mxu1  ;;  %v8703_v62 = vsel %vm764_vm5, %v8700_v8, %v8702_v43  ;;  %v11995_v8 = vld [vmem:[%s18494_s0 + $0x168] sm:$0xff] }
 0xb92   :  { %v10857_v49 = vadd.f32 %v17414_v45, %v8111_v6  ;;  %v8113_v46 = vpop.f32.mrb[133].mxu1  ;;  %v8705_v31 = vsel %vm764_vm5, %v8702_v43, %v8704_v18  ;;  %v8708_v6 = vrot.slane %v11992_v25, 3  ;;  %v8707_v11 = vsel %vm764_vm5, %v8704_v18, %v8706_v52  ;;  %v11997_v18 = vld [vmem:[%s18494_s0 + $0x178] sm:$0xff] }
 0xb93   :  { %v8114_v24 = vpop.f32.mrb[134].mxu1  ;;  %v8908_v15 = vpack.c.bf16 %v8705_v31, %v8703_v62 }
 0xb94   :  { %v17693_v48 = vadd.f32 %v10857_v49, %v20175_v59  ;;  %v10858_v32 = vadd.f32 %v17414_v45, %v8114_v24  ;;  %v8116_v2 = vpop.f32.mrb[135].mxu1  ;;  %v11993_v49 = vld [vmem:[%s18494_s0 + $0x158] sm:$0xff]  ;;  %v8786_v59 = vrot.slane %v11995_v8, 3  ;;  %v8709_v43 = vsel %vm764_vm5, %v8706_v52, %v8708_v6  ;;  %v11998_v6 = vld [vmem:[%s18494_s0 + $0x180] sm:$0xff] }
 0xb95   :  { %v8783_v46 = vrot.slane %v11993_v49, 3  ;;  %v8909_v31 = vpack.c.bf16 %v8709_v43, %v8707_v11  ;;  %v8792_v49 = vrot.slane %v11998_v6, 3  ;;  %v20182_v6 = vld [vmem:[#allocation64_spill] sm:$0xff] }
 0xb96   :  { %v17703_v14 = vadd.f32 %v10858_v32, %v20176_v63  ;;  %10644 = vmatmul.mubr.bf16.gmra.mrb[240].mxu1 %v8905_v16  ;;  %v20177_v16 = vld [vmem:[#allocation65_spill] sm:$0xff]  ;;  %v20178_v32 = vld [vmem:[#allocation70_spill] sm:$0xff]  ;;  %v8787_v63 = vsel %vm764_vm5, %v8784_v23, %v8786_v59 }
 0xb97   :  { %10647 = vmatprep.mubr.bf16.mxu1 %v8906_v58  ;;  %v8785_v41 = vsel %vm764_vm5, %v8783_v46, %v8784_v23  ;;  %v11999_v46 = vld [vmem:[%s18494_s0 + $0x188] sm:$0xff] }
 0xb99   :  { %v8119_v5 = vpop.f32.mrb[136].mxu1 }
 0xb9a   :  { %v10859_v27 = vadd.f32 %v17414_v45, %v8119_v5  ;;  %v8121_v4 = vpop.f32.mrb[137].mxu1 }
 0xb9b   :  { %v8122_v54 = vpop.f32.mrb[138].mxu1  ;;  %v11996_v4 = vld [vmem:[%s18494_s0 + $0x170] sm:$0xff] }
 0xb9c   :  { %v17720_v24 = vadd.f32 %v10859_v27, %v20177_v16  ;;  %v10860_v58 = vadd.f32 %v17414_v45, %v8122_v54  ;;  %v8124_v40 = vpop.f32.mrb[139].mxu1  ;;  %v8910_v27 = vpack.c.bf16 %v8787_v63, %v8785_v41  ;;  %v8790_v54 = vrot.slane %v11997_v18, 3 }
 0xb9d   :  { %v8794_v16 = vrot.slane %v11999_v46, 3 }
 0xb9e   :  { %v17730_v2 = vadd.f32 %v10860_v58, %v20178_v32  ;;  %10648 = vmatmul.mubr.bf16.gmra.mrb[244].mxu1 %v8907_v53  ;;  %v8788_v53 = vrot.slane %v11996_v4, 3  ;;  %v20180_v58 = vld [vmem:[#allocation59_spill] sm:$0xff]  ;;  %v8793_v8 = vsel %vm764_vm5, %v8790_v54, %v8792_v49 }
 0xb9f   :  { %10651 = vmatprep.mubr.bf16.mxu1 %v8908_v15  ;;  %v20179_v15 = vld [vmem:[#allocation55_spill] sm:$0xff]  ;;  %v8795_v32 = vsel %vm764_vm5, %v8792_v49, %v8794_v16 }
 0xba0   :  { %v8789_v42 = vsel %vm764_vm5, %v8786_v59, %v8788_v53  ;;  %v8791_v23 = vsel %vm764_vm5, %v8788_v53, %v8790_v54  ;;  %v12001_v59 = vld [vmem:[%s18494_s0 + $0x198] sm:$0xff]  ;;  %v12002_v54 = vld [vmem:[%s18494_s0 + $0x1a0] sm:$0xff] }
 0xba1   :  { %v8127_v1 = vpop.f32.mrb[140].mxu1  ;;  %v8911_v63 = vpack.c.bf16 %v8791_v23, %v8789_v42 }
 0xba2   :  { %v10861_v33 = vadd.f32 %v17414_v45, %v8127_v1  ;;  %v8129_v62 = vpop.f32.mrb[141].mxu1 }
 0xba3   :  { %v8130_v5 = vpop.f32.mrb[142].mxu1 }
 0xba4   :  { %v17744_v35 = vadd.f32 %v10861_v33, %v20179_v15  ;;  %v10862_v52 = vadd.f32 %v17414_v45, %v8130_v5  ;;  %v8132_v25 = vpop.f32.mrb[143].mxu1  ;;  %v12000_v33 = vld [vmem:[%s18494_s0 + $0x190] sm:$0xff]  ;;  %v8912_v5 = vpack.c.bf16 %v8795_v32, %v8793_v8  ;;  %v8800_v15 = vrot.slane %v12002_v54, 3  ;;  %v12007_v54 = vld [vmem:[%s18494_s0 + $0x1c8] sm:$0xff] }
 0xba5   :  { %v8796_v62 = vrot.slane %v12000_v33, 3 }
 0xba6   :  { %v17754_v40 = vadd.f32 %v10862_v52, %v20180_v58  ;;  %10652 = vmatmul.mubr.bf16.gmra.mrb[248].mxu1 %v8909_v31  ;;  %v8798_v31 = vrot.slane %v12001_v59, 3  ;;  %v12003_v52 = vld [vmem:[%s18494_s0 + $0x1a8] sm:$0xff] }
 0xba7   :  { %10655 = vmatprep.mubr.bf16.mxu1 %v8910_v27  ;;  %v20181_v27 = vld [vmem:[#allocation60_spill] sm:$0xff]  ;;  %v8802_v25 = vrot.slane %v12003_v52, 3  ;;  %v8797_v46 = vsel %vm764_vm5, %v8794_v16, %v8796_v62  ;;  %v12005_v16 = vld [vmem:[%s18494_s0 + $0x1b8] sm:$0xff]  ;;  %v20183_v59 = vld [vmem:[#allocation63_spill] sm:$0xff] }
 0xba8   :  { %v8799_v58 = vsel %vm764_vm5, %v8796_v62, %v8798_v31  ;;  %v8801_v42 = vsel %vm764_vm5, %v8798_v31, %v8800_v15  ;;  %v8806_v33 = vrot.slane %v12005_v16, 3  ;;  %v20184_v52 = vld [vmem:[#allocation54_spill] sm:$0xff]  ;;  %v12008_v16 = vld [vmem:[%s18494_s0 + $0x1d0] sm:$0xff] }
 0xba9   :  { %v8135_v11 = vpop.f32.mrb[144].mxu1  ;;  %v8803_v23 = vsel %vm764_vm5, %v8800_v15, %v8802_v25  ;;  %v8810_v15 = vrot.slane %v12007_v54, 3  ;;  %v12011_v54 = vld [vmem:[%s18494_s0 + $0x1e8] sm:$0xff] }
 0xbaa   :  { %v10863_v43 = vadd.f32 %v17414_v45, %v8135_v11  ;;  %v8137_v41 = vpop.f32.mrb[145].mxu1  ;;  %v8914_v62 = vpack.c.bf16 %v8803_v23, %v8801_v42 }
 0xbab   :  { %v8138_v1 = vpop.f32.mrb[146].mxu1 }
 0xbac   :  { %v17768_v4 = vadd.f32 %v10863_v43, %v20181_v27  ;;  %v10864_v53 = vadd.f32 %v17414_v45, %v8138_v1  ;;  %v8140_v18 = vpop.f32.mrb[147].mxu1  ;;  %v8913_v43 = vpack.c.bf16 %v8799_v58, %v8797_v46  ;;  %v12004_v1 = vld [vmem:[%s18494_s0 + $0x1b0] sm:$0xff] }
 0xbae   :  { %v17778_v49 = vadd.f32 %v10864_v53, %v20182_v6  ;;  %10656 = vmatmul.mubr.bf16.gmra.mrb[252].mxu1 %v8911_v63  ;;  %v8804_v63 = vrot.slane %v12004_v1, 3  ;;  %v12006_v53 = vld [vmem:[%s18494_s0 + $0x1c0] sm:$0xff] }
 0xbaf   :  { %10659 = vmatprep.mubr.bf16.mxu1 %v8912_v5  ;;  %v8808_v18 = vrot.slane %v12006_v53, 3  ;;  %v12010_v53 = vld [vmem:[%s18494_s0 + $0x1e0] sm:$0xff] }
 0xbb0   :  { %v8805_v46 = vsel %vm764_vm5, %v8802_v25, %v8804_v63  ;;  %v8807_v58 = vsel %vm764_vm5, %v8804_v63, %v8806_v33  ;;  %v12009_v25 = vld [vmem:[%s18494_s0 + $0x1d8] sm:$0xff] }
 0xbb1   :  { %v8143_v8 = vpop.f32.mrb[148].mxu1  ;;  %v8809_v42 = vsel %vm764_vm5, %v8806_v33, %v8808_v18  ;;  %v8811_v23 = vsel %vm764_vm5, %v8808_v18, %v8810_v15  ;;  %v8814_v63 = vrot.slane %v12009_v25, 3  ;;  %v20185_v33 = vld [vmem:[#allocation68_spill] sm:$0xff]  ;;  %v8816_v18 = vrot.slane %v12010_v53, 3 }
 0xbb2   :  { %v10865_v32 = vadd.f32 %v17414_v45, %v8143_v8  ;;  %v8145_v11 = vpop.f32.mrb[149].mxu1 }
 0xbb3   :  { %v8146_v41 = vpop.f32.mrb[150].mxu1 }
 0xbb4   :  { %v17792_v31 = vadd.f32 %v10865_v32, %v20183_v59  ;;  %v10866_v5 = vadd.f32 %v17414_v45, %v8146_v41  ;;  %v8148_v27 = vpop.f32.mrb[151].mxu1  ;;  %v8915_v41 = vpack.c.bf16 %v8807_v58, %v8805_v46  ;;  %v20186_v46 = vld [vmem:[#allocation84_spill] sm:$0xff] }
 0xbb6   :  { %v17802_v6 = vadd.f32 %v10866_v5, %v20184_v52  ;;  %10660 = vmatmul.mubr.bf16.gmra.mrb[0].mxu1 %v8913_v43  ;;  %v8812_v43 = vrot.slane %v12008_v16, 3  ;;  %v8818_v52 = vrot.slane %v12011_v54, 3  ;;  %v12014_v54 = vld [vmem:[%s18494_s0 + $0x200] sm:$0xff] }
 0xbb7   :  { %10663 = vmatprep.mubr.bf16.mxu1 %v8914_v62  ;;  %v8916_v62 = vpack.c.bf16 %v8811_v23, %v8809_v42 }
 0xbb8   :  { %v8813_v42 = vsel %vm764_vm5, %v8810_v15, %v8812_v43  ;;  %v8815_v23 = vsel %vm764_vm5, %v8812_v43, %v8814_v63  ;;  %v12013_v15 = vld [vmem:[%s18494_s0 + $0x1f8] sm:$0xff] }
 0xbb9   :  { %v8151_v8 = vpop.f32.mrb[152].mxu1  ;;  %v8917_v25 = vpack.c.bf16 %v8815_v23, %v8813_v42  ;;  %v8822_v43 = vrot.slane %v12013_v15, 3  ;;  %v12015_v42 = vld [vmem:[%s18494_s0 + $0x208] sm:$0xff] }
 0xbba   :  { %v10867_v32 = vadd.f32 %v17414_v45, %v8151_v8  ;;  %v8153_v11 = vpop.f32.mrb[153].mxu1  ;;  %v8817_v8 = vsel %vm764_vm5, %v8814_v63, %v8816_v18  ;;  %v20188_v63 = vld [vmem:[#allocation58_spill] sm:$0xff]  ;;  %v8826_v23 = vrot.slane %v12015_v42, 3 }
 0xbbb   :  { %v8154_v1 = vpop.f32.mrb[154].mxu1 }
 0xbbc   :  { %v17816_v59 = vadd.f32 %v10867_v32, %v20185_v33  ;;  %v10868_v5 = vadd.f32 %v17414_v45, %v8154_v1  ;;  %v8156_v27 = vpop.f32.mrb[155].mxu1  ;;  %v8819_v32 = vsel %vm764_vm5, %v8816_v18, %v8818_v52 }
 0xbbe   :  { %v17826_v58 = vadd.f32 %v10868_v5, %v20186_v46  ;;  %10664 = vmatmul.mubr.bf16.gmra.mrb[4].mxu1 %v8915_v41  ;;  %v12012_v5 = vld [vmem:[%s18494_s0 + $0x1f0] sm:$0xff]  ;;  %v8824_v46 = vrot.slane %v12014_v54, 3 }
 0xbbf   :  { %10667 = vmatprep.mubr.bf16.mxu1 %v8916_v62  ;;  %v8820_v41 = vrot.slane %v12012_v5, 3  ;;  %v8918_v62 = vpack.c.bf16 %v8819_v32, %v8817_v8 }
 0xbc0   :  { %20187 = vst [vmem:[#allocation11_spill] sm:$0xff] %v17826_v58 }
 0xbc1   :  { %v8159_v11 = vpop.f32.mrb[156].mxu1  ;;  %v8821_v8 = vsel %vm764_vm5, %v8818_v52, %v8820_v41  ;;  %v8823_v32 = vsel %vm764_vm5, %v8820_v41, %v8822_v43  ;;  %v12017_v52 = vld [vmem:[%s18494_s0 + $0x218] sm:$0xff] }
 0xbc2   :  { %v10869_v1 = vadd.f32 %v17414_v45, %v8159_v11  ;;  %v8161_v16 = vpop.f32.mrb[157].mxu1  ;;  %v20189_v11 = vld [vmem:[#allocation62_spill] sm:$0xff]  ;;  %v8830_v41 = vrot.slane %v12017_v52, 3 }
 0xbc3   :  { %v8162_v33 = vpop.f32.mrb[158].mxu1 }
 0xbc4   :  { %v17840_v27 = vadd.f32 %v10869_v1, %v20188_v63  ;;  %v10870_v53 = vadd.f32 %v17414_v45, %v8162_v33  ;;  %v8164_v18 = vpop.f32.mrb[159].mxu1  ;;  %v8825_v1 = vsel %vm764_vm5, %v8822_v43, %v8824_v46  ;;  %v8827_v33 = vsel %vm764_vm5, %v8824_v46, %v8826_v23  ;;  %v20190_v43 = vld [vmem:[#allocation72_spill] sm:$0xff] }
 0xbc5   :  { %v8919_v18 = vpack.c.bf16 %v8823_v32, %v8821_v8  ;;  %v12018_v8 = vld [vmem:[%s18494_s0 + $0x220] sm:$0xff] }
 0xbc6   :  { %v17850_v16 = vadd.f32 %v10870_v53, %v20189_v11  ;;  %10668 = vmatmul.mubr.bf16.gmra.mrb[8].mxu1 %v8917_v25  ;;  %v12016_v53 = vld [vmem:[%s18494_s0 + $0x210] sm:$0xff]  ;;  %v8832_v32 = vrot.slane %v12018_v8, 3 }
 0xbc7   :  { %10671 = vmatprep.mubr.bf16.mxu1 %v8918_v62  ;;  %v8828_v25 = vrot.slane %v12016_v53, 3  ;;  %v8920_v62 = vpack.c.bf16 %v8827_v33, %v8825_v1  ;;  %v20192_v53 = vld [vmem:[#allocation20_spill] sm:$0xff] }
 0xbc9   :  { %v8167_v5 = vpop.f32.mrb[160].mxu1  ;;  %v8829_v1 = vsel %vm764_vm5, %v8826_v23, %v8828_v25  ;;  %v8831_v33 = vsel %vm764_vm5, %v8828_v25, %v8830_v41  ;;  %v12021_v23 = vld [vmem:[%s18494_s0 + $0x238] sm:$0xff] }
 0xbca   :  { %v10871_v15 = vadd.f32 %v17414_v45, %v8167_v5  ;;  %v8169_v63 = vpop.f32.mrb[161].mxu1  ;;  %v12019_v5 = vld [vmem:[%s18494_s0 + $0x228] sm:$0xff]  ;;  %v8921_v8 = vpack.c.bf16 %v8831_v33, %v8829_v1  ;;  %v8838_v25 = vrot.slane %v12021_v23, 3  ;;  %v12022_v1 = vld [vmem:[%s18494_s0 + $0x240] sm:$0xff] }
 0xbcb   :  { %v8170_v54 = vpop.f32.mrb[162].mxu1  ;;  %v8834_v63 = vrot.slane %v12019_v5, 3  ;;  %v8840_v33 = vrot.slane %v12022_v1, 3 }
 0xbcc   :  { %v17864_v42 = vadd.f32 %v10871_v15, %v20190_v43  ;;  %v10872_v46 = vadd.f32 %v17414_v45, %v8170_v54  ;;  %v8172_v11 = vpop.f32.mrb[163].mxu1  ;;  %v8833_v15 = vsel %vm764_vm5, %v8830_v41, %v8832_v32  ;;  %v20194_v41 = vld [vmem:[#allocation66_spill] sm:$0xff] }
 0xbcd   :  { %v8835_v54 = vsel %vm764_vm5, %v8832_v32, %v8834_v63 }
 0xbce   :  { %20191 = vst [vmem:[#allocation75_spill] sm:$0xff] %v17864_v42  ;;  %v17874_v58 = vadd.f32 %v10872_v46, %v20192_v53  ;;  %10672 = vmatmul.mubr.bf16.gmra.mrb[12].mxu1 %v8919_v18  ;;  %v12020_v46 = vld [vmem:[%s18494_s0 + $0x230] sm:$0xff] }
 0xbcf   :  { %10675 = vmatprep.mubr.bf16.mxu1 %v8920_v62  ;;  %v8836_v18 = vrot.slane %v12020_v46, 3  ;;  %v8922_v62 = vpack.c.bf16 %v8835_v54, %v8833_v15  ;;  %v20196_v46 = vld [vmem:[#allocation90_spill] sm:$0xff] }
 0xbd0   :  { %20193 = vst [vmem:[#allocation16_spill] sm:$0xff] %v17874_v58 }
 0xbd1   :  { %v8175_v52 = vpop.f32.mrb[164].mxu1  ;;  %v8837_v15 = vsel %vm764_vm5, %v8834_v63, %v8836_v18  ;;  %v8839_v54 = vsel %vm764_vm5, %v8836_v18, %v8838_v25  ;;  %v12025_v63 = vld [vmem:[%s18494_s0 + $0x258] sm:$0xff] }
 0xbd2   :  { %v10873_v43 = vadd.f32 %v17414_v45, %v8175_v52  ;;  %v8177_v11 = vpop.f32.mrb[165].mxu1  ;;  %v12023_v52 = vld [vmem:[%s18494_s0 + $0x248] sm:$0xff]  ;;  %v8923_v1 = vpack.c.bf16 %v8839_v54, %v8837_v15  ;;  %v8846_v18 = vrot.slane %v12025_v63, 3  ;;  %v12026_v15 = vld [vmem:[%s18494_s0 + $0x260] sm:$0xff] }
 0xbd3   :  { %v8178_v42 = vpop.f32.mrb[166].mxu1  ;;  %v8842_v11 = vrot.slane %v12023_v52, 3  ;;  %v8848_v54 = vrot.slane %v12026_v15, 3 }
 0xbd4   :  { %v17888_v5 = vadd.f32 %v10873_v43, %v20194_v41  ;;  %v10874_v32 = vadd.f32 %v17414_v45, %v8178_v42  ;;  %v8180_v53 = vpop.f32.mrb[167].mxu1  ;;  %v8841_v42 = vsel %vm764_vm5, %v8838_v25, %v8840_v33  ;;  %v20198_v25 = vld [vmem:[#allocation125_spill] sm:$0xff] }
 0xbd5   :  { %v8843_v43 = vsel %vm764_vm5, %v8840_v33, %v8842_v11 }
 0xbd6   :  { %20195 = vst [vmem:[#allocation79_spill] sm:$0xff] %v17888_v5  ;;  %v17898_v58 = vadd.f32 %v10874_v32, %v20196_v46  ;;  %10676 = vmatmul.mubr.bf16.gmra.mrb[16].mxu1 %v8921_v8  ;;  %v12024_v32 = vld [vmem:[%s18494_s0 + $0x250] sm:$0xff] }
 0xbd7   :  { %10679 = vmatprep.mubr.bf16.mxu1 %v8922_v62  ;;  %v8844_v8 = vrot.slane %v12024_v32, 3  ;;  %v8924_v62 = vpack.c.bf16 %v8843_v43, %v8841_v42  ;;  %v20200_v32 = vld [vmem:[#allocation28_spill] sm:$0xff] }
 0xbd8   :  { %20197 = vst [vmem:[#allocation81_spill] sm:$0xff] %v17898_v58 }
 0xbd9   :  { %v8183_v23 = vpop.f32.mrb[168].mxu1  ;;  %v8845_v42 = vsel %vm764_vm5, %v8842_v11, %v8844_v8  ;;  %v8847_v43 = vsel %vm764_vm5, %v8844_v8, %v8846_v18  ;;  %v12029_v11 = vld [vmem:[%s18494_s0 + $0x278] sm:$0xff] }
 0xbda   :  { %v10875_v41 = vadd.f32 %v17414_v45, %v8183_v23  ;;  %v8185_v53 = vpop.f32.mrb[169].mxu1  ;;  %v12027_v23 = vld [vmem:[%s18494_s0 + $0x268] sm:$0xff]  ;;  %v8925_v15 = vpack.c.bf16 %v8847_v43, %v8845_v42  ;;  %v8854_v8 = vrot.slane %v12029_v11, 3 }
 0xbdb   :  { %v8186_v5 = vpop.f32.mrb[170].mxu1  ;;  %v8850_v53 = vrot.slane %v12027_v23, 3 }
 0xbdc   :  { %v17912_v52 = vadd.f32 %v10875_v41, %v20198_v25  ;;  %v10876_v33 = vadd.f32 %v17414_v45, %v8186_v5  ;;  %v8188_v46 = vpop.f32.mrb[171].mxu1  ;;  %v8849_v5 = vsel %vm764_vm5, %v8846_v18, %v8848_v54  ;;  %v20202_v18 = vld [vmem:[#allocation119_spill] sm:$0xff] }
 0xbdd   :  { %v8851_v41 = vsel %vm764_vm5, %v8848_v54, %v8850_v53 }
 0xbde   :  { %20199 = vst [vmem:[#allocation83_spill] sm:$0xff] %v17912_v52  ;;  %v17922_v58 = vadd.f32 %v10876_v33, %v20200_v32  ;;  %10680 = vmatmul.mubr.bf16.gmra.mrb[20].mxu1 %v8923_v1  ;;  %v12028_v33 = vld [vmem:[%s18494_s0 + $0x270] sm:$0xff] }
 0xbdf   :  { %10683 = vmatprep.mubr.bf16.mxu1 %v8924_v62  ;;  %v8852_v1 = vrot.slane %v12028_v33, 3  ;;  %v8926_v62 = vpack.c.bf16 %v8851_v41, %v8849_v5 }
 0xbe0   :  { %20201 = vst [vmem:[#allocation39_spill] sm:$0xff] %v17922_v58 }
 0xbe1   :  { %v8191_v63 = vpop.f32.mrb[172].mxu1  ;;  %v8853_v43 = vsel %vm764_vm5, %v8850_v53, %v8852_v1 }
 0xbe2   :  { %v10877_v25 = vadd.f32 %v17414_v45, %v8191_v63  ;;  %v8193_v46 = vpop.f32.mrb[173].mxu1  ;;  %v20203_v63 = vld [vmem:[#allocation93_spill] sm:$0xff] }
 0xbe3   :  { %v8194_v52 = vpop.f32.mrb[174].mxu1  ;;  %v8855_v46 = vsel %vm764_vm5, %v8852_v1, %v8854_v8 }
 0xbe4   :  { %v17936_v23 = vadd.f32 %v10877_v25, %v20202_v18  ;;  %v10878_v54 = vadd.f32 %v17414_v45, %v8194_v52  ;;  %v8196_v32 = vpop.f32.mrb[175].mxu1  ;;  %v8927_v5 = vpack.c.bf16 %v8855_v46, %v8853_v43  ;;  %v20205_v25 = vld [vmem:[#allocation130_spill] sm:$0xff] }
 0xbe6   :  { %v17940_v42 = vadd.f32 %v10878_v54, %v20203_v63  ;;  %10684 = vmatmul.mubr.bf16.gmra.mrb[24].mxu1 %v8925_v15  ;;  %v20207_v54 = vld [vmem:[#allocation132_spill] sm:$0xff] }
 0xbe7   :  { %10687 = vmatprep.mubr.bf16.mxu1 %v8926_v62  ;;  %v20209_v62 = vld [vmem:[#allocation101_spill] sm:$0xff] }
 0xbe8   :  { %20204 = vst [vmem:[#allocation36_spill] sm:$0xff] %v17940_v42 }
 0xbe9   :  { %v8199_v33 = vpop.f32.mrb[176].mxu1 }
 0xbea   :  { %v10879_v58 = vadd.f32 %v17414_v45, %v8199_v33  ;;  %v8201_v11 = vpop.f32.mrb[177].mxu1 }
 0xbeb   :  { %v8202_v41 = vpop.f32.mrb[178].mxu1 }
 0xbec   :  { %v17946_v18 = vadd.f32 %v10879_v58, %v20205_v25  ;;  %v10880_v52 = vadd.f32 %v17414_v45, %v8202_v41  ;;  %v8204_v32 = vpop.f32.mrb[179].mxu1  ;;  %v20211_v58 = vld [vmem:[#allocation131_spill] sm:$0xff] }
 0xbee   :  { %20206 = vst [vmem:[#allocation87_spill] sm:$0xff] %v17946_v18  ;;  %v17950_v63 = vadd.f32 %v10880_v52, %v20207_v54  ;;  %10688 = vmatmul.mubr.bf16.gmra.mrb[28].mxu1 %v8927_v5  ;;  %v20213_v5 = vld [vmem:[#allocation134_spill] sm:$0xff] }
 0xbf0   :  { %20208 = vst [vmem:[#allocation102_spill] sm:$0xff] %v17950_v63  ;;  %v20215_v63 = vld [vmem:[#allocation136_spill] sm:$0xff] }
 0xbf1   :  { %v8207_v53 = vpop.f32.mrb[180].mxu1 }
 0xbf2   :  { %v10881_v15 = vadd.f32 %v17414_v45, %v8207_v53  ;;  %v8209_v1 = vpop.f32.mrb[181].mxu1 }
 0xbf3   :  { %v8210_v8 = vpop.f32.mrb[182].mxu1 }
 0xbf4   :  { %v17954_v33 = vadd.f32 %v10881_v15, %v20209_v62  ;;  %v10882_v43 = vadd.f32 %v17414_v45, %v8210_v8  ;;  %v8212_v46 = vpop.f32.mrb[183].mxu1 }
 0xbf6   :  { %20210 = vst [vmem:[#allocation113_spill] sm:$0xff] %v17954_v33  ;;  %v17958_v11 = vadd.f32 %v10882_v43, %v20211_v58  ;;  %v20217_v58 = vld [vmem:[#allocation133_spill] sm:$0xff] }
 0xbf8   :  { %20212 = vst [vmem:[#allocation115_spill] sm:$0xff] %v17958_v11 }
 0xbf9   :  { %v8215_v41 = vpop.f32.mrb[184].mxu1 }
 0xbfa   :  { %v10883_v25 = vadd.f32 %v17414_v45, %v8215_v41  ;;  %v8217_v52 = vpop.f32.mrb[185].mxu1 }
 0xbfb   :  { %v8218_v32 = vpop.f32.mrb[186].mxu1 }
 0xbfc   :  { %v17962_v54 = vadd.f32 %v10883_v25, %v20213_v5  ;;  %v10884_v53 = vadd.f32 %v17414_v45, %v8218_v32  ;;  %v8220_v1 = vpop.f32.mrb[187].mxu1  ;;  %v17976_v25 = vld [vmem:[%s18507_s13 + $0x4] ss:$12 sps:$4 sm:$0xff]   ;;  %v20220_v32 = vld [vmem:[#allocation135_spill] sm:$0xff] }
 0xbfd   :  { %20219 = vst [vmem:[#allocation9_spill] sm:$0xff] %v17976_v25  ;;  %9608 = vmatprep.mubr.bf16.mxu0 %v17976_v25 }
 0xbfe   :  { %20214 = vst [vmem:[#allocation129_spill] sm:$0xff] %v17962_v54  ;;  %v17966_v15 = vadd.f32 %v10884_v53, %v20215_v63  ;;  %v19104_v53 = vmov 0.0  }
 0xbff   :  { %10723 = vmatprep.subr.bf16.mxu1 %v19104_v53 }
 0xc00   :  { %20216 = vst [vmem:[#allocation121_spill] sm:$0xff] %v17966_v15  ;;  %v20224_v15 = vld [vmem:[#allocation140_spill] sm:$0xff] }
 0xc01   :  { %v8223_v62 = vpop.f32.mrb[188].mxu1 }
 0xc02   :  { %v10885_v8 = vadd.f32 %v17414_v45, %v8223_v62  ;;  %v8225_v46 = vpop.f32.mrb[189].mxu1 }
 0xc03   :  { %v8226_v43 = vpop.f32.mrb[190].mxu1  ;;  %v20222_v46 = vld [vmem:[#allocation138_spill] sm:$0xff] }
 0xc04   :  { %v17970_v11 = vadd.f32 %v10885_v8, %v20217_v58  ;;  %v10886_v41 = vadd.f32 %v17414_v45, %v8226_v43  ;;  %v8228_v52 = vpop.f32.mrb[191].mxu1 }
 0xc06   :  { %20218 = vst [vmem:[#allocation117_spill] sm:$0xff] %v17970_v11  ;;  %v17979_v5 = vadd.f32 %v10886_v41, %v20220_v32  ;;  %v20226_v11 = vld [vmem:[#allocation137_spill] sm:$0xff] }
 0xc08   :  { %20221 = vst [vmem:[#allocation71_spill] sm:$0xff] %v17979_v5 }
 0xc09   :  { %v8231_v63 = vpop.f32.mrb[192].mxu1 }
 0xc0a   :  { %v10887_v1 = vadd.f32 %v17414_v45, %v8231_v63  ;;  %v8233_v62 = vpop.f32.mrb[193].mxu1  ;;  %v12030_v63 = vld [vmem:[%s18502_s8] ss:$0 sm:$0xff] }
 0xc0b   :  { %v8234_v8 = vpop.f32.mrb[194].mxu1 }
 0xc0c   :  { %v17985_v43 = vadd.f32 %v10887_v1, %v20222_v46  ;;  %v10888_v58 = vadd.f32 %v17414_v45, %v8234_v8  ;;  %v8236_v52 = vpop.f32.mrb[195].mxu1  ;;  %v20228_v46 = vld [vmem:[#allocation139_spill] sm:$0xff] }
 0xc0e   :  { %20223 = vst [vmem:[#allocation123_spill] sm:$0xff] %v17985_v43  ;;  %v17989_v54 = vadd.f32 %v10888_v58, %v20224_v15  ;;  %v20230_v43 = vld [vmem:[#allocation142_spill] sm:$0xff] }
 0xc10   :  { %20225 = vst [vmem:[#allocation127_spill] sm:$0xff] %v17989_v54 }
 0xc11   :  { %v8239_v41 = vpop.f32.mrb[196].mxu1 }
 0xc12   :  { %v10889_v32 = vadd.f32 %v17414_v45, %v8239_v41  ;;  %v8241_v25 = vpop.f32.mrb[197].mxu1 }
 0xc13   :  { %v8242_v5 = vpop.f32.mrb[198].mxu1 }
 0xc14   :  { %v17993_v53 = vadd.f32 %v10889_v32, %v20226_v11  ;;  %v10890_v1 = vadd.f32 %v12030_v63, %v8242_v5  ;;  %v8244_v62 = vpop.f32.mrb[199].mxu1  ;;  %v20232_v11 = vld [vmem:[#allocation144_spill] sm:$0xff] }
 0xc15   :  { %v20234_v62 = vld [vmem:[#allocation141_spill] sm:$0xff] }
 0xc16   :  { %20227 = vst [vmem:[#allocation91_spill] sm:$0xff] %v17993_v53  ;;  %v17999_v8 = vadd.f32 %v10890_v1, %v20228_v46 }
 0xc18   :  { %20229 = vst [vmem:[#allocation33_spill] sm:$0xff] %v17999_v8 }
 0xc19   :  { %v8247_v52 = vpop.f32.mrb[200].mxu1 }
 0xc1a   :  { %v10891_v15 = vadd.f32 %v12030_v63, %v8247_v52  ;;  %v8249_v58 = vpop.f32.mrb[201].mxu1  ;;  %v20236_v52 = vld [vmem:[#allocation143_spill] sm:$0xff] }
 0xc1b   :  { %v8250_v54 = vpop.f32.mrb[202].mxu1 }
 0xc1c   :  { %v18002_v45 = vadd.f32 %v10891_v15, %v20230_v43  ;;  %v10892_v25 = vadd.f32 %v12030_v63, %v8250_v54  ;;  %v8252_v41 = vpop.f32.mrb[203].mxu1 }
 0xc1d   :  { %v20237_v41 = vld [vmem:[#allocation146_spill] sm:$0xff] }
 0xc1e   :  { %20231 = vst [vmem:[#allocation128_spill] sm:$0xff] %v18002_v45  ;;  %v18005_v32 = vadd.f32 %v10892_v25, %v20232_v11 }
 0xc20   :  { %20233 = vst [vmem:[#allocation69_spill] sm:$0xff] %v18005_v32 }
 0xc21   :  { %v8255_v53 = vpop.f32.mrb[204].mxu1 }
 0xc22   :  { %v10893_v18 = vadd.f32 %v12030_v63, %v8255_v53  ;;  %v8257_v33 = vpop.f32.mrb[205].mxu1  ;;  %v20239_v53 = vld [vmem:[#allocation148_spill] sm:$0xff] }
 0xc23   :  { %v8258_v5 = vpop.f32.mrb[206].mxu1 }
 0xc24   :  { %v18008_v42 = vadd.f32 %v10893_v18, %v20234_v62  ;;  %v10894_v1 = vadd.f32 %v12030_v63, %v8258_v5  ;;  %v8260_v46 = vpop.f32.mrb[207].mxu1 }
 0xc25   :  { %v20241_v46 = vld [vmem:[#allocation145_spill] sm:$0xff] }
 0xc26   :  { %20235 = vst [vmem:[#allocation34_spill] sm:$0xff] %v18008_v42  ;;  %v18011_v58 = vadd.f32 %v10894_v1, %v20236_v52 }
 0xc29   :  { %v8263_v8 = vpop.f32.mrb[208].mxu1 }
 0xc2a   :  { %v10895_v43 = vadd.f32 %v12030_v63, %v8263_v8  ;;  %v8265_v15 = vpop.f32.mrb[209].mxu1  ;;  %v20242_v8 = vld [vmem:[#allocation147_spill] sm:$0xff] }
 0xc2b   :  { %v8266_v54 = vpop.f32.mrb[210].mxu1 }
 0xc2c   :  { %v18014_v45 = vadd.f32 %v10895_v43, %v20237_v41  ;;  %v10896_v25 = vadd.f32 %v12030_v63, %v8266_v54  ;;  %v8268_v11 = vpop.f32.mrb[211].mxu1  ;;  %v18028_v43 = vld [vmem:[%s18504_s10] ss:$0 sm:$0xff] }
 0xc2e   :  { %20238 = vst [vmem:[#allocation95_spill] sm:$0xff] %v18014_v45  ;;  %v18017_v33 = vadd.f32 %v10896_v25, %v20239_v53 }
 0xc30   :  { %20240 = vst [vmem:[#allocation67_spill] sm:$0xff] %v18017_v33 }
 0xc31   :  { %v8271_v32 = vpop.f32.mrb[212].mxu1 }
 0xc32   :  { %v10897_v18 = vadd.f32 %v12030_v63, %v8271_v32  ;;  %v8273_v62 = vpop.f32.mrb[213].mxu1 }
 0xc33   :  { %v8274_v5 = vpop.f32.mrb[214].mxu1 }
 0xc34   :  { %v18020_v42 = vadd.f32 %v10897_v18, %v20241_v46  ;;  %v10898_v1 = vadd.f32 %v12030_v63, %v8274_v5  ;;  %v8276_v52 = vpop.f32.mrb[215].mxu1 }
 0xc36   :  { %v18023_v15 = vadd.f32 %v10898_v1, %v20242_v8  ;;  %v20244_v1 = vmov 0.0  }
 0xc37   :  { %10727 = vmatprep.mubr.msk.bf16.mxu1 %vm12084_vm10, %v20244_v1 }
 0xc38   :  { %20243 = vst [vmem:[#allocation8_spill] sm:$0xff] %v18023_v15 }
 0xc39   :  { %v10621_v54 = vpop.f32.mrb[216].mxu1 }
 0xc3a   :  { %v9042_v41 = vadd.f32 %v10621_v54, %v18028_v43  ;;  %v9033_v25 = vpop.f32.mrb[217].mxu1 }
 0xc3b   :  { %v9034_v32 = vadd.f32 %v18028_v43, %v9033_v25  ;;  %v10622_v11 = vpop.f32.mrb[218].mxu1 }
 0xc3c   :  { %v18033_v53 = vadd.f32 %v9042_v41, %v17430_v26  ;;  %v9045_v63 = vadd.f32 %v10622_v11, %v18028_v43  ;;  %v9036_v18 = vpop.f32.mrb[219].mxu1 }
 0xc3d   :  { %v18037_v62 = vadd.f32 %v9034_v32, %v17418_v3  ;;  %v9037_v5 = vadd.f32 %v18028_v43, %v9036_v18 }
 0xc3e   :  { %v18041_v46 = vadd.f32 %v9045_v63, %v17434_v19 }
 0xc3f   :  { %v18046_v52 = vadd.f32 %v9037_v5, %v17422_v12 }
 0xc41   :  { %v10625_v3 = vpop.f32.mrb[220].mxu1 }
 0xc42   :  { %v9058_v54 = vadd.f32 %v10625_v3, %v18028_v43  ;;  %v9049_v41 = vpop.f32.mrb[221].mxu1 }
 0xc43   :  { %v9050_v19 = vadd.f32 %v18028_v43, %v9049_v41  ;;  %v10626_v25 = vpop.f32.mrb[222].mxu1 }
 0xc44   :  { %v18055_v32 = vadd.f32 %v9058_v54, %v17454_v44  ;;  %v9061_v11 = vadd.f32 %v10626_v25, %v18028_v43  ;;  %v9052_v12 = vpop.f32.mrb[223].mxu1 }
 0xc45   :  { %v18059_v63 = vadd.f32 %v9050_v19, %v17442_v30  ;;  %v9053_v18 = vadd.f32 %v18028_v43, %v9052_v12 }
 0xc46   :  { %v18063_v5 = vadd.f32 %v9061_v11, %v17458_v50 }
 0xc47   :  { %v18066_v3 = vadd.f32 %v9053_v18, %v17446_v0 }
 0xc49   :  { %v10629_v54 = vpop.f32.mrb[224].mxu1 }
 0xc4a   :  { %v9074_v25 = vadd.f32 %v10629_v54, %v18028_v43  ;;  %v9065_v26 = vpop.f32.mrb[225].mxu1 }
 0xc4b   :  { %v9066_v30 = vadd.f32 %v18028_v43, %v9065_v26  ;;  %v10630_v19 = vpop.f32.mrb[226].mxu1 }
 0xc4c   :  { %v18075_v12 = vadd.f32 %v9074_v25, %v17476_v28  ;;  %v9077_v50 = vadd.f32 %v10630_v19, %v18028_v43  ;;  %v9068_v0 = vpop.f32.mrb[227].mxu1 }
 0xc4d   :  { %v18079_v11 = vadd.f32 %v9066_v30, %v17466_v34  ;;  %v9069_v18 = vadd.f32 %v18028_v43, %v9068_v0 }
 0xc4e   :  { %v18083_v41 = vadd.f32 %v9077_v50, %v17480_v9 }
 0xc4f   :  { %v18086_v54 = vadd.f32 %v9069_v18, %v17470_v47 }
 0xc51   :  { %v10633_v25 = vpop.f32.mrb[228].mxu1 }
 0xc52   :  { %v9090_v19 = vadd.f32 %v10633_v25, %v18028_v43  ;;  %v9081_v44 = vpop.f32.mrb[229].mxu1 }
 0xc53   :  { %v9082_v34 = vadd.f32 %v18028_v43, %v9081_v44  ;;  %v10634_v30 = vpop.f32.mrb[230].mxu1 }
 0xc54   :  { %v18095_v0 = vadd.f32 %v9090_v19, %v17500_v39  ;;  %v9093_v9 = vadd.f32 %v10634_v30, %v18028_v43  ;;  %v9084_v47 = vpop.f32.mrb[231].mxu1 }
 0xc55   :  { %v18099_v50 = vadd.f32 %v9082_v34, %v17487_v20  ;;  %v9085_v18 = vadd.f32 %v18028_v43, %v9084_v47 }
 0xc56   :  { %v18103_v26 = vadd.f32 %v9093_v9, %v17510_v60 }
 0xc57   :  { %v18106_v25 = vadd.f32 %v9085_v18, %v17491_v17 }
 0xc59   :  { %v10637_v19 = vpop.f32.mrb[232].mxu1 }
 0xc5a   :  { %v9106_v30 = vadd.f32 %v10637_v19, %v18028_v43  ;;  %v9097_v28 = vpop.f32.mrb[233].mxu1 }
 0xc5b   :  { %v9098_v20 = vadd.f32 %v18028_v43, %v9097_v28  ;;  %v10638_v34 = vpop.f32.mrb[234].mxu1 }
 0xc5c   :  { %v9338_v47 = vadd.f32 %v9106_v30, %v17549_v61  ;;  %v9109_v60 = vadd.f32 %v10638_v34, %v18028_v43  ;;  %v9100_v9 = vpop.f32.mrb[235].mxu1  ;;  %v20246_v34 = vpack.c.bf16 %v18041_v46, %v18033_v53 }
 0xc5d   :  { %v9336_v17 = vadd.f32 %v9098_v20, %v17524_v57  ;;  %v9101_v18 = vadd.f32 %v18028_v43, %v9100_v9 }
 0xc5e   :  { %v9339_v44 = vadd.f32 %v9109_v60, %v17559_v10  ;;  %v20245_v10 = vpack.c.bf16 %v18046_v52, %v18037_v62 }
 0xc5f   :  { %v9337_v39 = vadd.f32 %v9101_v18, %v17534_v55  ;;  %v20248_v18 = vpack.c.bf16 %v18063_v5, %v18055_v32 }
 0xc60   :  { %v9401_v8 = vpack.c.bf16 %v9339_v44, %v9338_v47 }
 0xc61   :  { %v10641_v33 = vpop.f32.mrb[236].mxu1  ;;  %v9400_v19 = vpack.c.bf16 %v9337_v39, %v9336_v17 }
 0xc62   :  { %v9122_v15 = vadd.f32 %v10641_v33, %v18028_v43  ;;  %v9113_v28 = vpop.f32.mrb[237].mxu1 }
 0xc63   :  { %v9114_v45 = vadd.f32 %v18028_v43, %v9113_v28  ;;  %v10642_v61 = vpop.f32.mrb[238].mxu1  ;;  %10293 = vmatprep.subr.bf16.mxu0 %v9400_v19 }
 0xc64   :  { %v9342_v30 = vadd.f32 %v9122_v15, %v17597_v29  ;;  %v9125_v57 = vadd.f32 %v10642_v61, %v18028_v43  ;;  %v9116_v20 = vpop.f32.mrb[239].mxu1  ;;  %10294 = vmatpush3.bf16.msra.mxu0 %v20245_v10 }
 0xc65   :  { %v9340_v55 = vadd.f32 %v9114_v45, %v17573_v56  ;;  %v9117_v44 = vadd.f32 %v18028_v43, %v9116_v20  ;;  %10295 = vmatprep.subr.bf16.mxu0 %v9401_v8 }
 0xc66   :  { %v9343_v33 = vadd.f32 %v9125_v57, %v17607_v13 }
 0xc67   :  { %v9341_v39 = vadd.f32 %v9117_v44, %v17583_v51  ;;  %v20247_v51 = vpack.c.bf16 %v18066_v3, %v18059_v63 }
 0xc68   :  { %10296 = vmatpush3.bf16.msra.mxu0 %v20246_v34  ;;  %v9403_v29 = vpack.c.bf16 %v9343_v33, %v9342_v30 }
 0xc69   :  { %v10645_v15 = vpop.f32.mrb[240].mxu1  ;;  %v9402_v47 = vpack.c.bf16 %v9341_v39, %v9340_v55  ;;  %v20250_v55 = vpack.c.bf16 %v18083_v41, %v18075_v12 }
 0xc6a   :  { %v9138_v60 = vadd.f32 %v10645_v15, %v18028_v43  ;;  %v9129_v62 = vpop.f32.mrb[241].mxu1 }
 0xc6b   :  { %v9130_v52 = vadd.f32 %v18028_v43, %v9129_v62  ;;  %v10646_v56 = vpop.f32.mrb[242].mxu1  ;;  %10297 = vmatprep.subr.bf16.mxu0 %v9402_v47  ;;  %v20252_v62 = vpack.c.bf16 %v18103_v26, %v18095_v0 }
 0xc6c   :  { %v9346_v45 = vadd.f32 %v9138_v60, %v17645_v21  ;;  %v9141_v13 = vadd.f32 %v10646_v56, %v18028_v43  ;;  %v9132_v8 = vpop.f32.mrb[243].mxu1  ;;  %10298 = vmatpush3.bf16.msra.mxu0 %v20247_v51 }
 0xc6d   :  { %v9344_v53 = vadd.f32 %v9130_v52, %v17621_v38  ;;  %v9133_v46 = vadd.f32 %v18028_v43, %v9132_v8  ;;  %10299 = vmatprep.subr.bf16.mxu0 %v9403_v29 }
 0xc6e   :  { %v9347_v9 = vadd.f32 %v9141_v13, %v17655_v36 }
 0xc6f   :  { %v9345_v17 = vadd.f32 %v9133_v46, %v17631_v22  ;;  %v20249_v22 = vpack.c.bf16 %v18086_v54, %v18079_v11 }
 0xc70   :  { %10300 = vmatpush3.bf16.msra.mxu0 %v20248_v18  ;;  %v9405_v21 = vpack.c.bf16 %v9347_v9, %v9346_v45 }
 0xc71   :  { %v10649_v19 = vpop.f32.mrb[244].mxu1  ;;  %v9404_v28 = vpack.c.bf16 %v9345_v17, %v9344_v53 }
 0xc72   :  { %v9154_v61 = vadd.f32 %v10649_v19, %v18028_v43  ;;  %v9145_v63 = vpop.f32.mrb[245].mxu1 }
 0xc73   :  { %v9146_v3 = vadd.f32 %v18028_v43, %v9145_v63  ;;  %v10650_v38 = vpop.f32.mrb[246].mxu1  ;;  %10301 = vmatprep.subr.bf16.mxu0 %v9404_v28 }
 0xc74   :  { %v9350_v30 = vadd.f32 %v9154_v61, %v17693_v48  ;;  %v9157_v36 = vadd.f32 %v10650_v38, %v18028_v43  ;;  %v9148_v57 = vpop.f32.mrb[247].mxu1  ;;  %10302 = vmatpush3.bf16.msra.mxu0 %v20249_v22 }
 0xc75   :  { %v9348_v32 = vadd.f32 %v9146_v3, %v17669_v37  ;;  %v9149_v5 = vadd.f32 %v18028_v43, %v9148_v57  ;;  %10303 = vmatprep.subr.bf16.mxu0 %v9405_v21 }
 0xc76   :  { %v9351_v20 = vadd.f32 %v9157_v36, %v17703_v14 }
 0xc77   :  { %v9349_v10 = vadd.f32 %v9149_v5, %v17679_v7  ;;  %v20251_v7 = vpack.c.bf16 %v18106_v25, %v18099_v50 }
 0xc78   :  { %10304 = vmatpush3.bf16.msra.mxu0 %v20250_v55  ;;  %v9407_v48 = vpack.c.bf16 %v9351_v20, %v9350_v30  ;;  %v20253_v30 = vld [vmem:[#allocation11_spill] sm:$0xff] }
 0xc79   :  { %v10653_v44 = vpop.f32.mrb[248].mxu1  ;;  %v9406_v33 = vpack.c.bf16 %v9349_v10, %v9348_v32  ;;  %v20254_v55 = vld [vmem:[#allocation79_spill] sm:$0xff] }
 0xc7a   :  { %v9170_v39 = vadd.f32 %v10653_v44, %v18028_v43  ;;  %v9161_v11 = vpop.f32.mrb[249].mxu1 }
 0xc7b   :  { %v9162_v54 = vadd.f32 %v18028_v43, %v9161_v11  ;;  %v10654_v37 = vpop.f32.mrb[250].mxu1  ;;  %10305 = vmatprep.subr.bf16.mxu0 %v9406_v33 }
 0xc7c   :  { %v9354_v34 = vadd.f32 %v9170_v39, %v17744_v35  ;;  %v9173_v14 = vadd.f32 %v10654_v37, %v18028_v43  ;;  %v9164_v29 = vpop.f32.mrb[251].mxu1  ;;  %10306 = vmatpush3.bf16.msra.mxu0 %v20251_v7  ;;  %v18176_v35 = vld [vmem:[%s18507_s13] ss:$12 sps:$4 sm:$0xff]   ;;  %v20256_v37 = vld [vmem:[#allocation81_spill] sm:$0xff]  ;;  %v18273_v7 = vld [vmem:[%s18507_s13 + $0x48] ss:$12 sps:$4 sm:$0xff]  }
 0xc7d   :  { %v9352_v41 = vadd.f32 %v9162_v54, %v17720_v24  ;;  %v9165_v12 = vadd.f32 %v18028_v43, %v9164_v29  ;;  %10307 = vmatprep.subr.bf16.mxu0 %v9407_v48  ;;  %v18184_v24 = vld [vmem:[%s18507_s13 + $0x1c] ss:$12 sps:$4 sm:$0xff]  }
 0xc7e   :  { %v9355_v15 = vadd.f32 %v9173_v14, %v17754_v40  ;;  %v20255_v39 = vld [vmem:[#allocation75_spill] sm:$0xff]  ;;  %v20257_v14 = vld [vmem:[#allocation16_spill] sm:$0xff] }
 0xc7f   :  { %v9353_v47 = vadd.f32 %v9165_v12, %v17730_v2  ;;  %v18280_v12 = vld [vmem:[%s18507_s13 + $0x64] ss:$12 sps:$4 sm:$0xff]  }
 0xc80   :  { %v9409_v60 = vpack.c.bf16 %v9355_v15, %v9354_v34  ;;  %10308 = vmatpush3.bf16.msra.mxu0 %v20252_v62 }
 0xc81   :  { %v9408_v50 = vpack.c.bf16 %v9353_v47, %v9352_v41  ;;  %v10657_v25 = vpop.f32.mrb[252].mxu1  ;;  %10691 = vmatprep.subr.bf16.mxu0 %v20244_v1 }
 0xc82   :  { %v9186_v2 = vadd.f32 %v10657_v25, %v18028_v43  ;;  %v9177_v40 = vpop.f32.mrb[253].mxu1 }
 0xc83   :  { %v9178_v52 = vadd.f32 %v18028_v43, %v9177_v40  ;;  %v10658_v56 = vpop.f32.mrb[254].mxu1  ;;  %9609 = vmatmul.mubr.bf16.vlgmr.msra.gmra.mrb[216].mxu0 %v18176_v35 }
 0xc84   :  { %v18191_v26 = vadd.f32 %v9186_v2, %v17792_v31  ;;  %v9189_v0 = vadd.f32 %v10658_v56, %v18028_v43  ;;  %v9180_v45 = vpop.f32.mrb[255].mxu1  ;;  %10692 = vmatpush3.bf16.msra.mxu0 %v9408_v50  ;;  %9616 = vmatprep.mubr.bf16.mxu0 %v18184_v24  ;;  %v18209_v31 = vld [vmem:[%s18507_s13 + $0x18] ss:$12 sps:$4 sm:$0xff]   ;;  %v20258_v56 = vld [vmem:[#allocation83_spill] sm:$0xff] }
 0xc85   :  { %v18196_v13 = vadd.f32 %v9178_v52, %v17768_v4  ;;  %v9181_v8 = vadd.f32 %v18028_v43, %v9180_v45  ;;  %10693 = vmatprep.subr.bf16.mxu0 %v20244_v1  ;;  %v18216_v4 = vld [vmem:[%s18507_s13 + $0x34] ss:$12 sps:$4 sm:$0xff]  }
 0xc86   :  { %v18201_v51 = vadd.f32 %v9189_v0, %v17802_v6 }
 0xc87   :  { %v18204_v53 = vadd.f32 %v9181_v8, %v17778_v49  ;;  %v20259_v8 = vld [vmem:[#allocation36_spill] sm:$0xff] }
 0xc88   :  { %v9411_v46 = vpack.c.bf16 %v18201_v51, %v18191_v26  ;;  %10694 = vmatpush3.bf16.msra.mxu0 %v9409_v60  ;;  %v20276_v51 = vld [vmem:[#allocation95_spill] sm:$0xff] }
 0xc89   :  { %v9410_v6 = vpack.c.bf16 %v18204_v53, %v18196_v13  ;;  %v10661_v9 = vpop.f32.mrb[0].mxu1 }
 0xc8a   :  { %v9202_v49 = vadd.f32 %v10661_v9, %v18028_v43  ;;  %v9193_v17 = vpop.f32.mrb[1].mxu1 }
 0xc8b   :  { %v9194_v18 = vadd.f32 %v18028_v43, %v9193_v17  ;;  %v10662_v21 = vpop.f32.mrb[2].mxu1  ;;  %9617 = vmatmul.mubr.bf16.gmra.mrb[220].mxu0 %v18209_v31 }
 0xc8c   :  { %v18224_v19 = vadd.f32 %v9202_v49, %v17840_v27  ;;  %v9205_v28 = vadd.f32 %v10662_v21, %v18028_v43  ;;  %v9196_v61 = vpop.f32.mrb[3].mxu1  ;;  %9624 = vmatprep.mubr.bf16.mxu0 %v18216_v4  ;;  %v18241_v27 = vld [vmem:[%s18507_s13 + $0x30] ss:$12 sps:$4 sm:$0xff]   ;;  %v20260_v49 = vld [vmem:[#allocation39_spill] sm:$0xff] }
 0xc8d   :  { %v18229_v63 = vadd.f32 %v9194_v18, %v17816_v59  ;;  %v9197_v3 = vadd.f32 %v18028_v43, %v9196_v61  ;;  %v18248_v59 = vld [vmem:[%s18507_s13 + $0x4c] ss:$12 sps:$4 sm:$0xff]   ;;  %v18312_v21 = vld [vmem:[%s18507_s13 + $0x7c] ss:$12 sps:$4 sm:$0xff]  }
 0xc8e   :  { %v18233_v38 = vadd.f32 %v9205_v28, %v17850_v16 }
 0xc8f   :  { %v18236_v36 = vadd.f32 %v9197_v3, %v20253_v30 }
 0xc90   :  { %v9413_v57 = vpack.c.bf16 %v18233_v38, %v18224_v19  ;;  %v11950_v19 = vld [vmem:[%s18507_s13 + $0x68] ss:$12 sps:$4 sm:$0xff]   ;;  %v11951_v38 = vld [vmem:[%s18507_s13 + $0x80] ss:$12 sps:$4 sm:$0xff]  }
 0xc91   :  { %v9412_v16 = vpack.c.bf16 %v18236_v36, %v18229_v63  ;;  %v10665_v22 = vpop.f32.mrb[4].mxu1  ;;  %v11952_v36 = vld [vmem:[%s18507_s13 + $0x98] ss:$0 sps:$4 sm:$0xff]  }
 0xc92   :  { %v9218_v32 = vadd.f32 %v10665_v22, %v18028_v43  ;;  %v9209_v5 = vpop.f32.mrb[5].mxu1 }
 0xc93   :  { %v9210_v20 = vadd.f32 %v18028_v43, %v9209_v5  ;;  %v10666_v10 = vpop.f32.mrb[6].mxu1  ;;  %9625 = vmatmul.mubr.bf16.gmra.mrb[224].mxu0 %v18241_v27  ;;  %v20261_v5 = vld [vmem:[#allocation113_spill] sm:$0xff] }
 0xc94   :  { %v18256_v48 = vadd.f32 %v9218_v32, %v20254_v55  ;;  %v9221_v44 = vadd.f32 %v10666_v10, %v18028_v43  ;;  %v9212_v33 = vpop.f32.mrb[7].mxu1  ;;  %9632 = vmatprep.mubr.bf16.mxu0 %v18248_v59 }
 0xc95   :  { %v18261_v11 = vadd.f32 %v9210_v20, %v20255_v39  ;;  %v9213_v54 = vadd.f32 %v18028_v43, %v9212_v33 }
 0xc96   :  { %v18265_v34 = vadd.f32 %v9221_v44, %v20256_v37  ;;  %v20262_v44 = vld [vmem:[#allocation87_spill] sm:$0xff] }
 0xc97   :  { %v18268_v29 = vadd.f32 %v9213_v54, %v20257_v14  ;;  %v9452_v54 = vld [vmem:[%s18507_s13 + $0x90] sm:$0xff]  ;;  %v20263_v37 = vld [vmem:[#allocation115_spill] sm:$0xff] }
 0xc98   :  { %v9415_v41 = vpack.c.bf16 %v18265_v34, %v18256_v48 }
 0xc99   :  { %v9414_v15 = vpack.c.bf16 %v18268_v29, %v18261_v11  ;;  %v10669_v47 = vpop.f32.mrb[8].mxu1 }
 0xc9a   :  { %v9234_v60 = vadd.f32 %v10669_v47, %v18028_v43  ;;  %v9225_v62 = vpop.f32.mrb[9].mxu1  ;;  %v20264_v47 = vld [vmem:[#allocation102_spill] sm:$0xff] }
 0xc9b   :  { %v9226_v50 = vadd.f32 %v18028_v43, %v9225_v62  ;;  %v10670_v25 = vpop.f32.mrb[10].mxu1  ;;  %9633 = vmatmul.mubr.bf16.gmra.mrb[228].mxu0 %v18273_v7  ;;  %v18332_v62 = vld [vmem:[%s18507_s13 + $0x78] ss:$12 sps:$4 sm:$0xff]  }
 0xc9c   :  { %v18288_v2 = vadd.f32 %v9234_v60, %v17936_v23  ;;  %v9237_v40 = vadd.f32 %v10670_v25, %v18028_v43  ;;  %v9228_v52 = vpop.f32.mrb[11].mxu1  ;;  %9640 = vmatprep.mubr.bf16.mxu0 %v18280_v12  ;;  %v18305_v23 = vld [vmem:[%s18507_s13 + $0x60] ss:$12 sps:$4 sm:$0xff]  }
 0xc9d   :  { %v18293_v0 = vadd.f32 %v9226_v50, %v20258_v56  ;;  %v9229_v45 = vadd.f32 %v18028_v43, %v9228_v52  ;;  %v18334_v50 = vcombine.high %v9452_v54, %v9452_v54 }
 0xc9e   :  { %v18297_v9 = vadd.f32 %v9237_v40, %v20259_v8 }
 0xc9f   :  { %v18300_v17 = vadd.f32 %v9229_v45, %v20260_v49 }
 0xca0   :  { %v9417_v18 = vpack.c.bf16 %v18297_v9, %v18288_v2 }
 0xca1   :  { %v9416_v28 = vpack.c.bf16 %v18300_v17, %v18293_v0  ;;  %v10673_v61 = vpop.f32.mrb[12].mxu1 }
 0xca2   :  { %v9250_v3 = vadd.f32 %v10673_v61, %v18028_v43  ;;  %v9241_v30 = vpop.f32.mrb[13].mxu1  ;;  %v20265_v61 = vld [vmem:[#allocation117_spill] sm:$0xff] }
 0xca3   :  { %v9242_v22 = vadd.f32 %v18028_v43, %v9241_v30  ;;  %v10674_v32 = vpop.f32.mrb[14].mxu1  ;;  %9641 = vmatmul.mubr.bf16.gmra.mrb[232].mxu0 %v18305_v23 }
 0xca4   :  { %v9374_v20 = vadd.f32 %v9250_v3, %v20261_v5  ;;  %v9253_v10 = vadd.f32 %v10674_v32, %v18028_v43  ;;  %v9244_v55 = vpop.f32.mrb[15].mxu1  ;;  %9648 = vmatprep.mubr.bf16.mxu0 %v18312_v21  ;;  %v20266_v32 = vld [vmem:[#allocation129_spill] sm:$0xff] }
 0xca5   :  { %v9372_v33 = vadd.f32 %v9242_v22, %v20262_v44  ;;  %v9245_v39 = vadd.f32 %v18028_v43, %v9244_v55  ;;  %v20268_v44 = vld [vmem:[#allocation121_spill] sm:$0xff] }
 0xca6   :  { %v9375_v14 = vadd.f32 %v9253_v10, %v20263_v37  ;;  %v20267_v10 = vld [vmem:[#allocation71_spill] sm:$0xff] }
 0xca7   :  { %v9373_v60 = vadd.f32 %v9245_v39, %v20264_v47  ;;  %v18348_v39 = vcombine.low %v9452_v54, %v9452_v54  ;;  %v20270_v54 = vld [vmem:[#allocation123_spill] sm:$0xff] }
 0xca8   :  { %v9419_v25 = vpack.c.bf16 %v9375_v14, %v9374_v20 }
 0xca9   :  { %v10677_v40 = vpop.f32.mrb[16].mxu1  ;;  %v9418_v52 = vpack.c.bf16 %v9373_v60, %v9372_v33 }
 0xcaa   :  { %v9266_v56 = vadd.f32 %v10677_v40, %v18028_v43  ;;  %v9257_v45 = vpop.f32.mrb[17].mxu1 }
 0xcab   :  { %v9258_v8 = vadd.f32 %v18028_v43, %v9257_v45  ;;  %v10678_v49 = vpop.f32.mrb[18].mxu1  ;;  %9649 = vmatmul.mubr.bf16.gmra.mrb[236].mxu0 %v18332_v62  ;;  %10360 = vmatprep.subr.bf16.mxu0 %v9418_v52  ;;  %v20269_v45 = vld [vmem:[#allocation91_spill] sm:$0xff] }
 0xcac   :  { %v18340_v3 = vadd.f32 %v9266_v56, %v20265_v61  ;;  %v9269_v30 = vadd.f32 %v10678_v49, %v18028_v43  ;;  %v9260_v22 = vpop.f32.mrb[19].mxu1  ;;  %9656 = vmatprep.mubr.bf16.mxu0 %v18334_v50 }
 0xcad   :  { %v9376_v5 = vadd.f32 %v9258_v8, %v20266_v32  ;;  %v9261_v20 = vadd.f32 %v18028_v43, %v9260_v22  ;;  %v20271_v22 = vld [vmem:[#allocation33_spill] sm:$0xff] }
 0xcae   :  { %v9379_v55 = vadd.f32 %v9269_v30, %v20267_v10  ;;  %v11946_v10 = vld [vmem:[%s18507_s13 + $0x8] ss:$12 sps:$4 sm:$0xff]  }
 0xcaf   :  { %v9377_v33 = vadd.f32 %v9261_v20, %v20268_v44 }
 0xcb0   :  { %v9421_v37 = vpack.c.bf16 %v9379_v55, %v18340_v3 }
 0xcb1   :  { %v10681_v14 = vpop.f32.mrb[20].mxu1  ;;  %v9420_v47 = vpack.c.bf16 %v9377_v33, %v9376_v5  ;;  %v20272_v5 = vld [vmem:[#allocation127_spill] sm:$0xff] }
 0xcb2   :  { %v9282_v60 = vadd.f32 %v10681_v14, %v18028_v43  ;;  %v9273_v40 = vpop.f32.mrb[21].mxu1 }
 0xcb3   :  { %v9274_v52 = vadd.f32 %v18028_v43, %v9273_v40  ;;  %v10682_v56 = vpop.f32.mrb[22].mxu1  ;;  %9657 = vmatmul.mubr.bf16.gmra.mrb[240].mxu0 %v18348_v39 }
 0xcb4   :  { %v9382_v8 = vadd.f32 %v9282_v60, %v20269_v45  ;;  %v9285_v49 = vadd.f32 %v10682_v56, %v18028_v43  ;;  %v9276_v61 = vpop.f32.mrb[23].mxu1  ;;  %10695 = vmatprep.mubr.msk.bf16.mxu0 %vm12084_vm10, %v20244_v1  ;;  %v20273_v56 = vld [vmem:[#allocation34_spill] sm:$0xff] }
 0xcb5   :  { %v9380_v3 = vadd.f32 %v9274_v52, %v20270_v54  ;;  %v9277_v30 = vadd.f32 %v18028_v43, %v9276_v61 }
 0xcb6   :  { %v9383_v32 = vadd.f32 %v9285_v49, %v20271_v22  ;;  %v20275_v22 = vld [vmem:[#allocation69_spill] sm:$0xff] }
 0xcb7   :  { %v9381_v20 = vadd.f32 %v9277_v30, %v20272_v5  ;;  %v11947_v5 = vld [vmem:[%s18507_s13 + $0x20] ss:$12 sps:$4 sm:$0xff]  }
 0xcb8   :  { %v9423_v55 = vpack.c.bf16 %v9383_v32, %v9382_v8  ;;  %v20274_v8 = vld [vmem:[#allocation128_spill] sm:$0xff] }
 0xcb9   :  { %v10685_v44 = vpop.f32.mrb[24].mxu1  ;;  %v9422_v33 = vpack.c.bf16 %v9381_v20, %v9380_v3 }
 0xcba   :  { %v9298_v14 = vadd.f32 %v10685_v44, %v18028_v43  ;;  %v9289_v60 = vpop.f32.mrb[25].mxu1 }
 0xcbb   :  { %v9290_v40 = vadd.f32 %v18028_v43, %v9289_v60  ;;  %v10686_v52 = vpop.f32.mrb[26].mxu1  ;;  %10696 = vmatmul.mubr.msk.bf16.vlgmr.msra.gmra.mrb[244].mxu0 %vm9554_vm11, %v11946_v10 }
 0xcbc   :  { %v9386_v45 = vadd.f32 %v9298_v14, %v20273_v56  ;;  %v9301_v49 = vadd.f32 %v10686_v52, %v18028_v43  ;;  %10361 = vmatpush3.bf16.msra.mxu0 %v9410_v6  ;;  %v9292_v61 = vpop.f32.mrb[27].mxu1  ;;  %10699 = vmatprep.mubr.msk.bf16.mxu0 %vm12084_vm10, %v20244_v1  ;;  %v20278_v56 = vld [vmem:[#allocation67_spill] sm:$0xff] }
 0xcbd   :  { %v9384_v54 = vadd.f32 %v9290_v40, %v20274_v8  ;;  %v9293_v3 = vadd.f32 %v18028_v43, %v9292_v61  ;;  %10362 = vmatprep.subr.bf16.mxu0 %v9419_v25  ;;  %v20277_v40 = vld [vmem:[#allocation8_spill] sm:$0xff] }
 0xcbe   :  { %v9387_v30 = vadd.f32 %v9301_v49, %v18011_v58 }
 0xcbf   :  { %v9385_v32 = vadd.f32 %v9293_v3, %v20275_v22 }
 0xcc0   :  { %10363 = vmatpush3.bf16.msra.mxu0 %v9411_v46  ;;  %v9425_v13 = vpack.c.bf16 %v9387_v30, %v9386_v45 }
 0xcc1   :  { %10364 = vmatprep.subr.bf16.mxu0 %v9420_v47  ;;  %v10689_v53 = vpop.f32.mrb[28].mxu1  ;;  %v9424_v6 = vpack.c.bf16 %v9385_v32, %v9384_v54 }
 0xcc2   :  { %v9314_v20 = vadd.f32 %v10689_v53, %v18028_v43  ;;  %v9305_v44 = vpop.f32.mrb[29].mxu1 }
 0xcc3   :  { %v9306_v25 = vadd.f32 %v18028_v43, %v9305_v44  ;;  %v10690_v58 = vpop.f32.mrb[30].mxu1  ;;  %10700 = vmatmul.mubr.msk.bf16.gmra.mrb[248].mxu0 %vm9554_vm11, %v11947_v5 }
 0xcc4   :  { %v9390_v14 = vadd.f32 %v9314_v20, %v18020_v42  ;;  %v9317_v60 = vadd.f32 %v10690_v58, %v18028_v43  ;;  %10365 = vmatpush3.bf16.msra.mxu0 %v9412_v16  ;;  %v9308_v26 = vpop.f32.mrb[31].mxu1  ;;  %10703 = vmatprep.mubr.msk.bf16.mxu0 %vm12084_vm10, %v20244_v1  ;;  %v11948_v42 = vld [vmem:[%s18507_s13 + $0x38] ss:$12 sps:$4 sm:$0xff]  }
 0xcc5   :  { %v9388_v46 = vadd.f32 %v9306_v25, %v20276_v51  ;;  %v9309_v47 = vadd.f32 %v18028_v43, %v9308_v26  ;;  %10366 = vmatprep.subr.bf16.mxu0 %v9421_v37  ;;  %v11949_v43 = vld [vmem:[%s18507_s13 + $0x50] ss:$12 sps:$4 sm:$0xff]   ;;  %s12085_s13 = smov [#allocation5]  }
 0xcc6   :  { %v9391_v52 = vadd.f32 %v9317_v60, %v20277_v40  ;;  %s9959_s4 = sshll.u32 %s12085_s13, 4  ;;  %s9960_s4 = int_to_ptr.vmem [resolvable:$true] %s9959_s4 }
 0xcc7   :  { %v9389_v45 = vadd.f32 %v9309_v47, %v20278_v56  ;;  %s12053_s28 = scalar_lea.vmem %s9960_s4, 3328  ;;  %p12058_p9 = scmp.lt.s32.totalorder %s9960_s4, %s9960_s4 }
 0xcc8   :  { %v9427_v49 = vpack.c.bf16 %v9391_v52, %v9390_v14  ;;  %10367 = vmatpush3.bf16.msra.mxu0 %v9413_v57  ;;  %v20279_v57 = vld [vmem:[#allocation9_spill] sm:$0xff]  ;;  %p12054_p8 = scmp.ne.s32.totalorder %s9960_s4, %s12053_s28  ;;  %p12059_p10 = scmp.lt.s32.totalorder %s12053_s28, %s12053_s28 }
 0xcc9   :  { %v9426_v63 = vpack.c.bf16 %v9389_v45, %v9388_v46  ;;  %10368 = vmatprep.subr.bf16.mxu0 %v9422_v33 }
 0xcca   :  { %p12060_p11 = por %p12059_p10, %p12058_p9 }
 0xccb   :  { %10724 = vmatpush3.bf16.msra.mxu1 %v9426_v63  ;;  %10704 = vmatmul.mubr.msk.bf16.gmra.mrb[252].mxu0 %vm9554_vm11, %v11948_v42 }
 0xccc   :  { %10369 = vmatpush3.bf16.msra.mxu0 %v9414_v15  ;;  %10725 = vmatprep.subr.bf16.mxu1 %v20244_v1  ;;  %p12061_p12 = pnand %p12060_p11, %p12054_p8 }
 0xccd   :  { %10370 = vmatprep.subr.bf16.mxu0 %v9423_v55  ;;  %10707 = vmatprep.mubr.msk.bf16.mxu0 %vm12084_vm10, %v20244_v1 }
 0xccf   :  { %10726 = vmatpush3.bf16.msra.mxu1 %v9427_v49 }
 0xcd0   :  { %10371 = vmatpush3.bf16.msra.mxu0 %v9415_v41 }
 0xcd1   :  { %10372 = vmatprep.subr.bf16.mxu0 %v9424_v6 }
 0xcd2   :  { %10728 = vmatmul.mubr.msk.bf16.vlgmr.msra.gmra.mrb[32].mxu1 %vm9554_vm11, %v11946_v10 }
 0xcd3   :  { %10708 = vmatmul.mubr.msk.bf16.gmra.mrb[0].mxu0 %vm9554_vm11, %v11949_v43  ;;  %10731 = vmatprep.mubr.msk.bf16.mxu1 %vm12084_vm10, %v20244_v1 }
 0xcd4   :  { %10373 = vmatpush3.bf16.msra.mxu0 %v9416_v28  ;;  %10711 = vmatprep.mubr.msk.bf16.mxu0 %vm12084_vm10, %v20244_v1 }
 0xcd5   :  { %10374 = vmatprep.subr.bf16.mxu0 %v9425_v13 }
 0xcd8   :  { %10375 = vmatpush3.bf16.msra.mxu0 %v9417_v18 }
 0xcda   :  { %10732 = vmatmul.mubr.msk.bf16.gmra.mrb[36].mxu1 %vm9554_vm11, %v11947_v5 }
 0xcdb   :  { %10712 = vmatmul.mubr.msk.bf16.gmra.mrb[4].mxu0 %vm9554_vm11, %v11950_v19  ;;  %10735 = vmatprep.mubr.msk.bf16.mxu1 %vm12084_vm10, %v20244_v1 }
 0xcdc   :  { %10715 = vmatprep.mubr.msk.bf16.mxu0 %vm12084_vm10, %v20244_v1 }
 0xce2   :  { %10736 = vmatmul.mubr.msk.bf16.gmra.mrb[40].mxu1 %vm9554_vm11, %v11948_v42 }
 0xce3   :  { %10716 = vmatmul.mubr.msk.bf16.gmra.mrb[8].mxu0 %vm9554_vm11, %v11951_v38  ;;  %10739 = vmatprep.mubr.msk.bf16.mxu1 %vm12084_vm10, %v20244_v1 }
 0xce4   :  { %10719 = vmatprep.mubr.msk.bf16.mxu0 %vm12084_vm10, %v20244_v1 }
 0xcea   :  { %10740 = vmatmul.mubr.msk.bf16.gmra.mrb[44].mxu1 %vm9554_vm11, %v11949_v43 }
 0xceb   :  { %10720 = vmatmul.mubr.msk.bf16.gmra.mrb[12].mxu0 %vm9554_vm11, %v11952_v36  ;;  %10743 = vmatprep.mubr.msk.bf16.mxu1 %vm12084_vm10, %v20244_v1 }
 0xcec   :  { %9784 = vmatprep.mubr.bf16.mxu0 %v20279_v57 }
 0xcf2   :  { %10744 = vmatmul.mubr.msk.bf16.gmra.mrb[48].mxu1 %vm9554_vm11, %v11950_v19 }
 0xcf3   :  { %9785 = vmatmul.mubr.bf16.vlgmr.msra.gmra.mrb[16].mxu0 %v18176_v35  ;;  %10747 = vmatprep.mubr.msk.bf16.mxu1 %vm12084_vm10, %v20244_v1 }
 0xcf4   :  { %9792 = vmatprep.mubr.bf16.mxu0 %v18184_v24 }
 0xcfa   :  { %10748 = vmatmul.mubr.msk.bf16.gmra.mrb[52].mxu1 %vm9554_vm11, %v11951_v38 }
 0xcfb   :  { %9793 = vmatmul.mubr.bf16.gmra.mrb[20].mxu0 %v18209_v31  ;;  %10751 = vmatprep.mubr.msk.bf16.mxu1 %vm12084_vm10, %v20244_v1 }
 0xcfc   :  { %9800 = vmatprep.mubr.bf16.mxu0 %v18216_v4 }
 0xd02   :  { %10752 = vmatmul.mubr.msk.bf16.gmra.mrb[56].mxu1 %vm9554_vm11, %v11952_v36 }
 0xd03   :  { %9801 = vmatmul.mubr.bf16.gmra.mrb[24].mxu0 %v18241_v27 }
 0xd04   :  { %9808 = vmatprep.mubr.bf16.mxu0 %v18248_v59 }
 0xd0b   :  { %9809 = vmatmul.mubr.bf16.gmra.mrb[28].mxu0 %v18273_v7 }
 0xd0c   :  { %9816 = vmatprep.mubr.bf16.mxu0 %v18280_v12 }
 0xd13   :  { %9817 = vmatmul.mubr.bf16.gmra.mrb[32].mxu0 %v18305_v23 }
 0xd14   :  { %9824 = vmatprep.mubr.bf16.mxu0 %v18312_v21 }
 0xd1b   :  { %9825 = vmatmul.mubr.bf16.gmra.mrb[36].mxu0 %v18332_v62 }
 0xd1c   :  { %9832 = vmatprep.mubr.bf16.mxu0 %v18334_v50 }
 0xd23   :  { %9833 = vmatmul.mubr.bf16.gmra.mrb[40].mxu0 %v18348_v39 }
 0xd56   :  { %v10309_v1 = vpop.f32.mrb[216].mxu0 }
 0xd57   :  { %v10310_v35 = vpop.f32.mrb[217].mxu0 }
 0xd58   :  { %v10311_v24 = vadd.f32 %v10310_v35, %v10309_v1  ;;  %v10312_v31 = vpop.f32.mrb[218].mxu0 }
 0xd59   :  { %v10313_v4 = vpop.f32.mrb[219].mxu0 }
 0xd5a   :  { %v10314_v27 = vadd.f32 %v10313_v4, %v10312_v31 }
 0xd5e   :  { %v10315_v59 = vpop.f32.mrb[220].mxu0 }
 0xd5f   :  { %v10316_v16 = vpop.f32.mrb[221].mxu0 }
 0xd60   :  { %v10317_v48 = vadd.f32 %v10316_v16, %v10315_v59  ;;  %v10318_v11 = vpop.f32.mrb[222].mxu0 }
 0xd61   :  { %v10319_v34 = vpop.f32.mrb[223].mxu0 }
 0xd62   :  { %v10320_v29 = vadd.f32 %v10319_v34, %v10318_v11 }
 0xd66   :  { %v10321_v7 = vpop.f32.mrb[224].mxu0 }
 0xd67   :  { %v10322_v41 = vpop.f32.mrb[225].mxu0 }
 0xd68   :  { %v10323_v12 = vadd.f32 %v10322_v41, %v10321_v7  ;;  %v10324_v15 = vpop.f32.mrb[226].mxu0 }
 0xd69   :  { %v10325_v2 = vpop.f32.mrb[227].mxu0 }
 0xd6a   :  { %v10326_v0 = vadd.f32 %v10325_v2, %v10324_v15 }
 0xd6e   :  { %v10327_v9 = vpop.f32.mrb[228].mxu0 }
 0xd6f   :  { %v10328_v17 = vpop.f32.mrb[229].mxu0 }
 0xd70   :  { %v10329_v23 = vadd.f32 %v10328_v17, %v10327_v9  ;;  %v10330_v18 = vpop.f32.mrb[230].mxu0 }
 0xd71   :  { %v10331_v21 = vpop.f32.mrb[231].mxu0 }
 0xd72   :  { %v10332_v28 = vadd.f32 %v10331_v21, %v10330_v18 }
 0xd76   :  { %v10333_v62 = vpop.f32.mrb[232].mxu0 }
 0xd77   :  { %v10334_v50 = vpop.f32.mrb[233].mxu0 }
 0xd78   :  { %v10335_v39 = vadd.f32 %v10334_v50, %v10333_v62  ;;  %v10336_v37 = vpop.f32.mrb[234].mxu0 }
 0xd79   :  { %v10337_v10 = vpop.f32.mrb[235].mxu0 }
 0xd7a   :  { %v10338_v55 = vadd.f32 %v10337_v10, %v10336_v37 }
 0xd7e   :  { %v10339_v33 = vpop.f32.mrb[236].mxu0 }
 0xd7f   :  { %v10340_v61 = vpop.f32.mrb[237].mxu0 }
 0xd80   :  { %v10341_v8 = vadd.f32 %v10340_v61, %v10339_v33  ;;  %v10342_v54 = vpop.f32.mrb[238].mxu0 }
 0xd81   :  { %v10343_v3 = vpop.f32.mrb[239].mxu0 }
 0xd82   :  { %v18476_v30 = vadd.f32 %v10343_v3, %v10342_v54 }
 0xd86   :  { %v10345_v22 = vpop.f32.mrb[240].mxu0 }
 0xd87   :  { %v10346_v32 = vpop.f32.mrb[241].mxu0 }
 0xd88   :  { %v18478_v5 = vadd.f32 %v10346_v32, %v10345_v22  ;;  %v10348_v13 = vpop.f32.mrb[242].mxu0 }
 0xd89   :  { %v10349_v53 = vpop.f32.mrb[243].mxu0 }
 0xd8e   :  { %v9698_v6 = vpop.f32.mrb[244].mxu0 }
 0xd8f   :  { %v9699_v20 = vadd.f32 %v10311_v24, %v9698_v6  ;;  %v10697_v44 = vpop.f32.mrb[245].mxu0 }
 0xd90   :  { %v9701_v25 = vpop.f32.mrb[246].mxu0 }
 0xd91   :  { %9928 = vst [vmem:[#allocation5] sm:$0xff] %v9699_v20  ;;  %v9702_v58 = vadd.f32 %v10314_v27, %v9701_v25  ;;  %v10698_v14 = vpop.f32.mrb[247].mxu0 }
 0xd93   :  { %9929 = vst [vmem:[#allocation5 + $0x8] sm:$0xff] %v9702_v58 }
 0xd96   :  { %v9706_v60 = vpop.f32.mrb[248].mxu0 }
 0xd97   :  { %v9707_v26 = vadd.f32 %v10317_v48, %v9706_v60  ;;  %v10701_v51 = vpop.f32.mrb[249].mxu0 }
 0xd98   :  { %v9709_v46 = vpop.f32.mrb[250].mxu0 }
 0xd99   :  { %9930 = vst [vmem:[#allocation5 + $0x10] sm:$0xff] %v9707_v26  ;;  %v9710_v47 = vadd.f32 %v10320_v29, %v9709_v46  ;;  %v10702_v40 = vpop.f32.mrb[251].mxu0 }
 0xd9b   :  { %9931 = vst [vmem:[#allocation5 + $0x18] sm:$0xff] %v9710_v47 }
 0xd9e   :  { %v9714_v52 = vpop.f32.mrb[252].mxu0 }
 0xd9f   :  { %v9715_v56 = vadd.f32 %v10323_v12, %v9714_v52  ;;  %v10705_v45 = vpop.f32.mrb[253].mxu0 }
 0xda0   :  { %v9717_v42 = vpop.f32.mrb[254].mxu0 }
 0xda1   :  { %9932 = vst [vmem:[#allocation5 + $0x20] sm:$0xff] %v9715_v56  ;;  %v9718_v49 = vadd.f32 %v10326_v0, %v9717_v42  ;;  %v10706_v63 = vpop.f32.mrb[255].mxu0 }
 0xda3   :  { %9933 = vst [vmem:[#allocation5 + $0x28] sm:$0xff] %v9718_v49 }
 0xda5   :  { %v9874_v43 = vpop.f32.mrb[32].mxu1 }
 0xda6   :  { %v9722_v19 = vpop.f32.mrb[0].mxu0  ;;  %v10729_v38 = vpop.f32.mrb[33].mxu1 }
 0xda7   :  { %v9723_v36 = vadd.f32 %v10329_v23, %v9722_v19  ;;  %v10709_v57 = vpop.f32.mrb[1].mxu0  ;;  %v9877_v1 = vpop.f32.mrb[34].mxu1 }
 0xda8   :  { %v9725_v35 = vpop.f32.mrb[2].mxu0  ;;  %v10730_v24 = vpop.f32.mrb[35].mxu1 }
 0xda9   :  { %9934 = vst [vmem:[#allocation5 + $0x30] sm:$0xff] %v9723_v36  ;;  %v9726_v31 = vadd.f32 %v10332_v28, %v9725_v35  ;;  %v10710_v4 = vpop.f32.mrb[3].mxu0 }
 0xdab   :  { %9935 = vst [vmem:[#allocation5 + $0x38] sm:$0xff] %v9726_v31 }
 0xdad   :  { %v9882_v27 = vpop.f32.mrb[36].mxu1 }
 0xdae   :  { %v9730_v59 = vpop.f32.mrb[4].mxu0  ;;  %v10733_v16 = vpop.f32.mrb[37].mxu1 }
 0xdaf   :  { %v9731_v48 = vadd.f32 %v10335_v39, %v9730_v59  ;;  %v10713_v11 = vpop.f32.mrb[5].mxu0  ;;  %v9885_v34 = vpop.f32.mrb[38].mxu1 }
 0xdb0   :  { %v9733_v29 = vpop.f32.mrb[6].mxu0  ;;  %v10734_v7 = vpop.f32.mrb[39].mxu1 }
 0xdb1   :  { %9936 = vst [vmem:[#allocation5 + $0x40] sm:$0xff] %v9731_v48  ;;  %v9734_v41 = vadd.f32 %v10338_v55, %v9733_v29  ;;  %v10714_v12 = vpop.f32.mrb[7].mxu0 }
 0xdb3   :  { %9937 = vst [vmem:[#allocation5 + $0x48] sm:$0xff] %v9734_v41 }
 0xdb5   :  { %v9890_v15 = vpop.f32.mrb[40].mxu1 }
 0xdb6   :  { %v9738_v2 = vpop.f32.mrb[8].mxu0  ;;  %v10737_v0 = vpop.f32.mrb[41].mxu1 }
 0xdb7   :  { %v9739_v9 = vadd.f32 %v10341_v8, %v9738_v2  ;;  %v10717_v17 = vpop.f32.mrb[9].mxu0  ;;  %v9893_v23 = vpop.f32.mrb[42].mxu1 }
 0xdb8   :  { %v9741_v18 = vpop.f32.mrb[10].mxu0  ;;  %v10738_v21 = vpop.f32.mrb[43].mxu1 }
 0xdb9   :  { %9938 = vst [vmem:[#allocation5 + $0x50] sm:$0xff] %v9739_v9  ;;  %v9742_v28 = vadd.f32 %v18476_v30, %v9741_v18  ;;  %v10718_v62 = vpop.f32.mrb[11].mxu0 }
 0xdbb   :  { %9939 = vst [vmem:[#allocation5 + $0x58] sm:$0xff] %v9742_v28 }
 0xdbd   :  { %v9898_v50 = vpop.f32.mrb[44].mxu1 }
 0xdbe   :  { %v9746_v39 = vpop.f32.mrb[12].mxu0  ;;  %v10741_v37 = vpop.f32.mrb[45].mxu1 }
 0xdbf   :  { %v9747_v10 = vadd.f32 %v18478_v5, %v9746_v39  ;;  %v10721_v55 = vpop.f32.mrb[13].mxu0  ;;  %v9901_v33 = vpop.f32.mrb[46].mxu1 }
 0xdc0   :  { %v9749_v61 = vpop.f32.mrb[14].mxu0  ;;  %v10742_v54 = vpop.f32.mrb[47].mxu1 }
 0xdc1   :  { %9940 = vst [vmem:[#allocation5 + $0x60] sm:$0xff] %v9747_v10  ;;  %v10722_v8 = vpop.f32.mrb[15].mxu0 }
 0xdc5   :  { %v9906_v3 = vpop.f32.mrb[48].mxu1 }
 0xdc6   :  { %v10376_v22 = vpop.f32.mrb[16].mxu0  ;;  %v10745_v32 = vpop.f32.mrb[49].mxu1 }
 0xdc7   :  { %v10377_v13 = vpop.f32.mrb[17].mxu0  ;;  %v9909_v53 = vpop.f32.mrb[50].mxu1 }
 0xdc8   :  { %v10378_v6 = vadd.f32 %v10377_v13, %v10376_v22  ;;  %v10379_v30 = vpop.f32.mrb[18].mxu0  ;;  %v10746_v20 = vpop.f32.mrb[51].mxu1 }
 0xdc9   :  { %v10380_v44 = vpop.f32.mrb[19].mxu0 }
 0xdca   :  { %v10381_v25 = vadd.f32 %v10380_v44, %v10379_v30  ;;  %v9875_v58 = vadd.f32 %v10378_v6, %v9874_v43 }
 0xdcc   :  { %9941 = vst [vmem:[#allocation5 + $0x68] sm:$0xff] %v9875_v58  ;;  %v9878_v14 = vadd.f32 %v10381_v25, %v9877_v1 }
 0xdcd   :  { %v9914_v5 = vpop.f32.mrb[52].mxu1 }
 0xdce   :  { %9942 = vst [vmem:[#allocation5 + $0x70] sm:$0xff] %v9878_v14  ;;  %v10382_v60 = vpop.f32.mrb[20].mxu0  ;;  %v10749_v26 = vpop.f32.mrb[53].mxu1 }
 0xdcf   :  { %v10383_v51 = vpop.f32.mrb[21].mxu0  ;;  %v9917_v46 = vpop.f32.mrb[54].mxu1 }
 0xdd0   :  { %v10384_v47 = vadd.f32 %v10383_v51, %v10382_v60  ;;  %v10385_v40 = vpop.f32.mrb[22].mxu0  ;;  %v10750_v52 = vpop.f32.mrb[55].mxu1 }
 0xdd1   :  { %v10386_v56 = vpop.f32.mrb[23].mxu0 }
 0xdd2   :  { %v10387_v45 = vadd.f32 %v10386_v56, %v10385_v40  ;;  %v9883_v42 = vadd.f32 %v10384_v47, %v9882_v27 }
 0xdd4   :  { %9943 = vst [vmem:[#allocation5 + $0x78] sm:$0xff] %v9883_v42  ;;  %v9886_v49 = vadd.f32 %v10387_v45, %v9885_v34 }
 0xdd5   :  { %v9922_v63 = vpop.f32.mrb[56].mxu1 }
 0xdd6   :  { %9944 = vst [vmem:[#allocation5 + $0x80] sm:$0xff] %v9886_v49  ;;  %v10388_v19 = vpop.f32.mrb[24].mxu0  ;;  %v10753_v43 = vpop.f32.mrb[57].mxu1 }
 0xdd7   :  { %v10389_v38 = vpop.f32.mrb[25].mxu0  ;;  %v9925_v36 = vpop.f32.mrb[58].mxu1 }
 0xdd8   :  { %v10390_v57 = vadd.f32 %v10389_v38, %v10388_v19  ;;  %v10391_v1 = vpop.f32.mrb[26].mxu0  ;;  %v10754_v35 = vpop.f32.mrb[59].mxu1 }
 0xdd9   :  { %v10392_v24 = vpop.f32.mrb[27].mxu0 }
 0xdda   :  { %v10393_v31 = vadd.f32 %v10392_v24, %v10391_v1  ;;  %v9891_v4 = vadd.f32 %v10390_v57, %v9890_v15 }
 0xddc   :  { %9945 = vst [vmem:[#allocation5 + $0x88] sm:$0xff] %v9891_v4  ;;  %v9894_v59 = vadd.f32 %v10393_v31, %v9893_v23 }
 0xdde   :  { %9946 = vst [vmem:[#allocation5 + $0x90] sm:$0xff] %v9894_v59  ;;  %v10394_v16 = vpop.f32.mrb[28].mxu0 }
 0xddf   :  { %v10395_v48 = vpop.f32.mrb[29].mxu0 }
 0xde0   :  { %v10396_v27 = vadd.f32 %v10395_v48, %v10394_v16  ;;  %v10397_v11 = vpop.f32.mrb[30].mxu0 }
 0xde1   :  { %v10398_v34 = vpop.f32.mrb[31].mxu0 }
 0xde2   :  { %v10399_v29 = vadd.f32 %v10398_v34, %v10397_v11  ;;  %v9899_v7 = vadd.f32 %v10396_v27, %v9898_v50 }
 0xde4   :  { %9947 = vst [vmem:[#allocation5 + $0x98] sm:$0xff] %v9899_v7  ;;  %v9902_v41 = vadd.f32 %v10399_v29, %v9901_v33 }
 0xde6   :  { %9948 = vst [vmem:[#allocation5 + $0xa0] sm:$0xff] %v9902_v41  ;;  %v10400_v12 = vpop.f32.mrb[32].mxu0 }
 0xde7   :  { %v10401_v2 = vpop.f32.mrb[33].mxu0 }
 0xde8   :  { %v10402_v0 = vadd.f32 %v10401_v2, %v10400_v12  ;;  %v10403_v9 = vpop.f32.mrb[34].mxu0 }
 0xde9   :  { %v10404_v17 = vpop.f32.mrb[35].mxu0 }
 0xdea   :  { %v10405_v18 = vadd.f32 %v10404_v17, %v10403_v9  ;;  %v9907_v15 = vadd.f32 %v10402_v0, %v9906_v3 }
 0xdec   :  { %9949 = vst [vmem:[#allocation5 + $0xa8] sm:$0xff] %v9907_v15  ;;  %v9910_v23 = vadd.f32 %v10405_v18, %v9909_v53 }
 0xdee   :  { %9950 = vst [vmem:[#allocation5 + $0xb0] sm:$0xff] %v9910_v23  ;;  %v10406_v21 = vpop.f32.mrb[36].mxu0 }
 0xdef   :  { %v10407_v28 = vpop.f32.mrb[37].mxu0 }
 0xdf0   :  { %v10408_v62 = vadd.f32 %v10407_v28, %v10406_v21  ;;  %v10409_v39 = vpop.f32.mrb[38].mxu0 }
 0xdf1   :  { %v10410_v37 = vpop.f32.mrb[39].mxu0 }
 0xdf2   :  { %v10411_v10 = vadd.f32 %v10410_v37, %v10409_v39  ;;  %v9915_v50 = vadd.f32 %v10408_v62, %v9914_v5 }
 0xdf4   :  { %9951 = vst [vmem:[#allocation5 + $0xb8] sm:$0xff] %v9915_v50  ;;  %v9918_v55 = vadd.f32 %v10411_v10, %v9917_v46 }
 0xdf6   :  { %9952 = vst [vmem:[#allocation5 + $0xc0] sm:$0xff] %v9918_v55  ;;  %v10412_v33 = vpop.f32.mrb[40].mxu0 }
 0xdf7   :  { %v10413_v61 = vpop.f32.mrb[41].mxu0 }
 0xdf8   :  { %v10414_v54 = vadd.f32 %v10413_v61, %v10412_v33  ;;  %v10415_v8 = vpop.f32.mrb[42].mxu0 }
 0xdf9   :  { %v10416_v3 = vpop.f32.mrb[43].mxu0 }
 0xdfa   :  { %v9923_v22 = vadd.f32 %v10414_v54, %v9922_v63 }
 0xdfc   :  { %9953 = vst [vmem:[#allocation5 + $0xc8] sm:$0xff] %v9923_v22 }
 0xdfd   :  { %12064 = shalt.err (!%p12061_p12)
}
 0xdfe   :  { %s12065_s5 = scalar_lea.hbm %s18508_s14, 3328 }
 0xdff   :  { %p12066_p13 = scmp.ne.s32.totalorder %s18508_s14, %s12065_s5  ;;  %p12069_p0 = scmp.lt.u32.totalorder %s12065_s5, %s18508_s14 }
 0xe01   :  { %p12071_p1 = pnand %p12069_p0, %p12066_p13 }
 0xe03   :  { %12074 = shalt.err (!%p12071_p1)
}
 0xe04   :  { %s12086_s16 = smov 128   ;;  %s12087_s2 = smov 8  }
 0xe05   :  { %9965 = dma.vmem_to_hbm [thread:$0]  %s9960_s4, 3328, %s18508_s14, [#allocation4], %s12086_s16, %s12086_s16, %s12087_s2  }
 0xe06   :  { %12077 = dma.done.wait [#allocation4], 3328  }
 0xe07   :  { %12078 = vsyncadd [#allocation4], 4294963968 }
 0xe08   :  { %9969 = vsyncpa [#allocation3], 1 }
 0xe09   :  { %9970 = vsyncpa [#allocation4], 1 }

</bundles_post_ra>
